<compile_context>
chip_gen: v5e
topology: v5e:2x2
jax: 0.10.0
libtpu: 0.0.40
codegen_flags: <defaults>
</compile_context>

<pallas_src>
import functools

import jax
import jax.numpy as jnp
from jax.experimental import pallas as pl
from jax.experimental.pallas import tpu as pltpu

H1 = 51      # lstm1 hidden size (PyTorch)
H2 = 1       # lstm2 hidden size
HP = 128     # lane-padded lstm1 hidden (one vreg per gate slice)
G4 = 4 * HP  # stacked gate width, gate order [i, f, o, g]


def _sequence_kernel(*refs, seq_len, future, fold_k256):
    if fold_k256:
        # rhs1: (2*HP, G4) = vstack(whh1t, wih1_row, b1_row, zeros)
        x_ref, rhs1_ref, wih2t_ref, whh2_ref, b2_ref, out_ref = refs
    else:
        # rhs1: (HP, G4) = whh1t; input proj / bias handled on the VPU.
        (x_ref, rhs1_ref, wih1_ref, b1_ref,
         wih2t_ref, whh2_ref, b2_ref, out_ref) = refs

    Bp = x_ref.shape[0]
    Wp = out_ref.shape[1]
    total = seq_len + future

    x = x_ref[...]
    rhs1 = rhs1_ref[...]
    wih2t = wih2t_ref[...]
    # Hoist broadcasts once (JAX does not CSE broadcast_in_dim).
    whh2 = jnp.broadcast_to(whh2_ref[...], (Bp, 4))
    b2 = jnp.broadcast_to(b2_ref[...], (Bp, 4))

    if fold_k256:
        lane_hp = jax.lax.broadcasted_iota(jnp.int32, (Bp, HP), 1)
        ones_lane = jnp.where(lane_hp == 1, 1.0, 0.0).astype(jnp.float32)
    else:
        wih1 = jnp.broadcast_to(wih1_ref[...], (Bp, G4))
        b1 = jnp.broadcast_to(b1_ref[...], (Bp, G4))   # bias folded into gx

    def step(x_t, h1, c1, h2, c2):
        # ---- lstm1: one fused recurrent matmul --------------------------
        if fold_k256:
            # K=256 fold: x_t at lane 128, constant 1 at lane 129 -> the MXU
            # produces whh1t@h1 + x_t*wih1 + b1 in a single 256-deep pass.
            aux = jnp.where(lane_hp == 0, x_t, ones_lane)
            lhs = jnp.concatenate([h1, aux], axis=-1)          # (Bp, 2*HP)
            z1 = jnp.dot(lhs, rhs1, preferred_element_type=jnp.float32)
        else:
            # gx has no dependence on the h/c chain (main loop) and the bias
            # is pre-folded, so only ONE add sits on the recurrence.
            gx = x_t * wih1 + b1
            z1 = gx + jnp.dot(h1, rhs1, preferred_element_type=jnp.float32)

        s1 = jax.nn.sigmoid(z1)              # single EUP pass over 4*HP lanes
        i1 = s1[:, 0 * HP:1 * HP]
        f1 = s1[:, 1 * HP:2 * HP]
        o1 = s1[:, 2 * HP:3 * HP]
        g1 = 2.0 * s1[:, 3 * HP:4 * HP] - 1.0   # tanh via pre-scaled weights
        c1n = f1 * c1 + i1 * g1
        h1n = o1 * jnp.tanh(c1n)

        # ---- lstm2: one small matmul replaces 4 cross-lane reductions ---
        z2 = (jnp.dot(c1n, wih2t, preferred_element_type=jnp.float32)
              + h2 * whh2 + b2)                                 # (Bp, 4)
        s2 = jax.nn.sigmoid(z2)              # single EUP pass over 4 lanes
        i2 = s2[:, 0:1]
        f2 = s2[:, 1:2]
        o2 = s2[:, 2:3]
        g2 = 2.0 * s2[:, 3:4] - 1.0
        c2n = f2 * c2 + i2 * g2
        h2n = o2 * jnp.tanh(c2n)
        return h1n, c1n, h2n, c2n

    h1 = jnp.zeros((Bp, HP), jnp.float32)
    c1 = jnp.zeros((Bp, HP), jnp.float32)
    h2 = jnp.zeros((Bp, 1), jnp.float32)
    c2 = jnp.zeros((Bp, 1), jnp.float32)

    # Accumulate outputs in one lane-dense vreg; single unmasked store at end
    # (replaces 12 dependent vst.msk partial stores).
    lane_out = jax.lax.broadcasted_iota(jnp.int32, (Bp, Wp), 1)
    out_acc = jnp.zeros((Bp, Wp), jnp.float32)

    # Fully unrolled: seq_len / future are tiny compile-time constants, so the
    # LLO scheduler sees the whole recurrence and overlaps MXU/EUP/VPU work.
    for t in range(total):
        x_t = x[:, t:t + 1] if t < seq_len else c2   # future: feed c_t2 back
        h1, c1, h2, c2 = step(x_t, h1, c1, h2, c2)
        out_acc = jnp.where(lane_out == t, c2, out_acc)

    out_ref[...] = out_acc


_GATE_PERM = (0, 1, 3, 2)       # PyTorch order i,f,g,o -> stacked order i,f,o,g
_GATE_SCALE = (1.0, 1.0, 1.0, 2.0)   # g gate pre-scaled: tanh(x)=2*sigmoid(2x)-1


def _reorder_gates(a):
    a = jnp.asarray(a, jnp.float32)
    return jnp.stack([a[g] for g in _GATE_PERM])


def _scale_g(a):
    s = jnp.asarray(_GATE_SCALE, jnp.float32).reshape((4,) + (1,) * (a.ndim - 1))
    return a * s


def _pad_lanes(a, width):
    pad = [(0, 0)] * (a.ndim - 1) + [(0, width - a.shape[-1])]
    return jnp.pad(a, pad)


def _mxu_is_256_deep():
    # K=256 fold only pays off on 256-deep MXUs (v6e/v7x); v5e/older stay K=128.
    try:
        kind = jax.devices()[0].device_kind.lower()
    except Exception:
        return False
    return ("v6" in kind) or ("v7" in kind)


def sequence_forward(x, params, future=0):
    """x: (B, T) float32, returns (B, T+future) like the PyTorch module."""
    B, T = x.shape
    total = T + future
    Bp = max(8, -(-B // 8) * 8)                       # sublane-pad the batch
    Wp = max(128, -(-total // 128) * 128)             # lane-dense output slab
    x_p = jnp.zeros((Bp, T), jnp.float32).at[:B].set(jnp.asarray(x, jnp.float32))

    # ---- lstm1 params: reorder gates, pre-scale g, pad 51 -> 128 ----------
    wih1 = _scale_g(_reorder_gates(params["W_ih1"].reshape(4, H1)))    # (4,51)
    wih1_row = _pad_lanes(wih1, HP).reshape(1, G4)

    whh1 = _scale_g(_reorder_gates(params["W_hh1"].reshape(4, H1, H1)))
    whh1_p = jnp.zeros((4, HP, HP), jnp.float32).at[:, :H1, :H1].set(whh1)
    whh1t = jnp.transpose(whh1_p, (2, 0, 1)).reshape(HP, G4)          # (in,4*out)

    b1 = _scale_g(_reorder_gates((params["b_ih1"] + params["b_hh1"]).reshape(4, H1)))
    b1_row = _pad_lanes(b1, HP).reshape(1, G4)

    # ---- lstm2 params (hidden size 1) --------------------------------------
    wih2 = _scale_g(_reorder_gates(params["W_ih2"]))                   # (4,51)
    wih2t = jnp.zeros((HP, 4), jnp.float32).at[:H1, :].set(wih2.T)
    whh2_row = _scale_g(_reorder_gates(params["W_hh2"].reshape(4))).reshape(1, 4)
    b2_row = _scale_g(_reorder_gates(params["b_ih2"] + params["b_hh2"])).reshape(1, 4)

    fold_k256 = _mxu_is_256_deep()
    if fold_k256:
        rhs1 = jnp.concatenate(
            [whh1t, wih1_row, b1_row, jnp.zeros((HP - 2, G4), jnp.float32)],
            axis=0)                                                   # (256,G4)
        inputs = (x_p, rhs1, wih2t, whh2_row, b2_row)
    else:
        inputs = (x_p, whh1t, wih1_row, b1_row, wih2t, whh2_row, b2_row)

    # Everything (a few hundred KiB) fits in VMEM on v5e/v6e/v7x; no grid
    # needed.  If B grows, add a "parallel" batch grid axis for v7x megacore.
    kernel = functools.partial(_sequence_kernel, seq_len=T, future=future,
                               fold_k256=fold_k256)
    out_p = pl.pallas_call(
        kernel,
        out_shape=jax.ShapeDtypeStruct((Bp, Wp), jnp.float32),
        in_specs=[pl.BlockSpec(memory_space=pltpu.MemorySpace.VMEM)] * len(inputs),
        out_specs=pl.BlockSpec(memory_space=pltpu.MemorySpace.VMEM),
    )(*inputs)
    return out_p[:B, :total]


# ------------------------- pure-JAX reference ------------------------------
def _lstm_cell_ref(x, h, c, W_ih, W_hh, b_ih, b_hh):
    H = h.shape[1]
    gates = x @ W_ih.T + h @ W_hh.T + b_ih + b_hh
    i = jax.nn.sigmoid(gates[:, 0 * H:1 * H])
    f = jax.nn.sigmoid(gates[:, 1 * H:2 * H])
    g = jnp.tanh(gates[:, 2 * H:3 * H])
    o = jax.nn.sigmoid(gates[:, 3 * H:4 * H])
    c_new = f * c + i * g
    h_new = o * jnp.tanh(c_new)
    return h_new, c_new


def sequence_forward_ref(x, p, future=0):
    B, T = x.shape
    h1 = jnp.zeros((B, H1)); c1 = jnp.zeros((B, H1))
    h2 = jnp.zeros((B, H2)); c2 = jnp.zeros((B, H2))
    outs = []
    for t in range(T):
        x_t = x[:, t:t + 1]
        h1, c1 = _lstm_cell_ref(x_t, h1, c1, p["W_ih1"], p["W_hh1"], p["b_ih1"], p["b_hh1"])
        h2, c2 = _lstm_cell_ref(c1, h2, c2, p["W_ih2"], p["W_hh2"], p["b_ih2"], p["b_hh2"])
        outs.append(c2)
    for _ in range(future):
        h1, c1 = _lstm_cell_ref(c2, h1, c1, p["W_ih1"], p["W_hh1"], p["b_ih1"], p["b_hh1"])
        h2, c2 = _lstm_cell_ref(c1, h2, c2, p["W_ih2"], p["W_hh2"], p["b_ih2"], p["b_hh2"])
        outs.append(c2)
    return jnp.stack(outs, axis=1).squeeze(2)


def init_params(key):
    """Deterministic init mirroring nn.LSTMCell: U(-1/sqrt(H), 1/sqrt(H))."""
    ks = jax.random.split(key, 8)
    s1 = 1.0 / jnp.sqrt(float(H1))
    s2 = 1.0 / jnp.sqrt(float(H2))
    u = lambda k, shape, s: jax.random.uniform(k, shape, jnp.float32, -s, s)
    return {
        "W_ih1": u(ks[0], (4 * H1, 1), s1),
        "W_hh1": u(ks[1], (4 * H1, H1), s1),
        "b_ih1": u(ks[2], (4 * H1,), s1),
        "b_hh1": u(ks[3], (4 * H1,), s1),
        "W_ih2": u(ks[4], (4 * H2, H1), s2),
        "W_hh2": u(ks[5], (4 * H2, H2), s2),
        "b_ih2": u(ks[6], (4 * H2,), s2),
        "b_hh2": u(ks[7], (4 * H2,), s2),
    }


if __name__ == "__main__":
    key = jax.random.PRNGKey(0)
    k_x, k_p = jax.random.split(key)
    B, T, FUTURE = 4, 8, 4
    x = jax.random.normal(k_x, (B, T), jnp.float32)
    params = init_params(k_p)

    out = sequence_forward(x, params, future=FUTURE)
    out = jax.block_until_ready(out)

    ref = sequence_forward_ref(x, params, future=FUTURE)
    assert out.shape == (B, T + FUTURE), out.shape
    err = float(jnp.max(jnp.abs(out - ref)))
    assert jnp.allclose(out, ref, atol=5e-5, rtol=1e-5), err
    print("KERNEL_OK")
</pallas_src>

<mosaic_0001>
module attributes {stable_mosaic.version = 11 : i64} {
  func.func @_sequence_kernel(%arg0: memref<8x8xf32, #tpu.memory_space<vmem>>, %arg1: memref<128x512xf32, #tpu.memory_space<vmem>>, %arg2: memref<1x512xf32, #tpu.memory_space<vmem>>, %arg3: memref<1x512xf32, #tpu.memory_space<vmem>>, %arg4: memref<128x4xf32, #tpu.memory_space<vmem>>, %arg5: memref<1x4xf32, #tpu.memory_space<vmem>>, %arg6: memref<1x4xf32, #tpu.memory_space<vmem>>, %arg7: memref<8x128xf32, #tpu.memory_space<vmem>>) attributes {dimension_semantics = [], scalar_prefetch = 0 : i64, scratch_operands = 0 : i64, tpu.core_type = #tpu.core_type<tc>} {
    %c0 = arith.constant 0 : index
    %c0_0 = arith.constant 0 : index
    %0 = vector.load %arg0[%c0, %c0_0] : memref<8x8xf32, #tpu.memory_space<vmem>>, vector<8x8xf32>
    %c0_1 = arith.constant 0 : index
    %c0_2 = arith.constant 0 : index
    %1 = vector.load %arg1[%c0_1, %c0_2] : memref<128x512xf32, #tpu.memory_space<vmem>>, vector<128x512xf32>
    %c0_3 = arith.constant 0 : index
    %c0_4 = arith.constant 0 : index
    %2 = vector.load %arg4[%c0_3, %c0_4] : memref<128x4xf32, #tpu.memory_space<vmem>>, vector<128x4xf32>
    %c0_5 = arith.constant 0 : index
    %c0_6 = arith.constant 0 : index
    %3 = vector.load %arg5[%c0_5, %c0_6] : memref<1x4xf32, #tpu.memory_space<vmem>>, vector<1x4xf32>
    %4 = vector.shape_cast %3 : vector<1x4xf32> to vector<1x4xf32>
    %5 = vector.broadcast %4 : vector<1x4xf32> to vector<8x4xf32>
    %c0_7 = arith.constant 0 : index
    %c0_8 = arith.constant 0 : index
    %6 = vector.load %arg6[%c0_7, %c0_8] : memref<1x4xf32, #tpu.memory_space<vmem>>, vector<1x4xf32>
    %7 = vector.shape_cast %6 : vector<1x4xf32> to vector<1x4xf32>
    %8 = vector.broadcast %7 : vector<1x4xf32> to vector<8x4xf32>
    %c0_9 = arith.constant 0 : index
    %c0_10 = arith.constant 0 : index
    %9 = vector.load %arg2[%c0_9, %c0_10] : memref<1x512xf32, #tpu.memory_space<vmem>>, vector<1x512xf32>
    %10 = vector.shape_cast %9 : vector<1x512xf32> to vector<1x512xf32>
    %11 = vector.broadcast %10 : vector<1x512xf32> to vector<8x512xf32>
    %c0_11 = arith.constant 0 : index
    %c0_12 = arith.constant 0 : index
    %12 = vector.load %arg3[%c0_11, %c0_12] : memref<1x512xf32, #tpu.memory_space<vmem>>, vector<1x512xf32>
    %13 = vector.shape_cast %12 : vector<1x512xf32> to vector<1x512xf32>
    %14 = vector.broadcast %13 : vector<1x512xf32> to vector<8x512xf32>
    %cst = arith.constant 0.000000e+00 : f32
    %15 = vector.broadcast %cst : f32 to vector<8x128xf32>
    %cst_13 = arith.constant 0.000000e+00 : f32
    %16 = vector.broadcast %cst_13 : f32 to vector<8x128xf32>
    %cst_14 = arith.constant 0.000000e+00 : f32
    %17 = vector.broadcast %cst_14 : f32 to vector<8x1xf32>
    %cst_15 = arith.constant 0.000000e+00 : f32
    %18 = vector.broadcast %cst_15 : f32 to vector<8x1xf32>
    %19 = tpu.iota {dimensions = array<i32: 1>} : vector<8x128xi32>
    %cst_16 = arith.constant 0.000000e+00 : f32
    %20 = vector.broadcast %cst_16 : f32 to vector<8x128xf32>
    %21 = vector.extract_strided_slice %0 {offsets = [0, 0], sizes = [8, 1], strides = [1, 1]} : vector<8x8xf32> to vector<8x1xf32>
    %22 = vector.broadcast %21 : vector<8x1xf32> to vector<8x512xf32>
    %23 = arith.mulf %22, %11 : vector<8x512xf32>
    %24 = arith.addf %23, %14 : vector<8x512xf32>
    %cst_17 = arith.constant dense<0.000000e+00> : vector<8x512xf32>
    %25 = tpu.matmul %15, %1, %cst_17 {dimension_numbers = #tpu.dot_dimension_numbers<[1], [0], [0], [1], [0, 0, 1, 1], [], []>} : vector<8x128xf32>, vector<128x512xf32>, vector<8x512xf32> -> vector<8x512xf32>
    %26 = arith.addf %24, %25 : vector<8x512xf32>
    %27 = arith.negf %26 : vector<8x512xf32>
    %28 = math.exp %27 : vector<8x512xf32>
    %cst_18 = arith.constant 1.000000e+00 : f32
    %29 = vector.broadcast %cst_18 : f32 to vector<8x512xf32>
    %30 = arith.addf %29, %28 : vector<8x512xf32>
    %31 = arith.divf %29, %30 : vector<8x512xf32>
    %32 = vector.extract_strided_slice %31 {offsets = [0, 0], sizes = [8, 128], strides = [1, 1]} : vector<8x512xf32> to vector<8x128xf32>
    %33 = vector.extract_strided_slice %31 {offsets = [0, 128], sizes = [8, 128], strides = [1, 1]} : vector<8x512xf32> to vector<8x128xf32>
    %34 = vector.extract_strided_slice %31 {offsets = [0, 256], sizes = [8, 128], strides = [1, 1]} : vector<8x512xf32> to vector<8x128xf32>
    %35 = vector.extract_strided_slice %31 {offsets = [0, 384], sizes = [8, 128], strides = [1, 1]} : vector<8x512xf32> to vector<8x128xf32>
    %cst_19 = arith.constant 2.000000e+00 : f32
    %36 = vector.broadcast %cst_19 : f32 to vector<8x128xf32>
    %37 = arith.mulf %36, %35 : vector<8x128xf32>
    %cst_20 = arith.constant 1.000000e+00 : f32
    %38 = vector.broadcast %cst_20 : f32 to vector<8x128xf32>
    %39 = arith.subf %37, %38 : vector<8x128xf32>
    %40 = arith.mulf %33, %16 : vector<8x128xf32>
    %41 = arith.mulf %32, %39 : vector<8x128xf32>
    %42 = arith.addf %40, %41 : vector<8x128xf32>
    %43 = math.tanh %42 : vector<8x128xf32>
    %44 = arith.mulf %34, %43 : vector<8x128xf32>
    %cst_21 = arith.constant dense<0.000000e+00> : vector<8x4xf32>
    %45 = tpu.matmul %42, %2, %cst_21 {dimension_numbers = #tpu.dot_dimension_numbers<[1], [0], [0], [1], [0, 0, 1, 1], [], []>} : vector<8x128xf32>, vector<128x4xf32>, vector<8x4xf32> -> vector<8x4xf32>
    %46 = vector.broadcast %17 : vector<8x1xf32> to vector<8x4xf32>
    %47 = arith.mulf %46, %5 : vector<8x4xf32>
    %48 = arith.addf %45, %47 : vector<8x4xf32>
    %49 = arith.addf %48, %8 : vector<8x4xf32>
    %50 = arith.negf %49 : vector<8x4xf32>
    %51 = math.exp %50 : vector<8x4xf32>
    %cst_22 = arith.constant 1.000000e+00 : f32
    %52 = vector.broadcast %cst_22 : f32 to vector<8x4xf32>
    %53 = arith.addf %52, %51 : vector<8x4xf32>
    %54 = arith.divf %52, %53 : vector<8x4xf32>
    %55 = vector.extract_strided_slice %54 {offsets = [0, 0], sizes = [8, 1], strides = [1, 1]} : vector<8x4xf32> to vector<8x1xf32>
    %56 = vector.extract_strided_slice %54 {offsets = [0, 1], sizes = [8, 1], strides = [1, 1]} : vector<8x4xf32> to vector<8x1xf32>
    %57 = vector.extract_strided_slice %54 {offsets = [0, 2], sizes = [8, 1], strides = [1, 1]} : vector<8x4xf32> to vector<8x1xf32>
    %58 = vector.extract_strided_slice %54 {offsets = [0, 3], sizes = [8, 1], strides = [1, 1]} : vector<8x4xf32> to vector<8x1xf32>
    %cst_23 = arith.constant 2.000000e+00 : f32
    %59 = vector.broadcast %cst_23 : f32 to vector<8x1xf32>
    %60 = arith.mulf %59, %58 : vector<8x1xf32>
    %cst_24 = arith.constant 1.000000e+00 : f32
    %61 = vector.broadcast %cst_24 : f32 to vector<8x1xf32>
    %62 = arith.subf %60, %61 : vector<8x1xf32>
    %63 = arith.mulf %56, %18 : vector<8x1xf32>
    %64 = arith.mulf %55, %62 : vector<8x1xf32>
    %65 = arith.addf %63, %64 : vector<8x1xf32>
    %66 = math.tanh %65 : vector<8x1xf32>
    %67 = arith.mulf %57, %66 : vector<8x1xf32>
    %c0_i32 = arith.constant 0 : i32
    %68 = vector.broadcast %c0_i32 : i32 to vector<8x128xi32>
    %69 = arith.cmpi eq, %19, %68 : vector<8x128xi32>
    %70 = vector.shape_cast %65 : vector<8x1xf32> to vector<8x1xf32>
    %71 = vector.broadcast %70 : vector<8x1xf32> to vector<8x128xf32>
    %72 = arith.select %69, %71, %20 : vector<8x128xi1>, vector<8x128xf32>
    %73 = vector.extract_strided_slice %0 {offsets = [0, 1], sizes = [8, 1], strides = [1, 1]} : vector<8x8xf32> to vector<8x1xf32>
    %74 = vector.broadcast %73 : vector<8x1xf32> to vector<8x512xf32>
    %75 = arith.mulf %74, %11 : vector<8x512xf32>
    %76 = arith.addf %75, %14 : vector<8x512xf32>
    %cst_25 = arith.constant dense<0.000000e+00> : vector<8x512xf32>
    %77 = tpu.matmul %44, %1, %cst_25 {dimension_numbers = #tpu.dot_dimension_numbers<[1], [0], [0], [1], [0, 0, 1, 1], [], []>} : vector<8x128xf32>, vector<128x512xf32>, vector<8x512xf32> -> vector<8x512xf32>
    %78 = arith.addf %76, %77 : vector<8x512xf32>
    %79 = arith.negf %78 : vector<8x512xf32>
    %80 = math.exp %79 : vector<8x512xf32>
    %cst_26 = arith.constant 1.000000e+00 : f32
    %81 = vector.broadcast %cst_26 : f32 to vector<8x512xf32>
    %82 = arith.addf %81, %80 : vector<8x512xf32>
    %83 = arith.divf %81, %82 : vector<8x512xf32>
    %84 = vector.extract_strided_slice %83 {offsets = [0, 0], sizes = [8, 128], strides = [1, 1]} : vector<8x512xf32> to vector<8x128xf32>
    %85 = vector.extract_strided_slice %83 {offsets = [0, 128], sizes = [8, 128], strides = [1, 1]} : vector<8x512xf32> to vector<8x128xf32>
    %86 = vector.extract_strided_slice %83 {offsets = [0, 256], sizes = [8, 128], strides = [1, 1]} : vector<8x512xf32> to vector<8x128xf32>
    %87 = vector.extract_strided_slice %83 {offsets = [0, 384], sizes = [8, 128], strides = [1, 1]} : vector<8x512xf32> to vector<8x128xf32>
    %cst_27 = arith.constant 2.000000e+00 : f32
    %88 = vector.broadcast %cst_27 : f32 to vector<8x128xf32>
    %89 = arith.mulf %88, %87 : vector<8x128xf32>
    %cst_28 = arith.constant 1.000000e+00 : f32
    %90 = vector.broadcast %cst_28 : f32 to vector<8x128xf32>
    %91 = arith.subf %89, %90 : vector<8x128xf32>
    %92 = arith.mulf %85, %42 : vector<8x128xf32>
    %93 = arith.mulf %84, %91 : vector<8x128xf32>
    %94 = arith.addf %92, %93 : vector<8x128xf32>
    %95 = math.tanh %94 : vector<8x128xf32>
    %96 = arith.mulf %86, %95 : vector<8x128xf32>
    %cst_29 = arith.constant dense<0.000000e+00> : vector<8x4xf32>
    %97 = tpu.matmul %94, %2, %cst_29 {dimension_numbers = #tpu.dot_dimension_numbers<[1], [0], [0], [1], [0, 0, 1, 1], [], []>} : vector<8x128xf32>, vector<128x4xf32>, vector<8x4xf32> -> vector<8x4xf32>
    %98 = vector.broadcast %67 : vector<8x1xf32> to vector<8x4xf32>
    %99 = arith.mulf %98, %5 : vector<8x4xf32>
    %100 = arith.addf %97, %99 : vector<8x4xf32>
    %101 = arith.addf %100, %8 : vector<8x4xf32>
    %102 = arith.negf %101 : vector<8x4xf32>
    %103 = math.exp %102 : vector<8x4xf32>
    %cst_30 = arith.constant 1.000000e+00 : f32
    %104 = vector.broadcast %cst_30 : f32 to vector<8x4xf32>
    %105 = arith.addf %104, %103 : vector<8x4xf32>
    %106 = arith.divf %104, %105 : vector<8x4xf32>
    %107 = vector.extract_strided_slice %106 {offsets = [0, 0], sizes = [8, 1], strides = [1, 1]} : vector<8x4xf32> to vector<8x1xf32>
    %108 = vector.extract_strided_slice %106 {offsets = [0, 1], sizes = [8, 1], strides = [1, 1]} : vector<8x4xf32> to vector<8x1xf32>
    %109 = vector.extract_strided_slice %106 {offsets = [0, 2], sizes = [8, 1], strides = [1, 1]} : vector<8x4xf32> to vector<8x1xf32>
    %110 = vector.extract_strided_slice %106 {offsets = [0, 3], sizes = [8, 1], strides = [1, 1]} : vector<8x4xf32> to vector<8x1xf32>
    %cst_31 = arith.constant 2.000000e+00 : f32
    %111 = vector.broadcast %cst_31 : f32 to vector<8x1xf32>
    %112 = arith.mulf %111, %110 : vector<8x1xf32>
    %cst_32 = arith.constant 1.000000e+00 : f32
    %113 = vector.broadcast %cst_32 : f32 to vector<8x1xf32>
    %114 = arith.subf %112, %113 : vector<8x1xf32>
    %115 = arith.mulf %108, %65 : vector<8x1xf32>
    %116 = arith.mulf %107, %114 : vector<8x1xf32>
    %117 = arith.addf %115, %116 : vector<8x1xf32>
    %118 = math.tanh %117 : vector<8x1xf32>
    %119 = arith.mulf %109, %118 : vector<8x1xf32>
    %c1_i32 = arith.constant 1 : i32
    %120 = vector.broadcast %c1_i32 : i32 to vector<8x128xi32>
    %121 = arith.cmpi eq, %19, %120 : vector<8x128xi32>
    %122 = vector.shape_cast %117 : vector<8x1xf32> to vector<8x1xf32>
    %123 = vector.broadcast %122 : vector<8x1xf32> to vector<8x128xf32>
    %124 = arith.select %121, %123, %72 : vector<8x128xi1>, vector<8x128xf32>
    %125 = vector.extract_strided_slice %0 {offsets = [0, 2], sizes = [8, 1], strides = [1, 1]} : vector<8x8xf32> to vector<8x1xf32>
    %126 = vector.broadcast %125 : vector<8x1xf32> to vector<8x512xf32>
    %127 = arith.mulf %126, %11 : vector<8x512xf32>
    %128 = arith.addf %127, %14 : vector<8x512xf32>
    %cst_33 = arith.constant dense<0.000000e+00> : vector<8x512xf32>
    %129 = tpu.matmul %96, %1, %cst_33 {dimension_numbers = #tpu.dot_dimension_numbers<[1], [0], [0], [1], [0, 0, 1, 1], [], []>} : vector<8x128xf32>, vector<128x512xf32>, vector<8x512xf32> -> vector<8x512xf32>
    %130 = arith.addf %128, %129 : vector<8x512xf32>
    %131 = arith.negf %130 : vector<8x512xf32>
    %132 = math.exp %131 : vector<8x512xf32>
    %cst_34 = arith.constant 1.000000e+00 : f32
    %133 = vector.broadcast %cst_34 : f32 to vector<8x512xf32>
    %134 = arith.addf %133, %132 : vector<8x512xf32>
    %135 = arith.divf %133, %134 : vector<8x512xf32>
    %136 = vector.extract_strided_slice %135 {offsets = [0, 0], sizes = [8, 128], strides = [1, 1]} : vector<8x512xf32> to vector<8x128xf32>
    %137 = vector.extract_strided_slice %135 {offsets = [0, 128], sizes = [8, 128], strides = [1, 1]} : vector<8x512xf32> to vector<8x128xf32>
    %138 = vector.extract_strided_slice %135 {offsets = [0, 256], sizes = [8, 128], strides = [1, 1]} : vector<8x512xf32> to vector<8x128xf32>
    %139 = vector.extract_strided_slice %135 {offsets = [0, 384], sizes = [8, 128], strides = [1, 1]} : vector<8x512xf32> to vector<8x128xf32>
    %cst_35 = arith.constant 2.000000e+00 : f32
    %140 = vector.broadcast %cst_35 : f32 to vector<8x128xf32>
    %141 = arith.mulf %140, %139 : vector<8x128xf32>
    %cst_36 = arith.constant 1.000000e+00 : f32
    %142 = vector.broadcast %cst_36 : f32 to vector<8x128xf32>
    %143 = arith.subf %141, %142 : vector<8x128xf32>
    %144 = arith.mulf %137, %94 : vector<8x128xf32>
    %145 = arith.mulf %136, %143 : vector<8x128xf32>
    %146 = arith.addf %144, %145 : vector<8x128xf32>
    %147 = math.tanh %146 : vector<8x128xf32>
    %148 = arith.mulf %138, %147 : vector<8x128xf32>
    %cst_37 = arith.constant dense<0.000000e+00> : vector<8x4xf32>
    %149 = tpu.matmul %146, %2, %cst_37 {dimension_numbers = #tpu.dot_dimension_numbers<[1], [0], [0], [1], [0, 0, 1, 1], [], []>} : vector<8x128xf32>, vector<128x4xf32>, vector<8x4xf32> -> vector<8x4xf32>
    %150 = vector.broadcast %119 : vector<8x1xf32> to vector<8x4xf32>
    %151 = arith.mulf %150, %5 : vector<8x4xf32>
    %152 = arith.addf %149, %151 : vector<8x4xf32>
    %153 = arith.addf %152, %8 : vector<8x4xf32>
    %154 = arith.negf %153 : vector<8x4xf32>
    %155 = math.exp %154 : vector<8x4xf32>
    %cst_38 = arith.constant 1.000000e+00 : f32
    %156 = vector.broadcast %cst_38 : f32 to vector<8x4xf32>
    %157 = arith.addf %156, %155 : vector<8x4xf32>
    %158 = arith.divf %156, %157 : vector<8x4xf32>
    %159 = vector.extract_strided_slice %158 {offsets = [0, 0], sizes = [8, 1], strides = [1, 1]} : vector<8x4xf32> to vector<8x1xf32>
    %160 = vector.extract_strided_slice %158 {offsets = [0, 1], sizes = [8, 1], strides = [1, 1]} : vector<8x4xf32> to vector<8x1xf32>
    %161 = vector.extract_strided_slice %158 {offsets = [0, 2], sizes = [8, 1], strides = [1, 1]} : vector<8x4xf32> to vector<8x1xf32>
    %162 = vector.extract_strided_slice %158 {offsets = [0, 3], sizes = [8, 1], strides = [1, 1]} : vector<8x4xf32> to vector<8x1xf32>
    %cst_39 = arith.constant 2.000000e+00 : f32
    %163 = vector.broadcast %cst_39 : f32 to vector<8x1xf32>
    %164 = arith.mulf %163, %162 : vector<8x1xf32>
    %cst_40 = arith.constant 1.000000e+00 : f32
    %165 = vector.broadcast %cst_40 : f32 to vector<8x1xf32>
    %166 = arith.subf %164, %165 : vector<8x1xf32>
    %167 = arith.mulf %160, %117 : vector<8x1xf32>
    %168 = arith.mulf %159, %166 : vector<8x1xf32>
    %169 = arith.addf %167, %168 : vector<8x1xf32>
    %170 = math.tanh %169 : vector<8x1xf32>
    %171 = arith.mulf %161, %170 : vector<8x1xf32>
    %c2_i32 = arith.constant 2 : i32
    %172 = vector.broadcast %c2_i32 : i32 to vector<8x128xi32>
    %173 = arith.cmpi eq, %19, %172 : vector<8x128xi32>
    %174 = vector.shape_cast %169 : vector<8x1xf32> to vector<8x1xf32>
    %175 = vector.broadcast %174 : vector<8x1xf32> to vector<8x128xf32>
    %176 = arith.select %173, %175, %124 : vector<8x128xi1>, vector<8x128xf32>
    %177 = vector.extract_strided_slice %0 {offsets = [0, 3], sizes = [8, 1], strides = [1, 1]} : vector<8x8xf32> to vector<8x1xf32>
    %178 = vector.broadcast %177 : vector<8x1xf32> to vector<8x512xf32>
    %179 = arith.mulf %178, %11 : vector<8x512xf32>
    %180 = arith.addf %179, %14 : vector<8x512xf32>
    %cst_41 = arith.constant dense<0.000000e+00> : vector<8x512xf32>
    %181 = tpu.matmul %148, %1, %cst_41 {dimension_numbers = #tpu.dot_dimension_numbers<[1], [0], [0], [1], [0, 0, 1, 1], [], []>} : vector<8x128xf32>, vector<128x512xf32>, vector<8x512xf32> -> vector<8x512xf32>
    %182 = arith.addf %180, %181 : vector<8x512xf32>
    %183 = arith.negf %182 : vector<8x512xf32>
    %184 = math.exp %183 : vector<8x512xf32>
    %cst_42 = arith.constant 1.000000e+00 : f32
    %185 = vector.broadcast %cst_42 : f32 to vector<8x512xf32>
    %186 = arith.addf %185, %184 : vector<8x512xf32>
    %187 = arith.divf %185, %186 : vector<8x512xf32>
    %188 = vector.extract_strided_slice %187 {offsets = [0, 0], sizes = [8, 128], strides = [1, 1]} : vector<8x512xf32> to vector<8x128xf32>
    %189 = vector.extract_strided_slice %187 {offsets = [0, 128], sizes = [8, 128], strides = [1, 1]} : vector<8x512xf32> to vector<8x128xf32>
    %190 = vector.extract_strided_slice %187 {offsets = [0, 256], sizes = [8, 128], strides = [1, 1]} : vector<8x512xf32> to vector<8x128xf32>
    %191 = vector.extract_strided_slice %187 {offsets = [0, 384], sizes = [8, 128], strides = [1, 1]} : vector<8x512xf32> to vector<8x128xf32>
    %cst_43 = arith.constant 2.000000e+00 : f32
    %192 = vector.broadcast %cst_43 : f32 to vector<8x128xf32>
    %193 = arith.mulf %192, %191 : vector<8x128xf32>
    %cst_44 = arith.constant 1.000000e+00 : f32
    %194 = vector.broadcast %cst_44 : f32 to vector<8x128xf32>
    %195 = arith.subf %193, %194 : vector<8x128xf32>
    %196 = arith.mulf %189, %146 : vector<8x128xf32>
    %197 = arith.mulf %188, %195 : vector<8x128xf32>
    %198 = arith.addf %196, %197 : vector<8x128xf32>
    %199 = math.tanh %198 : vector<8x128xf32>
    %200 = arith.mulf %190, %199 : vector<8x128xf32>
    %cst_45 = arith.constant dense<0.000000e+00> : vector<8x4xf32>
    %201 = tpu.matmul %198, %2, %cst_45 {dimension_numbers = #tpu.dot_dimension_numbers<[1], [0], [0], [1], [0, 0, 1, 1], [], []>} : vector<8x128xf32>, vector<128x4xf32>, vector<8x4xf32> -> vector<8x4xf32>
    %202 = vector.broadcast %171 : vector<8x1xf32> to vector<8x4xf32>
    %203 = arith.mulf %202, %5 : vector<8x4xf32>
    %204 = arith.addf %201, %203 : vector<8x4xf32>
    %205 = arith.addf %204, %8 : vector<8x4xf32>
    %206 = arith.negf %205 : vector<8x4xf32>
    %207 = math.exp %206 : vector<8x4xf32>
    %cst_46 = arith.constant 1.000000e+00 : f32
    %208 = vector.broadcast %cst_46 : f32 to vector<8x4xf32>
    %209 = arith.addf %208, %207 : vector<8x4xf32>
    %210 = arith.divf %208, %209 : vector<8x4xf32>
    %211 = vector.extract_strided_slice %210 {offsets = [0, 0], sizes = [8, 1], strides = [1, 1]} : vector<8x4xf32> to vector<8x1xf32>
    %212 = vector.extract_strided_slice %210 {offsets = [0, 1], sizes = [8, 1], strides = [1, 1]} : vector<8x4xf32> to vector<8x1xf32>
    %213 = vector.extract_strided_slice %210 {offsets = [0, 2], sizes = [8, 1], strides = [1, 1]} : vector<8x4xf32> to vector<8x1xf32>
    %214 = vector.extract_strided_slice %210 {offsets = [0, 3], sizes = [8, 1], strides = [1, 1]} : vector<8x4xf32> to vector<8x1xf32>
    %cst_47 = arith.constant 2.000000e+00 : f32
    %215 = vector.broadcast %cst_47 : f32 to vector<8x1xf32>
    %216 = arith.mulf %215, %214 : vector<8x1xf32>
    %cst_48 = arith.constant 1.000000e+00 : f32
    %217 = vector.broadcast %cst_48 : f32 to vector<8x1xf32>
    %218 = arith.subf %216, %217 : vector<8x1xf32>
    %219 = arith.mulf %212, %169 : vector<8x1xf32>
    %220 = arith.mulf %211, %218 : vector<8x1xf32>
    %221 = arith.addf %219, %220 : vector<8x1xf32>
    %222 = math.tanh %221 : vector<8x1xf32>
    %223 = arith.mulf %213, %222 : vector<8x1xf32>
    %c3_i32 = arith.constant 3 : i32
    %224 = vector.broadcast %c3_i32 : i32 to vector<8x128xi32>
    %225 = arith.cmpi eq, %19, %224 : vector<8x128xi32>
    %226 = vector.shape_cast %221 : vector<8x1xf32> to vector<8x1xf32>
    %227 = vector.broadcast %226 : vector<8x1xf32> to vector<8x128xf32>
    %228 = arith.select %225, %227, %176 : vector<8x128xi1>, vector<8x128xf32>
    %229 = vector.extract_strided_slice %0 {offsets = [0, 4], sizes = [8, 1], strides = [1, 1]} : vector<8x8xf32> to vector<8x1xf32>
    %230 = vector.broadcast %229 : vector<8x1xf32> to vector<8x512xf32>
    %231 = arith.mulf %230, %11 : vector<8x512xf32>
    %232 = arith.addf %231, %14 : vector<8x512xf32>
    %cst_49 = arith.constant dense<0.000000e+00> : vector<8x512xf32>
    %233 = tpu.matmul %200, %1, %cst_49 {dimension_numbers = #tpu.dot_dimension_numbers<[1], [0], [0], [1], [0, 0, 1, 1], [], []>} : vector<8x128xf32>, vector<128x512xf32>, vector<8x512xf32> -> vector<8x512xf32>
    %234 = arith.addf %232, %233 : vector<8x512xf32>
    %235 = arith.negf %234 : vector<8x512xf32>
    %236 = math.exp %235 : vector<8x512xf32>
    %cst_50 = arith.constant 1.000000e+00 : f32
    %237 = vector.broadcast %cst_50 : f32 to vector<8x512xf32>
    %238 = arith.addf %237, %236 : vector<8x512xf32>
    %239 = arith.divf %237, %238 : vector<8x512xf32>
    %240 = vector.extract_strided_slice %239 {offsets = [0, 0], sizes = [8, 128], strides = [1, 1]} : vector<8x512xf32> to vector<8x128xf32>
    %241 = vector.extract_strided_slice %239 {offsets = [0, 128], sizes = [8, 128], strides = [1, 1]} : vector<8x512xf32> to vector<8x128xf32>
    %242 = vector.extract_strided_slice %239 {offsets = [0, 256], sizes = [8, 128], strides = [1, 1]} : vector<8x512xf32> to vector<8x128xf32>
    %243 = vector.extract_strided_slice %239 {offsets = [0, 384], sizes = [8, 128], strides = [1, 1]} : vector<8x512xf32> to vector<8x128xf32>
    %cst_51 = arith.constant 2.000000e+00 : f32
    %244 = vector.broadcast %cst_51 : f32 to vector<8x128xf32>
    %245 = arith.mulf %244, %243 : vector<8x128xf32>
    %cst_52 = arith.constant 1.000000e+00 : f32
    %246 = vector.broadcast %cst_52 : f32 to vector<8x128xf32>
    %247 = arith.subf %245, %246 : vector<8x128xf32>
    %248 = arith.mulf %241, %198 : vector<8x128xf32>
    %249 = arith.mulf %240, %247 : vector<8x128xf32>
    %250 = arith.addf %248, %249 : vector<8x128xf32>
    %251 = math.tanh %250 : vector<8x128xf32>
    %252 = arith.mulf %242, %251 : vector<8x128xf32>
    %cst_53 = arith.constant dense<0.000000e+00> : vector<8x4xf32>
    %253 = tpu.matmul %250, %2, %cst_53 {dimension_numbers = #tpu.dot_dimension_numbers<[1], [0], [0], [1], [0, 0, 1, 1], [], []>} : vector<8x128xf32>, vector<128x4xf32>, vector<8x4xf32> -> vector<8x4xf32>
    %254 = vector.broadcast %223 : vector<8x1xf32> to vector<8x4xf32>
    %255 = arith.mulf %254, %5 : vector<8x4xf32>
    %256 = arith.addf %253, %255 : vector<8x4xf32>
    %257 = arith.addf %256, %8 : vector<8x4xf32>
    %258 = arith.negf %257 : vector<8x4xf32>
    %259 = math.exp %258 : vector<8x4xf32>
    %cst_54 = arith.constant 1.000000e+00 : f32
    %260 = vector.broadcast %cst_54 : f32 to vector<8x4xf32>
    %261 = arith.addf %260, %259 : vector<8x4xf32>
    %262 = arith.divf %260, %261 : vector<8x4xf32>
    %263 = vector.extract_strided_slice %262 {offsets = [0, 0], sizes = [8, 1], strides = [1, 1]} : vector<8x4xf32> to vector<8x1xf32>
    %264 = vector.extract_strided_slice %262 {offsets = [0, 1], sizes = [8, 1], strides = [1, 1]} : vector<8x4xf32> to vector<8x1xf32>
    %265 = vector.extract_strided_slice %262 {offsets = [0, 2], sizes = [8, 1], strides = [1, 1]} : vector<8x4xf32> to vector<8x1xf32>
    %266 = vector.extract_strided_slice %262 {offsets = [0, 3], sizes = [8, 1], strides = [1, 1]} : vector<8x4xf32> to vector<8x1xf32>
    %cst_55 = arith.constant 2.000000e+00 : f32
    %267 = vector.broadcast %cst_55 : f32 to vector<8x1xf32>
    %268 = arith.mulf %267, %266 : vector<8x1xf32>
    %cst_56 = arith.constant 1.000000e+00 : f32
    %269 = vector.broadcast %cst_56 : f32 to vector<8x1xf32>
    %270 = arith.subf %268, %269 : vector<8x1xf32>
    %271 = arith.mulf %264, %221 : vector<8x1xf32>
    %272 = arith.mulf %263, %270 : vector<8x1xf32>
    %273 = arith.addf %271, %272 : vector<8x1xf32>
    %274 = math.tanh %273 : vector<8x1xf32>
    %275 = arith.mulf %265, %274 : vector<8x1xf32>
    %c4_i32 = arith.constant 4 : i32
    %276 = vector.broadcast %c4_i32 : i32 to vector<8x128xi32>
    %277 = arith.cmpi eq, %19, %276 : vector<8x128xi32>
    %278 = vector.shape_cast %273 : vector<8x1xf32> to vector<8x1xf32>
    %279 = vector.broadcast %278 : vector<8x1xf32> to vector<8x128xf32>
    %280 = arith.select %277, %279, %228 : vector<8x128xi1>, vector<8x128xf32>
    %281 = vector.extract_strided_slice %0 {offsets = [0, 5], sizes = [8, 1], strides = [1, 1]} : vector<8x8xf32> to vector<8x1xf32>
    %282 = vector.broadcast %281 : vector<8x1xf32> to vector<8x512xf32>
    %283 = arith.mulf %282, %11 : vector<8x512xf32>
    %284 = arith.addf %283, %14 : vector<8x512xf32>
    %cst_57 = arith.constant dense<0.000000e+00> : vector<8x512xf32>
    %285 = tpu.matmul %252, %1, %cst_57 {dimension_numbers = #tpu.dot_dimension_numbers<[1], [0], [0], [1], [0, 0, 1, 1], [], []>} : vector<8x128xf32>, vector<128x512xf32>, vector<8x512xf32> -> vector<8x512xf32>
    %286 = arith.addf %284, %285 : vector<8x512xf32>
    %287 = arith.negf %286 : vector<8x512xf32>
    %288 = math.exp %287 : vector<8x512xf32>
    %cst_58 = arith.constant 1.000000e+00 : f32
    %289 = vector.broadcast %cst_58 : f32 to vector<8x512xf32>
    %290 = arith.addf %289, %288 : vector<8x512xf32>
    %291 = arith.divf %289, %290 : vector<8x512xf32>
    %292 = vector.extract_strided_slice %291 {offsets = [0, 0], sizes = [8, 128], strides = [1, 1]} : vector<8x512xf32> to vector<8x128xf32>
    %293 = vector.extract_strided_slice %291 {offsets = [0, 128], sizes = [8, 128], strides = [1, 1]} : vector<8x512xf32> to vector<8x128xf32>
    %294 = vector.extract_strided_slice %291 {offsets = [0, 256], sizes = [8, 128], strides = [1, 1]} : vector<8x512xf32> to vector<8x128xf32>
    %295 = vector.extract_strided_slice %291 {offsets = [0, 384], sizes = [8, 128], strides = [1, 1]} : vector<8x512xf32> to vector<8x128xf32>
    %cst_59 = arith.constant 2.000000e+00 : f32
    %296 = vector.broadcast %cst_59 : f32 to vector<8x128xf32>
    %297 = arith.mulf %296, %295 : vector<8x128xf32>
    %cst_60 = arith.constant 1.000000e+00 : f32
    %298 = vector.broadcast %cst_60 : f32 to vector<8x128xf32>
    %299 = arith.subf %297, %298 : vector<8x128xf32>
    %300 = arith.mulf %293, %250 : vector<8x128xf32>
    %301 = arith.mulf %292, %299 : vector<8x128xf32>
    %302 = arith.addf %300, %301 : vector<8x128xf32>
    %303 = math.tanh %302 : vector<8x128xf32>
    %304 = arith.mulf %294, %303 : vector<8x128xf32>
    %cst_61 = arith.constant dense<0.000000e+00> : vector<8x4xf32>
    %305 = tpu.matmul %302, %2, %cst_61 {dimension_numbers = #tpu.dot_dimension_numbers<[1], [0], [0], [1], [0, 0, 1, 1], [], []>} : vector<8x128xf32>, vector<128x4xf32>, vector<8x4xf32> -> vector<8x4xf32>
    %306 = vector.broadcast %275 : vector<8x1xf32> to vector<8x4xf32>
    %307 = arith.mulf %306, %5 : vector<8x4xf32>
    %308 = arith.addf %305, %307 : vector<8x4xf32>
    %309 = arith.addf %308, %8 : vector<8x4xf32>
    %310 = arith.negf %309 : vector<8x4xf32>
    %311 = math.exp %310 : vector<8x4xf32>
    %cst_62 = arith.constant 1.000000e+00 : f32
    %312 = vector.broadcast %cst_62 : f32 to vector<8x4xf32>
    %313 = arith.addf %312, %311 : vector<8x4xf32>
    %314 = arith.divf %312, %313 : vector<8x4xf32>
    %315 = vector.extract_strided_slice %314 {offsets = [0, 0], sizes = [8, 1], strides = [1, 1]} : vector<8x4xf32> to vector<8x1xf32>
    %316 = vector.extract_strided_slice %314 {offsets = [0, 1], sizes = [8, 1], strides = [1, 1]} : vector<8x4xf32> to vector<8x1xf32>
    %317 = vector.extract_strided_slice %314 {offsets = [0, 2], sizes = [8, 1], strides = [1, 1]} : vector<8x4xf32> to vector<8x1xf32>
    %318 = vector.extract_strided_slice %314 {offsets = [0, 3], sizes = [8, 1], strides = [1, 1]} : vector<8x4xf32> to vector<8x1xf32>
    %cst_63 = arith.constant 2.000000e+00 : f32
    %319 = vector.broadcast %cst_63 : f32 to vector<8x1xf32>
    %320 = arith.mulf %319, %318 : vector<8x1xf32>
    %cst_64 = arith.constant 1.000000e+00 : f32
    %321 = vector.broadcast %cst_64 : f32 to vector<8x1xf32>
    %322 = arith.subf %320, %321 : vector<8x1xf32>
    %323 = arith.mulf %316, %273 : vector<8x1xf32>
    %324 = arith.mulf %315, %322 : vector<8x1xf32>
    %325 = arith.addf %323, %324 : vector<8x1xf32>
    %326 = math.tanh %325 : vector<8x1xf32>
    %327 = arith.mulf %317, %326 : vector<8x1xf32>
    %c5_i32 = arith.constant 5 : i32
    %328 = vector.broadcast %c5_i32 : i32 to vector<8x128xi32>
    %329 = arith.cmpi eq, %19, %328 : vector<8x128xi32>
    %330 = vector.shape_cast %325 : vector<8x1xf32> to vector<8x1xf32>
    %331 = vector.broadcast %330 : vector<8x1xf32> to vector<8x128xf32>
    %332 = arith.select %329, %331, %280 : vector<8x128xi1>, vector<8x128xf32>
    %333 = vector.extract_strided_slice %0 {offsets = [0, 6], sizes = [8, 1], strides = [1, 1]} : vector<8x8xf32> to vector<8x1xf32>
    %334 = vector.broadcast %333 : vector<8x1xf32> to vector<8x512xf32>
    %335 = arith.mulf %334, %11 : vector<8x512xf32>
    %336 = arith.addf %335, %14 : vector<8x512xf32>
    %cst_65 = arith.constant dense<0.000000e+00> : vector<8x512xf32>
    %337 = tpu.matmul %304, %1, %cst_65 {dimension_numbers = #tpu.dot_dimension_numbers<[1], [0], [0], [1], [0, 0, 1, 1], [], []>} : vector<8x128xf32>, vector<128x512xf32>, vector<8x512xf32> -> vector<8x512xf32>
    %338 = arith.addf %336, %337 : vector<8x512xf32>
    %339 = arith.negf %338 : vector<8x512xf32>
    %340 = math.exp %339 : vector<8x512xf32>
    %cst_66 = arith.constant 1.000000e+00 : f32
    %341 = vector.broadcast %cst_66 : f32 to vector<8x512xf32>
    %342 = arith.addf %341, %340 : vector<8x512xf32>
    %343 = arith.divf %341, %342 : vector<8x512xf32>
    %344 = vector.extract_strided_slice %343 {offsets = [0, 0], sizes = [8, 128], strides = [1, 1]} : vector<8x512xf32> to vector<8x128xf32>
    %345 = vector.extract_strided_slice %343 {offsets = [0, 128], sizes = [8, 128], strides = [1, 1]} : vector<8x512xf32> to vector<8x128xf32>
    %346 = vector.extract_strided_slice %343 {offsets = [0, 256], sizes = [8, 128], strides = [1, 1]} : vector<8x512xf32> to vector<8x128xf32>
    %347 = vector.extract_strided_slice %343 {offsets = [0, 384], sizes = [8, 128], strides = [1, 1]} : vector<8x512xf32> to vector<8x128xf32>
    %cst_67 = arith.constant 2.000000e+00 : f32
    %348 = vector.broadcast %cst_67 : f32 to vector<8x128xf32>
    %349 = arith.mulf %348, %347 : vector<8x128xf32>
    %cst_68 = arith.constant 1.000000e+00 : f32
    %350 = vector.broadcast %cst_68 : f32 to vector<8x128xf32>
    %351 = arith.subf %349, %350 : vector<8x128xf32>
    %352 = arith.mulf %345, %302 : vector<8x128xf32>
    %353 = arith.mulf %344, %351 : vector<8x128xf32>
    %354 = arith.addf %352, %353 : vector<8x128xf32>
    %355 = math.tanh %354 : vector<8x128xf32>
    %356 = arith.mulf %346, %355 : vector<8x128xf32>
    %cst_69 = arith.constant dense<0.000000e+00> : vector<8x4xf32>
    %357 = tpu.matmul %354, %2, %cst_69 {dimension_numbers = #tpu.dot_dimension_numbers<[1], [0], [0], [1], [0, 0, 1, 1], [], []>} : vector<8x128xf32>, vector<128x4xf32>, vector<8x4xf32> -> vector<8x4xf32>
    %358 = vector.broadcast %327 : vector<8x1xf32> to vector<8x4xf32>
    %359 = arith.mulf %358, %5 : vector<8x4xf32>
    %360 = arith.addf %357, %359 : vector<8x4xf32>
    %361 = arith.addf %360, %8 : vector<8x4xf32>
    %362 = arith.negf %361 : vector<8x4xf32>
    %363 = math.exp %362 : vector<8x4xf32>
    %cst_70 = arith.constant 1.000000e+00 : f32
    %364 = vector.broadcast %cst_70 : f32 to vector<8x4xf32>
    %365 = arith.addf %364, %363 : vector<8x4xf32>
    %366 = arith.divf %364, %365 : vector<8x4xf32>
    %367 = vector.extract_strided_slice %366 {offsets = [0, 0], sizes = [8, 1], strides = [1, 1]} : vector<8x4xf32> to vector<8x1xf32>
    %368 = vector.extract_strided_slice %366 {offsets = [0, 1], sizes = [8, 1], strides = [1, 1]} : vector<8x4xf32> to vector<8x1xf32>
    %369 = vector.extract_strided_slice %366 {offsets = [0, 2], sizes = [8, 1], strides = [1, 1]} : vector<8x4xf32> to vector<8x1xf32>
    %370 = vector.extract_strided_slice %366 {offsets = [0, 3], sizes = [8, 1], strides = [1, 1]} : vector<8x4xf32> to vector<8x1xf32>
    %cst_71 = arith.constant 2.000000e+00 : f32
    %371 = vector.broadcast %cst_71 : f32 to vector<8x1xf32>
    %372 = arith.mulf %371, %370 : vector<8x1xf32>
    %cst_72 = arith.constant 1.000000e+00 : f32
    %373 = vector.broadcast %cst_72 : f32 to vector<8x1xf32>
    %374 = arith.subf %372, %373 : vector<8x1xf32>
    %375 = arith.mulf %368, %325 : vector<8x1xf32>
    %376 = arith.mulf %367, %374 : vector<8x1xf32>
    %377 = arith.addf %375, %376 : vector<8x1xf32>
    %378 = math.tanh %377 : vector<8x1xf32>
    %379 = arith.mulf %369, %378 : vector<8x1xf32>
    %c6_i32 = arith.constant 6 : i32
    %380 = vector.broadcast %c6_i32 : i32 to vector<8x128xi32>
    %381 = arith.cmpi eq, %19, %380 : vector<8x128xi32>
    %382 = vector.shape_cast %377 : vector<8x1xf32> to vector<8x1xf32>
    %383 = vector.broadcast %382 : vector<8x1xf32> to vector<8x128xf32>
    %384 = arith.select %381, %383, %332 : vector<8x128xi1>, vector<8x128xf32>
    %385 = vector.extract_strided_slice %0 {offsets = [0, 7], sizes = [8, 1], strides = [1, 1]} : vector<8x8xf32> to vector<8x1xf32>
    %386 = vector.broadcast %385 : vector<8x1xf32> to vector<8x512xf32>
    %387 = arith.mulf %386, %11 : vector<8x512xf32>
    %388 = arith.addf %387, %14 : vector<8x512xf32>
    %cst_73 = arith.constant dense<0.000000e+00> : vector<8x512xf32>
    %389 = tpu.matmul %356, %1, %cst_73 {dimension_numbers = #tpu.dot_dimension_numbers<[1], [0], [0], [1], [0, 0, 1, 1], [], []>} : vector<8x128xf32>, vector<128x512xf32>, vector<8x512xf32> -> vector<8x512xf32>
    %390 = arith.addf %388, %389 : vector<8x512xf32>
    %391 = arith.negf %390 : vector<8x512xf32>
    %392 = math.exp %391 : vector<8x512xf32>
    %cst_74 = arith.constant 1.000000e+00 : f32
    %393 = vector.broadcast %cst_74 : f32 to vector<8x512xf32>
    %394 = arith.addf %393, %392 : vector<8x512xf32>
    %395 = arith.divf %393, %394 : vector<8x512xf32>
    %396 = vector.extract_strided_slice %395 {offsets = [0, 0], sizes = [8, 128], strides = [1, 1]} : vector<8x512xf32> to vector<8x128xf32>
    %397 = vector.extract_strided_slice %395 {offsets = [0, 128], sizes = [8, 128], strides = [1, 1]} : vector<8x512xf32> to vector<8x128xf32>
    %398 = vector.extract_strided_slice %395 {offsets = [0, 256], sizes = [8, 128], strides = [1, 1]} : vector<8x512xf32> to vector<8x128xf32>
    %399 = vector.extract_strided_slice %395 {offsets = [0, 384], sizes = [8, 128], strides = [1, 1]} : vector<8x512xf32> to vector<8x128xf32>
    %cst_75 = arith.constant 2.000000e+00 : f32
    %400 = vector.broadcast %cst_75 : f32 to vector<8x128xf32>
    %401 = arith.mulf %400, %399 : vector<8x128xf32>
    %cst_76 = arith.constant 1.000000e+00 : f32
    %402 = vector.broadcast %cst_76 : f32 to vector<8x128xf32>
    %403 = arith.subf %401, %402 : vector<8x128xf32>
    %404 = arith.mulf %397, %354 : vector<8x128xf32>
    %405 = arith.mulf %396, %403 : vector<8x128xf32>
    %406 = arith.addf %404, %405 : vector<8x128xf32>
    %407 = math.tanh %406 : vector<8x128xf32>
    %408 = arith.mulf %398, %407 : vector<8x128xf32>
    %cst_77 = arith.constant dense<0.000000e+00> : vector<8x4xf32>
    %409 = tpu.matmul %406, %2, %cst_77 {dimension_numbers = #tpu.dot_dimension_numbers<[1], [0], [0], [1], [0, 0, 1, 1], [], []>} : vector<8x128xf32>, vector<128x4xf32>, vector<8x4xf32> -> vector<8x4xf32>
    %410 = vector.broadcast %379 : vector<8x1xf32> to vector<8x4xf32>
    %411 = arith.mulf %410, %5 : vector<8x4xf32>
    %412 = arith.addf %409, %411 : vector<8x4xf32>
    %413 = arith.addf %412, %8 : vector<8x4xf32>
    %414 = arith.negf %413 : vector<8x4xf32>
    %415 = math.exp %414 : vector<8x4xf32>
    %cst_78 = arith.constant 1.000000e+00 : f32
    %416 = vector.broadcast %cst_78 : f32 to vector<8x4xf32>
    %417 = arith.addf %416, %415 : vector<8x4xf32>
    %418 = arith.divf %416, %417 : vector<8x4xf32>
    %419 = vector.extract_strided_slice %418 {offsets = [0, 0], sizes = [8, 1], strides = [1, 1]} : vector<8x4xf32> to vector<8x1xf32>
    %420 = vector.extract_strided_slice %418 {offsets = [0, 1], sizes = [8, 1], strides = [1, 1]} : vector<8x4xf32> to vector<8x1xf32>
    %421 = vector.extract_strided_slice %418 {offsets = [0, 2], sizes = [8, 1], strides = [1, 1]} : vector<8x4xf32> to vector<8x1xf32>
    %422 = vector.extract_strided_slice %418 {offsets = [0, 3], sizes = [8, 1], strides = [1, 1]} : vector<8x4xf32> to vector<8x1xf32>
    %cst_79 = arith.constant 2.000000e+00 : f32
    %423 = vector.broadcast %cst_79 : f32 to vector<8x1xf32>
    %424 = arith.mulf %423, %422 : vector<8x1xf32>
    %cst_80 = arith.constant 1.000000e+00 : f32
    %425 = vector.broadcast %cst_80 : f32 to vector<8x1xf32>
    %426 = arith.subf %424, %425 : vector<8x1xf32>
    %427 = arith.mulf %420, %377 : vector<8x1xf32>
    %428 = arith.mulf %419, %426 : vector<8x1xf32>
    %429 = arith.addf %427, %428 : vector<8x1xf32>
    %430 = math.tanh %429 : vector<8x1xf32>
    %431 = arith.mulf %421, %430 : vector<8x1xf32>
    %c7_i32 = arith.constant 7 : i32
    %432 = vector.broadcast %c7_i32 : i32 to vector<8x128xi32>
    %433 = arith.cmpi eq, %19, %432 : vector<8x128xi32>
    %434 = vector.shape_cast %429 : vector<8x1xf32> to vector<8x1xf32>
    %435 = vector.broadcast %434 : vector<8x1xf32> to vector<8x128xf32>
    %436 = arith.select %433, %435, %384 : vector<8x128xi1>, vector<8x128xf32>
    %437 = vector.broadcast %429 : vector<8x1xf32> to vector<8x512xf32>
    %438 = arith.mulf %437, %11 : vector<8x512xf32>
    %439 = arith.addf %438, %14 : vector<8x512xf32>
    %cst_81 = arith.constant dense<0.000000e+00> : vector<8x512xf32>
    %440 = tpu.matmul %408, %1, %cst_81 {dimension_numbers = #tpu.dot_dimension_numbers<[1], [0], [0], [1], [0, 0, 1, 1], [], []>} : vector<8x128xf32>, vector<128x512xf32>, vector<8x512xf32> -> vector<8x512xf32>
    %441 = arith.addf %439, %440 : vector<8x512xf32>
    %442 = arith.negf %441 : vector<8x512xf32>
    %443 = math.exp %442 : vector<8x512xf32>
    %cst_82 = arith.constant 1.000000e+00 : f32
    %444 = vector.broadcast %cst_82 : f32 to vector<8x512xf32>
    %445 = arith.addf %444, %443 : vector<8x512xf32>
    %446 = arith.divf %444, %445 : vector<8x512xf32>
    %447 = vector.extract_strided_slice %446 {offsets = [0, 0], sizes = [8, 128], strides = [1, 1]} : vector<8x512xf32> to vector<8x128xf32>
    %448 = vector.extract_strided_slice %446 {offsets = [0, 128], sizes = [8, 128], strides = [1, 1]} : vector<8x512xf32> to vector<8x128xf32>
    %449 = vector.extract_strided_slice %446 {offsets = [0, 256], sizes = [8, 128], strides = [1, 1]} : vector<8x512xf32> to vector<8x128xf32>
    %450 = vector.extract_strided_slice %446 {offsets = [0, 384], sizes = [8, 128], strides = [1, 1]} : vector<8x512xf32> to vector<8x128xf32>
    %cst_83 = arith.constant 2.000000e+00 : f32
    %451 = vector.broadcast %cst_83 : f32 to vector<8x128xf32>
    %452 = arith.mulf %451, %450 : vector<8x128xf32>
    %cst_84 = arith.constant 1.000000e+00 : f32
    %453 = vector.broadcast %cst_84 : f32 to vector<8x128xf32>
    %454 = arith.subf %452, %453 : vector<8x128xf32>
    %455 = arith.mulf %448, %406 : vector<8x128xf32>
    %456 = arith.mulf %447, %454 : vector<8x128xf32>
    %457 = arith.addf %455, %456 : vector<8x128xf32>
    %458 = math.tanh %457 : vector<8x128xf32>
    %459 = arith.mulf %449, %458 : vector<8x128xf32>
    %cst_85 = arith.constant dense<0.000000e+00> : vector<8x4xf32>
    %460 = tpu.matmul %457, %2, %cst_85 {dimension_numbers = #tpu.dot_dimension_numbers<[1], [0], [0], [1], [0, 0, 1, 1], [], []>} : vector<8x128xf32>, vector<128x4xf32>, vector<8x4xf32> -> vector<8x4xf32>
    %461 = vector.broadcast %431 : vector<8x1xf32> to vector<8x4xf32>
    %462 = arith.mulf %461, %5 : vector<8x4xf32>
    %463 = arith.addf %460, %462 : vector<8x4xf32>
    %464 = arith.addf %463, %8 : vector<8x4xf32>
    %465 = arith.negf %464 : vector<8x4xf32>
    %466 = math.exp %465 : vector<8x4xf32>
    %cst_86 = arith.constant 1.000000e+00 : f32
    %467 = vector.broadcast %cst_86 : f32 to vector<8x4xf32>
    %468 = arith.addf %467, %466 : vector<8x4xf32>
    %469 = arith.divf %467, %468 : vector<8x4xf32>
    %470 = vector.extract_strided_slice %469 {offsets = [0, 0], sizes = [8, 1], strides = [1, 1]} : vector<8x4xf32> to vector<8x1xf32>
    %471 = vector.extract_strided_slice %469 {offsets = [0, 1], sizes = [8, 1], strides = [1, 1]} : vector<8x4xf32> to vector<8x1xf32>
    %472 = vector.extract_strided_slice %469 {offsets = [0, 2], sizes = [8, 1], strides = [1, 1]} : vector<8x4xf32> to vector<8x1xf32>
    %473 = vector.extract_strided_slice %469 {offsets = [0, 3], sizes = [8, 1], strides = [1, 1]} : vector<8x4xf32> to vector<8x1xf32>
    %cst_87 = arith.constant 2.000000e+00 : f32
    %474 = vector.broadcast %cst_87 : f32 to vector<8x1xf32>
    %475 = arith.mulf %474, %473 : vector<8x1xf32>
    %cst_88 = arith.constant 1.000000e+00 : f32
    %476 = vector.broadcast %cst_88 : f32 to vector<8x1xf32>
    %477 = arith.subf %475, %476 : vector<8x1xf32>
    %478 = arith.mulf %471, %429 : vector<8x1xf32>
    %479 = arith.mulf %470, %477 : vector<8x1xf32>
    %480 = arith.addf %478, %479 : vector<8x1xf32>
    %481 = math.tanh %480 : vector<8x1xf32>
    %482 = arith.mulf %472, %481 : vector<8x1xf32>
    %c8_i32 = arith.constant 8 : i32
    %483 = vector.broadcast %c8_i32 : i32 to vector<8x128xi32>
    %484 = arith.cmpi eq, %19, %483 : vector<8x128xi32>
    %485 = vector.shape_cast %480 : vector<8x1xf32> to vector<8x1xf32>
    %486 = vector.broadcast %485 : vector<8x1xf32> to vector<8x128xf32>
    %487 = arith.select %484, %486, %436 : vector<8x128xi1>, vector<8x128xf32>
    %488 = vector.broadcast %480 : vector<8x1xf32> to vector<8x512xf32>
    %489 = arith.mulf %488, %11 : vector<8x512xf32>
    %490 = arith.addf %489, %14 : vector<8x512xf32>
    %cst_89 = arith.constant dense<0.000000e+00> : vector<8x512xf32>
    %491 = tpu.matmul %459, %1, %cst_89 {dimension_numbers = #tpu.dot_dimension_numbers<[1], [0], [0], [1], [0, 0, 1, 1], [], []>} : vector<8x128xf32>, vector<128x512xf32>, vector<8x512xf32> -> vector<8x512xf32>
    %492 = arith.addf %490, %491 : vector<8x512xf32>
    %493 = arith.negf %492 : vector<8x512xf32>
    %494 = math.exp %493 : vector<8x512xf32>
    %cst_90 = arith.constant 1.000000e+00 : f32
    %495 = vector.broadcast %cst_90 : f32 to vector<8x512xf32>
    %496 = arith.addf %495, %494 : vector<8x512xf32>
    %497 = arith.divf %495, %496 : vector<8x512xf32>
    %498 = vector.extract_strided_slice %497 {offsets = [0, 0], sizes = [8, 128], strides = [1, 1]} : vector<8x512xf32> to vector<8x128xf32>
    %499 = vector.extract_strided_slice %497 {offsets = [0, 128], sizes = [8, 128], strides = [1, 1]} : vector<8x512xf32> to vector<8x128xf32>
    %500 = vector.extract_strided_slice %497 {offsets = [0, 256], sizes = [8, 128], strides = [1, 1]} : vector<8x512xf32> to vector<8x128xf32>
    %501 = vector.extract_strided_slice %497 {offsets = [0, 384], sizes = [8, 128], strides = [1, 1]} : vector<8x512xf32> to vector<8x128xf32>
    %cst_91 = arith.constant 2.000000e+00 : f32
    %502 = vector.broadcast %cst_91 : f32 to vector<8x128xf32>
    %503 = arith.mulf %502, %501 : vector<8x128xf32>
    %cst_92 = arith.constant 1.000000e+00 : f32
    %504 = vector.broadcast %cst_92 : f32 to vector<8x128xf32>
    %505 = arith.subf %503, %504 : vector<8x128xf32>
    %506 = arith.mulf %499, %457 : vector<8x128xf32>
    %507 = arith.mulf %498, %505 : vector<8x128xf32>
    %508 = arith.addf %506, %507 : vector<8x128xf32>
    %509 = math.tanh %508 : vector<8x128xf32>
    %510 = arith.mulf %500, %509 : vector<8x128xf32>
    %cst_93 = arith.constant dense<0.000000e+00> : vector<8x4xf32>
    %511 = tpu.matmul %508, %2, %cst_93 {dimension_numbers = #tpu.dot_dimension_numbers<[1], [0], [0], [1], [0, 0, 1, 1], [], []>} : vector<8x128xf32>, vector<128x4xf32>, vector<8x4xf32> -> vector<8x4xf32>
    %512 = vector.broadcast %482 : vector<8x1xf32> to vector<8x4xf32>
    %513 = arith.mulf %512, %5 : vector<8x4xf32>
    %514 = arith.addf %511, %513 : vector<8x4xf32>
    %515 = arith.addf %514, %8 : vector<8x4xf32>
    %516 = arith.negf %515 : vector<8x4xf32>
    %517 = math.exp %516 : vector<8x4xf32>
    %cst_94 = arith.constant 1.000000e+00 : f32
    %518 = vector.broadcast %cst_94 : f32 to vector<8x4xf32>
    %519 = arith.addf %518, %517 : vector<8x4xf32>
    %520 = arith.divf %518, %519 : vector<8x4xf32>
    %521 = vector.extract_strided_slice %520 {offsets = [0, 0], sizes = [8, 1], strides = [1, 1]} : vector<8x4xf32> to vector<8x1xf32>
    %522 = vector.extract_strided_slice %520 {offsets = [0, 1], sizes = [8, 1], strides = [1, 1]} : vector<8x4xf32> to vector<8x1xf32>
    %523 = vector.extract_strided_slice %520 {offsets = [0, 2], sizes = [8, 1], strides = [1, 1]} : vector<8x4xf32> to vector<8x1xf32>
    %524 = vector.extract_strided_slice %520 {offsets = [0, 3], sizes = [8, 1], strides = [1, 1]} : vector<8x4xf32> to vector<8x1xf32>
    %cst_95 = arith.constant 2.000000e+00 : f32
    %525 = vector.broadcast %cst_95 : f32 to vector<8x1xf32>
    %526 = arith.mulf %525, %524 : vector<8x1xf32>
    %cst_96 = arith.constant 1.000000e+00 : f32
    %527 = vector.broadcast %cst_96 : f32 to vector<8x1xf32>
    %528 = arith.subf %526, %527 : vector<8x1xf32>
    %529 = arith.mulf %522, %480 : vector<8x1xf32>
    %530 = arith.mulf %521, %528 : vector<8x1xf32>
    %531 = arith.addf %529, %530 : vector<8x1xf32>
    %532 = math.tanh %531 : vector<8x1xf32>
    %533 = arith.mulf %523, %532 : vector<8x1xf32>
    %c9_i32 = arith.constant 9 : i32
    %534 = vector.broadcast %c9_i32 : i32 to vector<8x128xi32>
    %535 = arith.cmpi eq, %19, %534 : vector<8x128xi32>
    %536 = vector.shape_cast %531 : vector<8x1xf32> to vector<8x1xf32>
    %537 = vector.broadcast %536 : vector<8x1xf32> to vector<8x128xf32>
    %538 = arith.select %535, %537, %487 : vector<8x128xi1>, vector<8x128xf32>
    %539 = vector.broadcast %531 : vector<8x1xf32> to vector<8x512xf32>
    %540 = arith.mulf %539, %11 : vector<8x512xf32>
    %541 = arith.addf %540, %14 : vector<8x512xf32>
    %cst_97 = arith.constant dense<0.000000e+00> : vector<8x512xf32>
    %542 = tpu.matmul %510, %1, %cst_97 {dimension_numbers = #tpu.dot_dimension_numbers<[1], [0], [0], [1], [0, 0, 1, 1], [], []>} : vector<8x128xf32>, vector<128x512xf32>, vector<8x512xf32> -> vector<8x512xf32>
    %543 = arith.addf %541, %542 : vector<8x512xf32>
    %544 = arith.negf %543 : vector<8x512xf32>
    %545 = math.exp %544 : vector<8x512xf32>
    %cst_98 = arith.constant 1.000000e+00 : f32
    %546 = vector.broadcast %cst_98 : f32 to vector<8x512xf32>
    %547 = arith.addf %546, %545 : vector<8x512xf32>
    %548 = arith.divf %546, %547 : vector<8x512xf32>
    %549 = vector.extract_strided_slice %548 {offsets = [0, 0], sizes = [8, 128], strides = [1, 1]} : vector<8x512xf32> to vector<8x128xf32>
    %550 = vector.extract_strided_slice %548 {offsets = [0, 128], sizes = [8, 128], strides = [1, 1]} : vector<8x512xf32> to vector<8x128xf32>
    %551 = vector.extract_strided_slice %548 {offsets = [0, 256], sizes = [8, 128], strides = [1, 1]} : vector<8x512xf32> to vector<8x128xf32>
    %552 = vector.extract_strided_slice %548 {offsets = [0, 384], sizes = [8, 128], strides = [1, 1]} : vector<8x512xf32> to vector<8x128xf32>
    %cst_99 = arith.constant 2.000000e+00 : f32
    %553 = vector.broadcast %cst_99 : f32 to vector<8x128xf32>
    %554 = arith.mulf %553, %552 : vector<8x128xf32>
    %cst_100 = arith.constant 1.000000e+00 : f32
    %555 = vector.broadcast %cst_100 : f32 to vector<8x128xf32>
    %556 = arith.subf %554, %555 : vector<8x128xf32>
    %557 = arith.mulf %550, %508 : vector<8x128xf32>
    %558 = arith.mulf %549, %556 : vector<8x128xf32>
    %559 = arith.addf %557, %558 : vector<8x128xf32>
    %560 = math.tanh %559 : vector<8x128xf32>
    %561 = arith.mulf %551, %560 : vector<8x128xf32>
    %cst_101 = arith.constant dense<0.000000e+00> : vector<8x4xf32>
    %562 = tpu.matmul %559, %2, %cst_101 {dimension_numbers = #tpu.dot_dimension_numbers<[1], [0], [0], [1], [0, 0, 1, 1], [], []>} : vector<8x128xf32>, vector<128x4xf32>, vector<8x4xf32> -> vector<8x4xf32>
    %563 = vector.broadcast %533 : vector<8x1xf32> to vector<8x4xf32>
    %564 = arith.mulf %563, %5 : vector<8x4xf32>
    %565 = arith.addf %562, %564 : vector<8x4xf32>
    %566 = arith.addf %565, %8 : vector<8x4xf32>
    %567 = arith.negf %566 : vector<8x4xf32>
    %568 = math.exp %567 : vector<8x4xf32>
    %cst_102 = arith.constant 1.000000e+00 : f32
    %569 = vector.broadcast %cst_102 : f32 to vector<8x4xf32>
    %570 = arith.addf %569, %568 : vector<8x4xf32>
    %571 = arith.divf %569, %570 : vector<8x4xf32>
    %572 = vector.extract_strided_slice %571 {offsets = [0, 0], sizes = [8, 1], strides = [1, 1]} : vector<8x4xf32> to vector<8x1xf32>
    %573 = vector.extract_strided_slice %571 {offsets = [0, 1], sizes = [8, 1], strides = [1, 1]} : vector<8x4xf32> to vector<8x1xf32>
    %574 = vector.extract_strided_slice %571 {offsets = [0, 2], sizes = [8, 1], strides = [1, 1]} : vector<8x4xf32> to vector<8x1xf32>
    %575 = vector.extract_strided_slice %571 {offsets = [0, 3], sizes = [8, 1], strides = [1, 1]} : vector<8x4xf32> to vector<8x1xf32>
    %cst_103 = arith.constant 2.000000e+00 : f32
    %576 = vector.broadcast %cst_103 : f32 to vector<8x1xf32>
    %577 = arith.mulf %576, %575 : vector<8x1xf32>
    %cst_104 = arith.constant 1.000000e+00 : f32
    %578 = vector.broadcast %cst_104 : f32 to vector<8x1xf32>
    %579 = arith.subf %577, %578 : vector<8x1xf32>
    %580 = arith.mulf %573, %531 : vector<8x1xf32>
    %581 = arith.mulf %572, %579 : vector<8x1xf32>
    %582 = arith.addf %580, %581 : vector<8x1xf32>
    %583 = math.tanh %582 : vector<8x1xf32>
    %584 = arith.mulf %574, %583 : vector<8x1xf32>
    %c10_i32 = arith.constant 10 : i32
    %585 = vector.broadcast %c10_i32 : i32 to vector<8x128xi32>
    %586 = arith.cmpi eq, %19, %585 : vector<8x128xi32>
    %587 = vector.shape_cast %582 : vector<8x1xf32> to vector<8x1xf32>
    %588 = vector.broadcast %587 : vector<8x1xf32> to vector<8x128xf32>
    %589 = arith.select %586, %588, %538 : vector<8x128xi1>, vector<8x128xf32>
    %590 = vector.broadcast %582 : vector<8x1xf32> to vector<8x512xf32>
    %591 = arith.mulf %590, %11 : vector<8x512xf32>
    %592 = arith.addf %591, %14 : vector<8x512xf32>
    %cst_105 = arith.constant dense<0.000000e+00> : vector<8x512xf32>
    %593 = tpu.matmul %561, %1, %cst_105 {dimension_numbers = #tpu.dot_dimension_numbers<[1], [0], [0], [1], [0, 0, 1, 1], [], []>} : vector<8x128xf32>, vector<128x512xf32>, vector<8x512xf32> -> vector<8x512xf32>
    %594 = arith.addf %592, %593 : vector<8x512xf32>
    %595 = arith.negf %594 : vector<8x512xf32>
    %596 = math.exp %595 : vector<8x512xf32>
    %cst_106 = arith.constant 1.000000e+00 : f32
    %597 = vector.broadcast %cst_106 : f32 to vector<8x512xf32>
    %598 = arith.addf %597, %596 : vector<8x512xf32>
    %599 = arith.divf %597, %598 : vector<8x512xf32>
    %600 = vector.extract_strided_slice %599 {offsets = [0, 0], sizes = [8, 128], strides = [1, 1]} : vector<8x512xf32> to vector<8x128xf32>
    %601 = vector.extract_strided_slice %599 {offsets = [0, 128], sizes = [8, 128], strides = [1, 1]} : vector<8x512xf32> to vector<8x128xf32>
    %602 = vector.extract_strided_slice %599 {offsets = [0, 384], sizes = [8, 128], strides = [1, 1]} : vector<8x512xf32> to vector<8x128xf32>
    %cst_107 = arith.constant 2.000000e+00 : f32
    %603 = vector.broadcast %cst_107 : f32 to vector<8x128xf32>
    %604 = arith.mulf %603, %602 : vector<8x128xf32>
    %cst_108 = arith.constant 1.000000e+00 : f32
    %605 = vector.broadcast %cst_108 : f32 to vector<8x128xf32>
    %606 = arith.subf %604, %605 : vector<8x128xf32>
    %607 = arith.mulf %601, %559 : vector<8x128xf32>
    %608 = arith.mulf %600, %606 : vector<8x128xf32>
    %609 = arith.addf %607, %608 : vector<8x128xf32>
    %cst_109 = arith.constant dense<0.000000e+00> : vector<8x4xf32>
    %610 = tpu.matmul %609, %2, %cst_109 {dimension_numbers = #tpu.dot_dimension_numbers<[1], [0], [0], [1], [0, 0, 1, 1], [], []>} : vector<8x128xf32>, vector<128x4xf32>, vector<8x4xf32> -> vector<8x4xf32>
    %611 = vector.broadcast %584 : vector<8x1xf32> to vector<8x4xf32>
    %612 = arith.mulf %611, %5 : vector<8x4xf32>
    %613 = arith.addf %610, %612 : vector<8x4xf32>
    %614 = arith.addf %613, %8 : vector<8x4xf32>
    %615 = arith.negf %614 : vector<8x4xf32>
    %616 = math.exp %615 : vector<8x4xf32>
    %cst_110 = arith.constant 1.000000e+00 : f32
    %617 = vector.broadcast %cst_110 : f32 to vector<8x4xf32>
    %618 = arith.addf %617, %616 : vector<8x4xf32>
    %619 = arith.divf %617, %618 : vector<8x4xf32>
    %620 = vector.extract_strided_slice %619 {offsets = [0, 0], sizes = [8, 1], strides = [1, 1]} : vector<8x4xf32> to vector<8x1xf32>
    %621 = vector.extract_strided_slice %619 {offsets = [0, 1], sizes = [8, 1], strides = [1, 1]} : vector<8x4xf32> to vector<8x1xf32>
    %622 = vector.extract_strided_slice %619 {offsets = [0, 3], sizes = [8, 1], strides = [1, 1]} : vector<8x4xf32> to vector<8x1xf32>
    %cst_111 = arith.constant 2.000000e+00 : f32
    %623 = vector.broadcast %cst_111 : f32 to vector<8x1xf32>
    %624 = arith.mulf %623, %622 : vector<8x1xf32>
    %cst_112 = arith.constant 1.000000e+00 : f32
    %625 = vector.broadcast %cst_112 : f32 to vector<8x1xf32>
    %626 = arith.subf %624, %625 : vector<8x1xf32>
    %627 = arith.mulf %621, %582 : vector<8x1xf32>
    %628 = arith.mulf %620, %626 : vector<8x1xf32>
    %629 = arith.addf %627, %628 : vector<8x1xf32>
    %c11_i32 = arith.constant 11 : i32
    %630 = vector.broadcast %c11_i32 : i32 to vector<8x128xi32>
    %631 = arith.cmpi eq, %19, %630 : vector<8x128xi32>
    %632 = vector.shape_cast %629 : vector<8x1xf32> to vector<8x1xf32>
    %633 = vector.broadcast %632 : vector<8x1xf32> to vector<8x128xf32>
    %634 = arith.select %631, %633, %589 : vector<8x128xi1>, vector<8x128xf32>
    %c0_113 = arith.constant 0 : index
    %c0_114 = arith.constant 0 : index
    %635 = vector.load %arg7[%c0_113, %c0_114] : memref<8x128xf32, #tpu.memory_space<vmem>>, vector<8x128xf32>
    tpu.vector_store %arg7[%c0_113, %c0_114], %634 {strides = array<i32>} : memref<8x128xf32, #tpu.memory_space<vmem>>, vector<8x128xf32>,
    return
  }
}

</mosaic_0001>

<bundles_post_ra>
// kernel: tpu_custom_call.1
= control target key start
LH: loop header
LB: loop body
LE: loop exit
PB: predicated region body
PF: predicated region fallthrough
CT: control target
= control target key end

     0   :  { %12 = vsyncpa [#allocation3], 0  ;;  %s6276_s0 = inlined_call_operand.vmem [shape: f32[8,8], index: 0, kind: input, shape index: {}]   ;;  %s6277_s1 = inlined_call_operand.hbm [shape: f32[128,512], index: 1, kind: input, shape index: {}]   ;;  %s6278_s2 = inlined_call_operand.vmem [shape: f32[1,512], index: 2, kind: input, shape index: {}]   ;;  %s6279_s3 = inlined_call_operand.vmem [shape: f32[1,512], index: 3, kind: input, shape index: {}]   ;;  %s6280_s4 = inlined_call_operand.vmem [shape: f32[128,4], index: 4, kind: input, shape index: {}]   ;;  %s6281_s5 = inlined_call_operand.vmem [shape: f32[1,4], index: 5, kind: input, shape index: {}]   ;;  %s6282_s6 = inlined_call_operand.vmem [shape: f32[1,4], index: 6, kind: input, shape index: {}]   ;;  %s6283_s7 = inlined_call_operand.hbm [shape: f32[8,128], index: 7, kind: output, shape index: {}]  }
   0x1   :  { %13 = vsyncpa [#allocation4], 0  ;;  %s20_s26 = sshll.u32 %s6277_s1, 4  ;;  %s3825_s27 = smov [#allocation2]   ;;  %s21_s26 = int_to_ptr.hbm [resolvable:$true] %s20_s26 }
   0x2   :  { %s22_s28 = sshll.u32 %s3825_s27, 4  ;;  %s3826_s29 = smov 512   ;;  %s23_s28 = int_to_ptr.vmem [resolvable:$true] %s22_s28 }
   0x3   :  { %s3827_s30 = smov 32  }
   0x4   :  { %28 = dma.hbm_to_vmem [thread:$0]  %s21_s26, 8192, %s23_s28, [#allocation3], %s3826_s29, %s3826_s29, %s3827_s30  }
   0x5   :  { %3821 = dma.done.wait [#allocation3], 8192  }
   0x6   :  { %3822 = vsyncadd [#allocation3], 4294959104  ;;  %v3883_v0 = vld [vmem:[#allocation2 + $0x1e0] sm:$0xff]  ;;  %v3885_v1 = vld [vmem:[#allocation2 + $0x1e8] sm:$0xff]  ;;  %s3831_s23 = smov 125   ;;  %s3833_s24 = smov 1  }
   0x7   :  { %6613 = vst [vmem:[#allocation8_spill] sm:$0xff] %v3885_v1  ;;  %v3887_v2 = vld [vmem:[#allocation2 + $0x1f0] sm:$0xff]  ;;  %167 = vmatpush.msra.mxu0 %v3883_v0  ;;  %187 = vmatpush.msra.mxu1 %v3885_v1  ;;  %v3891_v3 = vld [vmem:[#allocation2 + $0x1f8] sm:$0xff]  ;;  %v3893_v4 = vld [vmem:[#allocation2 + $0x1c0] sm:$0xff]  ;;  %s3104_s13 = sshll.u32 %s6283_s7, 4  ;;  %s3105_s13 = int_to_ptr.hbm [resolvable:$true] %s3104_s13 }
   0x8   :  { %v3895_v5 = vld [vmem:[#allocation2 + $0x1c8] sm:$0xff]  ;;  %207 = vmatpush.msra.mxu2 %v3887_v2  ;;  %227 = vmatpush.msra.mxu3 %v3891_v3  ;;  %v3899_v6 = vld [vmem:[#allocation2 + $0x1d0] sm:$0xff]  ;;  %v3901_v7 = vld [vmem:[#allocation2 + $0x1d8] sm:$0xff] }
   0x9   :  { %6614 = vst [vmem:[#allocation9_spill] sm:$0xff] %v3895_v5  ;;  %v3903_v8 = vld [vmem:[#allocation2 + $0x1a0] sm:$0xff]  ;;  %168 = vmatpush.msra.mxu0 %v3893_v4  ;;  %188 = vmatpush.msra.mxu1 %v3895_v5  ;;  %v3907_v9 = vld [vmem:[#allocation2 + $0x1a8] sm:$0xff]  ;;  %v3909_v10 = vld [vmem:[#allocation2 + $0x1b0] sm:$0xff] }
   0xa   :  { %6615 = vst [vmem:[#allocation10_spill] sm:$0xff] %v3907_v9  ;;  %v3911_v11 = vld [vmem:[#allocation2 + $0x1b8] sm:$0xff]  ;;  %208 = vmatpush.msra.mxu2 %v3899_v6  ;;  %228 = vmatpush.msra.mxu3 %v3901_v7  ;;  %v3915_v12 = vld [vmem:[#allocation2 + $0x180] sm:$0xff]  ;;  %v3917_v13 = vld [vmem:[#allocation2 + $0x188] sm:$0xff] }
   0xb   :  { %6616 = vst [vmem:[#allocation11_spill] sm:$0xff] %v3917_v13  ;;  %169 = vmatpush.msra.mxu0 %v3903_v8  ;;  %189 = vmatpush.msra.mxu1 %v3907_v9  ;;  %v3921_v14 = vld [vmem:[#allocation2 + $0x190] sm:$0xff]  ;;  %v3923_v15 = vld [vmem:[#allocation2 + $0x198] sm:$0xff]  ;;  %v3927_v16 = vld [vmem:[#allocation2 + $0x160] sm:$0xff] }
   0xc   :  { %209 = vmatpush.msra.mxu2 %v3909_v10  ;;  %229 = vmatpush.msra.mxu3 %v3911_v11  ;;  %v3929_v17 = vld [vmem:[#allocation2 + $0x168] sm:$0xff]  ;;  %v3933_v18 = vld [vmem:[#allocation2 + $0x170] sm:$0xff]  ;;  %v3935_v19 = vld [vmem:[#allocation2 + $0x178] sm:$0xff] }
   0xd   :  { %6617 = vst [vmem:[#allocation12_spill] sm:$0xff] %v3929_v17  ;;  %170 = vmatpush.msra.mxu0 %v3915_v12  ;;  %190 = vmatpush.msra.mxu1 %v3917_v13  ;;  %v3939_v20 = vld [vmem:[#allocation2 + $0x140] sm:$0xff]  ;;  %v3941_v21 = vld [vmem:[#allocation2 + $0x148] sm:$0xff]  ;;  %v3945_v22 = vld [vmem:[#allocation2 + $0x150] sm:$0xff] }
   0xe   :  { %210 = vmatpush.msra.mxu2 %v3921_v14  ;;  %230 = vmatpush.msra.mxu3 %v3923_v15  ;;  %6618 = vst [vmem:[#allocation13_spill] sm:$0xff] %v3941_v21  ;;  %v3947_v23 = vld [vmem:[#allocation2 + $0x158] sm:$0xff]  ;;  %v3951_v24 = vld [vmem:[#allocation2 + $0x120] sm:$0xff]  ;;  %v3953_v25 = vld [vmem:[#allocation2 + $0x128] sm:$0xff] }
   0xf   :  { %171 = vmatpush.msra.mxu0 %v3927_v16  ;;  %191 = vmatpush.msra.mxu1 %v3929_v17  ;;  %6619 = vst [vmem:[#allocation14_spill] sm:$0xff] %v3953_v25  ;;  %v3957_v26 = vld [vmem:[#allocation2 + $0x130] sm:$0xff]  ;;  %v3959_v27 = vld [vmem:[#allocation2 + $0x138] sm:$0xff]  ;;  %v3963_v28 = vld [vmem:[#allocation2 + $0x100] sm:$0xff] }
  0x10   :  { %211 = vmatpush.msra.mxu2 %v3933_v18  ;;  %231 = vmatpush.msra.mxu3 %v3935_v19  ;;  %6620 = vst [vmem:[#allocation15_spill] sm:$0xff] %v3963_v28  ;;  %v3965_v29 = vld [vmem:[#allocation2 + $0x108] sm:$0xff]  ;;  %v3969_v30 = vld [vmem:[#allocation2 + $0x110] sm:$0xff]  ;;  %v3971_v31 = vld [vmem:[#allocation2 + $0x118] sm:$0xff] }
  0x11   :  { %172 = vmatpush.msra.mxu0 %v3939_v20  ;;  %192 = vmatpush.msra.mxu1 %v3941_v21  ;;  %6621 = vst [vmem:[#allocation16_spill] sm:$0xff] %v3965_v29  ;;  %v3975_v32 = vld [vmem:[#allocation2 + $0xe0] sm:$0xff]  ;;  %v3977_v33 = vld [vmem:[#allocation2 + $0xe8] sm:$0xff]  ;;  %v3981_v34 = vld [vmem:[#allocation2 + $0xf0] sm:$0xff] }
  0x12   :  { %212 = vmatpush.msra.mxu2 %v3945_v22  ;;  %232 = vmatpush.msra.mxu3 %v3947_v23  ;;  %6622 = vst [vmem:[#allocation17_spill] sm:$0xff] %v3975_v32  ;;  %v3983_v35 = vld [vmem:[#allocation2 + $0xf8] sm:$0xff]  ;;  %v3987_v36 = vld [vmem:[#allocation2 + $0xc0] sm:$0xff]  ;;  %v3989_v37 = vld [vmem:[#allocation2 + $0xc8] sm:$0xff] }
  0x13   :  { %173 = vmatpush.msra.mxu0 %v3951_v24  ;;  %193 = vmatpush.msra.mxu1 %v3953_v25  ;;  %6623 = vst [vmem:[#allocation18_spill] sm:$0xff] %v3977_v33  ;;  %v3993_v38 = vld [vmem:[#allocation2 + $0xd0] sm:$0xff]  ;;  %v3995_v39 = vld [vmem:[#allocation2 + $0xd8] sm:$0xff]  ;;  %v3999_v40 = vld [vmem:[#allocation2 + $0xa0] sm:$0xff] }
  0x14   :  { %213 = vmatpush.msra.mxu2 %v3957_v26  ;;  %233 = vmatpush.msra.mxu3 %v3959_v27  ;;  %6624 = vst [vmem:[#allocation19_spill] sm:$0xff] %v3983_v35  ;;  %v4001_v41 = vld [vmem:[#allocation2 + $0xa8] sm:$0xff]  ;;  %v4005_v42 = vld [vmem:[#allocation2 + $0xb0] sm:$0xff]  ;;  %v4007_v43 = vld [vmem:[#allocation2 + $0xb8] sm:$0xff] }
  0x15   :  { %174 = vmatpush.msra.mxu0 %v3963_v28  ;;  %194 = vmatpush.msra.mxu1 %v3965_v29  ;;  %6625 = vst [vmem:[#allocation20_spill] sm:$0xff] %v3987_v36  ;;  %v4011_v44 = vld [vmem:[#allocation2 + $0x80] sm:$0xff]  ;;  %v4013_v45 = vld [vmem:[#allocation2 + $0x88] sm:$0xff]  ;;  %v4017_v46 = vld [vmem:[#allocation2 + $0x90] sm:$0xff] }
  0x16   :  { %214 = vmatpush.msra.mxu2 %v3969_v30  ;;  %234 = vmatpush.msra.mxu3 %v3971_v31  ;;  %6626 = vst [vmem:[#allocation21_spill] sm:$0xff] %v3989_v37  ;;  %v4019_v47 = vld [vmem:[#allocation2 + $0x98] sm:$0xff]  ;;  %v4023_v48 = vld [vmem:[#allocation2 + $0x60] sm:$0xff]  ;;  %v4025_v49 = vld [vmem:[#allocation2 + $0x68] sm:$0xff] }
  0x17   :  { %175 = vmatpush.msra.mxu0 %v3975_v32  ;;  %195 = vmatpush.msra.mxu1 %v3977_v33  ;;  %6627 = vst [vmem:[#allocation22_spill] sm:$0xff] %v3995_v39  ;;  %v4029_v50 = vld [vmem:[#allocation2 + $0x70] sm:$0xff]  ;;  %v4031_v51 = vld [vmem:[#allocation2 + $0x78] sm:$0xff]  ;;  %v4035_v52 = vld [vmem:[#allocation2 + $0x40] sm:$0xff] }
  0x18   :  { %215 = vmatpush.msra.mxu2 %v3981_v34  ;;  %235 = vmatpush.msra.mxu3 %v3983_v35  ;;  %6628 = vst [vmem:[#allocation23_spill] sm:$0xff] %v3999_v40  ;;  %v4037_v53 = vld [vmem:[#allocation2 + $0x48] sm:$0xff]  ;;  %v4041_v54 = vld [vmem:[#allocation2 + $0x50] sm:$0xff]  ;;  %v4043_v55 = vld [vmem:[#allocation2 + $0x58] sm:$0xff] }
  0x19   :  { %6629 = vst [vmem:[#allocation24_spill] sm:$0xff] %v4001_v41  ;;  %176 = vmatpush.msra.mxu0 %v3987_v36  ;;  %196 = vmatpush.msra.mxu1 %v3989_v37  ;;  %v4047_v56 = vld [vmem:[#allocation2 + $0x20] sm:$0xff]  ;;  %v4049_v57 = vld [vmem:[#allocation2 + $0x28] sm:$0xff]  ;;  %v4053_v58 = vld [vmem:[#allocation2 + $0x30] sm:$0xff] }
  0x1a   :  { %6630 = vst [vmem:[#allocation25_spill] sm:$0xff] %v4007_v43  ;;  %216 = vmatpush.msra.mxu2 %v3993_v38  ;;  %236 = vmatpush.msra.mxu3 %v3995_v39  ;;  %v4055_v59 = vld [vmem:[#allocation2 + $0x38] sm:$0xff]  ;;  %v4059_v60 = vld [vmem:[#allocation2] sm:$0xff]  ;;  %v4061_v61 = vld [vmem:[#allocation2 + $0x8] sm:$0xff] }
  0x1b   :  { %6631 = vst [vmem:[#allocation26_spill] sm:$0xff] %v4011_v44  ;;  %177 = vmatpush.msra.mxu0 %v3999_v40  ;;  %197 = vmatpush.msra.mxu1 %v4001_v41  ;;  %v4065_v62 = vld [vmem:[#allocation2 + $0x10] sm:$0xff]  ;;  %v4067_v63 = vld [vmem:[#allocation2 + $0x18] sm:$0xff] }
  0x1c   :  { %6632 = vst [vmem:[#allocation27_spill] sm:$0xff] %v4013_v45  ;;  %217 = vmatpush.msra.mxu2 %v4005_v42  ;;  %237 = vmatpush.msra.mxu3 %v4007_v43  ;;  %v4095_v43 = vld [vmem:[%s6280_s4 + $0x68] sm:$0xff] }
  0x1d   :  { %6633 = vst [vmem:[#allocation28_spill] sm:$0xff] %v4019_v47  ;;  %178 = vmatpush.msra.mxu0 %v4011_v44  ;;  %198 = vmatpush.msra.mxu1 %v4013_v45 }
  0x1e   :  { %6634 = vst [vmem:[#allocation29_spill] sm:$0xff] %v4023_v48  ;;  %218 = vmatpush.msra.mxu2 %v4017_v46  ;;  %238 = vmatpush.msra.mxu3 %v4019_v47  ;;  %v4088_v47 = vld [vmem:[%s6280_s4 + $0x70] sm:$0xff] }
  0x1f   :  { %6635 = vst [vmem:[#allocation30_spill] sm:$0xff] %v4025_v49  ;;  %179 = vmatpush.msra.mxu0 %v4023_v48  ;;  %199 = vmatpush.msra.mxu1 %v4025_v49 }
  0x20   :  { %6636 = vst [vmem:[#allocation31_spill] sm:$0xff] %v4029_v50  ;;  %219 = vmatpush.msra.mxu2 %v4029_v50  ;;  %239 = vmatpush.msra.mxu3 %v4031_v51 }
  0x21   :  { %6637 = vst [vmem:[#allocation32_spill] sm:$0xff] %v4031_v51  ;;  %180 = vmatpush.msra.mxu0 %v4035_v52  ;;  %200 = vmatpush.msra.mxu1 %v4037_v53  ;;  %v3828_v51 = vmov 0.0  }
  0x22   :  { %6638 = vst [vmem:[#allocation33_spill] sm:$0xff] %v4035_v52  ;;  %220 = vmatpush.msra.mxu2 %v4041_v54  ;;  %240 = vmatpush.msra.mxu3 %v4043_v55 }
  0x23   :  { %6639 = vst [vmem:[#allocation34_spill] sm:$0xff] %v4037_v53  ;;  %181 = vmatpush.msra.mxu0 %v4047_v56  ;;  %201 = vmatpush.msra.mxu1 %v4049_v57 }
  0x24   :  { %6640 = vst [vmem:[#allocation35_spill] sm:$0xff] %v4041_v54  ;;  %221 = vmatpush.msra.mxu2 %v4053_v58  ;;  %241 = vmatpush.msra.mxu3 %v4055_v59 }
  0x25   :  { %6641 = vst [vmem:[#allocation36_spill] sm:$0xff] %v4043_v55  ;;  %182 = vmatpush.msra.mxu0 %v4059_v60  ;;  %202 = vmatpush.msra.mxu1 %v4061_v61  ;;  %v4078_v55 = vld [vmem:[%s6280_s4 + $0x78] sm:$0xff] }
  0x26   :  { %6642 = vst [vmem:[#allocation37_spill] sm:$0xff] %v4047_v56  ;;  %222 = vmatpush.msra.mxu2 %v4065_v62  ;;  %242 = vmatpush.msra.mxu3 %v4067_v63 }
  0x27   :  { %6643 = vst [vmem:[#allocation38_spill] sm:$0xff] %v4049_v57  ;;  %183 = vmatmul.f32.vlgmr.msra.gmra.mxu0 %v3828_v51  ;;  %203 = vmatmul.f32.vlgmr.msra.gmra.mxu1 %v3828_v51 }
  0x28   :  { %6644 = vst [vmem:[#allocation39_spill] sm:$0xff] %v4053_v58  ;;  %223 = vmatmul.f32.vlgmr.msra.gmra.mxu2 %v3828_v51  ;;  %243 = vmatmul.f32.vlgmr.msra.gmra.mxu3 %v3828_v51  ;;  %v4185_v51 = vld [vmem:[%s6280_s4 + $0x60] sm:$0xff] }
  0x29   :  { %6645 = vst [vmem:[#allocation40_spill] sm:$0xff] %v4055_v59  ;;  %v4083_v59 = vld [vmem:[%s6276_s0] sm:$0xff]  ;;  %335 = vmatpush.msrb.mxu0 %v4078_v55  ;;  %413 = vmatpush.msrb.mxu1 %v3883_v0 }
  0x2a   :  { %6646 = vst [vmem:[#allocation41_spill] sm:$0xff] %v4059_v60  ;;  %433 = vmatpush.msrb.mxu2 %v3885_v1  ;;  %453 = vmatpush.msrb.mxu3 %v3887_v2 }
  0x2b   :  { %6647 = vst [vmem:[#allocation42_spill] sm:$0xff] %v4061_v61  ;;  %336 = vmatpush.msrb.mxu0 %v4088_v47  ;;  %414 = vmatpush.msrb.mxu1 %v3893_v4 }
  0x2c   :  { %6648 = vst [vmem:[#allocation43_spill] sm:$0xff] %v4065_v62  ;;  %434 = vmatpush.msrb.mxu2 %v3895_v5  ;;  %454 = vmatpush.msrb.mxu3 %v3899_v6 }
  0x2d   :  { %6649 = vst [vmem:[#allocation44_spill] sm:$0xff] %v4067_v63  ;;  %v3829_v63 = vmov 0   ;;  %337 = vmatpush.msrb.mxu0 %v4095_v43  ;;  %415 = vmatpush.msrb.mxu1 %v3903_v8 }
  0x2e   :  { %3212 = vset.pattern.permute.xlu0 %v3829_v63  ;;  %435 = vmatpush.msrb.mxu2 %v3907_v9  ;;  %v4192_v63 = vld [vmem:[%s6280_s4 + $0x58] sm:$0xff] }
  0x2f   :  { %156 = vperm.xlu0 %3212, %v4083_v59   ;;  %455 = vmatpush.msrb.mxu3 %v3909_v10 }
  0x30   :  { %416 = vmatpush.msrb.mxu1 %v3915_v12  ;;  %436 = vmatpush.msrb.mxu2 %v3917_v13 }
  0x31   :  { %456 = vmatpush.msrb.mxu3 %v3921_v14  ;;  %338 = vmatpush.msrb.mxu0 %v4185_v51 }
  0x32   :  { %417 = vmatpush.msrb.mxu1 %v3927_v16  ;;  %437 = vmatpush.msrb.mxu2 %v3929_v17 }
  0x33   :  { %457 = vmatpush.msrb.mxu3 %v3933_v18  ;;  %339 = vmatpush.msrb.mxu0 %v4192_v63 }
  0x34   :  { %418 = vmatpush.msrb.mxu1 %v3939_v20  ;;  %438 = vmatpush.msrb.mxu2 %v3941_v21 }
  0x35   :  { %458 = vmatpush.msrb.mxu3 %v3945_v22 }
  0x36   :  { %419 = vmatpush.msrb.mxu1 %v3951_v24  ;;  %439 = vmatpush.msrb.mxu2 %v3953_v25 }
  0x37   :  { %459 = vmatpush.msrb.mxu3 %v3957_v26 }
  0x38   :  { %420 = vmatpush.msrb.mxu1 %v3963_v28  ;;  %440 = vmatpush.msrb.mxu2 %v3965_v29 }
  0x39   :  { %460 = vmatpush.msrb.mxu3 %v3969_v30 }
  0x3a   :  { %421 = vmatpush.msrb.mxu1 %v3975_v32  ;;  %441 = vmatpush.msrb.mxu2 %v3977_v33 }
  0x3b   :  { %461 = vmatpush.msrb.mxu3 %v3981_v34 }
  0x3c   :  { %422 = vmatpush.msrb.mxu1 %v3987_v36  ;;  %442 = vmatpush.msrb.mxu2 %v3989_v37 }
  0x3d   :  { %462 = vmatpush.msrb.mxu3 %v3993_v38 }
  0x3e   :  { %423 = vmatpush.msrb.mxu1 %v3999_v40  ;;  %443 = vmatpush.msrb.mxu2 %v4001_v41 }
  0x3f   :  { %463 = vmatpush.msrb.mxu3 %v4005_v42 }
  0x40   :  { %424 = vmatpush.msrb.mxu1 %v4011_v44  ;;  %444 = vmatpush.msrb.mxu2 %v4013_v45 }
  0x41   :  { %464 = vmatpush.msrb.mxu3 %v4017_v46 }
  0x42   :  { %425 = vmatpush.msrb.mxu1 %v4023_v48  ;;  %445 = vmatpush.msrb.mxu2 %v4025_v49 }
  0x43   :  { %465 = vmatpush.msrb.mxu3 %v4029_v50 }
  0x44   :  { %426 = vmatpush.msrb.mxu1 %v4035_v52  ;;  %446 = vmatpush.msrb.mxu2 %v4037_v53 }
  0x45   :  { %466 = vmatpush.msrb.mxu3 %v4041_v54 }
  0x46   :  { %427 = vmatpush.msrb.mxu1 %v4047_v56  ;;  %447 = vmatpush.msrb.mxu2 %v4049_v57 }
  0x47   :  { %467 = vmatpush.msrb.mxu3 %v4053_v58 }
  0x48   :  { %428 = vmatpush.msrb.mxu1 %v4059_v60  ;;  %448 = vmatpush.msrb.mxu2 %v4061_v61 }
  0x49   :  { %468 = vmatpush.msrb.mxu3 %v4065_v62 }
  0x4a   :  { %586 = vmatpush.msra.mxu1 %v4078_v55  ;;  %664 = vmatpush.msra.mxu2 %v3883_v0 }
  0x4b   :  { %684 = vmatpush.msra.mxu3 %v3885_v1 }
  0x4c   :  { %587 = vmatpush.msra.mxu1 %v4088_v47  ;;  %665 = vmatpush.msra.mxu2 %v3893_v4 }
  0x4d   :  { %685 = vmatpush.msra.mxu3 %v3895_v5 }
  0x4e   :  { %588 = vmatpush.msra.mxu1 %v4095_v43  ;;  %666 = vmatpush.msra.mxu2 %v3903_v8 }
  0x4f   :  { %686 = vmatpush.msra.mxu3 %v3907_v9 }
  0x50   :  { %667 = vmatpush.msra.mxu2 %v3915_v12  ;;  %589 = vmatpush.msra.mxu1 %v4185_v51 }
  0x51   :  { %687 = vmatpush.msra.mxu3 %v3917_v13  ;;  %v4279_v13 = vld [vmem:[%s6280_s4] sm:$0xff] }
  0x52   :  { %668 = vmatpush.msra.mxu2 %v3927_v16  ;;  %590 = vmatpush.msra.mxu1 %v4192_v63  ;;  %6660 = vst [vmem:[#allocation55_spill] sm:$0xff] %v4279_v13 }
  0x53   :  { %688 = vmatpush.msra.mxu3 %v3929_v17  ;;  %v4269_v17 = vld [vmem:[%s6280_s4 + $0x8] sm:$0xff] }
  0x54   :  { %669 = vmatpush.msra.mxu2 %v3939_v20  ;;  %6659 = vst [vmem:[#allocation54_spill] sm:$0xff] %v4269_v17 }
  0x55   :  { %689 = vmatpush.msra.mxu3 %v3941_v21 }
  0x56   :  { %670 = vmatpush.msra.mxu2 %v3951_v24 }
  0x57   :  { %690 = vmatpush.msra.mxu3 %v3953_v25  ;;  %v4258_v25 = vld [vmem:[%s6280_s4 + $0x10] sm:$0xff] }
  0x58   :  { %671 = vmatpush.msra.mxu2 %v3963_v28  ;;  %6656 = vst [vmem:[#allocation51_spill] sm:$0xff] %v4258_v25 }
  0x59   :  { %691 = vmatpush.msra.mxu3 %v3965_v29  ;;  %v132_v29 = vld [vmem:[%s6278_s2] sm:$0xf] }
  0x5a   :  { %672 = vmatpush.msra.mxu2 %v3975_v32  ;;  %v4262_v21 = vperm.slane %v132_v29, 0 }
  0x5b   :  { %692 = vmatpush.msra.mxu3 %v3977_v33  ;;  %v4248_v33 = vld [vmem:[%s6280_s4 + $0x18] sm:$0xff] }
  0x5c   :  { %673 = vmatpush.msra.mxu2 %v3987_v36  ;;  %6655 = vst [vmem:[#allocation50_spill] sm:$0xff] %v4248_v33 }
  0x5d   :  { %693 = vmatpush.msra.mxu3 %v3989_v37  ;;  %v4241_v37 = vld [vmem:[%s6280_s4 + $0x20] sm:$0xff]  ;;  %6657 = vst [vmem:[#allocation52_spill] sm:$0xff] %v4262_v21 }
  0x5e   :  { %674 = vmatpush.msra.mxu2 %v3999_v40  ;;  %6654 = vst [vmem:[#allocation49_spill] sm:$0xff] %v4241_v37 }
  0x5f   :  { %694 = vmatpush.msra.mxu3 %v4001_v41  ;;  %v4234_v41 = vld [vmem:[%s6280_s4 + $0x28] sm:$0xff] }
  0x60   :  { %675 = vmatpush.msra.mxu2 %v4011_v44  ;;  %6653 = vst [vmem:[#allocation48_spill] sm:$0xff] %v4234_v41 }
  0x61   :  { %695 = vmatpush.msra.mxu3 %v4013_v45  ;;  %v4227_v45 = vld [vmem:[%s6280_s4 + $0x30] sm:$0xff] }
  0x62   :  { %676 = vmatpush.msra.mxu2 %v4023_v48  ;;  %6652 = vst [vmem:[#allocation47_spill] sm:$0xff] %v4227_v45 }
  0x63   :  { %696 = vmatpush.msra.mxu3 %v4025_v49  ;;  %v4220_v49 = vld [vmem:[%s6280_s4 + $0x38] sm:$0xff] }
  0x64   :  { %677 = vmatpush.msra.mxu2 %v4035_v52  ;;  %6651 = vst [vmem:[#allocation46_spill] sm:$0xff] %v4220_v49 }
  0x65   :  { %697 = vmatpush.msra.mxu3 %v4037_v53  ;;  %v4213_v53 = vld [vmem:[%s6280_s4 + $0x40] sm:$0xff] }
  0x66   :  { %678 = vmatpush.msra.mxu2 %v4047_v56  ;;  %6650 = vst [vmem:[#allocation45_spill] sm:$0xff] %v4213_v53  ;;  %v142_v56 = vld [vmem:[%s6279_s3] sm:$0xf] }
  0x67   :  { %698 = vmatpush.msra.mxu3 %v4049_v57  ;;  %v4206_v57 = vld [vmem:[%s6280_s4 + $0x48] sm:$0xff]  ;;  %v4283_v9 = vperm.slane %v142_v56, 0  ;;  %v4286_v48 = vperm.slane %v142_v56, 1  ;;  %v4302_v62 = vperm.slane %v142_v56, 3 }
  0x68   :  { %679 = vmatpush.msra.mxu2 %v4059_v60  ;;  %v4264_v60 = vperm.slane %v132_v29, 1 }
  0x69   :  { %699 = vmatpush.msra.mxu3 %v4061_v61  ;;  %v4199_v61 = vld [vmem:[%s6280_s4 + $0x50] sm:$0xff]  ;;  %6661 = vst [vmem:[#allocation56_spill] sm:$0xff] %v4283_v9 }
  0x6a   :  { %340 = vmatpush.msrb.mxu0 %v4199_v61  ;;  %591 = vmatpush.msra.mxu1 %v4199_v61  ;;  %6658 = vst [vmem:[#allocation53_spill] sm:$0xff] %v4264_v60 }
  0x6b   :  { %6662 = vst [vmem:[#allocation57_spill] sm:$0xff] %v4286_v48 }
  0x6c   :  { %341 = vmatpush.msrb.mxu0 %v4206_v57  ;;  %592 = vmatpush.msra.mxu1 %v4206_v57  ;;  %6666 = vst [vmem:[#allocation61_spill] sm:$0xff] %v4302_v62 }
  0x6e   :  { %342 = vmatpush.msrb.mxu0 %v4213_v53  ;;  %593 = vmatpush.msra.mxu1 %v4213_v53 }
  0x70   :  { %343 = vmatpush.msrb.mxu0 %v4220_v49  ;;  %594 = vmatpush.msra.mxu1 %v4220_v49 }
  0x72   :  { %344 = vmatpush.msrb.mxu0 %v4227_v45  ;;  %595 = vmatpush.msra.mxu1 %v4227_v45 }
  0x74   :  { %345 = vmatpush.msrb.mxu0 %v4234_v41  ;;  %596 = vmatpush.msra.mxu1 %v4234_v41 }
  0x76   :  { %346 = vmatpush.msrb.mxu0 %v4241_v37  ;;  %597 = vmatpush.msra.mxu1 %v4241_v37  ;;  %v4299_v37 = vperm.slane %v142_v56, 2 }
  0x78   :  { %347 = vmatpush.msrb.mxu0 %v4248_v33  ;;  %598 = vmatpush.msra.mxu1 %v4248_v33  ;;  %v4293_v33 = vperm.slane %v132_v29, 3  ;;  %6665 = vst [vmem:[#allocation60_spill] sm:$0xff] %v4299_v37 }
  0x7a   :  { %348 = vmatpush.msrb.mxu0 %v4258_v25  ;;  %599 = vmatpush.msra.mxu1 %v4258_v25  ;;  %6664 = vst [vmem:[#allocation59_spill] sm:$0xff] %v4293_v33 }
  0x7c   :  { %349 = vmatpush.msrb.mxu0 %v4269_v17  ;;  %600 = vmatpush.msra.mxu1 %v4269_v17  ;;  %v4291_v17 = vperm.slane %v132_v29, 2 }
  0x7e   :  { %350 = vmatpush.msrb.mxu0 %v4279_v13  ;;  %601 = vmatpush.msra.mxu1 %v4279_v13  ;;  %6663 = vst [vmem:[#allocation58_spill] sm:$0xff] %v4291_v17 }
  0x80   :  { %473 = vmatpush.msra.mxu0 %v3891_v3 }
  0x82   :  { %474 = vmatpush.msra.mxu0 %v3901_v7 }
  0x84   :  { %475 = vmatpush.msra.mxu0 %v3911_v11 }
  0x86   :  { %476 = vmatpush.msra.mxu0 %v3923_v15 }
  0x88   :  { %477 = vmatpush.msra.mxu0 %v3935_v19 }
  0x8a   :  { %478 = vmatpush.msra.mxu0 %v3947_v23 }
  0x8c   :  { %479 = vmatpush.msra.mxu0 %v3959_v27 }
  0x8e   :  { %480 = vmatpush.msra.mxu0 %v3971_v31 }
  0x90   :  { %481 = vmatpush.msra.mxu0 %v3983_v35 }
  0x92   :  { %482 = vmatpush.msra.mxu0 %v3995_v39 }
  0xa1   :  { %v157_v52 = vpop.permute.xlu0 %156 }
  0xa2   :  { %v159_v25 = vmul.f32 %v157_v52, %v4262_v21  ;;  %v160_v5 = vmul.f32 %v157_v52, %v4264_v60  ;;  %v161_v60 = vmul.f32 %v157_v52, %v4291_v17  ;;  %v162_v40 = vmul.f32 %v157_v52, %v4293_v33 }
  0xa4   :  { %v163_v44 = vadd.f32 %v159_v25, %v4283_v9  ;;  %v164_v13 = vadd.f32 %v160_v5, %v4286_v48  ;;  %v184_v21 = vpop.f32.mrf.mxu0  ;;  %v204_v1 = vpop.f32.mrf.mxu1  ;;  %v165_v48 = vadd.f32 %v161_v60, %v4299_v37  ;;  %v166_v9 = vadd.f32 %v162_v40, %v4302_v62  ;;  %v6672_v37 = vld [vmem:[#allocation44_spill] sm:$0xff] }
  0xa6   :  { %v247_v29 = vadd.f32 %v184_v21, %v163_v44  ;;  %v248_v41 = vadd.f32 %v204_v1, %v164_v13 }
  0xa8   :  { %v3114_v25 = vmul.f32 -1.442695, %v247_v29  ;;  %v3115_v5 = vmul.f32 -1.442695, %v248_v41  ;;  %v6667_v29 = vld [vmem:[#allocation25_spill] sm:$0xff] }
  0xa9   :  { %483 = vmatpush.msra.mxu0 %v6667_v29 }
  0xaa   :  { %3229 = vpow2.f32 %v3114_v25 }
  0xab   :  { %3231 = vpow2.f32 %v3115_v5  ;;  %v224_v56 = vpop.f32.mrf.mxu2  ;;  %v244_v17 = vpop.f32.mrf.mxu3  ;;  %v6670_v5 = vld [vmem:[#allocation36_spill] sm:$0xff] }
  0xac   :  { %v249_v21 = vadd.f32 %v224_v56, %v165_v48  ;;  %v250_v1 = vadd.f32 %v244_v17, %v166_v9  ;;  %v6668_v48 = vld [vmem:[#allocation28_spill] sm:$0xff] }
  0xad   :  { %484 = vmatpush.msra.mxu0 %v6668_v48  ;;  %v6669_v9 = vld [vmem:[#allocation32_spill] sm:$0xff] }
  0xae   :  { %v3116_v13 = vmul.f32 -1.442695, %v249_v21  ;;  %v3117_v41 = vmul.f32 -1.442695, %v250_v1 }
  0xaf   :  { %485 = vmatpush.msra.mxu0 %v6669_v9  ;;  %v6349_v9 = vmov 1  }
  0xb0   :  { %v3230_v44 = vpop.eup %3229  ;;  %3233 = vpow2.f32 %v3116_v13  ;;  %v6671_v13 = vld [vmem:[#allocation40_spill] sm:$0xff]  ;;  %3213 = vset.pattern.permute.xlu0 %v6349_v9 }
  0xb1   :  { %v3232_v52 = vpop.eup %3231  ;;  %v4313_v60 = vadd.f32 1.0, %v3230_v44  ;;  %3235 = vpow2.f32 %v3117_v41  ;;  %486 = vmatpush.msra.mxu0 %v6670_v5  ;;  %402 = vperm.xlu0 %3213, %v4083_v59  }
  0xb2   :  { %v264_v40 = vadd.f32 1.0, %v3232_v52 }
  0xb3   :  { %3237 = vrcp.f32 %v4313_v60  ;;  %487 = vmatpush.msra.mxu0 %v6671_v13  ;;  %vm272_vm3 = vweird.f32 %v4313_v60 }
  0xb4   :  { %3239 = vrcp.f32 %v264_v40  ;;  %vm287_vm0 = vweird.f32 %v264_v40  ;;  %v291_v9 = vand.u32 2147483647, %v264_v40  ;;  %v293_v45 = vand.u32 2147483648, %v264_v40 }
  0xb5   :  { %488 = vmatpush.msra.mxu0 %v6672_v37 }
  0xb6   :  { %v3234_v17 = vpop.eup %3233  ;;  %vm292_vm10 = vcmp.eq.f32.partialorder %v291_v9, 8.507059e+37  ;;  %v6706_v9 = vld [vmem:[#allocation37_spill] sm:$0xff] }
  0xb7   :  { %v3236_v25 = vpop.eup %3235  ;;  %v4320_v44 = vadd.f32 1.0, %v3234_v17 }
  0xb8   :  { %v266_v21 = vadd.f32 1.0, %v3236_v25 }
  0xb9   :  { %v3238_v56 = vpop.eup %3237  ;;  %vm302_vm13 = vweird.f32 %v4320_v44 }
  0xba   :  { %v3240_v1 = vpop.eup %3239  ;;  %3241 = vrcp.f32 %v266_v21  ;;  %v268_v52 = vmul.f32 %v3238_v56, %v4313_v60  ;;  %v323_v29 = vand.u32 2147483648, %v266_v21  ;;  %vm273_vm4 = vweird.f32 %v3238_v56 }
  0xbb   :  { %v283_v41 = vmul.f32 %v3240_v1, %v264_v40  ;;  %3243 = vrcp.f32 %v4320_v44  ;;  %vm288_vm1 = vweird.f32 %v3240_v1  ;;  %vm317_vm6 = vweird.f32 %v266_v21  ;;  %vm274_vm9 = vmor %vm272_vm3, %vm273_vm4 }
  0xbc   :  { %v269_v33 = vsub.f32 1.0, %v268_v52  ;;  %vm4330_vm5 = vmor %vm287_vm0, %vm288_vm1 }
  0xbd   :  { %v284_v62 = vsub.f32 1.0, %v283_v41  ;;  %v321_v41 = vand.u32 2147483647, %v266_v21 }
  0xbe   :  { %v270_v58 = vmul.f32 %v3238_v56, %v269_v33 }
  0xbf   :  { %v285_v25 = vmul.f32 %v3240_v1, %v284_v62  ;;  %v278_v62 = vand.u32 2147483648, %v4313_v60  ;;  %vm322_vm8 = vcmp.eq.f32.partialorder %v321_v41, 8.507059e+37  ;;  %v6710_v41 = vld [vmem:[#allocation13_spill] sm:$0xff] }
  0xc0   :  { %v3242_v5 = vpop.eup %3241  ;;  %v271_v54 = vadd.f32 %v3238_v56, %v270_v58  ;;  %v294_v58 = vor.u32 1.1754944e-38, %v293_v45 }
  0xc1   :  { %v313_v17 = vmul.f32 %v3242_v5, %v266_v21  ;;  %v3244_v48 = vpop.eup %3243  ;;  %v286_v36 = vadd.f32 %v3240_v1, %v285_v25  ;;  %vm318_vm2 = vweird.f32 %v3242_v5  ;;  %v279_v21 = vor.u32 1.1754944e-38, %v278_v62  ;;  %v6713_v62 = vld [vmem:[#allocation18_spill] sm:$0xff] }
  0xc2   :  { %v298_v52 = vmul.f32 %v3244_v48, %v4320_v44  ;;  %vm319_vm7 = vmor %vm317_vm6, %vm318_vm2  ;;  %v275_v49 = vsel %vm274_vm9, %v3238_v56, %v271_v54  ;;  %vm303_vm12 = vweird.f32 %v3244_v48  ;;  %v6703_v54 = vld [vmem:[#allocation54_spill] sm:$0xff]  ;;  %v6707_v56 = vld [vmem:[#allocation55_spill] sm:$0xff] }
  0xc3   :  { %v314_v13 = vsub.f32 1.0, %v313_v17  ;;  %v276_v17 = vand.u32 2147483647, %v4313_v60  ;;  %v290_v25 = vsel %vm4330_vm5, %v3240_v1, %v286_v36  ;;  %vm304_vm14 = vmor %vm302_vm13, %vm303_vm12  ;;  %v6704_v60 = vld [vmem:[#allocation11_spill] sm:$0xff]  ;;  %v6708_v1 = vld [vmem:[#allocation12_spill] sm:$0xff] }
  0xc4   :  { %v299_v40 = vsub.f32 1.0, %v298_v52  ;;  %v295_v50 = vsel %vm292_vm10, %v294_v58, %v290_v25  ;;  %v6711_v52 = vld [vmem:[#allocation14_spill] sm:$0xff]  ;;  %v6716_v25 = vld [vmem:[#allocation27_spill] sm:$0xff] }
  0xc5   :  { %v315_v37 = vmul.f32 %v3242_v5, %v314_v13  ;;  %v324_v13 = vor.u32 1.1754944e-38, %v323_v29  ;;  %vm277_vm11 = vcmp.eq.f32.partialorder %v276_v17, 8.507059e+37  ;;  %v329_v53 = vmul.f32 0.0, %v295_v50  ;;  %v6715_v17 = vld [vmem:[#allocation24_spill] sm:$0xff]  ;;  %v6718_v58 = vld [vmem:[#allocation34_spill] sm:$0xff] }
  0xc6   :  { %v280_v35 = vsel %vm277_vm11, %v279_v21, %v275_v49  ;;  %v300_v28 = vmul.f32 %v3244_v48, %v299_v40  ;;  %v6717_v40 = vld [vmem:[#allocation30_spill] sm:$0xff] }
  0xc7   :  { %v316_v33 = vadd.f32 %v3242_v5, %v315_v37  ;;  %v6720_v21 = vld [vmem:[#allocation42_spill] sm:$0xff] }
  0xc9   :  { %v320_v39 = vsel %vm319_vm7, %v3242_v5, %v316_v33  ;;  %v301_v5 = vadd.f32 %v3244_v48, %v300_v28  ;;  %v6712_v33 = vld [vmem:[#allocation16_spill] sm:$0xff] }
  0xca   :  { %v325_v32 = vsel %vm322_vm8, %v324_v13, %v320_v39  ;;  %v308_v39 = vand.u32 2147483648, %v4320_v44  ;;  %v6714_v13 = vld [vmem:[#allocation21_spill] sm:$0xff] }
  0xcb   :  { %v327_v37 = vmul.f32 2.0, %v325_v32  ;;  %v306_v32 = vand.u32 2147483647, %v4320_v44  ;;  %v305_v45 = vsel %vm304_vm14, %v3244_v48, %v301_v5  ;;  %v6705_v48 = vld [vmem:[#allocation44_spill] sm:$0xff]  ;;  %v6709_v44 = vld [vmem:[#allocation41_spill] sm:$0xff] }
  0xcc   :  { %v4436_v5 = vld [vmem:[%s6282_s6] ss:$0 sm:$0xff] }
  0xcd   :  { %v3118_v29 = vadd.f32 -1.0, %v327_v37  ;;  %vm307_vm15 = vcmp.eq.f32.partialorder %v306_v32, 8.507059e+37  ;;  %v6719_v37 = vld [vmem:[#allocation38_spill] sm:$0xff] }
  0xcf   :  { %v330_v59 = vmul.f32 %v3118_v29, %v280_v35  ;;  %v309_v35 = vor.u32 1.1754944e-38, %v308_v39  ;;  %v4430_v29 = vld [vmem:[%s6281_s5] ss:$0 sm:$0xff] }
  0xd1   :  { %v4340_v36 = vadd.f32 %v330_v59, %v329_v53  ;;  %v310_v49 = vsel %vm307_vm15, %v309_v35, %v305_v45  ;;  %v6702_v53 = vld [vmem:[#allocation33_spill] sm:$0xff]  ;;  %v334_v59 = vmul.f32 0.0, %v4430_v29  ;;  %v6723_v35 = vld [vmem:[#allocation52_spill] sm:$0xff] }
  0xd3   :  { %3245 = vtanh.f32 %v4340_v36  ;;  %351 = vmatmul.f32.vlgmr.msrb.gmra.mxu0 %v4340_v36 }
  0xd4   :  { %704 = vmatpush.msrb.mxu0 %v3887_v2  ;;  %v6676_v2 = vld [vmem:[#allocation15_spill] sm:$0xff] }
  0xd5   :  { %6722 = vst [vmem:[#allocation15_spill] sm:$0xff] %v4436_v5 }
  0xd6   :  { %705 = vmatpush.msrb.mxu0 %v3899_v6  ;;  %v6679_v6 = vld [vmem:[#allocation46_spill] sm:$0xff] }
  0xd8   :  { %706 = vmatpush.msrb.mxu0 %v3909_v10  ;;  %v6682_v10 = vld [vmem:[#allocation35_spill] sm:$0xff] }
  0xd9   :  { %v3246_v28 = vpop.eup %3245 }
  0xda   :  { %v333_v50 = vmul.f32 %v3246_v28, %v310_v49  ;;  %707 = vmatpush.msrb.mxu0 %v3921_v14  ;;  %v6685_v14 = vld [vmem:[#allocation25_spill] sm:$0xff] }
  0xdc   :  { %429 = vmatmul.f32.vlgmr.msrb.gmra.mxu1 %v333_v50  ;;  %449 = vmatmul.f32.vlgmr.msrb.gmra.mxu2 %v333_v50 }
  0xdd   :  { %469 = vmatmul.f32.vlgmr.msrb.gmra.mxu3 %v333_v50  ;;  %489 = vmatmul.f32.vlgmr.msra.gmra.mxu0 %v333_v50  ;;  %v6724_v50 = vld [vmem:[#allocation59_spill] sm:$0xff] }
  0xde   :  { %724 = vmatpush.msrb.mxu1 %v3891_v3  ;;  %708 = vmatpush.msrb.mxu0 %v3933_v18  ;;  %v6677_v3 = vld [vmem:[#allocation19_spill] sm:$0xff] }
  0xdf   :  { %837 = vmatpush.msrb.mxu2 %v4078_v55  ;;  %915 = vmatpush.msrb.mxu3 %v3883_v0  ;;  %v6675_v0 = vld [vmem:[#allocation45_spill] sm:$0xff]  ;;  %v6688_v18 = vld [vmem:[#allocation23_spill] sm:$0xff] }
  0xe0   :  { %725 = vmatpush.msrb.mxu1 %v3901_v7  ;;  %709 = vmatpush.msrb.mxu0 %v3945_v22  ;;  %v6680_v7 = vld [vmem:[#allocation17_spill] sm:$0xff]  ;;  %6721 = vst [vmem:[#allocation45_spill] sm:$0xff] %v4430_v29  ;;  %v4649_v29 = vld [vmem:[#allocation2 + $0x168] sm:$0xff] }
  0xe1   :  { %838 = vmatpush.msrb.mxu2 %v4088_v47  ;;  %916 = vmatpush.msrb.mxu3 %v3893_v4  ;;  %v6678_v4 = vld [vmem:[#allocation31_spill] sm:$0xff]  ;;  %v6691_v22 = vld [vmem:[#allocation49_spill] sm:$0xff]  ;;  %6757 = vst [vmem:[#allocation54_spill] sm:$0xff] %v4649_v29 }
  0xe2   :  { %726 = vmatpush.msrb.mxu1 %v3911_v11  ;;  %710 = vmatpush.msrb.mxu0 %v3957_v26  ;;  %v6683_v11 = vld [vmem:[#allocation47_spill] sm:$0xff]  ;;  %v6694_v26 = vld [vmem:[#allocation26_spill] sm:$0xff] }
  0xe3   :  { %839 = vmatpush.msrb.mxu2 %v4095_v43  ;;  %917 = vmatpush.msrb.mxu3 %v3903_v8  ;;  %v6681_v8 = vld [vmem:[#allocation22_spill] sm:$0xff] }
  0xe4   :  { %727 = vmatpush.msrb.mxu1 %v3923_v15  ;;  %711 = vmatpush.msrb.mxu0 %v3969_v30  ;;  %v6686_v15 = vld [vmem:[#allocation39_spill] sm:$0xff]  ;;  %v6696_v30 = vld [vmem:[#allocation9_spill] sm:$0xff] }
  0xe5   :  { %840 = vmatpush.msrb.mxu2 %v4185_v51  ;;  %918 = vmatpush.msrb.mxu3 %v3915_v12  ;;  %v6684_v12 = vld [vmem:[#allocation20_spill] sm:$0xff] }
  0xe6   :  { %728 = vmatpush.msrb.mxu1 %v3935_v19  ;;  %712 = vmatpush.msrb.mxu0 %v3981_v34  ;;  %v6689_v19 = vld [vmem:[#allocation28_spill] sm:$0xff]  ;;  %v6698_v34 = vld [vmem:[#allocation29_spill] sm:$0xff] }
  0xe7   :  { %841 = vmatpush.msrb.mxu2 %v4192_v63  ;;  %919 = vmatpush.msrb.mxu3 %v3927_v16  ;;  %v6687_v16 = vld [vmem:[#allocation48_spill] sm:$0xff] }
  0xe8   :  { %729 = vmatpush.msrb.mxu1 %v3947_v23  ;;  %713 = vmatpush.msrb.mxu0 %v3993_v38  ;;  %v6692_v23 = vld [vmem:[#allocation8_spill] sm:$0xff]  ;;  %v6699_v38 = vld [vmem:[#allocation51_spill] sm:$0xff] }
  0xe9   :  { %842 = vmatpush.msrb.mxu2 %v4199_v61  ;;  %920 = vmatpush.msrb.mxu3 %v3939_v20  ;;  %v6690_v20 = vld [vmem:[#allocation43_spill] sm:$0xff] }
  0xea   :  { %730 = vmatpush.msrb.mxu1 %v3959_v27  ;;  %714 = vmatpush.msrb.mxu0 %v4005_v42  ;;  %v6695_v27 = vld [vmem:[#allocation50_spill] sm:$0xff] }
  0xeb   :  { %843 = vmatpush.msrb.mxu2 %v4206_v57  ;;  %921 = vmatpush.msrb.mxu3 %v3951_v24  ;;  %v6693_v24 = vld [vmem:[#allocation32_spill] sm:$0xff]  ;;  %v6700_v42 = vld [vmem:[#allocation10_spill] sm:$0xff] }
  0xec   :  { %731 = vmatpush.msrb.mxu1 %v3971_v31  ;;  %715 = vmatpush.msrb.mxu0 %v4017_v46  ;;  %v6697_v31 = vld [vmem:[#allocation36_spill] sm:$0xff] }
  0xed   :  { %844 = vmatpush.msrb.mxu2 %v6675_v0  ;;  %922 = vmatpush.msrb.mxu3 %v6676_v2  ;;  %v6701_v46 = vld [vmem:[#allocation40_spill] sm:$0xff] }
  0xee   :  { %732 = vmatpush.msrb.mxu1 %v6677_v3  ;;  %716 = vmatpush.msrb.mxu0 %v6678_v4  ;;  %v6725_v4 = vld [vmem:[#allocation56_spill] sm:$0xff] }
  0xef   :  { %845 = vmatpush.msrb.mxu2 %v6679_v6  ;;  %923 = vmatpush.msrb.mxu3 %v6680_v7 }
  0xf0   :  { %733 = vmatpush.msrb.mxu1 %v6681_v8  ;;  %717 = vmatpush.msrb.mxu0 %v6682_v10  ;;  %v6726_v8 = vld [vmem:[#allocation61_spill] sm:$0xff] }
  0xf1   :  { %846 = vmatpush.msrb.mxu2 %v6683_v11  ;;  %924 = vmatpush.msrb.mxu3 %v6684_v12  ;;  %v6727_v12 = vld [vmem:[#allocation53_spill] sm:$0xff] }
  0xf2   :  { %734 = vmatpush.msrb.mxu1 %v6685_v14  ;;  %718 = vmatpush.msrb.mxu0 %v6686_v15 }
  0xf3   :  { %847 = vmatpush.msrb.mxu2 %v6687_v16  ;;  %925 = vmatpush.msrb.mxu3 %v6688_v18  ;;  %v6728_v18 = vld [vmem:[#allocation58_spill] sm:$0xff] }
  0xf4   :  { %735 = vmatpush.msrb.mxu1 %v6689_v19  ;;  %719 = vmatpush.msrb.mxu0 %v6690_v20 }
  0xf5   :  { %848 = vmatpush.msrb.mxu2 %v6691_v22  ;;  %926 = vmatpush.msrb.mxu3 %v6694_v26 }
  0xf6   :  { %935 = vmatpush.msra.mxu0 %v6692_v23  ;;  %736 = vmatpush.msrb.mxu1 %v6693_v24 }
  0xf7   :  { %849 = vmatpush.msrb.mxu2 %v6695_v27  ;;  %927 = vmatpush.msrb.mxu3 %v6698_v34 }
  0xf8   :  { %936 = vmatpush.msra.mxu0 %v6696_v30  ;;  %737 = vmatpush.msrb.mxu1 %v6697_v31  ;;  %v6729_v30 = vld [vmem:[#allocation57_spill] sm:$0xff] }
  0xf9   :  { %850 = vmatpush.msrb.mxu2 %v6699_v38  ;;  %928 = vmatpush.msrb.mxu3 %v6702_v53 }
  0xfa   :  { %937 = vmatpush.msra.mxu0 %v6700_v42  ;;  %738 = vmatpush.msrb.mxu1 %v6701_v46  ;;  %v6730_v46 = vld [vmem:[#allocation60_spill] sm:$0xff] }
  0xfb   :  { %851 = vmatpush.msrb.mxu2 %v6703_v54  ;;  %929 = vmatpush.msrb.mxu3 %v6706_v9 }
  0xfc   :  { %938 = vmatpush.msra.mxu0 %v6704_v60  ;;  %739 = vmatpush.msrb.mxu1 %v6705_v48 }
  0xfd   :  { %852 = vmatpush.msrb.mxu2 %v6707_v56  ;;  %930 = vmatpush.msrb.mxu3 %v6709_v44 }
  0xfe   :  { %939 = vmatpush.msra.mxu0 %v6708_v1 }
 0x100   :  { %940 = vmatpush.msra.mxu0 %v6710_v41 }
 0x102   :  { %941 = vmatpush.msra.mxu0 %v6711_v52 }
 0x104   :  { %942 = vmatpush.msra.mxu0 %v6712_v33 }
 0x106   :  { %943 = vmatpush.msra.mxu0 %v6713_v62 }
 0x108   :  { %944 = vmatpush.msra.mxu0 %v6714_v13 }
 0x10a   :  { %945 = vmatpush.msra.mxu0 %v6715_v17 }
 0x10c   :  { %946 = vmatpush.msra.mxu0 %v6716_v25 }
 0x10e   :  { %947 = vmatpush.msra.mxu0 %v6717_v40 }
 0x110   :  { %948 = vmatpush.msra.mxu0 %v6718_v58 }
 0x112   :  { %949 = vmatpush.msra.mxu0 %v6719_v37 }
 0x114   :  { %950 = vmatpush.msra.mxu0 %v6720_v21 }
 0x123   :  { %v403_v39 = vpop.permute.xlu0 %402 }
 0x124   :  { %v405_v28 = vmul.f32 %v403_v39, %v6723_v35  ;;  %v408_v2 = vmul.f32 %v403_v39, %v6724_v50  ;;  %v406_v14 = vmul.f32 %v403_v39, %v6727_v12  ;;  %v407_v19 = vmul.f32 %v403_v39, %v6728_v18 }
 0x126   :  { %v409_v7 = vadd.f32 %v405_v28, %v6725_v4  ;;  %v412_v10 = vadd.f32 %v408_v2, %v6726_v8  ;;  %v410_v31 = vadd.f32 %v406_v14, %v6729_v30  ;;  %v411_v53 = vadd.f32 %v407_v19, %v6730_v46 }
 0x150   :  { %v352_v32 = vpop.f32.mrf.mxu0 }
 0x151   :  { %v353_v45 = vadd.f32 %v352_v32, %v334_v59 }
 0x153   :  { %v355_v49 = vadd.f32 %v4436_v5, %v353_v45  ;;  %v4642_v5 = vld [vmem:[#allocation2 + $0x18] sm:$0xff] }
 0x154   :  { %6755 = vst [vmem:[#allocation40_spill] sm:$0xff] %v4642_v5 }
 0x155   :  { %v3119_v3 = vmul.f32 -1.442695, %v355_v49 }
 0x157   :  { %3247 = vpow2.f32 %v3119_v3 }
 0x159   :  { %v430_v15 = vpop.f32.mrf.mxu1 }
 0x15a   :  { %v493_v20 = vadd.f32 %v430_v15, %v409_v7  ;;  %v490_v23 = vpop.f32.mrf.mxu0 }
 0x15b   :  { %v496_v24 = vadd.f32 %v490_v23, %v412_v10 }
 0x15c   :  { %v3121_v26 = vmul.f32 -1.442695, %v493_v20 }
 0x15d   :  { %v3248_v34 = vpop.eup %3247  ;;  %v3124_v42 = vmul.f32 -1.442695, %v496_v24 }
 0x15e   :  { %v359_v60 = vadd.f32 1.0, %v3248_v34  ;;  %3249 = vpow2.f32 %v3121_v26 }
 0x15f   :  { %3251 = vpow2.f32 %v3124_v42  ;;  %v450_v48 = vpop.f32.mrf.mxu2 }
 0x160   :  { %3253 = vrcp.f32 %v359_v60  ;;  %v494_v9 = vadd.f32 %v450_v48, %v410_v31  ;;  %v470_v1 = vpop.f32.mrf.mxu3  ;;  %v371_v21 = vand.u32 2147483648, %v359_v60  ;;  %v369_v45 = vand.u32 2147483647, %v359_v60 }
 0x161   :  { %v495_v44 = vadd.f32 %v470_v1, %v411_v53  ;;  %vm365_vm1 = vweird.f32 %v359_v60 }
 0x162   :  { %v3122_v41 = vmul.f32 -1.442695, %v494_v9  ;;  %v372_v10 = vor.u32 1.1754944e-38, %v371_v21  ;;  %vm370_vm3 = vcmp.eq.f32.partialorder %v369_v45, 8.507059e+37 }
 0x163   :  { %v3123_v52 = vmul.f32 -1.442695, %v495_v44 }
 0x164   :  { %v3250_v33 = vpop.eup %3249  ;;  %3255 = vpow2.f32 %v3122_v41 }
 0x165   :  { %v3252_v62 = vpop.eup %3251  ;;  %v4447_v13 = vadd.f32 1.0, %v3250_v33  ;;  %3257 = vpow2.f32 %v3123_v52 }
 0x166   :  { %v3254_v17 = vpop.eup %3253  ;;  %v512_v25 = vadd.f32 1.0, %v3252_v62 }
 0x167   :  { %3259 = vrcp.f32 %v4447_v13  ;;  %v361_v40 = vmul.f32 %v3254_v17, %v359_v60  ;;  %vm366_vm0 = vweird.f32 %v3254_v17  ;;  %vm518_vm5 = vweird.f32 %v4447_v13 }
 0x168   :  { %3261 = vrcp.f32 %v512_v25  ;;  %vm367_vm2 = vmor %vm365_vm1, %vm366_vm0  ;;  %v569_v31 = vand.u32 2147483648, %v512_v25  ;;  %v567_v60 = vand.u32 2147483647, %v512_v25  ;;  %vm563_vm6 = vweird.f32 %v512_v25 }
 0x169   :  { %v362_v58 = vsub.f32 1.0, %v361_v40  ;;  %v522_v44 = vand.u32 2147483647, %v4447_v13 }
 0x16a   :  { %v3256_v37 = vpop.eup %3255  ;;  %v570_v52 = vor.u32 1.1754944e-38, %v569_v31  ;;  %vm568_vm9 = vcmp.eq.f32.partialorder %v567_v60, 8.507059e+37  ;;  %v4486_v60 = vld [vmem:[#allocation2 + $0x1b0] sm:$0xff] }
 0x16b   :  { %v3258_v59 = vpop.eup %3257  ;;  %v4450_v39 = vadd.f32 1.0, %v3256_v37  ;;  %v363_v32 = vmul.f32 %v3254_v17, %v362_v58  ;;  %vm523_vm14 = vcmp.eq.f32.partialorder %v522_v44, 8.507059e+37 }
 0x16c   :  { %v4452_v28 = vadd.f32 1.0, %v3258_v59 }
 0x16d   :  { %v3260_v49 = vpop.eup %3259  ;;  %3263 = vrcp.f32 %v4450_v39  ;;  %v364_v2 = vadd.f32 %v3254_v17, %v363_v32  ;;  %v539_v40 = vand.u32 2147483648, %v4450_v39  ;;  %v537_v37 = vand.u32 2147483647, %v4450_v39 }
 0x16e   :  { %v3262_v3 = vpop.eup %3261  ;;  %v514_v7 = vmul.f32 %v3260_v49, %v4447_v13  ;;  %3265 = vrcp.f32 %v4452_v28  ;;  %vm519_vm7 = vweird.f32 %v3260_v49  ;;  %vm533_vm12 = vweird.f32 %v4450_v39 }
 0x16f   :  { %v559_v14 = vmul.f32 %v3262_v3, %v512_v25  ;;  %v368_v15 = vsel %vm367_vm2, %v3254_v17, %v364_v2  ;;  %vm564_vm4 = vweird.f32 %v3262_v3  ;;  %v524_v17 = vand.u32 2147483648, %v4447_v13  ;;  %vm520_vm11 = vmor %vm518_vm5, %vm519_vm7 }
 0x170   :  { %v515_v19 = vsub.f32 1.0, %v514_v7  ;;  %v4457_v20 = vsel %vm370_vm3, %v372_v10, %v368_v15  ;;  %vm565_vm8 = vmor %vm563_vm6, %vm564_vm4  ;;  %v540_v10 = vor.u32 1.1754944e-38, %v539_v40  ;;  %vm538_vm15 = vcmp.eq.f32.partialorder %v537_v37, 8.507059e+37  ;;  %v4512_v40 = vld [vmem:[#allocation2 + $0x1b8] sm:$0xff]  ;;  %v4529_v37 = vld [vmem:[#allocation2 + $0x180] sm:$0xff] }
 0x171   :  { %6731 = vst [vmem:[#allocation19_spill] sm:$0xff] %v4457_v20  ;;  %v560_v23 = vsub.f32 1.0, %v559_v14  ;;  %v375_v24 = vmul.f32 2.0, %v4457_v20  ;;  %v525_v7 = vor.u32 1.1754944e-38, %v524_v17  ;;  %vm548_vm1 = vweird.f32 %v4452_v28  ;;  %v4509_v17 = vld [vmem:[#allocation2 + $0x1c0] sm:$0xff] }
 0x172   :  { %v516_v26 = vmul.f32 %v3260_v49, %v515_v19 }
 0x173   :  { %v3264_v34 = vpop.eup %3263  ;;  %v561_v42 = vmul.f32 %v3262_v3, %v560_v23  ;;  %v3120_v53 = vadd.f32 -1.0, %v375_v24 }
 0x174   :  { %v3266_v48 = vpop.eup %3265  ;;  %v529_v9 = vmul.f32 %v3264_v34, %v4450_v39  ;;  %v517_v62 = vadd.f32 %v3260_v49, %v516_v26  ;;  %vm534_vm10 = vweird.f32 %v3264_v34  ;;  %v554_v39 = vand.u32 2147483648, %v4452_v28 }
 0x175   :  { %v544_v1 = vmul.f32 %v3266_v48, %v4452_v28  ;;  %379 = vrot.lane.b32.xlu1 %v3120_v53, %s3831_s23  ;;  %v562_v41 = vadd.f32 %v3262_v3, %v561_v42  ;;  %vm535_vm13 = vmor %vm533_vm12, %vm534_vm10  ;;  %vm549_vm0 = vweird.f32 %v3266_v48  ;;  %v4483_v42 = vld [vmem:[#allocation2 + $0x1d0] sm:$0xff] }
 0x176   :  { %v530_v33 = vsub.f32 1.0, %v529_v9  ;;  %v521_v45 = vsel %vm520_vm11, %v3260_v49, %v517_v62  ;;  %v552_v49 = vand.u32 2147483647, %v4452_v28  ;;  %vm550_vm2 = vmor %vm548_vm1, %vm549_vm0  ;;  %v555_v53 = vor.u32 1.1754944e-38, %v554_v39  ;;  %v4489_v28 = vld [vmem:[#allocation2 + $0x190] sm:$0xff]  ;;  %v4609_v39 = vld [vmem:[#allocation2 + $0x1e8] sm:$0xff] }
 0x177   :  { %v566_v58 = vsel %vm565_vm8, %v3262_v3, %v562_v41  ;;  %v545_v59 = vsub.f32 1.0, %v544_v1  ;;  %v526_v15 = vsel %vm523_vm14, %v525_v7, %v521_v45  ;;  %v4495_v41 = vld [vmem:[#allocation2 + $0x170] sm:$0xff]  ;;  %v4549_v45 = vld [vmem:[#allocation2 + $0x140] sm:$0xff]  ;;  %6745 = vst [vmem:[#allocation49_spill] sm:$0xff] %v4609_v39 }
 0x178   :  { %v531_v25 = vmul.f32 %v3264_v34, %v530_v33  ;;  %v571_v21 = vsel %vm568_vm9, %v570_v52, %v566_v58  ;;  %vm553_vm3 = vcmp.eq.f32.partialorder %v552_v49, 8.507059e+37  ;;  %v4499_v52 = vld [vmem:[#allocation2 + $0x1e0] sm:$0xff]  ;;  %v4502_v33 = vld [vmem:[#allocation2 + $0x1d8] sm:$0xff]  ;;  %v4505_v62 = vld [vmem:[#allocation2 + $0x150] sm:$0xff] }
 0x179   :  { %v573_v32 = vmul.f32 2.0, %v571_v21  ;;  %v546_v23 = vmul.f32 %v3266_v48, %v545_v59  ;;  %v4519_v58 = vld [vmem:[#allocation2 + $0x1a0] sm:$0xff]  ;;  %v4532_v21 = vld [vmem:[#allocation2 + $0x178] sm:$0xff] }
 0x17a   :  { %v532_v2 = vadd.f32 %v3264_v34, %v531_v25  ;;  %v4522_v25 = vld [vmem:[#allocation2 + $0x198] sm:$0xff]  ;;  %v4539_v59 = vld [vmem:[#allocation2 + $0x160] sm:$0xff] }
 0x17b   :  { %v3125_v14 = vadd.f32 -1.0, %v573_v32  ;;  %v547_v31 = vadd.f32 %v3266_v48, %v546_v23  ;;  %v4542_v32 = vld [vmem:[#allocation2 + $0x158] sm:$0xff]  ;;  %v4559_v7 = vld [vmem:[#allocation2 + $0x120] sm:$0xff] }
 0x17c   :  { %v536_v3 = vsel %vm535_vm13, %v3264_v34, %v532_v2  ;;  %v4480_v34 = vld [vmem:[#allocation2 + $0x1f0] sm:$0xff]  ;;  %v4552_v2 = vld [vmem:[#allocation2 + $0x138] sm:$0xff]  ;;  %v4589_v23 = vld [vmem:[#allocation2 + $0xc0] sm:$0xff] }
 0x17d   :  { %v541_v19 = vsel %vm538_vm15, %v540_v10, %v536_v3  ;;  %v576_v26 = vmul.f32 %v3125_v14, %v526_v15  ;;  %v4562_v10 = vld [vmem:[#allocation2 + $0x118] sm:$0xff]  ;;  %v4569_v14 = vld [vmem:[#allocation2 + $0x100] sm:$0xff]  ;;  %6739 = vst [vmem:[#allocation25_spill] sm:$0xff] %v4589_v23 }
 0x17e   :  { %v575_v24 = vmul.f32 %v541_v19, %v4340_v36  ;;  %v551_v36 = vsel %vm550_vm2, %v3266_v48, %v547_v31  ;;  %v4492_v48 = vld [vmem:[#allocation2 + $0x1f8] sm:$0xff]  ;;  %6733 = vst [vmem:[#allocation46_spill] sm:$0xff] %v4569_v14  ;;  %v4579_v15 = vld [vmem:[#allocation2 + $0xe0] sm:$0xff] }
 0x17f   :  { %v556_v1 = vsel %vm553_vm3, %v555_v53, %v551_v36  ;;  %v4572_v3 = vld [vmem:[#allocation2 + $0xf8] sm:$0xff]  ;;  %6736 = vst [vmem:[#allocation35_spill] sm:$0xff] %v4579_v15  ;;  %v4619_v36 = vld [vmem:[#allocation2 + $0x1c8] sm:$0xff] }
 0x180   :  { %v4473_v13 = vadd.f32 %v576_v26, %v575_v24  ;;  %6734 = vst [vmem:[#allocation17_spill] sm:$0xff] %v4572_v3  ;;  %v4582_v19 = vld [vmem:[#allocation2 + $0xd8] sm:$0xff]  ;;  %v4599_v26 = vld [vmem:[#allocation2 + $0xa0] sm:$0xff] }
 0x181   :  { %6737 = vst [vmem:[#allocation47_spill] sm:$0xff] %v4582_v19  ;;  %v4592_v24 = vld [vmem:[#allocation2 + $0xb8] sm:$0xff] }
 0x182   :  { %3267 = vtanh.f32 %v4473_v13  ;;  %602 = vmatmul.f32.vlgmr.msra.gmra.mxu1 %v4473_v13  ;;  %6740 = vst [vmem:[#allocation39_spill] sm:$0xff] %v4592_v24  ;;  %v4602_v31 = vld [vmem:[#allocation2 + $0x98] sm:$0xff] }
 0x183   :  { %955 = vmatpush.msra.mxu1 %v4480_v34  ;;  %6742 = vst [vmem:[#allocation23_spill] sm:$0xff] %v4599_v26  ;;  %v4612_v49 = vld [vmem:[#allocation2 + $0x78] sm:$0xff] }
 0x184   :  { %6743 = vst [vmem:[#allocation28_spill] sm:$0xff] %v4602_v31  ;;  %v4622_v53 = vld [vmem:[#allocation2 + $0x58] sm:$0xff] }
 0x185   :  { %956 = vmatpush.msra.mxu1 %v4483_v42  ;;  %6746 = vst [vmem:[#allocation8_spill] sm:$0xff] %v4612_v49 }
 0x186   :  { %6748 = vst [vmem:[#allocation26_spill] sm:$0xff] %v4619_v36 }
 0x187   :  { %957 = vmatpush.msra.mxu1 %v4486_v60  ;;  %6749 = vst [vmem:[#allocation50_spill] sm:$0xff] %v4622_v53 }
 0x188   :  { %v3268_v9 = vpop.eup %3267 }
 0x189   :  { %v579_v44 = vmul.f32 %v3268_v9, %v556_v1  ;;  %958 = vmatpush.msra.mxu1 %v4489_v28  ;;  %v4629_v9 = vld [vmem:[#allocation2 + $0x1a8] sm:$0xff]  ;;  %v4632_v1 = vld [vmem:[#allocation2 + $0x38] sm:$0xff] }
 0x18a   :  { %6751 = vst [vmem:[#allocation36_spill] sm:$0xff] %v4629_v9 }
 0x18b   :  { %680 = vmatmul.f32.vlgmr.msra.gmra.mxu2 %v579_v44  ;;  %700 = vmatmul.f32.vlgmr.msra.gmra.mxu3 %v579_v44  ;;  %6752 = vst [vmem:[#allocation29_spill] sm:$0xff] %v4632_v1 }
 0x18c   :  { %720 = vmatmul.f32.vlgmr.msrb.gmra.mxu0 %v579_v44  ;;  %740 = vmatmul.f32.vlgmr.msrb.gmra.mxu1 %v579_v44  ;;  %v4639_v44 = vld [vmem:[#allocation2 + $0x188] sm:$0xff] }
 0x18d   :  { %975 = vmatpush.msra.mxu2 %v4492_v48  ;;  %959 = vmatpush.msra.mxu1 %v4495_v41  ;;  %6754 = vst [vmem:[#allocation10_spill] sm:$0xff] %v4639_v44 }
 0x18e   :  { %1088 = vmatpush.msra.mxu3 %v4078_v55  ;;  %1166 = vmatpush.msrb.mxu0 %v4499_v52  ;;  %v4515_v55 = vld [vmem:[#allocation2 + $0x130] sm:$0xff] }
 0x18f   :  { %976 = vmatpush.msra.mxu2 %v4502_v33  ;;  %960 = vmatpush.msra.mxu1 %v4505_v62 }
 0x190   :  { %1089 = vmatpush.msra.mxu3 %v4088_v47  ;;  %1167 = vmatpush.msrb.mxu0 %v4509_v17  ;;  %v4525_v47 = vld [vmem:[#allocation2 + $0x110] sm:$0xff] }
 0x191   :  { %977 = vmatpush.msra.mxu2 %v4512_v40  ;;  %961 = vmatpush.msra.mxu1 %v4515_v55 }
 0x192   :  { %1090 = vmatpush.msra.mxu3 %v4095_v43  ;;  %1168 = vmatpush.msrb.mxu0 %v4519_v58  ;;  %v4535_v43 = vld [vmem:[#allocation2 + $0xf0] sm:$0xff] }
 0x193   :  { %978 = vmatpush.msra.mxu2 %v4522_v25  ;;  %962 = vmatpush.msra.mxu1 %v4525_v47 }
 0x194   :  { %1091 = vmatpush.msra.mxu3 %v4185_v51  ;;  %1169 = vmatpush.msrb.mxu0 %v4529_v37  ;;  %v4545_v51 = vld [vmem:[#allocation2 + $0xd0] sm:$0xff] }
 0x195   :  { %979 = vmatpush.msra.mxu2 %v4532_v21  ;;  %963 = vmatpush.msra.mxu1 %v4535_v43 }
 0x196   :  { %1092 = vmatpush.msra.mxu3 %v4192_v63  ;;  %1170 = vmatpush.msrb.mxu0 %v4539_v59  ;;  %v4555_v63 = vld [vmem:[#allocation2 + $0xb0] sm:$0xff] }
 0x197   :  { %980 = vmatpush.msra.mxu2 %v4542_v32  ;;  %964 = vmatpush.msra.mxu1 %v4545_v51 }
 0x198   :  { %1093 = vmatpush.msra.mxu3 %v4199_v61  ;;  %1171 = vmatpush.msrb.mxu0 %v4549_v45  ;;  %v4565_v61 = vld [vmem:[#allocation2 + $0x90] sm:$0xff] }
 0x199   :  { %981 = vmatpush.msra.mxu2 %v4552_v2  ;;  %965 = vmatpush.msra.mxu1 %v4555_v63  ;;  %6732 = vst [vmem:[#allocation31_spill] sm:$0xff] %v4565_v61 }
 0x19a   :  { %1094 = vmatpush.msra.mxu3 %v4206_v57  ;;  %1172 = vmatpush.msrb.mxu0 %v4559_v7  ;;  %v4575_v57 = vld [vmem:[#allocation2 + $0x70] sm:$0xff] }
 0x19b   :  { %982 = vmatpush.msra.mxu2 %v4562_v10  ;;  %966 = vmatpush.msra.mxu1 %v4565_v61  ;;  %6735 = vst [vmem:[#allocation22_spill] sm:$0xff] %v4575_v57 }
 0x19c   :  { %1095 = vmatpush.msra.mxu3 %v6675_v0  ;;  %1173 = vmatpush.msrb.mxu0 %v4569_v14  ;;  %v4585_v0 = vld [vmem:[#allocation2 + $0x50] sm:$0xff] }
 0x19d   :  { %983 = vmatpush.msra.mxu2 %v4572_v3  ;;  %967 = vmatpush.msra.mxu1 %v4575_v57  ;;  %6738 = vst [vmem:[#allocation20_spill] sm:$0xff] %v4585_v0 }
 0x19e   :  { %1096 = vmatpush.msra.mxu3 %v6679_v6  ;;  %1174 = vmatpush.msrb.mxu0 %v4579_v15  ;;  %v4595_v6 = vld [vmem:[#allocation2 + $0x30] sm:$0xff] }
 0x19f   :  { %984 = vmatpush.msra.mxu2 %v4582_v19  ;;  %968 = vmatpush.msra.mxu1 %v4585_v0  ;;  %6741 = vst [vmem:[#allocation48_spill] sm:$0xff] %v4595_v6 }
 0x1a0   :  { %1097 = vmatpush.msra.mxu3 %v6683_v11  ;;  %1175 = vmatpush.msrb.mxu0 %v4589_v23  ;;  %v4605_v11 = vld [vmem:[#allocation2 + $0x10] sm:$0xff] }
 0x1a1   :  { %985 = vmatpush.msra.mxu2 %v4592_v24  ;;  %969 = vmatpush.msra.mxu1 %v4595_v6  ;;  %6744 = vst [vmem:[#allocation43_spill] sm:$0xff] %v4605_v11 }
 0x1a2   :  { %1098 = vmatpush.msra.mxu3 %v6687_v16  ;;  %1176 = vmatpush.msrb.mxu0 %v4599_v26  ;;  %v4615_v16 = vld [vmem:[#allocation2 + $0x80] sm:$0xff] }
 0x1a3   :  { %986 = vmatpush.msra.mxu2 %v4602_v31  ;;  %970 = vmatpush.msra.mxu1 %v4605_v11  ;;  %6747 = vst [vmem:[#allocation32_spill] sm:$0xff] %v4615_v16 }
 0x1a4   :  { %1099 = vmatpush.msra.mxu3 %v6691_v22  ;;  %1177 = vmatpush.msrb.mxu0 %v4615_v16  ;;  %v4625_v22 = vld [vmem:[#allocation2 + $0x60] sm:$0xff] }
 0x1a5   :  { %1186 = vmatpush.msrb.mxu1 %v4609_v39  ;;  %987 = vmatpush.msra.mxu2 %v4612_v49  ;;  %6750 = vst [vmem:[#allocation9_spill] sm:$0xff] %v4625_v22 }
 0x1a6   :  { %1100 = vmatpush.msra.mxu3 %v6695_v27  ;;  %1178 = vmatpush.msrb.mxu0 %v4625_v22  ;;  %v4635_v27 = vld [vmem:[#allocation2 + $0x40] sm:$0xff] }
 0x1a7   :  { %1187 = vmatpush.msrb.mxu1 %v4619_v36  ;;  %988 = vmatpush.msra.mxu2 %v4622_v53  ;;  %6753 = vst [vmem:[#allocation51_spill] sm:$0xff] %v4635_v27 }
 0x1a8   :  { %1101 = vmatpush.msra.mxu3 %v6699_v38  ;;  %1179 = vmatpush.msrb.mxu0 %v4635_v27  ;;  %v4645_v38 = vld [vmem:[#allocation2 + $0x20] sm:$0xff] }
 0x1a9   :  { %1188 = vmatpush.msrb.mxu1 %v4629_v9  ;;  %989 = vmatpush.msra.mxu2 %v4632_v1  ;;  %6756 = vst [vmem:[#allocation33_spill] sm:$0xff] %v4645_v38  ;;  %v4652_v27 = vld [vmem:[#allocation2] sm:$0xff] }
 0x1aa   :  { %1102 = vmatpush.msra.mxu3 %v6703_v54  ;;  %1180 = vmatpush.msrb.mxu0 %v4645_v38  ;;  %6758 = vst [vmem:[#allocation11_spill] sm:$0xff] %v4652_v27  ;;  %v4655_v54 = vld [vmem:[#allocation2 + $0x148] sm:$0xff] }
 0x1ab   :  { %1189 = vmatpush.msrb.mxu1 %v4639_v44  ;;  %990 = vmatpush.msra.mxu2 %v4642_v5  ;;  %6759 = vst [vmem:[#allocation44_spill] sm:$0xff] %v4655_v54  ;;  %v4658_v44 = vld [vmem:[#allocation2 + $0x128] sm:$0xff] }
 0x1ac   :  { %1103 = vmatpush.msra.mxu3 %v6707_v56  ;;  %1181 = vmatpush.msrb.mxu0 %v4652_v27  ;;  %6760 = vst [vmem:[#allocation37_spill] sm:$0xff] %v4658_v44  ;;  %v4661_v5 = vld [vmem:[#allocation2 + $0x108] sm:$0xff] }
 0x1ad   :  { %1190 = vmatpush.msrb.mxu1 %v4649_v29  ;;  %6761 = vst [vmem:[#allocation55_spill] sm:$0xff] %v4661_v5  ;;  %v4664_v56 = vld [vmem:[#allocation2 + $0xe8] sm:$0xff] }
 0x1ae   :  { %6762 = vst [vmem:[#allocation12_spill] sm:$0xff] %v4664_v56  ;;  %v4667_v29 = vld [vmem:[#allocation2 + $0xc8] sm:$0xff] }
 0x1af   :  { %1191 = vmatpush.msrb.mxu1 %v4655_v54  ;;  %6763 = vst [vmem:[#allocation41_spill] sm:$0xff] %v4667_v29  ;;  %v4670_v27 = vld [vmem:[#allocation2 + $0xa8] sm:$0xff] }
 0x1b0   :  { %6764 = vst [vmem:[#allocation13_spill] sm:$0xff] %v4670_v27  ;;  %v4673_v54 = vld [vmem:[#allocation2 + $0x88] sm:$0xff] }
 0x1b1   :  { %1192 = vmatpush.msrb.mxu1 %v4658_v44  ;;  %6765 = vst [vmem:[#allocation14_spill] sm:$0xff] %v4673_v54  ;;  %v4676_v44 = vld [vmem:[#allocation2 + $0x68] sm:$0xff] }
 0x1b2   :  { %6766 = vst [vmem:[#allocation16_spill] sm:$0xff] %v4676_v44 }
 0x1b3   :  { %1193 = vmatpush.msrb.mxu1 %v4661_v5  ;;  %v4679_v5 = vld [vmem:[#allocation2 + $0x48] sm:$0xff] }
 0x1b4   :  { %6767 = vst [vmem:[#allocation18_spill] sm:$0xff] %v4679_v5 }
 0x1b5   :  { %1194 = vmatpush.msrb.mxu1 %v4664_v56  ;;  %v4682_v56 = vld [vmem:[#allocation2 + $0x28] sm:$0xff] }
 0x1b6   :  { %6768 = vst [vmem:[#allocation21_spill] sm:$0xff] %v4682_v56 }
 0x1b7   :  { %1195 = vmatpush.msrb.mxu1 %v4667_v29  ;;  %v4685_v29 = vld [vmem:[#allocation2 + $0x8] sm:$0xff] }
 0x1b8   :  { %6769 = vst [vmem:[#allocation24_spill] sm:$0xff] %v4685_v29 }
 0x1b9   :  { %1196 = vmatpush.msrb.mxu1 %v4670_v27  ;;  %v6401_v27 = vmov 2  }
 0x1ba   :  { %3215 = vset.pattern.permute.xlu1 %v6401_v27  ;;  %3214 = vset.pattern.permute.xlu2 %v6401_v27 }
 0x1bb   :  { %1197 = vmatpush.msrb.mxu1 %v4673_v54 }
 0x1bd   :  { %1198 = vmatpush.msrb.mxu1 %v4676_v44 }
 0x1bf   :  { %1199 = vmatpush.msrb.mxu1 %v4679_v5  ;;  %v4695_v5 = vld [vmem:[%s6276_s0] sm:$0xff] }
 0x1c0   :  { %6770 = vst [vmem:[#allocation27_spill] sm:$0xff] %v4695_v5 }
 0x1c1   :  { %1200 = vmatpush.msrb.mxu1 %v4682_v56 }
 0x1c3   :  { %1201 = vmatpush.msrb.mxu1 %v4685_v29  ;;  %v377_v29 = vmul.f32 0.0, %v4457_v20 }
 0x1e7   :  { %v380_v54 = vpop.permute.xlu1 %379 }
 0x1e8   :  { %v382_v44 = vmul.f32 %v380_v54, %v4457_v20 }
 0x1ea   :  { %384 = vrot.lane.b32.xlu1 %v382_v44, %s3833_s24 }
 0x1f2   :  { %653 = vperm.xlu1 %3215, %v4695_v5  }
 0x1ff   :  { %v4699_v38 = vpop.f32.mrf.mxu1 }
 0x200   :  { %6771 = vst [vmem:[#allocation30_spill] sm:$0xff] %v4699_v38 }
 0x209   :  { %v721_v5 = vpop.f32.mrf.mxu0  ;;  %v741_v20 = vpop.f32.mrf.mxu1 }
 0x20e   :  { %v681_v36 = vpop.f32.mrf.mxu2 }
 0x25c   :  { %v385_v56 = vpop.permute.xlu1 %384 }
 0x25d   :  { %v4701_v1 = vadd.f32 %v385_v56, %v377_v29 }
 0x25f   :  { %6772 = vst [vmem:[#allocation34_spill] sm:$0xff] %v4701_v1  ;;  %3269 = vtanh.f32 %v4701_v1 }
 0x264   :  { %v654_v54 = vpop.permute.xlu1 %653 }
 0x265   :  { %v3270_v27 = vpop.eup %3269  ;;  %v656_v44 = vmul.f32 %v654_v54, %v6723_v35  ;;  %v657_v9 = vmul.f32 %v654_v54, %v6727_v12  ;;  %v658_v22 = vmul.f32 %v654_v54, %v6728_v18  ;;  %v659_v53 = vmul.f32 %v654_v54, %v6724_v50  ;;  %v701_v35 = vpop.f32.mrf.mxu3 }
 0x266   :  { %390 = vrot.lane.b32.xlu2 %v3270_v27, %s3833_s24 }
 0x267   :  { %v660_v38 = vadd.f32 %v656_v44, %v6725_v4  ;;  %v661_v29 = vadd.f32 %v657_v9, %v6729_v30  ;;  %v662_v56 = vadd.f32 %v658_v22, %v6730_v46  ;;  %v663_v1 = vadd.f32 %v659_v53, %v6726_v8 }
 0x269   :  { %v744_v16 = vadd.f32 %v681_v36, %v660_v38  ;;  %v745_v12 = vadd.f32 %v701_v35, %v661_v29  ;;  %v746_v49 = vadd.f32 %v721_v5, %v662_v56  ;;  %v747_v18 = vadd.f32 %v741_v20, %v663_v1 }
 0x26b   :  { %v3128_v39 = vmul.f32 -1.442695, %v744_v16  ;;  %v3129_v54 = vmul.f32 -1.442695, %v745_v12  ;;  %v3130_v50 = vmul.f32 -1.442695, %v746_v49 }
 0x26c   :  { %v3131_v27 = vmul.f32 -1.442695, %v747_v18 }
 0x26d   :  { %3271 = vpow2.f32 %v3128_v39 }
 0x26e   :  { %3273 = vpow2.f32 %v3129_v54 }
 0x26f   :  { %3275 = vpow2.f32 %v3130_v50 }
 0x270   :  { %3277 = vpow2.f32 %v3131_v27 }
 0x273   :  { %v3272_v44 = vpop.eup %3271 }
 0x274   :  { %v3274_v9 = vpop.eup %3273  ;;  %v760_v30 = vadd.f32 1.0, %v3272_v44 }
 0x275   :  { %v3276_v22 = vpop.eup %3275  ;;  %v761_v46 = vadd.f32 1.0, %v3274_v9 }
 0x276   :  { %v3278_v53 = vpop.eup %3277  ;;  %3279 = vrcp.f32 %v760_v30  ;;  %v4713_v35 = vadd.f32 1.0, %v3276_v22  ;;  %vm769_vm10 = vweird.f32 %v760_v30 }
 0x277   :  { %v763_v8 = vadd.f32 1.0, %v3278_v53  ;;  %3281 = vrcp.f32 %v761_v46  ;;  %vm784_vm6 = vweird.f32 %v761_v46  ;;  %v788_v9 = vand.u32 2147483647, %v761_v46 }
 0x278   :  { %v790_v22 = vand.u32 2147483648, %v761_v46  ;;  %vm799_vm1 = vweird.f32 %v4713_v35 }
 0x279   :  { %3283 = vrcp.f32 %v763_v8  ;;  %v820_v56 = vand.u32 2147483648, %v763_v8  ;;  %v818_v44 = vand.u32 2147483647, %v763_v8  ;;  %vm814_vm9 = vweird.f32 %v763_v8 }
 0x27a   :  { %3285 = vrcp.f32 %v4713_v35  ;;  %vm789_vm14 = vcmp.eq.f32.partialorder %v788_v9, 8.507059e+37  ;;  %v4803_v9 = vld [vmem:[%s6280_s4 + $0x40] sm:$0xff] }
 0x27b   :  { %vm819_vm12 = vcmp.eq.f32.partialorder %v818_v44, 8.507059e+37  ;;  %v4794_v44 = vld [vmem:[%s6280_s4 + $0x48] sm:$0xff]  ;;  %6775 = vst [vmem:[#allocation38_spill] sm:$0xff] %v4803_v9 }
 0x27c   :  { %v3280_v5 = vpop.eup %3279 }
 0x27d   :  { %v3282_v12 = vpop.eup %3281  ;;  %v765_v18 = vmul.f32 %v3280_v5, %v760_v30  ;;  %vm770_vm7 = vweird.f32 %v3280_v5 }
 0x27e   :  { %v780_v20 = vmul.f32 %v3282_v12, %v761_v46  ;;  %vm785_vm4 = vweird.f32 %v3282_v12  ;;  %vm771_vm13 = vmor %vm769_vm10, %vm770_vm7  ;;  %v791_v46 = vor.u32 1.1754944e-38, %v790_v22  ;;  %v4812_v22 = vld [vmem:[%s6280_s4 + $0x38] sm:$0xff] }
 0x27f   :  { %v3284_v50 = vpop.eup %3283  ;;  %v766_v39 = vsub.f32 1.0, %v765_v18  ;;  %vm4717_vm8 = vmor %vm784_vm6, %vm785_vm4  ;;  %6776 = vst [vmem:[#allocation42_spill] sm:$0xff] %v4812_v22 }
 0x280   :  { %v781_v49 = vsub.f32 1.0, %v780_v20  ;;  %v810_v16 = vmul.f32 %v3284_v50, %v763_v8  ;;  %v3286_v36 = vpop.eup %3285  ;;  %vm815_vm5 = vweird.f32 %v3284_v50 }
 0x281   :  { %v767_v1 = vmul.f32 %v3280_v5, %v766_v39  ;;  %v795_v53 = vmul.f32 %v3286_v36, %v4713_v35  ;;  %v775_v39 = vand.u32 2147483648, %v760_v30  ;;  %vm816_vm11 = vmor %vm814_vm9, %vm815_vm5  ;;  %vm800_vm0 = vweird.f32 %v3286_v36 }
 0x282   :  { %v782_v38 = vmul.f32 %v3282_v12, %v781_v49  ;;  %v811_v29 = vsub.f32 1.0, %v810_v16  ;;  %v821_v49 = vor.u32 1.1754944e-38, %v820_v56  ;;  %v773_v16 = vand.u32 2147483647, %v760_v30  ;;  %vm801_vm2 = vmor %vm799_vm1, %vm800_vm0 }
 0x283   :  { %v768_v4 = vadd.f32 %v3280_v5, %v767_v1  ;;  %v796_v11 = vsub.f32 1.0, %v795_v53  ;;  %v776_v6 = vor.u32 1.1754944e-38, %v775_v39  ;;  %v4821_v53 = vld [vmem:[%s6280_s4 + $0x30] sm:$0xff]  ;;  %v6779_v39 = vld [vmem:[#allocation39_spill] sm:$0xff] }
 0x284   :  { %v783_v54 = vadd.f32 %v3282_v12, %v782_v38  ;;  %v812_v27 = vmul.f32 %v3284_v50, %v811_v29  ;;  %vm774_vm15 = vcmp.eq.f32.partialorder %v773_v16, 8.507059e+37  ;;  %6777 = vst [vmem:[#allocation62_spill] sm:$0xff] %v4821_v53  ;;  %v4830_v16 = vld [vmem:[%s6280_s4 + $0x28] sm:$0xff] }
 0x285   :  { %v772_v31 = vsel %vm771_vm13, %v3280_v5, %v768_v4  ;;  %v797_v23 = vmul.f32 %v3286_v36, %v796_v11  ;;  %v805_v4 = vand.u32 2147483648, %v4713_v35  ;;  %v803_v5 = vand.u32 2147483647, %v4713_v35  ;;  %v4749_v11 = vld [vmem:[%s6280_s4 + $0x70] sm:$0xff]  ;;  %v4758_v35 = vld [vmem:[%s6280_s4 + $0x68] sm:$0xff]  ;;  %6781 = vst [vmem:[#allocation63_spill] sm:$0xff] %v4830_v16 }
 0x286   :  { %v813_v20 = vadd.f32 %v3284_v50, %v812_v27  ;;  %v787_v38 = vsel %vm4717_vm8, %v3282_v12, %v783_v54  ;;  %v777_v24 = vsel %vm774_vm15, %v776_v6, %v772_v31  ;;  %v4740_v31 = vld [vmem:[%s6280_s4 + $0x78] sm:$0xff]  ;;  %v4785_v54 = vld [vmem:[%s6280_s4 + $0x50] sm:$0xff] }
 0x287   :  { %v792_v27 = vsel %vm789_vm14, %v791_v46, %v787_v38  ;;  %v798_v12 = vadd.f32 %v3286_v36, %v797_v23  ;;  %vm804_vm3 = vcmp.eq.f32.partialorder %v803_v5, 8.507059e+37  ;;  %v6782_v38 = vld [vmem:[#allocation23_spill] sm:$0xff]  ;;  %v6792_v5 = vld [vmem:[#allocation9_spill] sm:$0xff] }
 0x288   :  { %v817_v29 = vsel %vm816_vm11, %v3284_v50, %v813_v20  ;;  %v826_v30 = vmul.f32 %v792_v27, %v4473_v13  ;;  %v806_v13 = vor.u32 1.1754944e-38, %v805_v4  ;;  %v4767_v50 = vld [vmem:[%s6280_s4 + $0x60] sm:$0xff]  ;;  %v6778_v20 = vld [vmem:[#allocation25_spill] sm:$0xff]  ;;  %v6791_v4 = vld [vmem:[#allocation50_spill] sm:$0xff] }
 0x289   :  { %v822_v1 = vsel %vm819_vm12, %v821_v49, %v817_v29  ;;  %v802_v6 = vsel %vm801_vm2, %v3286_v36, %v798_v12  ;;  %v4776_v36 = vld [vmem:[%s6280_s4 + $0x58] sm:$0xff]  ;;  %v6780_v49 = vld [vmem:[#allocation48_spill] sm:$0xff]  ;;  %v6784_v46 = vld [vmem:[#allocation43_spill] sm:$0xff] }
 0x28a   :  { %v824_v26 = vmul.f32 2.0, %v822_v1  ;;  %v6783_v29 = vld [vmem:[#allocation28_spill] sm:$0xff]  ;;  %v4839_v1 = vld [vmem:[%s6280_s4 + $0x20] sm:$0xff]  ;;  %v6786_v27 = vld [vmem:[#allocation49_spill] sm:$0xff] }
 0x28b   :  { %6785 = vst [vmem:[#allocation64_spill] sm:$0xff] %v4839_v1  ;;  %v6790_v12 = vld [vmem:[#allocation26_spill] sm:$0xff] }
 0x28c   :  { %v3132_v8 = vadd.f32 -1.0, %v824_v26 }
 0x28e   :  { %v827_v56 = vmul.f32 %v3132_v8, %v777_v24  ;;  %v807_v24 = vsel %vm804_vm3, %v806_v13, %v802_v6  ;;  %v6787_v8 = vld [vmem:[#allocation8_spill] sm:$0xff]  ;;  %v4857_v6 = vld [vmem:[%s6280_s4 + $0x10] sm:$0xff] }
 0x28f   :  { %6793 = vst [vmem:[#allocation66_spill] sm:$0xff] %v4857_v6  ;;  %v6794_v13 = vld [vmem:[#allocation36_spill] sm:$0xff] }
 0x290   :  { %v4724_v18 = vadd.f32 %v827_v56, %v826_v30  ;;  %v6788_v30 = vld [vmem:[#allocation32_spill] sm:$0xff]  ;;  %v4848_v56 = vld [vmem:[%s6280_s4 + $0x18] sm:$0xff] }
 0x291   :  { %6789 = vst [vmem:[#allocation65_spill] sm:$0xff] %v4848_v56 }
 0x292   :  { %3287 = vtanh.f32 %v4724_v18  ;;  %853 = vmatmul.f32.vlgmr.msrb.gmra.mxu2 %v4724_v18 }
 0x293   :  { %1206 = vmatpush.msrb.mxu2 %v4480_v34 }
 0x295   :  { %1207 = vmatpush.msrb.mxu2 %v4483_v42 }
 0x297   :  { %1208 = vmatpush.msrb.mxu2 %v4486_v60 }
 0x298   :  { %v3288_v23 = vpop.eup %3287 }
 0x299   :  { %v830_v26 = vmul.f32 %v3288_v23, %v807_v24  ;;  %1209 = vmatpush.msrb.mxu2 %v4489_v28  ;;  %v6795_v23 = vld [vmem:[#allocation29_spill] sm:$0xff]  ;;  %v6796_v24 = vld [vmem:[#allocation51_spill] sm:$0xff] }
 0x29b   :  { %931 = vmatmul.f32.vlgmr.msrb.gmra.mxu3 %v830_v26  ;;  %951 = vmatmul.f32.vlgmr.msra.gmra.mxu0 %v830_v26 }
 0x29c   :  { %971 = vmatmul.f32.vlgmr.msra.gmra.mxu1 %v830_v26  ;;  %991 = vmatmul.f32.vlgmr.msra.gmra.mxu2 %v830_v26  ;;  %v4866_v26 = vld [vmem:[%s6280_s4 + $0x8] sm:$0xff] }
 0x29d   :  { %1226 = vmatpush.msrb.mxu3 %v4492_v48  ;;  %1210 = vmatpush.msrb.mxu2 %v4495_v41  ;;  %6797 = vst [vmem:[#allocation67_spill] sm:$0xff] %v4866_v26 }
 0x29e   :  { %1339 = vmatpush.msra.mxu0 %v4740_v31  ;;  %1417 = vmatpush.msra.mxu1 %v4499_v52 }
 0x29f   :  { %1227 = vmatpush.msrb.mxu3 %v4502_v33  ;;  %1211 = vmatpush.msrb.mxu2 %v4505_v62 }
 0x2a0   :  { %1340 = vmatpush.msra.mxu0 %v4749_v11  ;;  %1418 = vmatpush.msra.mxu1 %v4509_v17 }
 0x2a1   :  { %1228 = vmatpush.msrb.mxu3 %v4512_v40  ;;  %1212 = vmatpush.msrb.mxu2 %v4515_v55 }
 0x2a2   :  { %1341 = vmatpush.msra.mxu0 %v4758_v35  ;;  %1419 = vmatpush.msra.mxu1 %v4519_v58 }
 0x2a3   :  { %1229 = vmatpush.msrb.mxu3 %v4522_v25  ;;  %1213 = vmatpush.msrb.mxu2 %v4525_v47 }
 0x2a4   :  { %1342 = vmatpush.msra.mxu0 %v4767_v50  ;;  %1420 = vmatpush.msra.mxu1 %v4529_v37 }
 0x2a5   :  { %1230 = vmatpush.msrb.mxu3 %v4532_v21  ;;  %1214 = vmatpush.msrb.mxu2 %v4535_v43 }
 0x2a6   :  { %1343 = vmatpush.msra.mxu0 %v4776_v36  ;;  %1421 = vmatpush.msra.mxu1 %v4539_v59 }
 0x2a7   :  { %1231 = vmatpush.msrb.mxu3 %v4542_v32  ;;  %1215 = vmatpush.msrb.mxu2 %v4545_v51 }
 0x2a8   :  { %1344 = vmatpush.msra.mxu0 %v4785_v54  ;;  %1422 = vmatpush.msra.mxu1 %v4549_v45 }
 0x2a9   :  { %1232 = vmatpush.msrb.mxu3 %v4552_v2  ;;  %1216 = vmatpush.msrb.mxu2 %v4555_v63 }
 0x2aa   :  { %1345 = vmatpush.msra.mxu0 %v4794_v44  ;;  %1423 = vmatpush.msra.mxu1 %v4559_v7 }
 0x2ab   :  { %1233 = vmatpush.msrb.mxu3 %v4562_v10  ;;  %1217 = vmatpush.msrb.mxu2 %v4565_v61 }
 0x2ac   :  { %1346 = vmatpush.msra.mxu0 %v4803_v9  ;;  %1424 = vmatpush.msra.mxu1 %v4569_v14 }
 0x2ad   :  { %1234 = vmatpush.msrb.mxu3 %v4572_v3  ;;  %1218 = vmatpush.msrb.mxu2 %v4575_v57 }
 0x2ae   :  { %1347 = vmatpush.msra.mxu0 %v4812_v22  ;;  %1425 = vmatpush.msra.mxu1 %v4579_v15 }
 0x2af   :  { %1235 = vmatpush.msrb.mxu3 %v4582_v19  ;;  %1219 = vmatpush.msrb.mxu2 %v4585_v0 }
 0x2b0   :  { %1348 = vmatpush.msra.mxu0 %v4821_v53  ;;  %1426 = vmatpush.msra.mxu1 %v6778_v20  ;;  %v6831_v20 = vld [vmem:[#allocation61_spill] sm:$0xff] }
 0x2b1   :  { %1236 = vmatpush.msrb.mxu3 %v6779_v39  ;;  %1220 = vmatpush.msrb.mxu2 %v6780_v49  ;;  %v6829_v49 = vld [vmem:[#allocation57_spill] sm:$0xff]  ;;  %v6830_v39 = vld [vmem:[#allocation60_spill] sm:$0xff] }
 0x2b2   :  { %1349 = vmatpush.msra.mxu0 %v4830_v16  ;;  %1427 = vmatpush.msra.mxu1 %v6782_v38 }
 0x2b3   :  { %1237 = vmatpush.msrb.mxu3 %v6783_v29  ;;  %1221 = vmatpush.msrb.mxu2 %v6784_v46 }
 0x2b4   :  { %1350 = vmatpush.msra.mxu0 %v4839_v1  ;;  %1428 = vmatpush.msra.mxu1 %v6788_v30  ;;  %v6807_v30 = vld [vmem:[#allocation55_spill] sm:$0xff] }
 0x2b5   :  { %1437 = vmatpush.msra.mxu2 %v6786_v27  ;;  %1238 = vmatpush.msrb.mxu3 %v6787_v8  ;;  %v6809_v8 = vld [vmem:[#allocation41_spill] sm:$0xff] }
 0x2b6   :  { %1351 = vmatpush.msra.mxu0 %v4848_v56  ;;  %1429 = vmatpush.msra.mxu1 %v6792_v5  ;;  %v6798_v5 = vld [vmem:[#allocation10_spill] sm:$0xff]  ;;  %v6805_v56 = vld [vmem:[#allocation37_spill] sm:$0xff] }
 0x2b7   :  { %1438 = vmatpush.msra.mxu2 %v6790_v12  ;;  %1239 = vmatpush.msrb.mxu3 %v6791_v4  ;;  %v6799_v4 = vld [vmem:[#allocation40_spill] sm:$0xff]  ;;  %v6800_v12 = vld [vmem:[#allocation33_spill] sm:$0xff] }
 0x2b8   :  { %1352 = vmatpush.msra.mxu0 %v4857_v6  ;;  %1430 = vmatpush.msra.mxu1 %v6796_v24  ;;  %v6802_v24 = vld [vmem:[#allocation54_spill] sm:$0xff]  ;;  %v6804_v6 = vld [vmem:[#allocation44_spill] sm:$0xff]  ;;  %v6810_v27 = vld [vmem:[#allocation13_spill] sm:$0xff] }
 0x2b9   :  { %1439 = vmatpush.msra.mxu2 %v6794_v13  ;;  %1240 = vmatpush.msrb.mxu3 %v6795_v23  ;;  %v4875_v13 = vld [vmem:[%s6280_s4] sm:$0xff] }
 0x2ba   :  { %1353 = vmatpush.msra.mxu0 %v4866_v26  ;;  %1431 = vmatpush.msra.mxu1 %v6800_v12  ;;  %6801 = vst [vmem:[#allocation68_spill] sm:$0xff] %v4875_v13  ;;  %v6803_v23 = vld [vmem:[#allocation11_spill] sm:$0xff]  ;;  %v6808_v12 = vld [vmem:[#allocation12_spill] sm:$0xff] }
 0x2bb   :  { %1440 = vmatpush.msra.mxu2 %v6798_v5  ;;  %1241 = vmatpush.msrb.mxu3 %v6799_v4  ;;  %v6806_v5 = vld [vmem:[#allocation19_spill] sm:$0xff] }
 0x2bc   :  { %1354 = vmatpush.msra.mxu0 %v4875_v13  ;;  %1432 = vmatpush.msra.mxu1 %v6803_v23  ;;  %v6811_v13 = vld [vmem:[#allocation14_spill] sm:$0xff] }
 0x2bd   :  { %1441 = vmatpush.msra.mxu2 %v6802_v24  ;;  %v6812_v24 = vld [vmem:[#allocation16_spill] sm:$0xff]  ;;  %v6813_v23 = vld [vmem:[#allocation18_spill] sm:$0xff] }
 0x2bf   :  { %1442 = vmatpush.msra.mxu2 %v6804_v6  ;;  %v6814_v6 = vld [vmem:[#allocation21_spill] sm:$0xff] }
 0x2c0   :  { %v391_v26 = vpop.permute.xlu2 %390 }
 0x2c1   :  { %1443 = vmatpush.msra.mxu2 %v6805_v56  ;;  %v393_v4 = vmul.f32 %v391_v26, %v6806_v5  ;;  %v6815_v56 = vld [vmem:[#allocation24_spill] sm:$0xff]  ;;  %v6816_v26 = vld [vmem:[#allocation45_spill] sm:$0xff] }
 0x2c3   :  { %1444 = vmatpush.msra.mxu2 %v6807_v30  ;;  %582 = vperm.xlu2 %3214, %v393_v4   ;;  %v6817_v4 = vld [vmem:[#allocation30_spill] sm:$0xff] }
 0x2c5   :  { %1445 = vmatpush.msra.mxu2 %v6808_v12  ;;  %v6818_v12 = vld [vmem:[#allocation15_spill] sm:$0xff] }
 0x2c7   :  { %1446 = vmatpush.msra.mxu2 %v6809_v8 }
 0x2c9   :  { %1447 = vmatpush.msra.mxu2 %v6810_v27 }
 0x2cb   :  { %1448 = vmatpush.msra.mxu2 %v6811_v13 }
 0x2cd   :  { %1449 = vmatpush.msra.mxu2 %v6812_v24 }
 0x2cf   :  { %1450 = vmatpush.msra.mxu2 %v6813_v23 }
 0x2d1   :  { %1451 = vmatpush.msra.mxu2 %v6814_v6 }
 0x2d3   :  { %1452 = vmatpush.msra.mxu2 %v6815_v56 }
 0x31d   :  { %v583_v5 = vpop.permute.xlu2 %582 }
 0x31e   :  { %v585_v30 = vmul.f32 %v6816_v26, %v583_v5  ;;  %v932_v0 = vpop.f32.mrf.mxu3 }
 0x320   :  { %v604_v1 = vadd.f32 %v6817_v4, %v585_v30  ;;  %v6824_v4 = vld [vmem:[#allocation52_spill] sm:$0xff] }
 0x322   :  { %v606_v46 = vadd.f32 %v6818_v12, %v604_v1 }
 0x324   :  { %v3126_v8 = vmul.f32 -1.442695, %v606_v46 }
 0x326   :  { %3289 = vpow2.f32 %v3126_v8 }
 0x32c   :  { %v3290_v27 = vpop.eup %3289 }
 0x32d   :  { %v610_v29 = vadd.f32 1.0, %v3290_v27  ;;  %v3834_v27 = vmov 3  }
 0x32e   :  { %3216 = vset.pattern.permute.xlu0 %v3834_v27 }
 0x32f   :  { %3291 = vrcp.f32 %v610_v29  ;;  %v622_v23 = vand.u32 2147483648, %v610_v29  ;;  %v620_v6 = vand.u32 2147483647, %v610_v29  ;;  %vm616_vm5 = vweird.f32 %v610_v29 }
 0x331   :  { %v623_v5 = vor.u32 1.1754944e-38, %v622_v23  ;;  %vm621_vm7 = vcmp.eq.f32.partialorder %v620_v6, 8.507059e+37 }
 0x335   :  { %v3292_v13 = vpop.eup %3291 }
 0x336   :  { %v612_v24 = vmul.f32 %v3292_v13, %v610_v29  ;;  %vm617_vm4 = vweird.f32 %v3292_v13  ;;  %v6821_v29 = vld [vmem:[#allocation34_spill] sm:$0xff] }
 0x337   :  { %vm618_vm6 = vmor %vm616_vm5, %vm617_vm4 }
 0x338   :  { %v613_v38 = vsub.f32 1.0, %v612_v24 }
 0x33a   :  { %v614_v16 = vmul.f32 %v3292_v13, %v613_v38 }
 0x33c   :  { %v615_v56 = vadd.f32 %v3292_v13, %v614_v16  ;;  %v6820_v16 = vld [vmem:[#allocation27_spill] sm:$0xff] }
 0x33e   :  { %v619_v26 = vsel %vm618_vm6, %v3292_v13, %v615_v56  ;;  %v4906_v13 = vpop.f32.mrf.mxu2 }
 0x33f   :  { %v4895_v30 = vsel %vm621_vm7, %v623_v5, %v619_v26  ;;  %6823 = vst [vmem:[#allocation30_spill] sm:$0xff] %v4906_v13  ;;  %v6825_v26 = vld [vmem:[#allocation53_spill] sm:$0xff] }
 0x340   :  { %6819 = vst [vmem:[#allocation19_spill] sm:$0xff] %v4895_v30  ;;  %v626_v46 = vmul.f32 2.0, %v4895_v30  ;;  %v628_v56 = vmul.f32 %v4895_v30, %v6821_v29  ;;  %v952_v29 = vpop.f32.mrf.mxu0 }
 0x342   :  { %v3127_v1 = vadd.f32 -1.0, %v626_v46 }
 0x344   :  { %630 = vrot.lane.b32.xlu2 %v3127_v1, %s3831_s23  ;;  %v6826_v1 = vld [vmem:[#allocation58_spill] sm:$0xff] }
 0x39e   :  { %v631_v8 = vpop.permute.xlu2 %630 }
 0x39f   :  { %v633_v38 = vmul.f32 %v631_v8, %v4895_v30  ;;  %v6827_v8 = vld [vmem:[#allocation59_spill] sm:$0xff]  ;;  %v972_v30 = vpop.f32.mrf.mxu1 }
 0x3a1   :  { %635 = vrot.lane.b32.xlu0 %v633_v38, %s3833_s24 }
 0x3a9   :  { %904 = vperm.xlu0 %3216, %v6820_v16  }
 0x413   :  { %v636_v12 = vpop.permute.xlu0 %635 }
 0x414   :  { %v4904_v6 = vadd.f32 %v636_v12, %v628_v56  ;;  %v6828_v56 = vld [vmem:[#allocation56_spill] sm:$0xff] }
 0x416   :  { %6822 = vst [vmem:[#allocation45_spill] sm:$0xff] %v4904_v6  ;;  %3293 = vtanh.f32 %v4904_v6 }
 0x41b   :  { %v905_v23 = vpop.permute.xlu0 %904 }
 0x41c   :  { %v3294_v24 = vpop.eup %3293  ;;  %v907_v5 = vmul.f32 %v905_v23, %v6824_v4  ;;  %v908_v46 = vmul.f32 %v905_v23, %v6825_v26  ;;  %v909_v27 = vmul.f32 %v905_v23, %v6826_v1  ;;  %v910_v38 = vmul.f32 %v905_v23, %v6827_v8  ;;  %v992_v4 = vpop.f32.mrf.mxu2 }
 0x41d   :  { %641 = vrot.lane.b32.xlu1 %v3294_v24, %s3833_s24 }
 0x41e   :  { %v911_v12 = vadd.f32 %v907_v5, %v6828_v56  ;;  %v912_v13 = vadd.f32 %v908_v46, %v6829_v49  ;;  %v913_v6 = vadd.f32 %v909_v27, %v6830_v39  ;;  %v914_v53 = vadd.f32 %v910_v38, %v6831_v20 }
 0x420   :  { %v995_v19 = vadd.f32 %v932_v0, %v911_v12  ;;  %v996_v26 = vadd.f32 %v952_v29, %v912_v13  ;;  %v997_v15 = vadd.f32 %v972_v30, %v913_v6  ;;  %v998_v1 = vadd.f32 %v992_v4, %v914_v53 }
 0x421   :  { %v3835_v53 = vmov 4  }
 0x422   :  { %v3135_v22 = vmul.f32 -1.442695, %v995_v19  ;;  %v3136_v23 = vmul.f32 -1.442695, %v996_v26  ;;  %v3137_v8 = vmul.f32 -1.442695, %v997_v15  ;;  %3217 = vset.pattern.permute.xlu0 %v3835_v53 }
 0x423   :  { %v3138_v24 = vmul.f32 -1.442695, %v998_v1  ;;  %1155 = vperm.xlu0 %3217, %v6820_v16  }
 0x424   :  { %3295 = vpow2.f32 %v3135_v22 }
 0x425   :  { %3297 = vpow2.f32 %v3136_v23 }
 0x426   :  { %3299 = vpow2.f32 %v3137_v8 }
 0x427   :  { %3301 = vpow2.f32 %v3138_v24 }
 0x42a   :  { %v3296_v5 = vpop.eup %3295 }
 0x42b   :  { %v3298_v46 = vpop.eup %3297  ;;  %v1011_v49 = vadd.f32 1.0, %v3296_v5 }
 0x42c   :  { %v3300_v27 = vpop.eup %3299  ;;  %v1012_v39 = vadd.f32 1.0, %v3298_v46 }
 0x42d   :  { %v3302_v38 = vpop.eup %3301  ;;  %3303 = vrcp.f32 %v1011_v49  ;;  %v4918_v0 = vadd.f32 1.0, %v3300_v27  ;;  %vm1020_vm14 = vweird.f32 %v1011_v49 }
 0x42e   :  { %v1014_v20 = vadd.f32 1.0, %v3302_v38  ;;  %3305 = vrcp.f32 %v1012_v39  ;;  %vm1035_vm10 = vweird.f32 %v1012_v39  ;;  %v1039_v27 = vand.u32 2147483647, %v1012_v39 }
 0x42f   :  { %v1041_v38 = vand.u32 2147483648, %v1012_v39  ;;  %vm1050_vm5 = vweird.f32 %v4918_v0 }
 0x430   :  { %3307 = vrcp.f32 %v1014_v20  ;;  %v1071_v23 = vand.u32 2147483648, %v1014_v20  ;;  %v1069_v46 = vand.u32 2147483647, %v1014_v20  ;;  %vm1065_vm13 = vweird.f32 %v1014_v20 }
 0x431   :  { %3309 = vrcp.f32 %v4918_v0  ;;  %vm1040_vm2 = vcmp.eq.f32.partialorder %v1039_v27, 8.507059e+37  ;;  %v6867_v27 = vld [vmem:[#allocation68_spill] sm:$0xff] }
 0x432   :  { %vm1070_vm0 = vcmp.eq.f32.partialorder %v1069_v46, 8.507059e+37  ;;  %v6866_v46 = vld [vmem:[#allocation33_spill] sm:$0xff] }
 0x433   :  { %v3304_v19 = vpop.eup %3303 }
 0x434   :  { %v3306_v15 = vpop.eup %3305  ;;  %v1016_v22 = vmul.f32 %v3304_v19, %v1011_v49  ;;  %vm1021_vm11 = vweird.f32 %v3304_v19 }
 0x435   :  { %v1031_v30 = vmul.f32 %v3306_v15, %v1012_v39  ;;  %vm1036_vm8 = vweird.f32 %v3306_v15  ;;  %vm1022_vm1 = vmor %vm1020_vm14, %vm1021_vm11  ;;  %v1042_v39 = vor.u32 1.1754944e-38, %v1041_v38  ;;  %v6868_v38 = vld [vmem:[#allocation54_spill] sm:$0xff] }
 0x436   :  { %v3308_v29 = vpop.eup %3307  ;;  %v1017_v6 = vsub.f32 1.0, %v1016_v22  ;;  %vm4923_vm12 = vmor %vm1035_vm10, %vm1036_vm8 }
 0x437   :  { %v1032_v13 = vsub.f32 1.0, %v1031_v30  ;;  %v1061_v4 = vmul.f32 %v3308_v29, %v1014_v20  ;;  %v3310_v26 = vpop.eup %3309  ;;  %vm1066_vm9 = vweird.f32 %v3308_v29 }
 0x438   :  { %v1018_v1 = vmul.f32 %v3304_v19, %v1017_v6  ;;  %v1046_v53 = vmul.f32 %v3310_v26, %v4918_v0  ;;  %v1026_v6 = vand.u32 2147483648, %v1011_v49  ;;  %vm1067_vm15 = vmor %vm1065_vm13, %vm1066_vm9  ;;  %vm1051_vm4 = vweird.f32 %v3310_v26 }
 0x439   :  { %v1033_v8 = vmul.f32 %v3306_v15, %v1032_v13  ;;  %v1062_v12 = vsub.f32 1.0, %v1061_v4  ;;  %v1072_v13 = vor.u32 1.1754944e-38, %v1071_v23  ;;  %v1024_v4 = vand.u32 2147483647, %v1011_v49  ;;  %vm1052_vm6 = vmor %vm1050_vm5, %vm1051_vm4 }
 0x43a   :  { %v1019_v16 = vadd.f32 %v3304_v19, %v1018_v1  ;;  %v1047_v56 = vsub.f32 1.0, %v1046_v53  ;;  %v1027_v14 = vor.u32 1.1754944e-38, %v1026_v6  ;;  %v6869_v53 = vld [vmem:[#allocation11_spill] sm:$0xff]  ;;  %v6871_v6 = vld [vmem:[#allocation37_spill] sm:$0xff] }
 0x43b   :  { %v1034_v24 = vadd.f32 %v3306_v15, %v1033_v8  ;;  %v1063_v5 = vmul.f32 %v3308_v29, %v1062_v12  ;;  %vm1025_vm3 = vcmp.eq.f32.partialorder %v1024_v4, 8.507059e+37  ;;  %v6873_v4 = vld [vmem:[#allocation12_spill] sm:$0xff] }
 0x43c   :  { %v1023_v57 = vsel %vm1022_vm1, %v3304_v19, %v1019_v16  ;;  %v1048_v61 = vmul.f32 %v3310_v26, %v1047_v56  ;;  %v1056_v16 = vand.u32 2147483648, %v4918_v0  ;;  %v1054_v19 = vand.u32 2147483647, %v4918_v0  ;;  %v6861_v56 = vld [vmem:[#allocation29_spill] sm:$0xff]  ;;  %v6862_v0 = vld [vmem:[#allocation51_spill] sm:$0xff] }
 0x43d   :  { %v1064_v30 = vadd.f32 %v3308_v29, %v1063_v5  ;;  %v1038_v8 = vsel %vm4923_vm12, %v3306_v15, %v1034_v24  ;;  %v1028_v9 = vsel %vm1025_vm3, %v1027_v14, %v1023_v57  ;;  %v6865_v24 = vld [vmem:[#allocation40_spill] sm:$0xff] }
 0x43e   :  { %v1043_v5 = vsel %vm1040_vm2, %v1042_v39, %v1038_v8  ;;  %v1049_v15 = vadd.f32 %v3310_v26, %v1048_v61  ;;  %vm1055_vm7 = vcmp.eq.f32.partialorder %v1054_v19, 8.507059e+37  ;;  %v6874_v8 = vld [vmem:[#allocation41_spill] sm:$0xff]  ;;  %v6876_v39 = vld [vmem:[#allocation14_spill] sm:$0xff] }
 0x43f   :  { %v1068_v12 = vsel %vm1067_vm15, %v3308_v29, %v1064_v30  ;;  %v1077_v49 = vmul.f32 %v1043_v5, %v4724_v18  ;;  %v6863_v29 = vld [vmem:[#allocation67_spill] sm:$0xff]  ;;  %v6870_v30 = vld [vmem:[#allocation44_spill] sm:$0xff]  ;;  %v6878_v5 = vld [vmem:[#allocation18_spill] sm:$0xff] }
 0x440   :  { %v1073_v1 = vsel %vm1070_vm0, %v1072_v13, %v1068_v12  ;;  %v1053_v14 = vsel %vm1052_vm6, %v3310_v26, %v1049_v15  ;;  %v6864_v26 = vld [vmem:[#allocation10_spill] sm:$0xff]  ;;  %v6872_v13 = vld [vmem:[#allocation55_spill] sm:$0xff]  ;;  %v6875_v12 = vld [vmem:[#allocation13_spill] sm:$0xff] }
 0x441   :  { %v1075_v3 = vmul.f32 2.0, %v1073_v1  ;;  %v6877_v1 = vld [vmem:[#allocation16_spill] sm:$0xff]  ;;  %v6881_v15 = vld [vmem:[#allocation19_spill] sm:$0xff] }
 0x443   :  { %v3139_v20 = vadd.f32 -1.0, %v1075_v3  ;;  %v1057_v3 = vor.u32 1.1754944e-38, %v1056_v16 }
 0x445   :  { %v1078_v23 = vmul.f32 %v3139_v20, %v1028_v9  ;;  %v1058_v57 = vsel %vm1055_vm7, %v1057_v3, %v1053_v14  ;;  %v6860_v9 = vld [vmem:[#allocation36_spill] sm:$0xff]  ;;  %v6879_v20 = vld [vmem:[#allocation21_spill] sm:$0xff] }
 0x446   :  { %v6882_v14 = vld [vmem:[#allocation52_spill] sm:$0xff] }
 0x447   :  { %v4930_v22 = vadd.f32 %v1078_v23, %v1077_v49  ;;  %v6880_v49 = vld [vmem:[#allocation24_spill] sm:$0xff] }
 0x449   :  { %3311 = vtanh.f32 %v4930_v22  ;;  %1104 = vmatmul.f32.vlgmr.msra.gmra.mxu3 %v4930_v22 }
 0x44a   :  { %1457 = vmatpush.msra.mxu3 %v4480_v34  ;;  %v6834_v34 = vld [vmem:[#allocation31_spill] sm:$0xff] }
 0x44c   :  { %1458 = vmatpush.msra.mxu3 %v4483_v42  ;;  %v6835_v42 = vld [vmem:[#allocation38_spill] sm:$0xff] }
 0x44e   :  { %1459 = vmatpush.msra.mxu3 %v4486_v60  ;;  %v6836_v60 = vld [vmem:[#allocation46_spill] sm:$0xff] }
 0x44f   :  { %v3312_v61 = vpop.eup %3311 }
 0x450   :  { %v1081_v18 = vmul.f32 %v3312_v61, %v1058_v57  ;;  %1460 = vmatpush.msra.mxu3 %v4489_v28  ;;  %v6837_v28 = vld [vmem:[#allocation17_spill] sm:$0xff] }
 0x451   :  { %v6883_v61 = vld [vmem:[#allocation53_spill] sm:$0xff] }
 0x452   :  { %1182 = vmatmul.f32.vlgmr.msrb.gmra.mxu0 %v1081_v18  ;;  %1202 = vmatmul.f32.vlgmr.msrb.gmra.mxu1 %v1081_v18 }
 0x453   :  { %1222 = vmatmul.f32.vlgmr.msrb.gmra.mxu2 %v1081_v18  ;;  %1242 = vmatmul.f32.vlgmr.msrb.gmra.mxu3 %v1081_v18 }
 0x454   :  { %1477 = vmatpush.msrb.mxu0 %v4492_v48  ;;  %1461 = vmatpush.msra.mxu3 %v4495_v41  ;;  %v6838_v48 = vld [vmem:[#allocation22_spill] sm:$0xff] }
 0x455   :  { %1590 = vmatpush.msrb.mxu1 %v4740_v31  ;;  %1668 = vmatpush.msrb.mxu2 %v4499_v52  ;;  %v6839_v41 = vld [vmem:[#allocation42_spill] sm:$0xff]  ;;  %v6840_v52 = vld [vmem:[#allocation35_spill] sm:$0xff] }
 0x456   :  { %1478 = vmatpush.msrb.mxu0 %v4502_v33  ;;  %1462 = vmatpush.msra.mxu3 %v4505_v62  ;;  %v6841_v33 = vld [vmem:[#allocation47_spill] sm:$0xff]  ;;  %v6842_v62 = vld [vmem:[#allocation20_spill] sm:$0xff] }
 0x457   :  { %1591 = vmatpush.msrb.mxu1 %v4749_v11  ;;  %1669 = vmatpush.msrb.mxu2 %v4509_v17  ;;  %v6843_v17 = vld [vmem:[#allocation62_spill] sm:$0xff] }
 0x458   :  { %1479 = vmatpush.msrb.mxu0 %v4512_v40  ;;  %1463 = vmatpush.msra.mxu3 %v4515_v55  ;;  %v6844_v40 = vld [vmem:[#allocation25_spill] sm:$0xff]  ;;  %v6845_v55 = vld [vmem:[#allocation39_spill] sm:$0xff] }
 0x459   :  { %1592 = vmatpush.msrb.mxu1 %v4758_v35  ;;  %1670 = vmatpush.msrb.mxu2 %v4519_v58  ;;  %v6846_v58 = vld [vmem:[#allocation48_spill] sm:$0xff] }
 0x45a   :  { %1480 = vmatpush.msrb.mxu0 %v4522_v25  ;;  %1464 = vmatpush.msra.mxu3 %v4525_v47  ;;  %v6847_v25 = vld [vmem:[#allocation63_spill] sm:$0xff] }
 0x45b   :  { %1593 = vmatpush.msrb.mxu1 %v4767_v50  ;;  %1671 = vmatpush.msrb.mxu2 %v4529_v37  ;;  %v6848_v47 = vld [vmem:[#allocation23_spill] sm:$0xff]  ;;  %v6849_v37 = vld [vmem:[#allocation28_spill] sm:$0xff] }
 0x45c   :  { %1481 = vmatpush.msrb.mxu0 %v4532_v21  ;;  %1465 = vmatpush.msra.mxu3 %v4535_v43  ;;  %v6850_v21 = vld [vmem:[#allocation43_spill] sm:$0xff]  ;;  %v6851_v43 = vld [vmem:[#allocation64_spill] sm:$0xff] }
 0x45d   :  { %1594 = vmatpush.msrb.mxu1 %v4776_v36  ;;  %1672 = vmatpush.msrb.mxu2 %v4539_v59  ;;  %v6852_v59 = vld [vmem:[#allocation49_spill] sm:$0xff] }
 0x45e   :  { %1482 = vmatpush.msrb.mxu0 %v4542_v32  ;;  %1466 = vmatpush.msra.mxu3 %v4545_v51  ;;  %v6853_v32 = vld [vmem:[#allocation8_spill] sm:$0xff] }
 0x45f   :  { %1595 = vmatpush.msrb.mxu1 %v4785_v54  ;;  %1673 = vmatpush.msrb.mxu2 %v4549_v45  ;;  %v6854_v51 = vld [vmem:[#allocation32_spill] sm:$0xff]  ;;  %v6855_v45 = vld [vmem:[#allocation65_spill] sm:$0xff] }
 0x460   :  { %1483 = vmatpush.msrb.mxu0 %v4552_v2  ;;  %1467 = vmatpush.msra.mxu3 %v4555_v63  ;;  %v6856_v2 = vld [vmem:[#allocation26_spill] sm:$0xff] }
 0x461   :  { %1596 = vmatpush.msrb.mxu1 %v4794_v44  ;;  %1674 = vmatpush.msrb.mxu2 %v4559_v7  ;;  %v6857_v63 = vld [vmem:[#allocation50_spill] sm:$0xff]  ;;  %v6858_v7 = vld [vmem:[#allocation9_spill] sm:$0xff] }
 0x462   :  { %1484 = vmatpush.msrb.mxu0 %v4562_v10  ;;  %1468 = vmatpush.msra.mxu3 %v6834_v34  ;;  %v6859_v10 = vld [vmem:[#allocation66_spill] sm:$0xff]  ;;  %v6885_v34 = vld [vmem:[#allocation56_spill] sm:$0xff] }
 0x463   :  { %1597 = vmatpush.msrb.mxu1 %v6835_v42  ;;  %1675 = vmatpush.msrb.mxu2 %v6836_v60 }
 0x464   :  { %1485 = vmatpush.msrb.mxu0 %v6837_v28  ;;  %1469 = vmatpush.msra.mxu3 %v6838_v48  ;;  %v6886_v28 = vld [vmem:[#allocation57_spill] sm:$0xff] }
 0x465   :  { %1598 = vmatpush.msrb.mxu1 %v6839_v41  ;;  %1676 = vmatpush.msrb.mxu2 %v6840_v52 }
 0x466   :  { %1486 = vmatpush.msrb.mxu0 %v6841_v33  ;;  %1470 = vmatpush.msra.mxu3 %v6842_v62  ;;  %v6887_v62 = vld [vmem:[#allocation58_spill] sm:$0xff] }
 0x467   :  { %1599 = vmatpush.msrb.mxu1 %v6843_v17  ;;  %1677 = vmatpush.msrb.mxu2 %v6844_v40 }
 0x468   :  { %1487 = vmatpush.msrb.mxu0 %v6845_v55  ;;  %1471 = vmatpush.msra.mxu3 %v6846_v58  ;;  %v6888_v55 = vld [vmem:[#allocation59_spill] sm:$0xff] }
 0x469   :  { %1600 = vmatpush.msrb.mxu1 %v6847_v25  ;;  %1678 = vmatpush.msrb.mxu2 %v6848_v47 }
 0x46a   :  { %1488 = vmatpush.msrb.mxu0 %v6849_v37  ;;  %1472 = vmatpush.msra.mxu3 %v6850_v21 }
 0x46b   :  { %1601 = vmatpush.msrb.mxu1 %v6851_v43  ;;  %1679 = vmatpush.msrb.mxu2 %v6854_v51 }
 0x46c   :  { %1688 = vmatpush.msrb.mxu3 %v6852_v59  ;;  %1489 = vmatpush.msrb.mxu0 %v6853_v32  ;;  %v6889_v32 = vld [vmem:[#allocation60_spill] sm:$0xff] }
 0x46d   :  { %1602 = vmatpush.msrb.mxu1 %v6855_v45  ;;  %1680 = vmatpush.msrb.mxu2 %v6858_v7 }
 0x46e   :  { %1689 = vmatpush.msrb.mxu3 %v6856_v2  ;;  %1490 = vmatpush.msrb.mxu0 %v6857_v63  ;;  %v6890_v2 = vld [vmem:[#allocation61_spill] sm:$0xff] }
 0x46f   :  { %1603 = vmatpush.msrb.mxu1 %v6859_v10  ;;  %1681 = vmatpush.msrb.mxu2 %v6862_v0 }
 0x470   :  { %1690 = vmatpush.msrb.mxu3 %v6860_v9  ;;  %1491 = vmatpush.msrb.mxu0 %v6861_v56 }
 0x471   :  { %1604 = vmatpush.msrb.mxu1 %v6863_v29  ;;  %1682 = vmatpush.msrb.mxu2 %v6866_v46 }
 0x472   :  { %1691 = vmatpush.msrb.mxu3 %v6864_v26  ;;  %1492 = vmatpush.msrb.mxu0 %v6865_v24 }
 0x473   :  { %1605 = vmatpush.msrb.mxu1 %v6867_v27  ;;  %1683 = vmatpush.msrb.mxu2 %v6869_v53 }
 0x474   :  { %1692 = vmatpush.msrb.mxu3 %v6868_v38 }
 0x476   :  { %1693 = vmatpush.msrb.mxu3 %v6870_v30 }
 0x478   :  { %1694 = vmatpush.msrb.mxu3 %v6871_v6 }
 0x47a   :  { %1695 = vmatpush.msrb.mxu3 %v6872_v13 }
 0x47c   :  { %1696 = vmatpush.msrb.mxu3 %v6873_v4 }
 0x47e   :  { %1697 = vmatpush.msrb.mxu3 %v6874_v8 }
 0x480   :  { %1698 = vmatpush.msrb.mxu3 %v6875_v12 }
 0x482   :  { %1699 = vmatpush.msrb.mxu3 %v6876_v39 }
 0x484   :  { %1700 = vmatpush.msrb.mxu3 %v6877_v1 }
 0x486   :  { %1701 = vmatpush.msrb.mxu3 %v6878_v5 }
 0x488   :  { %1702 = vmatpush.msrb.mxu3 %v6879_v20 }
 0x48a   :  { %1703 = vmatpush.msrb.mxu3 %v6880_v49 }
 0x48f   :  { %v642_v23 = vpop.permute.xlu1 %641 }
 0x490   :  { %v644_v16 = vmul.f32 %v642_v23, %v6881_v15  ;;  %v3836_v23 = vmov 5  }
 0x491   :  { %3218 = vset.pattern.permute.xlu0 %v3836_v23 }
 0x492   :  { %833 = vperm.xlu2 %3214, %v644_v16   ;;  %v6891_v16 = vld [vmem:[#allocation27_spill] sm:$0xff] }
 0x493   :  { %1406 = vperm.xlu0 %3218, %v6891_v16  }
 0x495   :  { %v1156_v19 = vpop.permute.xlu0 %1155 }
 0x496   :  { %v1158_v3 = vmul.f32 %v1156_v19, %v6882_v14  ;;  %v1159_v57 = vmul.f32 %v1156_v19, %v6883_v61  ;;  %v1160_v40 = vmul.f32 %v1156_v19, %v6887_v62  ;;  %v1161_v58 = vmul.f32 %v1156_v19, %v6888_v55 }
 0x498   :  { %v1162_v60 = vadd.f32 %v1158_v3, %v6885_v34  ;;  %v1163_v48 = vadd.f32 %v1159_v57, %v6886_v28  ;;  %v1164_v51 = vadd.f32 %v1160_v40, %v6889_v32  ;;  %v1165_v63 = vadd.f32 %v1161_v58, %v6890_v2 }
 0x4cc   :  { %v5020_v18 = vpop.f32.mrf.mxu3 }
 0x4cd   :  { %6884 = vst [vmem:[#allocation15_spill] sm:$0xff] %v5020_v18  ;;  %v5252_v18 = vld [vmem:[#allocation2 + $0x148] sm:$0xff] }
 0x4ce   :  { %6920 = vst [vmem:[#allocation66_spill] sm:$0xff] %v5252_v18 }
 0x4cf   :  { %v1183_v52 = vpop.f32.mrf.mxu0  ;;  %v1203_v33 = vpop.f32.mrf.mxu1 }
 0x4d0   :  { %v1246_v47 = vadd.f32 %v1183_v52, %v1162_v60  ;;  %v1247_v37 = vadd.f32 %v1203_v33, %v1163_v48  ;;  %v3590_v60 = vld [vmem:[%s6281_s5] ss:$0 sm:$0xff] }
 0x4d2   :  { %v3142_v21 = vmul.f32 -1.442695, %v1246_v47  ;;  %v3143_v59 = vmul.f32 -1.442695, %v1247_v37  ;;  %v6892_v47 = vld [vmem:[#allocation30_spill] sm:$0xff] }
 0x4d4   :  { %3313 = vpow2.f32 %v3142_v21 }
 0x4d5   :  { %3315 = vpow2.f32 %v3143_v59 }
 0x4d6   :  { %v1223_v7 = vpop.f32.mrf.mxu2  ;;  %v1243_v9 = vpop.f32.mrf.mxu3 }
 0x4d7   :  { %v1248_v56 = vadd.f32 %v1223_v7, %v1164_v51  ;;  %v1249_v0 = vadd.f32 %v1243_v9, %v1165_v63  ;;  %v3591_v63 = vld [vmem:[%s6282_s6] ss:$0 sm:$0xff] }
 0x4d9   :  { %v3144_v26 = vmul.f32 -1.442695, %v1248_v56  ;;  %v3145_v24 = vmul.f32 -1.442695, %v1249_v0 }
 0x4da   :  { %v3314_v46 = vpop.eup %3313 }
 0x4db   :  { %v3316_v38 = vpop.eup %3315  ;;  %v5028_v53 = vadd.f32 1.0, %v3314_v46  ;;  %3317 = vpow2.f32 %v3144_v26 }
 0x4dc   :  { %v1263_v30 = vadd.f32 1.0, %v3316_v38  ;;  %3319 = vpow2.f32 %v3145_v24  ;;  %v5091_v24 = vld [vmem:[#allocation2 + $0x170] sm:$0xff] }
 0x4dd   :  { %3321 = vrcp.f32 %v5028_v53  ;;  %vm1271_vm14 = vweird.f32 %v5028_v53 }
 0x4de   :  { %3323 = vrcp.f32 %v1263_v30  ;;  %vm1286_vm8 = vweird.f32 %v1263_v30  ;;  %v1290_v9 = vand.u32 2147483647, %v1263_v30  ;;  %v1292_v56 = vand.u32 2147483648, %v1263_v30 }
 0x4e0   :  { %vm1291_vm2 = vcmp.eq.f32.partialorder %v1290_v9, 8.507059e+37 }
 0x4e1   :  { %v3318_v6 = vpop.eup %3317 }
 0x4e2   :  { %v3320_v13 = vpop.eup %3319  ;;  %v5033_v1 = vadd.f32 1.0, %v3318_v6 }
 0x4e3   :  { %v5031_v4 = vpop.eup %3321  ;;  %v1265_v8 = vadd.f32 1.0, %v3320_v13  ;;  %v1277_v13 = vand.u32 2147483648, %v5028_v53 }
 0x4e4   :  { %v3324_v12 = vpop.eup %3323  ;;  %v1267_v5 = vmul.f32 %v5031_v4, %v5028_v53  ;;  %vm1272_vm11 = vweird.f32 %v5031_v4  ;;  %vm1301_vm5 = vweird.f32 %v5033_v1 }
 0x4e5   :  { %v1282_v39 = vmul.f32 %v3324_v12, %v1263_v30  ;;  %3325 = vrcp.f32 %v1265_v8  ;;  %v1322_v58 = vand.u32 2147483648, %v1265_v8  ;;  %vm1287_vm9 = vweird.f32 %v3324_v12  ;;  %vm1273_vm1 = vmor %vm1271_vm14, %vm1272_vm11 }
 0x4e6   :  { %3327 = vrcp.f32 %v5033_v1  ;;  %v1268_v49 = vsub.f32 1.0, %v1267_v5  ;;  %v1320_v51 = vand.u32 2147483647, %v1265_v8  ;;  %vm1316_vm12 = vweird.f32 %v1265_v8  ;;  %vm5054_vm13 = vmor %vm1286_vm8, %vm1287_vm9 }
 0x4e7   :  { %v1283_v20 = vsub.f32 1.0, %v1282_v39  ;;  %v1323_v38 = vor.u32 1.1754944e-38, %v1322_v58  ;;  %v1275_v39 = vand.u32 2147483647, %v5028_v53  ;;  %v1293_v30 = vor.u32 1.1754944e-38, %v1292_v56 }
 0x4e8   :  { %v1269_v52 = vmul.f32 %v5031_v4, %v1268_v49  ;;  %vm1321_vm0 = vcmp.eq.f32.partialorder %v1320_v51, 8.507059e+37  ;;  %v1307_v58 = vand.u32 2147483648, %v5033_v1  ;;  %v5085_v51 = vld [vmem:[#allocation2 + $0x1b0] sm:$0xff] }
 0x4e9   :  { %v1284_v19 = vmul.f32 %v3324_v12, %v1283_v20  ;;  %vm1276_vm3 = vcmp.eq.f32.partialorder %v1275_v39, 8.507059e+37 }
 0x4ea   :  { %v1270_v26 = vadd.f32 %v5031_v4, %v1269_v52 }
 0x4eb   :  { %v3326_v15 = vpop.eup %3325  ;;  %v1285_v59 = vadd.f32 %v3324_v12, %v1284_v19  ;;  %v1278_v19 = vor.u32 1.1754944e-38, %v1277_v13  ;;  %v5097_v13 = vld [vmem:[#allocation2 + $0x150] sm:$0xff] }
 0x4ec   :  { %v1312_v3 = vmul.f32 %v3326_v15, %v1265_v8  ;;  %v834_v57 = vpop.permute.xlu2 %833  ;;  %v5043_v40 = vpop.eup %3327  ;;  %vm1317_vm10 = vweird.f32 %v3326_v15  ;;  %v1274_v23 = vsel %vm1273_vm1, %v5031_v4, %v1270_v26 }
 0x4ed   :  { %v836_v48 = vmul.f32 %v3590_v60, %v834_v57  ;;  %v1297_v0 = vmul.f32 %v5043_v40, %v5033_v1  ;;  %vm1318_vm15 = vmor %vm1316_vm12, %vm1317_vm10  ;;  %v1289_v8 = vsel %vm5054_vm13, %v3324_v12, %v1285_v59  ;;  %v1279_v57 = vsel %vm1276_vm3, %v1278_v19, %v1274_v23  ;;  %v5111_v23 = vld [vmem:[#allocation2 + $0x1c0] sm:$0xff]  ;;  %v5119_v19 = vld [vmem:[#allocation2 + $0x110] sm:$0xff] }
 0x4ee   :  { %v1313_v33 = vsub.f32 1.0, %v1312_v3  ;;  %v1294_v3 = vsel %vm1291_vm2, %v1293_v30, %v1289_v8  ;;  %vm1302_vm4 = vweird.f32 %v5043_v40  ;;  %v1308_v59 = vor.u32 1.1754944e-38, %v1307_v58  ;;  %v5101_v8 = vld [vmem:[#allocation2 + $0x1e0] sm:$0xff]  ;;  %v5104_v30 = vld [vmem:[#allocation2 + $0x1d8] sm:$0xff]  ;;  %v5158_v58 = vld [vmem:[#allocation2 + $0x90] sm:$0xff] }
 0x4ef   :  { %v855_v37 = vadd.f32 %v6892_v47, %v836_v48  ;;  %v1298_v49 = vsub.f32 1.0, %v1297_v0  ;;  %v1328_v12 = vmul.f32 %v1294_v3, %v4930_v22  ;;  %v5076_v47 = vld [vmem:[#allocation2 + $0x1f0] sm:$0xff]  ;;  %v1305_v22 = vand.u32 2147483647, %v5033_v1  ;;  %vm1303_vm6 = vmor %vm1301_vm5, %vm1302_vm4 }
 0x4f0   :  { %v1314_v21 = vmul.f32 %v3326_v15, %v1313_v33  ;;  %v5088_v0 = vld [vmem:[#allocation2 + $0x190] sm:$0xff] }
 0x4f1   :  { %v857_v7 = vadd.f32 %v3591_v63, %v855_v37  ;;  %v1299_v60 = vmul.f32 %v5043_v40, %v1298_v49  ;;  %v5081_v37 = vld [vmem:[#allocation2 + $0x1d0] sm:$0xff]  ;;  %vm1306_vm7 = vcmp.eq.f32.partialorder %v1305_v22, 8.507059e+37  ;;  %v5165_v22 = vld [vmem:[#allocation2 + $0x118] sm:$0xff] }
 0x4f2   :  { %v1315_v46 = vadd.f32 %v3326_v15, %v1314_v21 }
 0x4f3   :  { %v3133_v6 = vmul.f32 -1.442695, %v857_v7  ;;  %v1300_v4 = vadd.f32 %v5043_v40, %v1299_v60  ;;  %v5140_v60 = vld [vmem:[#allocation2 + $0xd0] sm:$0xff] }
 0x4f4   :  { %v1319_v5 = vsel %vm1318_vm15, %v3326_v15, %v1315_v46 }
 0x4f5   :  { %3329 = vpow2.f32 %v3133_v6  ;;  %v1324_v20 = vsel %vm1321_vm0, %v1323_v38, %v1319_v5  ;;  %v1304_v21 = vsel %vm1303_vm6, %v5043_v40, %v1300_v4  ;;  %v5094_v6 = vld [vmem:[#allocation2 + $0x1f8] sm:$0xff] }
 0x4f6   :  { %v1326_v16 = vmul.f32 2.0, %v1324_v20  ;;  %v1309_v9 = vsel %vm1306_vm7, %v1308_v59, %v1304_v21  ;;  %v5107_v20 = vld [vmem:[#allocation2 + $0x130] sm:$0xff]  ;;  %v5155_v4 = vld [vmem:[#allocation2 + $0x138] sm:$0xff]  ;;  %v5172_v21 = vld [vmem:[#allocation2 + $0x120] sm:$0xff] }
 0x4f7   :  { %v5175_v59 = vld [vmem:[#allocation2 + $0xf8] sm:$0xff] }
 0x4f8   :  { %v3146_v53 = vadd.f32 -1.0, %v1326_v16  ;;  %v5116_v16 = vld [vmem:[#allocation2 + $0x1b8] sm:$0xff]  ;;  %6897 = vst [vmem:[#allocation46_spill] sm:$0xff] %v5175_v59 }
 0x4fa   :  { %v1329_v15 = vmul.f32 %v3146_v53, %v1279_v57  ;;  %v5124_v53 = vld [vmem:[#allocation2 + $0x1a0] sm:$0xff]  ;;  %v5130_v57 = vld [vmem:[#allocation2 + $0xf0] sm:$0xff] }
 0x4fb   :  { %v3330_v48 = vpop.eup %3329 }
 0x4fc   :  { %v861_v52 = vadd.f32 1.0, %v3330_v48  ;;  %v5069_v33 = vadd.f32 %v1329_v15, %v1328_v12  ;;  %v5134_v15 = vld [vmem:[#allocation2 + $0x180] sm:$0xff]  ;;  %v5145_v48 = vld [vmem:[#allocation2 + $0x158] sm:$0xff] }
 0x4fe   :  { %3331 = vrcp.f32 %v861_v52  ;;  %1355 = vmatmul.f32.vlgmr.msra.gmra.mxu0 %v5069_v33  ;;  %v873_v40 = vand.u32 2147483648, %v861_v52  ;;  %v871_v38 = vand.u32 2147483647, %v861_v52  ;;  %vm867_vm9 = vweird.f32 %v861_v52 }
 0x4ff   :  { %3333 = vtanh.f32 %v5069_v33  ;;  %1708 = vmatpush.msra.mxu0 %v5076_v47 }
 0x500   :  { %v874_v5 = vor.u32 1.1754944e-38, %v873_v40  ;;  %vm872_vm11 = vcmp.eq.f32.partialorder %v871_v38, 8.507059e+37  ;;  %v5212_v40 = vld [vmem:[#allocation2 + $0x1c8] sm:$0xff] }
 0x501   :  { %1709 = vmatpush.msra.mxu0 %v5081_v37  ;;  %6908 = vst [vmem:[#allocation63_spill] sm:$0xff] %v5212_v40  ;;  %v5222_v38 = vld [vmem:[#allocation2 + $0x1a8] sm:$0xff] }
 0x502   :  { %6911 = vst [vmem:[#allocation43_spill] sm:$0xff] %v5222_v38 }
 0x503   :  { %1710 = vmatpush.msra.mxu0 %v5085_v51 }
 0x504   :  { %v3332_v63 = vpop.eup %3331 }
 0x505   :  { %v3334_v7 = vpop.eup %3333  ;;  %v863_v56 = vmul.f32 %v3332_v63, %v861_v52  ;;  %1711 = vmatpush.msra.mxu0 %v5088_v0  ;;  %vm868_vm8 = vweird.f32 %v3332_v63  ;;  %v5152_v52 = vld [vmem:[#allocation2 + $0x160] sm:$0xff] }
 0x506   :  { %v1332_v1 = vmul.f32 %v3334_v7, %v1309_v9  ;;  %vm869_vm10 = vmor %vm867_vm9, %vm868_vm8  ;;  %v5185_v7 = vld [vmem:[#allocation2 + $0xd8] sm:$0xff]  ;;  %v5192_v9 = vld [vmem:[#allocation2 + $0xe0] sm:$0xff] }
 0x507   :  { %v864_v26 = vsub.f32 1.0, %v863_v56  ;;  %1712 = vmatpush.msra.mxu0 %v5091_v24  ;;  %6900 = vst [vmem:[#allocation42_spill] sm:$0xff] %v5185_v7  ;;  %v5195_v56 = vld [vmem:[#allocation2 + $0xb8] sm:$0xff] }
 0x508   :  { %1433 = vmatmul.f32.vlgmr.msra.gmra.mxu1 %v1332_v1  ;;  %1453 = vmatmul.f32.vlgmr.msra.gmra.mxu2 %v1332_v1  ;;  %6902 = vst [vmem:[#allocation47_spill] sm:$0xff] %v5192_v9 }
 0x509   :  { %1473 = vmatmul.f32.vlgmr.msra.gmra.mxu3 %v1332_v1  ;;  %1493 = vmatmul.f32.vlgmr.msrb.gmra.mxu0 %v1332_v1  ;;  %v865_v46 = vmul.f32 %v3332_v63, %v864_v26  ;;  %6903 = vst [vmem:[#allocation20_spill] sm:$0xff] %v5195_v56  ;;  %v5202_v1 = vld [vmem:[#allocation2 + $0x1e8] sm:$0xff]  ;;  %v5205_v26 = vld [vmem:[#allocation2 + $0x98] sm:$0xff] }
 0x50a   :  { %1728 = vmatpush.msra.mxu1 %v5094_v6  ;;  %1713 = vmatpush.msra.mxu0 %v5097_v13  ;;  %6905 = vst [vmem:[#allocation25_spill] sm:$0xff] %v5202_v1 }
 0x50b   :  { %v866_v39 = vadd.f32 %v3332_v63, %v865_v46  ;;  %1841 = vmatpush.msra.mxu2 %v4740_v31  ;;  %1919 = vmatpush.msra.mxu3 %v5101_v8  ;;  %6906 = vst [vmem:[#allocation39_spill] sm:$0xff] %v5205_v26  ;;  %v5215_v46 = vld [vmem:[#allocation2 + $0x78] sm:$0xff] }
 0x50c   :  { %1729 = vmatpush.msra.mxu1 %v5104_v30  ;;  %1714 = vmatpush.msra.mxu0 %v5107_v20  ;;  %6909 = vst [vmem:[#allocation23_spill] sm:$0xff] %v5215_v46 }
 0x50d   :  { %v870_v49 = vsel %vm869_vm10, %v3332_v63, %v866_v39  ;;  %1842 = vmatpush.msra.mxu2 %v4749_v11  ;;  %1920 = vmatpush.msra.mxu3 %v5111_v23  ;;  %v5127_v11 = vld [vmem:[#allocation2 + $0x198] sm:$0xff]  ;;  %v5182_v63 = vld [vmem:[#allocation2 + $0x100] sm:$0xff] }
 0x50e   :  { %v5114_v31 = vsel %vm872_vm11, %v874_v5, %v870_v49  ;;  %1730 = vmatpush.msra.mxu1 %v5116_v16  ;;  %1715 = vmatpush.msra.mxu0 %v5119_v19  ;;  %6899 = vst [vmem:[#allocation22_spill] sm:$0xff] %v5182_v63  ;;  %v5225_v39 = vld [vmem:[#allocation2 + $0x58] sm:$0xff]  ;;  %v5232_v5 = vld [vmem:[#allocation2 + $0x188] sm:$0xff] }
 0x50f   :  { %6895 = vst [vmem:[#allocation31_spill] sm:$0xff] %v5114_v31  ;;  %v877_v3 = vmul.f32 2.0, %v5114_v31  ;;  %1843 = vmatpush.msra.mxu2 %v4758_v35  ;;  %1921 = vmatpush.msra.mxu3 %v5124_v53  ;;  %v5137_v35 = vld [vmem:[#allocation2 + $0x178] sm:$0xff] }
 0x510   :  { %1731 = vmatpush.msra.mxu1 %v5127_v11  ;;  %1716 = vmatpush.msra.mxu0 %v5130_v57  ;;  %6912 = vst [vmem:[#allocation64_spill] sm:$0xff] %v5225_v39  ;;  %v5235_v49 = vld [vmem:[#allocation2 + $0x38] sm:$0xff] }
 0x511   :  { %v3134_v12 = vadd.f32 -1.0, %v877_v3  ;;  %1844 = vmatpush.msra.mxu2 %v4767_v50  ;;  %1922 = vmatpush.msra.mxu3 %v5134_v15  ;;  %v5148_v50 = vld [vmem:[#allocation2 + $0xb0] sm:$0xff]  ;;  %6914 = vst [vmem:[#allocation8_spill] sm:$0xff] %v5232_v5  ;;  %v5242_v3 = vld [vmem:[#allocation2 + $0x168] sm:$0xff] }
 0x512   :  { %1732 = vmatpush.msra.mxu1 %v5137_v35  ;;  %1717 = vmatpush.msra.mxu0 %v5140_v60  ;;  %6915 = vst [vmem:[#allocation32_spill] sm:$0xff] %v5235_v49 }
 0x513   :  { %881 = vrot.lane.b32.xlu1 %v3134_v12, %s3831_s23  ;;  %1845 = vmatpush.msra.mxu2 %v4776_v36  ;;  %v5162_v36 = vld [vmem:[#allocation2 + $0x140] sm:$0xff]  ;;  %6917 = vst [vmem:[#allocation26_spill] sm:$0xff] %v5242_v3  ;;  %v5245_v12 = vld [vmem:[#allocation2 + $0x18] sm:$0xff] }
 0x514   :  { %1733 = vmatpush.msra.mxu1 %v5145_v48  ;;  %1718 = vmatpush.msra.mxu0 %v5148_v50  ;;  %6918 = vst [vmem:[#allocation50_spill] sm:$0xff] %v5245_v12 }
 0x515   :  { %1846 = vmatpush.msra.mxu2 %v4785_v54  ;;  %1923 = vmatpush.msra.mxu3 %v5152_v52  ;;  %v5168_v54 = vld [vmem:[#allocation2 + $0x70] sm:$0xff] }
 0x516   :  { %1734 = vmatpush.msra.mxu1 %v5155_v4  ;;  %1719 = vmatpush.msra.mxu0 %v5158_v58  ;;  %6896 = vst [vmem:[#allocation38_spill] sm:$0xff] %v5168_v54 }
 0x517   :  { %1847 = vmatpush.msra.mxu2 %v4794_v44  ;;  %1924 = vmatpush.msra.mxu3 %v5162_v36  ;;  %v5178_v44 = vld [vmem:[#allocation2 + $0x50] sm:$0xff] }
 0x518   :  { %1735 = vmatpush.msra.mxu1 %v5165_v22  ;;  %1720 = vmatpush.msra.mxu0 %v5168_v54  ;;  %6898 = vst [vmem:[#allocation17_spill] sm:$0xff] %v5178_v44 }
 0x519   :  { %1848 = vmatpush.msra.mxu2 %v6835_v42  ;;  %1925 = vmatpush.msra.mxu3 %v5172_v21  ;;  %v5188_v42 = vld [vmem:[#allocation2 + $0x30] sm:$0xff] }
 0x51a   :  { %1736 = vmatpush.msra.mxu1 %v5175_v59  ;;  %1721 = vmatpush.msra.mxu0 %v5178_v44  ;;  %6901 = vst [vmem:[#allocation35_spill] sm:$0xff] %v5188_v42 }
 0x51b   :  { %1849 = vmatpush.msra.mxu2 %v6839_v41  ;;  %1926 = vmatpush.msra.mxu3 %v5182_v63  ;;  %v5198_v41 = vld [vmem:[#allocation2 + $0x10] sm:$0xff] }
 0x51c   :  { %1737 = vmatpush.msra.mxu1 %v5185_v7  ;;  %1722 = vmatpush.msra.mxu0 %v5188_v42  ;;  %6904 = vst [vmem:[#allocation62_spill] sm:$0xff] %v5198_v41 }
 0x51d   :  { %1850 = vmatpush.msra.mxu2 %v6843_v17  ;;  %1927 = vmatpush.msra.mxu3 %v5192_v9  ;;  %v5208_v17 = vld [vmem:[#allocation2 + $0xc0] sm:$0xff] }
 0x51e   :  { %1738 = vmatpush.msra.mxu1 %v5195_v56  ;;  %1723 = vmatpush.msra.mxu0 %v5198_v41  ;;  %6907 = vst [vmem:[#allocation48_spill] sm:$0xff] %v5208_v17 }
 0x51f   :  { %1851 = vmatpush.msra.mxu2 %v6847_v25  ;;  %1928 = vmatpush.msra.mxu3 %v5208_v17  ;;  %v5218_v25 = vld [vmem:[#allocation2 + $0xa0] sm:$0xff] }
 0x520   :  { %1939 = vmatpush.msrb.mxu0 %v5202_v1  ;;  %1739 = vmatpush.msra.mxu1 %v5205_v26  ;;  %6910 = vst [vmem:[#allocation28_spill] sm:$0xff] %v5218_v25 }
 0x521   :  { %1852 = vmatpush.msra.mxu2 %v6851_v43  ;;  %1929 = vmatpush.msra.mxu3 %v5218_v25  ;;  %v5228_v43 = vld [vmem:[#allocation2 + $0x80] sm:$0xff] }
 0x522   :  { %1940 = vmatpush.msrb.mxu0 %v5212_v40  ;;  %1740 = vmatpush.msra.mxu1 %v5215_v46  ;;  %6913 = vst [vmem:[#allocation49_spill] sm:$0xff] %v5228_v43 }
 0x523   :  { %1853 = vmatpush.msra.mxu2 %v6855_v45  ;;  %1930 = vmatpush.msra.mxu3 %v5228_v43  ;;  %v5238_v45 = vld [vmem:[#allocation2 + $0x60] sm:$0xff] }
 0x524   :  { %1941 = vmatpush.msrb.mxu0 %v5222_v38  ;;  %1741 = vmatpush.msra.mxu1 %v5225_v39  ;;  %6916 = vst [vmem:[#allocation65_spill] sm:$0xff] %v5238_v45 }
 0x525   :  { %1854 = vmatpush.msra.mxu2 %v6859_v10  ;;  %1931 = vmatpush.msra.mxu3 %v5238_v45  ;;  %v5248_v10 = vld [vmem:[#allocation2 + $0x40] sm:$0xff] }
 0x526   :  { %1942 = vmatpush.msrb.mxu0 %v5232_v5  ;;  %1742 = vmatpush.msra.mxu1 %v5235_v49  ;;  %6919 = vst [vmem:[#allocation9_spill] sm:$0xff] %v5248_v10  ;;  %v5255_v5 = vld [vmem:[#allocation2 + $0x20] sm:$0xff] }
 0x527   :  { %1855 = vmatpush.msra.mxu2 %v6863_v29  ;;  %1932 = vmatpush.msra.mxu3 %v5248_v10  ;;  %6921 = vst [vmem:[#allocation36_spill] sm:$0xff] %v5255_v5  ;;  %v5258_v29 = vld [vmem:[#allocation2 + $0x128] sm:$0xff] }
 0x528   :  { %1943 = vmatpush.msrb.mxu0 %v5242_v3  ;;  %1743 = vmatpush.msra.mxu1 %v5245_v12  ;;  %6922 = vst [vmem:[#allocation29_spill] sm:$0xff] %v5258_v29  ;;  %v5261_v3 = vld [vmem:[#allocation2] sm:$0xff]  ;;  %v5264_v12 = vld [vmem:[#allocation2 + $0x108] sm:$0xff] }
 0x529   :  { %1856 = vmatpush.msra.mxu2 %v6867_v27  ;;  %1933 = vmatpush.msra.mxu3 %v5255_v5  ;;  %6923 = vst [vmem:[#allocation51_spill] sm:$0xff] %v5261_v3  ;;  %v5267_v27 = vld [vmem:[#allocation2 + $0xe8] sm:$0xff] }
 0x52a   :  { %1944 = vmatpush.msrb.mxu0 %v5252_v18  ;;  %6924 = vst [vmem:[#allocation67_spill] sm:$0xff] %v5264_v12  ;;  %v5270_v18 = vld [vmem:[#allocation2 + $0xc8] sm:$0xff] }
 0x52b   :  { %1934 = vmatpush.msra.mxu3 %v5261_v3  ;;  %6925 = vst [vmem:[#allocation10_spill] sm:$0xff] %v5267_v27  ;;  %v5273_v5 = vld [vmem:[#allocation2 + $0xa8] sm:$0xff] }
 0x52c   :  { %1945 = vmatpush.msrb.mxu0 %v5258_v29  ;;  %6926 = vst [vmem:[#allocation40_spill] sm:$0xff] %v5270_v18  ;;  %v5276_v29 = vld [vmem:[#allocation2 + $0x88] sm:$0xff] }
 0x52d   :  { %6927 = vst [vmem:[#allocation33_spill] sm:$0xff] %v5273_v5  ;;  %v5279_v3 = vld [vmem:[#allocation2 + $0x68] sm:$0xff] }
 0x52e   :  { %1946 = vmatpush.msrb.mxu0 %v5264_v12  ;;  %6928 = vst [vmem:[#allocation68_spill] sm:$0xff] %v5276_v29  ;;  %v5282_v12 = vld [vmem:[#allocation2 + $0x48] sm:$0xff] }
 0x52f   :  { %6929 = vst [vmem:[#allocation54_spill] sm:$0xff] %v5279_v3 }
 0x530   :  { %1947 = vmatpush.msrb.mxu0 %v5267_v27  ;;  %6930 = vst [vmem:[#allocation11_spill] sm:$0xff] %v5282_v12  ;;  %v5285_v27 = vld [vmem:[#allocation2 + $0x28] sm:$0xff] }
 0x531   :  { %6931 = vst [vmem:[#allocation44_spill] sm:$0xff] %v5285_v27 }
 0x532   :  { %1948 = vmatpush.msrb.mxu0 %v5270_v18  ;;  %v5288_v18 = vld [vmem:[#allocation2 + $0x8] sm:$0xff] }
 0x533   :  { %6932 = vst [vmem:[#allocation37_spill] sm:$0xff] %v5288_v18 }
 0x534   :  { %1949 = vmatpush.msrb.mxu0 %v5273_v5  ;;  %v1407_v5 = vpop.permute.xlu0 %1406 }
 0x535   :  { %v1412_v49 = vmul.f32 %v1407_v5, %v6888_v55 }
 0x536   :  { %1950 = vmatpush.msrb.mxu0 %v5276_v29  ;;  %v1409_v29 = vmul.f32 %v1407_v5, %v6882_v14 }
 0x537   :  { %v1416_v38 = vadd.f32 %v1412_v49, %v6890_v2 }
 0x538   :  { %1951 = vmatpush.msrb.mxu0 %v5279_v3  ;;  %v1413_v3 = vadd.f32 %v1409_v29, %v6885_v34 }
 0x53a   :  { %1952 = vmatpush.msrb.mxu0 %v5282_v12  ;;  %v1410_v12 = vmul.f32 %v1407_v5, %v6883_v61 }
 0x53c   :  { %1953 = vmatpush.msrb.mxu0 %v5285_v27  ;;  %v1411_v27 = vmul.f32 %v1407_v5, %v6887_v62  ;;  %v1414_v14 = vadd.f32 %v1410_v12, %v6886_v28 }
 0x53e   :  { %1954 = vmatpush.msrb.mxu0 %v5288_v18  ;;  %v1415_v29 = vadd.f32 %v1411_v27, %v6889_v32 }
 0x57b   :  { %v5291_v10 = vpop.f32.mrf.mxu0 }
 0x57c   :  { %6933 = vst [vmem:[#allocation55_spill] sm:$0xff] %v5291_v10 }
 0x585   :  { %v1434_v45 = vpop.f32.mrf.mxu1  ;;  %v882_v39 = vpop.permute.xlu1 %881 }
 0x586   :  { %v1497_v40 = vadd.f32 %v1434_v45, %v1413_v3  ;;  %v1494_v43 = vpop.f32.mrf.mxu0  ;;  %v884_v18 = vmul.f32 %v882_v39, %v5114_v31 }
 0x587   :  { %v1500_v46 = vadd.f32 %v1494_v43, %v1416_v38 }
 0x588   :  { %v3149_v10 = vmul.f32 -1.442695, %v1497_v40  ;;  %886 = vrot.lane.b32.xlu2 %v884_v18, %s3833_s24 }
 0x589   :  { %v3152_v55 = vmul.f32 -1.442695, %v1500_v46 }
 0x58a   :  { %3335 = vpow2.f32 %v3149_v10 }
 0x58b   :  { %3337 = vpow2.f32 %v3152_v55  ;;  %v1454_v49 = vpop.f32.mrf.mxu2 }
 0x58c   :  { %v1498_v34 = vadd.f32 %v1454_v49, %v1414_v14  ;;  %v1474_v61 = vpop.f32.mrf.mxu3  ;;  %v3837_v14 = vmov 6  }
 0x58d   :  { %v1499_v2 = vadd.f32 %v1474_v61, %v1415_v29  ;;  %3219 = vset.pattern.permute.xlu0 %v3837_v14 }
 0x58e   :  { %v3150_v5 = vmul.f32 -1.442695, %v1498_v34 }
 0x58f   :  { %v3151_v45 = vmul.f32 -1.442695, %v1499_v2  ;;  %v5309_v2 = vld [vmem:[%s6276_s0] sm:$0xff] }
 0x590   :  { %v3336_v3 = vpop.eup %3335  ;;  %3339 = vpow2.f32 %v3150_v5  ;;  %6934 = vst [vmem:[#allocation12_spill] sm:$0xff] %v5309_v2  ;;  %1657 = vperm.xlu0 %3219, %v5309_v2  }
 0x591   :  { %v3338_v39 = vpop.eup %3337  ;;  %v1513_v38 = vadd.f32 1.0, %v3336_v3  ;;  %3341 = vpow2.f32 %v3151_v45 }
 0x592   :  { %v1516_v40 = vadd.f32 1.0, %v3338_v39 }
 0x593   :  { %3343 = vrcp.f32 %v1513_v38  ;;  %vm1522_vm13 = vweird.f32 %v1513_v38  ;;  %v1526_v28 = vand.u32 2147483647, %v1513_v38 }
 0x594   :  { %3345 = vrcp.f32 %v1516_v40  ;;  %v1573_v5 = vand.u32 2147483648, %v1516_v40  ;;  %v1571_v39 = vand.u32 2147483647, %v1516_v40  ;;  %vm1567_vm14 = vweird.f32 %v1516_v40 }
 0x595   :  { %vm1527_vm6 = vcmp.eq.f32.partialorder %v1526_v28, 8.507059e+37 }
 0x596   :  { %v3340_v18 = vpop.eup %3339  ;;  %v1574_v62 = vor.u32 1.1754944e-38, %v1573_v5  ;;  %vm1572_vm1 = vcmp.eq.f32.partialorder %v1571_v39, 8.507059e+37 }
 0x597   :  { %v3342_v46 = vpop.eup %3341  ;;  %v1514_v43 = vadd.f32 1.0, %v3340_v18 }
 0x598   :  { %v5303_v12 = vadd.f32 1.0, %v3342_v46 }
 0x599   :  { %v3344_v55 = vpop.eup %3343  ;;  %3347 = vrcp.f32 %v1514_v43  ;;  %v1541_v1 = vand.u32 2147483647, %v1514_v43  ;;  %vm1537_vm4 = vweird.f32 %v1514_v43 }
 0x59a   :  { %v3346_v61 = vpop.eup %3345  ;;  %v1518_v34 = vmul.f32 %v3344_v55, %v1513_v38  ;;  %3349 = vrcp.f32 %v5303_v12  ;;  %vm1523_vm15 = vweird.f32 %v3344_v55  ;;  %vm1552_vm9 = vweird.f32 %v5303_v12 }
 0x59b   :  { %v1563_v10 = vmul.f32 %v3346_v61, %v1516_v40  ;;  %vm1568_vm12 = vweird.f32 %v3346_v61  ;;  %vm1524_vm3 = vmor %vm1522_vm13, %vm1523_vm15  ;;  %vm1542_vm7 = vcmp.eq.f32.partialorder %v1541_v1, 8.507059e+37  ;;  %v1556_v28 = vand.u32 2147483647, %v5303_v12 }
 0x59c   :  { %v1519_v27 = vsub.f32 1.0, %v1518_v34  ;;  %vm1569_vm0 = vmor %vm1567_vm14, %vm1568_vm12  ;;  %v1528_v34 = vand.u32 2147483648, %v1513_v38 }
 0x59d   :  { %v1564_v29 = vsub.f32 1.0, %v1563_v10  ;;  %v1543_v10 = vand.u32 2147483648, %v1514_v43  ;;  %vm1557_vm11 = vcmp.eq.f32.partialorder %v1556_v28, 8.507059e+37  ;;  %v6950_v28 = vld [vmem:[#allocation65_spill] sm:$0xff] }
 0x59e   :  { %v1520_v49 = vmul.f32 %v3344_v55, %v1519_v27  ;;  %v1529_v5 = vor.u32 1.1754944e-38, %v1528_v34  ;;  %v5385_v34 = vld [vmem:[%s6280_s4 + $0x48] sm:$0xff] }
 0x59f   :  { %v3348_v45 = vpop.eup %3347  ;;  %v1565_v3 = vmul.f32 %v3346_v61, %v1564_v29 }
 0x5a0   :  { %v3350_v18 = vpop.eup %3349  ;;  %v1533_v46 = vmul.f32 %v3348_v45, %v1514_v43  ;;  %v1521_v2 = vadd.f32 %v3344_v55, %v1520_v49  ;;  %vm1538_vm2 = vweird.f32 %v3348_v45  ;;  %v1544_v49 = vor.u32 1.1754944e-38, %v1543_v10  ;;  %v5331_v43 = vld [vmem:[%s6280_s4 + $0x78] sm:$0xff]  ;;  %v5394_v10 = vld [vmem:[%s6280_s4 + $0x40] sm:$0xff] }
 0x5a1   :  { %v1548_v14 = vmul.f32 %v3350_v18, %v5303_v12  ;;  %v1566_v32 = vadd.f32 %v3346_v61, %v1565_v3  ;;  %vm1539_vm5 = vmor %vm1537_vm4, %vm1538_vm2  ;;  %vm1553_vm8 = vweird.f32 %v3350_v18  ;;  %6935 = vst [vmem:[#allocation41_spill] sm:$0xff] %v5394_v10 }
 0x5a2   :  { %v1534_v31 = vsub.f32 1.0, %v1533_v46  ;;  %v1525_v25 = vsel %vm1524_vm3, %v3344_v55, %v1521_v2  ;;  %vm1554_vm10 = vmor %vm1552_vm9, %vm1553_vm8  ;;  %v5349_v55 = vld [vmem:[%s6280_s4 + $0x68] sm:$0xff]  ;;  %v5358_v2 = vld [vmem:[%s6280_s4 + $0x60] sm:$0xff] }
 0x5a3   :  { %v1570_v27 = vsel %vm1569_vm0, %v3346_v61, %v1566_v32  ;;  %v1549_v26 = vsub.f32 1.0, %v1548_v14  ;;  %v1530_v32 = vsel %vm1527_vm6, %v1529_v5, %v1525_v25  ;;  %v6940_v5 = vld [vmem:[#allocation28_spill] sm:$0xff] }
 0x5a4   :  { %v1535_v29 = vmul.f32 %v3348_v45, %v1534_v31  ;;  %v1575_v41 = vsel %vm1572_vm1, %v1574_v62, %v1570_v27  ;;  %v5403_v27 = vld [vmem:[%s6280_s4 + $0x38] sm:$0xff] }
 0x5a5   :  { %v1577_v40 = vmul.f32 2.0, %v1575_v41  ;;  %v1550_v31 = vmul.f32 %v3350_v18, %v1549_v26  ;;  %v1558_v41 = vand.u32 2147483648, %v5303_v12  ;;  %v5340_v12 = vld [vmem:[%s6280_s4 + $0x70] sm:$0xff]  ;;  %6936 = vst [vmem:[#allocation13_spill] sm:$0xff] %v5403_v27 }
 0x5a6   :  { %v1536_v3 = vadd.f32 %v3348_v45, %v1535_v29  ;;  %v5412_v29 = vld [vmem:[%s6280_s4 + $0x30] sm:$0xff] }
 0x5a7   :  { %v3153_v46 = vadd.f32 -1.0, %v1577_v40  ;;  %v1551_v38 = vadd.f32 %v3350_v18, %v1550_v31  ;;  %6937 = vst [vmem:[#allocation14_spill] sm:$0xff] %v5412_v29  ;;  %v6938_v40 = vld [vmem:[#allocation35_spill] sm:$0xff] }
 0x5a8   :  { %v1540_v42 = vsel %vm1539_vm5, %v3348_v45, %v1536_v3  ;;  %v5367_v45 = vld [vmem:[%s6280_s4 + $0x58] sm:$0xff]  ;;  %v5421_v3 = vld [vmem:[%s6280_s4 + $0x28] sm:$0xff]  ;;  %v6945_v31 = vld [vmem:[#allocation23_spill] sm:$0xff] }
 0x5a9   :  { %v1545_v61 = vsel %vm1542_vm7, %v1544_v49, %v1540_v42  ;;  %v1580_v62 = vmul.f32 %v3153_v46, %v1530_v32  ;;  %v1555_v42 = vsel %vm1554_vm10, %v3350_v18, %v1551_v38  ;;  %v5376_v18 = vld [vmem:[%s6280_s4 + $0x50] sm:$0xff]  ;;  %6939 = vst [vmem:[#allocation16_spill] sm:$0xff] %v5421_v3  ;;  %v6941_v49 = vld [vmem:[#allocation39_spill] sm:$0xff]  ;;  %v6942_v46 = vld [vmem:[#allocation62_spill] sm:$0xff] }
 0x5aa   :  { %v1579_v39 = vmul.f32 %v1545_v61, %v5069_v33  ;;  %v1559_v33 = vor.u32 1.1754944e-38, %v1558_v41  ;;  %v5430_v32 = vld [vmem:[%s6280_s4 + $0x20] sm:$0xff]  ;;  %v6944_v61 = vld [vmem:[#allocation25_spill] sm:$0xff]  ;;  %v6949_v41 = vld [vmem:[#allocation64_spill] sm:$0xff] }
 0x5ab   :  { %6943 = vst [vmem:[#allocation18_spill] sm:$0xff] %v5430_v32  ;;  %v6948_v38 = vld [vmem:[#allocation63_spill] sm:$0xff] }
 0x5ac   :  { %v5315_v14 = vadd.f32 %v1580_v62, %v1579_v39  ;;  %v1560_v26 = vsel %vm1557_vm11, %v1559_v33, %v1555_v42  ;;  %v6946_v39 = vld [vmem:[#allocation49_spill] sm:$0xff]  ;;  %v5439_v62 = vld [vmem:[%s6280_s4 + $0x18] sm:$0xff]  ;;  %v6952_v33 = vld [vmem:[#allocation43_spill] sm:$0xff] }
 0x5ad   :  { %6947 = vst [vmem:[#allocation21_spill] sm:$0xff] %v5439_v62  ;;  %v5448_v42 = vld [vmem:[%s6280_s4 + $0x10] sm:$0xff] }
 0x5ae   :  { %3351 = vtanh.f32 %v5315_v14  ;;  %1606 = vmatmul.f32.vlgmr.msrb.gmra.mxu1 %v5315_v14  ;;  %6951 = vst [vmem:[#allocation24_spill] sm:$0xff] %v5448_v42 }
 0x5af   :  { %1959 = vmatpush.msrb.mxu1 %v5076_v47 }
 0x5b1   :  { %1960 = vmatpush.msrb.mxu1 %v5081_v37 }
 0x5b3   :  { %1961 = vmatpush.msrb.mxu1 %v5085_v51 }
 0x5b4   :  { %v3352_v1 = vpop.eup %3351 }
 0x5b5   :  { %v1583_v25 = vmul.f32 %v3352_v1, %v1560_v26  ;;  %1962 = vmatpush.msrb.mxu1 %v5088_v0  ;;  %v6953_v1 = vld [vmem:[#allocation32_spill] sm:$0xff]  ;;  %v6954_v26 = vld [vmem:[#allocation9_spill] sm:$0xff] }
 0x5b7   :  { %1684 = vmatmul.f32.vlgmr.msrb.gmra.mxu2 %v1583_v25  ;;  %1704 = vmatmul.f32.vlgmr.msrb.gmra.mxu3 %v1583_v25 }
 0x5b8   :  { %1724 = vmatmul.f32.vlgmr.msra.gmra.mxu0 %v1583_v25  ;;  %1744 = vmatmul.f32.vlgmr.msra.gmra.mxu1 %v1583_v25  ;;  %v5457_v25 = vld [vmem:[%s6280_s4 + $0x8] sm:$0xff] }
 0x5b9   :  { %1979 = vmatpush.msrb.mxu2 %v5094_v6  ;;  %1963 = vmatpush.msrb.mxu1 %v5091_v24  ;;  %6955 = vst [vmem:[#allocation19_spill] sm:$0xff] %v5457_v25 }
 0x5ba   :  { %2092 = vmatpush.msrb.mxu3 %v5331_v43  ;;  %2166 = vmatpush.msra.mxu0 %v5101_v8 }
 0x5bb   :  { %1980 = vmatpush.msrb.mxu2 %v5104_v30  ;;  %1964 = vmatpush.msrb.mxu1 %v5097_v13 }
 0x5bc   :  { %2093 = vmatpush.msrb.mxu3 %v5340_v12  ;;  %2167 = vmatpush.msra.mxu0 %v5111_v23 }
 0x5bd   :  { %1981 = vmatpush.msrb.mxu2 %v5116_v16  ;;  %1965 = vmatpush.msrb.mxu1 %v5107_v20 }
 0x5be   :  { %2094 = vmatpush.msrb.mxu3 %v5349_v55  ;;  %2168 = vmatpush.msra.mxu0 %v5124_v53 }
 0x5bf   :  { %1982 = vmatpush.msrb.mxu2 %v5127_v11  ;;  %1966 = vmatpush.msrb.mxu1 %v5119_v19 }
 0x5c0   :  { %2095 = vmatpush.msrb.mxu3 %v5358_v2  ;;  %2169 = vmatpush.msra.mxu0 %v5134_v15 }
 0x5c1   :  { %1983 = vmatpush.msrb.mxu2 %v5137_v35  ;;  %1967 = vmatpush.msrb.mxu1 %v5130_v57 }
 0x5c2   :  { %2096 = vmatpush.msrb.mxu3 %v5367_v45  ;;  %2170 = vmatpush.msra.mxu0 %v5152_v52 }
 0x5c3   :  { %1984 = vmatpush.msrb.mxu2 %v5145_v48  ;;  %1968 = vmatpush.msrb.mxu1 %v5140_v60 }
 0x5c4   :  { %2097 = vmatpush.msrb.mxu3 %v5376_v18  ;;  %2171 = vmatpush.msra.mxu0 %v5162_v36 }
 0x5c5   :  { %1985 = vmatpush.msrb.mxu2 %v5155_v4  ;;  %1969 = vmatpush.msrb.mxu1 %v5148_v50 }
 0x5c6   :  { %2098 = vmatpush.msrb.mxu3 %v5385_v34  ;;  %2172 = vmatpush.msra.mxu0 %v5172_v21 }
 0x5c7   :  { %1986 = vmatpush.msrb.mxu2 %v5165_v22  ;;  %1970 = vmatpush.msrb.mxu1 %v5158_v58 }
 0x5c8   :  { %2099 = vmatpush.msrb.mxu3 %v5394_v10  ;;  %2173 = vmatpush.msra.mxu0 %v5182_v63 }
 0x5c9   :  { %1987 = vmatpush.msrb.mxu2 %v5175_v59  ;;  %1971 = vmatpush.msrb.mxu1 %v5168_v54 }
 0x5ca   :  { %2100 = vmatpush.msrb.mxu3 %v5403_v27  ;;  %2174 = vmatpush.msra.mxu0 %v5192_v9 }
 0x5cb   :  { %1988 = vmatpush.msrb.mxu2 %v5185_v7  ;;  %1972 = vmatpush.msrb.mxu1 %v5178_v44 }
 0x5cc   :  { %2101 = vmatpush.msrb.mxu3 %v5412_v29  ;;  %2175 = vmatpush.msra.mxu0 %v5208_v17 }
 0x5cd   :  { %1989 = vmatpush.msrb.mxu2 %v5195_v56  ;;  %1973 = vmatpush.msrb.mxu1 %v6938_v40 }
 0x5ce   :  { %2102 = vmatpush.msrb.mxu3 %v5421_v3  ;;  %2176 = vmatpush.msra.mxu0 %v6940_v5  ;;  %v6981_v5 = vld [vmem:[#allocation52_spill] sm:$0xff]  ;;  %v6982_v3 = vld [vmem:[#allocation53_spill] sm:$0xff] }
 0x5cf   :  { %1990 = vmatpush.msrb.mxu2 %v6941_v49  ;;  %1974 = vmatpush.msrb.mxu1 %v6942_v46  ;;  %v6979_v46 = vld [vmem:[#allocation60_spill] sm:$0xff]  ;;  %v6980_v49 = vld [vmem:[#allocation61_spill] sm:$0xff] }
 0x5d0   :  { %2103 = vmatpush.msrb.mxu3 %v5430_v32  ;;  %2177 = vmatpush.msra.mxu0 %v6946_v39 }
 0x5d1   :  { %2186 = vmatpush.msra.mxu1 %v6944_v61  ;;  %1991 = vmatpush.msrb.mxu2 %v6945_v31  ;;  %v6968_v61 = vld [vmem:[#allocation40_spill] sm:$0xff] }
 0x5d2   :  { %2104 = vmatpush.msrb.mxu3 %v5439_v62  ;;  %2178 = vmatpush.msra.mxu0 %v6950_v28  ;;  %v6956_v28 = vld [vmem:[#allocation8_spill] sm:$0xff]  ;;  %v6967_v62 = vld [vmem:[#allocation31_spill] sm:$0xff] }
 0x5d3   :  { %2187 = vmatpush.msra.mxu1 %v6948_v38  ;;  %1992 = vmatpush.msrb.mxu2 %v6949_v41  ;;  %v6957_v41 = vld [vmem:[#allocation50_spill] sm:$0xff]  ;;  %v6958_v38 = vld [vmem:[#allocation36_spill] sm:$0xff] }
 0x5d4   :  { %2105 = vmatpush.msrb.mxu3 %v5448_v42  ;;  %2179 = vmatpush.msra.mxu0 %v6954_v26  ;;  %v6960_v26 = vld [vmem:[#allocation26_spill] sm:$0xff] }
 0x5d5   :  { %2188 = vmatpush.msra.mxu1 %v6952_v33  ;;  %1993 = vmatpush.msrb.mxu2 %v6953_v1  ;;  %v5466_v33 = vld [vmem:[%s6280_s4] sm:$0xff]  ;;  %v6962_v42 = vld [vmem:[#allocation66_spill] sm:$0xff] }
 0x5d6   :  { %2106 = vmatpush.msrb.mxu3 %v5457_v25  ;;  %2180 = vmatpush.msra.mxu0 %v6958_v38  ;;  %6959 = vst [vmem:[#allocation27_spill] sm:$0xff] %v5466_v33  ;;  %v6961_v1 = vld [vmem:[#allocation51_spill] sm:$0xff]  ;;  %v6963_v25 = vld [vmem:[#allocation29_spill] sm:$0xff] }
 0x5d7   :  { %2189 = vmatpush.msra.mxu1 %v6956_v28  ;;  %1994 = vmatpush.msrb.mxu2 %v6957_v41  ;;  %v6964_v28 = vld [vmem:[#allocation67_spill] sm:$0xff]  ;;  %v6965_v41 = vld [vmem:[#allocation10_spill] sm:$0xff]  ;;  %v6966_v38 = vld [vmem:[#allocation45_spill] sm:$0xff] }
 0x5d8   :  { %2107 = vmatpush.msrb.mxu3 %v5466_v33  ;;  %2181 = vmatpush.msra.mxu0 %v6961_v1  ;;  %v879_v39 = vmul.f32 %v6967_v62, %v6966_v38  ;;  %v6970_v33 = vld [vmem:[#allocation33_spill] sm:$0xff]  ;;  %v6971_v1 = vld [vmem:[#allocation68_spill] sm:$0xff] }
 0x5d9   :  { %2190 = vmatpush.msra.mxu1 %v6960_v26  ;;  %v6975_v38 = vld [vmem:[#allocation37_spill] sm:$0xff]  ;;  %v6978_v26 = vld [vmem:[#allocation59_spill] sm:$0xff] }
 0x5db   :  { %2191 = vmatpush.msra.mxu1 %v6962_v42  ;;  %v6972_v42 = vld [vmem:[#allocation54_spill] sm:$0xff] }
 0x5dd   :  { %2192 = vmatpush.msra.mxu1 %v6963_v25  ;;  %v6973_v25 = vld [vmem:[#allocation11_spill] sm:$0xff] }
 0x5df   :  { %2193 = vmatpush.msra.mxu1 %v6964_v28 }
 0x5e1   :  { %2194 = vmatpush.msra.mxu1 %v6965_v41  ;;  %v6974_v41 = vld [vmem:[#allocation44_spill] sm:$0xff] }
 0x5e2   :  { %v887_v31 = vpop.permute.xlu2 %886 }
 0x5e3   :  { %2195 = vmatpush.msra.mxu1 %v6968_v61  ;;  %v5478_v32 = vadd.f32 %v887_v31, %v879_v39  ;;  %v6977_v39 = vld [vmem:[#allocation58_spill] sm:$0xff] }
 0x5e5   :  { %6969 = vst [vmem:[#allocation30_spill] sm:$0xff] %v5478_v32  ;;  %2196 = vmatpush.msra.mxu1 %v6970_v33  ;;  %3353 = vtanh.f32 %v5478_v32 }
 0x5e7   :  { %2197 = vmatpush.msra.mxu1 %v6971_v1 }
 0x5e9   :  { %2198 = vmatpush.msra.mxu1 %v6972_v42 }
 0x5eb   :  { %2199 = vmatpush.msra.mxu1 %v6973_v25  ;;  %v3354_v28 = vpop.eup %3353 }
 0x5ec   :  { %892 = vrot.lane.b32.xlu1 %v3354_v28, %s3833_s24 }
 0x5ed   :  { %2200 = vmatpush.msra.mxu1 %v6974_v41 }
 0x5ef   :  { %2201 = vmatpush.msra.mxu1 %v6975_v38  ;;  %v6983_v38 = vld [vmem:[#allocation56_spill] sm:$0xff] }
 0x602   :  { %v1658_v31 = vpop.permute.xlu0 %1657 }
 0x603   :  { %v1662_v33 = vmul.f32 %v1658_v31, %v6977_v39  ;;  %v1663_v32 = vmul.f32 %v1658_v31, %v6978_v26  ;;  %v1660_v25 = vmul.f32 %v1658_v31, %v6981_v5  ;;  %v1661_v40 = vmul.f32 %v1658_v31, %v6982_v3 }
 0x605   :  { %v1666_v1 = vadd.f32 %v1662_v33, %v6979_v46  ;;  %v1667_v42 = vadd.f32 %v1663_v32, %v6980_v49  ;;  %v1664_v29 = vadd.f32 %v1660_v25, %v6983_v38  ;;  %v6985_v25 = vld [vmem:[#allocation12_spill] sm:$0xff] }
 0x62b   :  { %v5488_v61 = vpop.f32.mrf.mxu1 }
 0x62c   :  { %6976 = vst [vmem:[#allocation31_spill] sm:$0xff] %v5488_v61  ;;  %v6984_v61 = vld [vmem:[#allocation57_spill] sm:$0xff] }
 0x62d   :  { %v1665_v44 = vadd.f32 %v1661_v40, %v6984_v61 }
 0x635   :  { %v1725_v28 = vpop.f32.mrf.mxu0  ;;  %v1745_v56 = vpop.f32.mrf.mxu1 }
 0x636   :  { %v1750_v41 = vadd.f32 %v1725_v28, %v1666_v1  ;;  %v1751_v17 = vadd.f32 %v1745_v56, %v1667_v42 }
 0x638   :  { %v3158_v7 = vmul.f32 -1.442695, %v1750_v41  ;;  %v3159_v39 = vmul.f32 -1.442695, %v1751_v17 }
 0x63a   :  { %3355 = vpow2.f32 %v3158_v7  ;;  %v1685_v26 = vpop.f32.mrf.mxu2  ;;  %v1705_v9 = vpop.f32.mrf.mxu3 }
 0x63b   :  { %3357 = vpow2.f32 %v3159_v39  ;;  %v1748_v33 = vadd.f32 %v1685_v26, %v1664_v29  ;;  %v1749_v32 = vadd.f32 %v1705_v9, %v1665_v44 }
 0x63d   :  { %v3156_v49 = vmul.f32 -1.442695, %v1748_v33  ;;  %v3157_v5 = vmul.f32 -1.442695, %v1749_v32 }
 0x63f   :  { %3359 = vpow2.f32 %v3156_v49 }
 0x640   :  { %v3356_v31 = vpop.eup %3355  ;;  %3361 = vpow2.f32 %v3157_v5  ;;  %v3838_v5 = vmov 7  }
 0x641   :  { %v3358_v46 = vpop.eup %3357  ;;  %v5498_v56 = vadd.f32 1.0, %v3356_v31  ;;  %3220 = vset.pattern.permute.xlu0 %v3838_v5 }
 0x642   :  { %v1767_v1 = vadd.f32 1.0, %v3358_v46  ;;  %1908 = vperm.xlu0 %3220, %v6985_v25  }
 0x643   :  { %vm1803_vm9 = vweird.f32 %v5498_v56 }
 0x644   :  { %3363 = vrcp.f32 %v1767_v1  ;;  %v1824_v49 = vand.u32 2147483648, %v1767_v1  ;;  %v1822_v26 = vand.u32 2147483647, %v1767_v1  ;;  %vm1818_vm13 = vweird.f32 %v1767_v1 }
 0x645   :  { %v3360_v42 = vpop.eup %3359  ;;  %3365 = vrcp.f32 %v5498_v56 }
 0x646   :  { %v3362_v40 = vpop.eup %3361  ;;  %v1764_v41 = vadd.f32 1.0, %v3360_v42  ;;  %v1825_v42 = vor.u32 1.1754944e-38, %v1824_v49  ;;  %vm1823_vm15 = vcmp.eq.f32.partialorder %v1822_v26, 8.507059e+37 }
 0x647   :  { %v1765_v7 = vadd.f32 1.0, %v3362_v40 }
 0x648   :  { %3367 = vrcp.f32 %v1764_v41  ;;  %v1777_v61 = vand.u32 2147483647, %v1764_v41  ;;  %v1779_v3 = vand.u32 2147483648, %v1764_v41  ;;  %vm1773_vm2 = vweird.f32 %v1764_v41 }
 0x649   :  { %3369 = vrcp.f32 %v1765_v7  ;;  %v1794_v25 = vand.u32 2147483648, %v1765_v7  ;;  %v1792_v54 = vand.u32 2147483647, %v1765_v7  ;;  %vm1788_vm3 = vweird.f32 %v1765_v7 }
 0x64a   :  { %v3364_v17 = vpop.eup %3363  ;;  %v1780_v49 = vor.u32 1.1754944e-38, %v1779_v3  ;;  %vm1778_vm5 = vcmp.eq.f32.partialorder %v1777_v61, 8.507059e+37 }
 0x64b   :  { %v1814_v44 = vmul.f32 %v3364_v17, %v1767_v1  ;;  %v5501_v9 = vpop.eup %3365  ;;  %vm1819_vm12 = vweird.f32 %v3364_v17  ;;  %v1795_v26 = vor.u32 1.1754944e-38, %v1794_v25  ;;  %vm1793_vm7 = vcmp.eq.f32.partialorder %v1792_v54, 8.507059e+37  ;;  %v7018_v25 = vld [vmem:[#allocation36_spill] sm:$0xff] }
 0x64c   :  { %v1799_v31 = vmul.f32 %v5501_v9, %v5498_v56  ;;  %vm1820_vm14 = vmor %vm1818_vm13, %vm1819_vm12  ;;  %vm1804_vm8 = vweird.f32 %v5501_v9 }
 0x64d   :  { %v1815_v29 = vsub.f32 1.0, %v1814_v44  ;;  %vm1805_vm10 = vmor %vm1803_vm9, %vm1804_vm8 }
 0x64e   :  { %v3368_v46 = vpop.eup %3367  ;;  %v1800_v59 = vsub.f32 1.0, %v1799_v31 }
 0x64f   :  { %v3370_v39 = vpop.eup %3369  ;;  %v1816_v28 = vmul.f32 %v3364_v17, %v1815_v29  ;;  %v1769_v33 = vmul.f32 %v3368_v46, %v1764_v41  ;;  %vm1774_vm0 = vweird.f32 %v3368_v46 }
 0x650   :  { %v1784_v32 = vmul.f32 %v3370_v39, %v1765_v7  ;;  %vm1789_vm1 = vweird.f32 %v3370_v39  ;;  %vm1775_vm4 = vmor %vm1773_vm2, %vm1774_vm0  ;;  %v1801_v41 = vmul.f32 %v5501_v9, %v1800_v59  ;;  %v1807_v59 = vand.u32 2147483647, %v5498_v56 }
 0x651   :  { %v1770_v40 = vsub.f32 1.0, %v1769_v33  ;;  %v1817_v38 = vadd.f32 %v3364_v17, %v1816_v28  ;;  %v6986_v33 = vmov 2   ;;  %vm1790_vm6 = vmor %vm1788_vm3, %vm1789_vm1 }
 0x652   :  { %v1785_v44 = vsub.f32 1.0, %v1784_v32  ;;  %3223 = vset.pattern.permute.xlu0 %v6986_v33  ;;  %v1802_v3 = vadd.f32 %v5501_v9, %v1801_v41  ;;  %vm1808_vm11 = vcmp.eq.f32.partialorder %v1807_v59, 8.507059e+37  ;;  %v7030_v41 = vld [vmem:[#allocation11_spill] sm:$0xff] }
 0x653   :  { %v1771_v5 = vmul.f32 %v3368_v46, %v1770_v40  ;;  %v1821_v27 = vsel %vm1820_vm14, %v3364_v17, %v1817_v38  ;;  %v7033_v59 = vld [vmem:[#allocation15_spill] sm:$0xff] }
 0x654   :  { %v1786_v29 = vmul.f32 %v3370_v39, %v1785_v44  ;;  %v1826_v1 = vsel %vm1823_vm15, %v1825_v42, %v1821_v27 }
 0x655   :  { %v1772_v63 = vadd.f32 %v3368_v46, %v1771_v5  ;;  %v1828_v10 = vmul.f32 2.0, %v1826_v1  ;;  %v7017_v5 = vld [vmem:[#allocation50_spill] sm:$0xff] }
 0x656   :  { %v1787_v28 = vadd.f32 %v3370_v39, %v1786_v29  ;;  %v7019_v29 = vld [vmem:[#allocation27_spill] sm:$0xff]  ;;  %v7020_v1 = vld [vmem:[#allocation26_spill] sm:$0xff] }
 0x657   :  { %v1776_v32 = vsel %vm1775_vm4, %v3368_v46, %v1772_v63  ;;  %v3160_v40 = vadd.f32 -1.0, %v1828_v10  ;;  %v1809_v10 = vand.u32 2147483648, %v5498_v56  ;;  %v7015_v56 = vld [vmem:[#allocation19_spill] sm:$0xff] }
 0x658   :  { %v1781_v38 = vsel %vm1778_vm5, %v1780_v49, %v1776_v32  ;;  %v1791_v17 = vsel %vm1790_vm6, %v3370_v39, %v1787_v28  ;;  %v7021_v49 = vld [vmem:[#allocation51_spill] sm:$0xff]  ;;  %v7022_v28 = vld [vmem:[#allocation66_spill] sm:$0xff]  ;;  %v7023_v32 = vld [vmem:[#allocation29_spill] sm:$0xff] }
 0x659   :  { %v1796_v44 = vsel %vm1793_vm7, %v1795_v26, %v1791_v17  ;;  %v1831_v27 = vmul.f32 %v3160_v40, %v1781_v38  ;;  %v1810_v61 = vor.u32 1.1754944e-38, %v1809_v10  ;;  %v7024_v26 = vld [vmem:[#allocation67_spill] sm:$0xff]  ;;  %v7025_v40 = vld [vmem:[#allocation10_spill] sm:$0xff]  ;;  %v7026_v38 = vld [vmem:[#allocation40_spill] sm:$0xff] }
 0x65a   :  { %v1830_v31 = vmul.f32 %v1796_v44, %v5315_v14  ;;  %v1806_v14 = vsel %vm1805_vm10, %v5501_v9, %v1802_v3  ;;  %v7016_v9 = vld [vmem:[#allocation8_spill] sm:$0xff]  ;;  %v7027_v17 = vld [vmem:[#allocation33_spill] sm:$0xff]  ;;  %v5603_v10 = vld [vmem:[%s6281_s5] ss:$0 sm:$0xff] }
 0x65b   :  { %v1811_v39 = vsel %vm1808_vm11, %v1810_v61, %v1806_v14  ;;  %v7028_v44 = vld [vmem:[#allocation68_spill] sm:$0xff]  ;;  %v7032_v3 = vld [vmem:[#allocation37_spill] sm:$0xff]  ;;  %v5610_v61 = vld [vmem:[%s6282_s6] ss:$0 sm:$0xff] }
 0x65c   :  { %v5509_v7 = vadd.f32 %v1831_v27, %v1830_v31  ;;  %v7029_v27 = vld [vmem:[#allocation54_spill] sm:$0xff]  ;;  %v7031_v31 = vld [vmem:[#allocation44_spill] sm:$0xff] }
 0x65e   :  { %3371 = vtanh.f32 %v5509_v7  ;;  %1857 = vmatmul.f32.vlgmr.msra.gmra.mxu2 %v5509_v7  ;;  %v893_v63 = vpop.permute.xlu1 %892 }
 0x65f   :  { %v895_v54 = vmul.f32 %v893_v63, %v6967_v62  ;;  %2206 = vmatpush.msra.mxu2 %v5076_v47  ;;  %v6987_v47 = vld [vmem:[#allocation41_spill] sm:$0xff] }
 0x660   :  { %v7014_v62 = vld [vmem:[#allocation9_spill] sm:$0xff] }
 0x661   :  { %1084 = vperm.xlu2 %3214, %v895_v54   ;;  %2207 = vmatpush.msra.mxu2 %v5081_v37  ;;  %v6988_v37 = vld [vmem:[#allocation22_spill] sm:$0xff] }
 0x663   :  { %2208 = vmatpush.msra.mxu2 %v5085_v51  ;;  %v6989_v51 = vld [vmem:[#allocation46_spill] sm:$0xff] }
 0x664   :  { %v3372_v46 = vpop.eup %3371 }
 0x665   :  { %v1834_v42 = vmul.f32 %v3372_v46, %v1811_v39  ;;  %2209 = vmatpush.msra.mxu2 %v5088_v0  ;;  %v6990_v0 = vld [vmem:[#allocation38_spill] sm:$0xff] }
 0x667   :  { %1935 = vmatmul.f32.vlgmr.msra.gmra.mxu3 %v1834_v42  ;;  %1955 = vmatmul.f32.vlgmr.msrb.gmra.mxu0 %v1834_v42 }
 0x668   :  { %1975 = vmatmul.f32.vlgmr.msrb.gmra.mxu1 %v1834_v42  ;;  %1995 = vmatmul.f32.vlgmr.msrb.gmra.mxu2 %v1834_v42 }
 0x669   :  { %2226 = vmatpush.msra.mxu3 %v5094_v6  ;;  %2210 = vmatpush.msra.mxu2 %v5091_v24  ;;  %v6991_v24 = vld [vmem:[#allocation13_spill] sm:$0xff]  ;;  %v6992_v6 = vld [vmem:[#allocation47_spill] sm:$0xff] }
 0x66a   :  { %2339 = vmatpush.msrb.mxu0 %v5331_v43  ;;  %2413 = vmatpush.msrb.mxu1 %v5101_v8  ;;  %v6994_v8 = vld [vmem:[#allocation17_spill] sm:$0xff] }
 0x66b   :  { %2227 = vmatpush.msra.mxu3 %v5104_v30  ;;  %2211 = vmatpush.msra.mxu2 %v5097_v13  ;;  %v6993_v13 = vld [vmem:[#allocation42_spill] sm:$0xff] }
 0x66c   :  { %2340 = vmatpush.msrb.mxu0 %v5340_v12  ;;  %2414 = vmatpush.msrb.mxu1 %v5111_v23  ;;  %v6995_v30 = vld [vmem:[#allocation14_spill] sm:$0xff]  ;;  %v6997_v23 = vld [vmem:[#allocation20_spill] sm:$0xff] }
 0x66d   :  { %2228 = vmatpush.msra.mxu3 %v5116_v16  ;;  %2212 = vmatpush.msra.mxu2 %v5107_v20  ;;  %v6996_v20 = vld [vmem:[#allocation48_spill] sm:$0xff]  ;;  %v6998_v16 = vld [vmem:[#allocation35_spill] sm:$0xff] }
 0x66e   :  { %2341 = vmatpush.msrb.mxu0 %v5349_v55  ;;  %2415 = vmatpush.msrb.mxu1 %v5124_v53  ;;  %v7000_v53 = vld [vmem:[#allocation28_spill] sm:$0xff] }
 0x66f   :  { %2229 = vmatpush.msra.mxu3 %v5127_v11  ;;  %2213 = vmatpush.msra.mxu2 %v5119_v19  ;;  %v6999_v19 = vld [vmem:[#allocation16_spill] sm:$0xff]  ;;  %v7001_v11 = vld [vmem:[#allocation39_spill] sm:$0xff] }
 0x670   :  { %2342 = vmatpush.msrb.mxu0 %v5358_v2  ;;  %2416 = vmatpush.msrb.mxu1 %v5134_v15  ;;  %v7003_v15 = vld [vmem:[#allocation18_spill] sm:$0xff] }
 0x671   :  { %2230 = vmatpush.msra.mxu3 %v5137_v35  ;;  %2214 = vmatpush.msra.mxu2 %v5130_v57  ;;  %v7002_v57 = vld [vmem:[#allocation62_spill] sm:$0xff]  ;;  %v7004_v35 = vld [vmem:[#allocation25_spill] sm:$0xff] }
 0x672   :  { %2343 = vmatpush.msrb.mxu0 %v5367_v45  ;;  %2417 = vmatpush.msrb.mxu1 %v5152_v52  ;;  %v7008_v52 = vld [vmem:[#allocation63_spill] sm:$0xff] }
 0x673   :  { %2231 = vmatpush.msra.mxu3 %v5145_v48  ;;  %2215 = vmatpush.msra.mxu2 %v5140_v60  ;;  %v7005_v60 = vld [vmem:[#allocation23_spill] sm:$0xff]  ;;  %v7006_v48 = vld [vmem:[#allocation49_spill] sm:$0xff] }
 0x674   :  { %2344 = vmatpush.msrb.mxu0 %v5376_v18  ;;  %2418 = vmatpush.msrb.mxu1 %v5162_v36  ;;  %v7011_v36 = vld [vmem:[#allocation24_spill] sm:$0xff] }
 0x675   :  { %2232 = vmatpush.msra.mxu3 %v5155_v4  ;;  %2216 = vmatpush.msra.mxu2 %v5148_v50  ;;  %v7007_v50 = vld [vmem:[#allocation21_spill] sm:$0xff]  ;;  %v7009_v4 = vld [vmem:[#allocation64_spill] sm:$0xff] }
 0x676   :  { %2345 = vmatpush.msrb.mxu0 %v5385_v34  ;;  %2419 = vmatpush.msrb.mxu1 %v5172_v21  ;;  %v7013_v21 = vld [vmem:[#allocation32_spill] sm:$0xff] }
 0x677   :  { %2233 = vmatpush.msra.mxu3 %v5165_v22  ;;  %2217 = vmatpush.msra.mxu2 %v5158_v58  ;;  %v7010_v58 = vld [vmem:[#allocation65_spill] sm:$0xff]  ;;  %v7012_v22 = vld [vmem:[#allocation43_spill] sm:$0xff] }
 0x678   :  { %2346 = vmatpush.msrb.mxu0 %v6987_v47  ;;  %2420 = vmatpush.msrb.mxu1 %v6988_v37 }
 0x679   :  { %2234 = vmatpush.msra.mxu3 %v6989_v51  ;;  %2218 = vmatpush.msra.mxu2 %v6990_v0 }
 0x67a   :  { %2347 = vmatpush.msrb.mxu0 %v6991_v24  ;;  %2421 = vmatpush.msrb.mxu1 %v6992_v6 }
 0x67b   :  { %2235 = vmatpush.msra.mxu3 %v6993_v13  ;;  %2219 = vmatpush.msra.mxu2 %v6994_v8 }
 0x67c   :  { %2348 = vmatpush.msrb.mxu0 %v6995_v30  ;;  %2422 = vmatpush.msrb.mxu1 %v6996_v20 }
 0x67d   :  { %2236 = vmatpush.msra.mxu3 %v6997_v23  ;;  %2220 = vmatpush.msra.mxu2 %v6998_v16 }
 0x67e   :  { %2349 = vmatpush.msrb.mxu0 %v6999_v19  ;;  %2423 = vmatpush.msrb.mxu1 %v7000_v53 }
 0x67f   :  { %2237 = vmatpush.msra.mxu3 %v7001_v11  ;;  %2221 = vmatpush.msra.mxu2 %v7002_v57  ;;  %v7034_v57 = vld [vmem:[#allocation53_spill] sm:$0xff] }
 0x680   :  { %2350 = vmatpush.msrb.mxu0 %v7003_v15  ;;  %2424 = vmatpush.msrb.mxu1 %v7006_v48  ;;  %v7035_v48 = vld [vmem:[#allocation58_spill] sm:$0xff] }
 0x681   :  { %2433 = vmatpush.msrb.mxu2 %v7004_v35  ;;  %2238 = vmatpush.msra.mxu3 %v7005_v60 }
 0x682   :  { %2351 = vmatpush.msrb.mxu0 %v7007_v50  ;;  %2425 = vmatpush.msrb.mxu1 %v7010_v58 }
 0x683   :  { %2434 = vmatpush.msrb.mxu2 %v7008_v52  ;;  %2239 = vmatpush.msra.mxu3 %v7009_v4 }
 0x684   :  { %2352 = vmatpush.msrb.mxu0 %v7011_v36  ;;  %2426 = vmatpush.msrb.mxu1 %v7014_v62 }
 0x685   :  { %2435 = vmatpush.msrb.mxu2 %v7012_v22  ;;  %2240 = vmatpush.msra.mxu3 %v7013_v21  ;;  %v7036_v21 = vld [vmem:[#allocation57_spill] sm:$0xff] }
 0x686   :  { %2353 = vmatpush.msrb.mxu0 %v7015_v56  ;;  %2427 = vmatpush.msrb.mxu1 %v7018_v25  ;;  %v7038_v25 = vld [vmem:[#allocation52_spill] sm:$0xff] }
 0x687   :  { %2436 = vmatpush.msrb.mxu2 %v7016_v9  ;;  %2241 = vmatpush.msra.mxu3 %v7017_v5  ;;  %v7037_v9 = vld [vmem:[#allocation60_spill] sm:$0xff] }
 0x688   :  { %2354 = vmatpush.msrb.mxu0 %v7019_v29  ;;  %2428 = vmatpush.msrb.mxu1 %v7021_v49 }
 0x689   :  { %2437 = vmatpush.msrb.mxu2 %v7020_v1 }
 0x68b   :  { %2438 = vmatpush.msrb.mxu2 %v7022_v28  ;;  %v7039_v28 = vld [vmem:[#allocation59_spill] sm:$0xff] }
 0x68d   :  { %2439 = vmatpush.msrb.mxu2 %v7023_v32 }
 0x68f   :  { %2440 = vmatpush.msrb.mxu2 %v7024_v26 }
 0x691   :  { %2441 = vmatpush.msrb.mxu2 %v7025_v40 }
 0x693   :  { %2442 = vmatpush.msrb.mxu2 %v7026_v38 }
 0x695   :  { %2443 = vmatpush.msrb.mxu2 %v7027_v17 }
 0x697   :  { %2444 = vmatpush.msrb.mxu2 %v7028_v44  ;;  %v7040_v44 = vld [vmem:[#allocation56_spill] sm:$0xff] }
 0x699   :  { %2445 = vmatpush.msrb.mxu2 %v7029_v27 }
 0x69b   :  { %2446 = vmatpush.msrb.mxu2 %v7030_v41  ;;  %v7041_v41 = vld [vmem:[#allocation61_spill] sm:$0xff] }
 0x69d   :  { %2447 = vmatpush.msrb.mxu2 %v7031_v31 }
 0x69f   :  { %2448 = vmatpush.msrb.mxu2 %v7032_v3 }
 0x6b4   :  { %v1909_v23 = vpop.permute.xlu0 %1908 }
 0x6b5   :  { %v1912_v35 = vmul.f32 %v1909_v23, %v7034_v57  ;;  %v1913_v52 = vmul.f32 %v1909_v23, %v7035_v48  ;;  %v1911_v1 = vmul.f32 %v1909_v23, %v7038_v25  ;;  %v1914_v32 = vmul.f32 %v1909_v23, %v7039_v28 }
 0x6b7   :  { %v1916_v62 = vadd.f32 %v1912_v35, %v7036_v21  ;;  %v1917_v5 = vadd.f32 %v1913_v52, %v7037_v9  ;;  %v1915_v27 = vadd.f32 %v1911_v1, %v7040_v44  ;;  %v1918_v31 = vadd.f32 %v1914_v32, %v7041_v41 }
 0x6bb   :  { %v1085_v63 = vpop.permute.xlu2 %1084 }
 0x6bc   :  { %v1087_v54 = vmul.f32 %v5603_v10, %v1085_v63 }
 0x6be   :  { %v1106_v14 = vadd.f32 %v7033_v59, %v1087_v54 }
 0x6c0   :  { %v1108_v46 = vadd.f32 %v5610_v61, %v1106_v14 }
 0x6c2   :  { %v3140_v39 = vmul.f32 -1.442695, %v1108_v46 }
 0x6c4   :  { %3373 = vpow2.f32 %v3140_v39 }
 0x6ca   :  { %v3374_v42 = vpop.eup %3373 }
 0x6cb   :  { %v1112_v37 = vadd.f32 1.0, %v3374_v42 }
 0x6cd   :  { %3375 = vrcp.f32 %v1112_v37  ;;  %v1124_v13 = vand.u32 2147483648, %v1112_v37  ;;  %v1122_v20 = vand.u32 2147483647, %v1112_v37  ;;  %vm1118_vm13 = vweird.f32 %v1112_v37 }
 0x6cf   :  { %v1125_v53 = vor.u32 1.1754944e-38, %v1124_v13  ;;  %vm1123_vm15 = vcmp.eq.f32.partialorder %v1122_v20, 8.507059e+37 }
 0x6d3   :  { %v3376_v51 = vpop.eup %3375 }
 0x6d4   :  { %v1114_v0 = vmul.f32 %v3376_v51, %v1112_v37  ;;  %vm1119_vm12 = vweird.f32 %v3376_v51 }
 0x6d5   :  { %vm1120_vm14 = vmor %vm1118_vm13, %vm1119_vm12 }
 0x6d6   :  { %v1115_v6 = vsub.f32 1.0, %v1114_v0 }
 0x6d8   :  { %v1116_v8 = vmul.f32 %v3376_v51, %v1115_v6 }
 0x6da   :  { %v1117_v16 = vadd.f32 %v3376_v51, %v1116_v8 }
 0x6dc   :  { %v1121_v11 = vsel %vm1120_vm14, %v3376_v51, %v1117_v16 }
 0x6dd   :  { %v5614_v60 = vsel %vm1123_vm15, %v1125_v53, %v1121_v11 }
 0x6de   :  { %v1128_v4 = vmul.f32 2.0, %v5614_v60 }
 0x6e0   :  { %v3141_v58 = vadd.f32 -1.0, %v1128_v4 }
 0x6e1   :  { %v5618_v22 = vpop.f32.mrf.mxu2 }
 0x6e2   :  { %1132 = vrot.lane.b32.xlu1 %v3141_v58, %s3831_s23 }
 0x6e4   :  { %v1956_v49 = vpop.f32.mrf.mxu0 }
 0x6e5   :  { %v2000_v26 = vadd.f32 %v1956_v49, %v1916_v62  ;;  %v1976_v40 = vpop.f32.mrf.mxu1 }
 0x6e6   :  { %v2001_v38 = vadd.f32 %v1976_v40, %v1917_v5 }
 0x6e7   :  { %v3164_v17 = vmul.f32 -1.442695, %v2000_v26 }
 0x6e8   :  { %v3165_v3 = vmul.f32 -1.442695, %v2001_v38 }
 0x6e9   :  { %3377 = vpow2.f32 %v3164_v17 }
 0x6ea   :  { %v1936_v63 = vpop.f32.mrf.mxu3  ;;  %3379 = vpow2.f32 %v3165_v3 }
 0x6eb   :  { %v1999_v54 = vadd.f32 %v1936_v63, %v1915_v27  ;;  %v1996_v59 = vpop.f32.mrf.mxu2  ;;  %v5667_v63 = vld [vmem:[#allocation2 + $0x1d8] sm:$0xff] }
 0x6ec   :  { %v2002_v14 = vadd.f32 %v1996_v59, %v1918_v31 }
 0x6ed   :  { %v3163_v46 = vmul.f32 -1.442695, %v1999_v54 }
 0x6ee   :  { %v3166_v39 = vmul.f32 -1.442695, %v2002_v14 }
 0x6ef   :  { %v3378_v42 = vpop.eup %3377  ;;  %3381 = vpow2.f32 %v3163_v46 }
 0x6f0   :  { %v2016_v37 = vadd.f32 1.0, %v3378_v42  ;;  %3383 = vpow2.f32 %v3166_v39  ;;  %v3380_v51 = vpop.eup %3379 }
 0x6f1   :  { %v5627_v23 = vadd.f32 1.0, %v3380_v51 }
 0x6f2   :  { %3385 = vrcp.f32 %v2016_v37  ;;  %vm2039_vm2 = vweird.f32 %v2016_v37  ;;  %v2043_v27 = vand.u32 2147483647, %v2016_v37  ;;  %v2045_v31 = vand.u32 2147483648, %v2016_v37 }
 0x6f3   :  { %vm2054_vm13 = vweird.f32 %v5627_v23 }
 0x6f4   :  { %vm2044_vm10 = vcmp.eq.f32.partialorder %v2043_v27, 8.507059e+37 }
 0x6f5   :  { %v3382_v0 = vpop.eup %3381 }
 0x6f6   :  { %v3384_v6 = vpop.eup %3383  ;;  %v2015_v13 = vadd.f32 1.0, %v3382_v0 }
 0x6f7   :  { %v2018_v8 = vadd.f32 1.0, %v3384_v6 }
 0x6f8   :  { %v3386_v20 = vpop.eup %3385  ;;  %3387 = vrcp.f32 %v2015_v13  ;;  %vm2024_vm6 = vweird.f32 %v2015_v13  ;;  %v2030_v14 = vand.u32 2147483648, %v2015_v13  ;;  %v2028_v46 = vand.u32 2147483647, %v2015_v13 }
 0x6f9   :  { %v2035_v16 = vmul.f32 %v3386_v20, %v2016_v37  ;;  %3389 = vrcp.f32 %v2018_v8  ;;  %v2075_v32 = vand.u32 2147483648, %v2018_v8  ;;  %vm2040_vm0 = vweird.f32 %v3386_v20 }
 0x6fa   :  { %3391 = vrcp.f32 %v5627_v23  ;;  %v2073_v38 = vand.u32 2147483647, %v2018_v8  ;;  %vm2069_vm3 = vweird.f32 %v2018_v8  ;;  %vm5631_vm5 = vmor %vm2039_vm2, %vm2040_vm0  ;;  %v2046_v37 = vor.u32 1.1754944e-38, %v2045_v31  ;;  %v5660_v31 = vld [vmem:[#allocation2 + $0x170] sm:$0xff] }
 0x6fb   :  { %v2036_v53 = vsub.f32 1.0, %v2035_v16  ;;  %v2076_v59 = vor.u32 1.1754944e-38, %v2075_v32  ;;  %v2031_v16 = vor.u32 1.1754944e-38, %v2030_v14  ;;  %vm2029_vm11 = vcmp.eq.f32.partialorder %v2028_v46, 8.507059e+37  ;;  %v5648_v32 = vld [vmem:[#allocation2 + $0x1d0] sm:$0xff]  ;;  %v5677_v14 = vld [vmem:[#allocation2 + $0x1b8] sm:$0xff] }
 0x6fc   :  { %vm2074_vm8 = vcmp.eq.f32.partialorder %v2073_v38, 8.507059e+37  ;;  %v5684_v46 = vld [vmem:[#allocation2 + $0x1a0] sm:$0xff] }
 0x6fd   :  { %v2037_v4 = vmul.f32 %v3386_v20, %v2036_v53 }
 0x6fe   :  { %v3388_v11 = vpop.eup %3387 }
 0x6ff   :  { %v3390_v35 = vpop.eup %3389  ;;  %v2020_v52 = vmul.f32 %v3388_v11, %v2015_v13  ;;  %v2038_v40 = vadd.f32 %v3386_v20, %v2037_v4  ;;  %vm2025_vm4 = vweird.f32 %v3388_v11 }
 0x700   :  { %v2065_v58 = vmul.f32 %v3390_v35, %v2018_v8  ;;  %v3392_v5 = vpop.eup %3391  ;;  %vm2070_vm1 = vweird.f32 %v3390_v35  ;;  %vm2026_vm9 = vmor %vm2024_vm6, %vm2025_vm4 }
 0x701   :  { %v2021_v62 = vsub.f32 1.0, %v2020_v52  ;;  %v2050_v17 = vmul.f32 %v3392_v5, %v5627_v23  ;;  %vm2071_vm7 = vmor %vm2069_vm3, %vm2070_vm1  ;;  %v2042_v39 = vsel %vm5631_vm5, %v3386_v20, %v2038_v40  ;;  %vm2055_vm12 = vweird.f32 %v3392_v5  ;;  %v5651_v40 = vld [vmem:[#allocation2 + $0x1b0] sm:$0xff] }
 0x702   :  { %v2066_v1 = vsub.f32 1.0, %v2065_v58  ;;  %v2047_v53 = vsel %vm2044_vm10, %v2046_v37, %v2042_v39  ;;  %vm2056_vm14 = vmor %vm2054_vm13, %vm2055_vm12  ;;  %v5687_v39 = vld [vmem:[#allocation2 + $0x198] sm:$0xff]  ;;  %v5704_v37 = vld [vmem:[#allocation2 + $0x160] sm:$0xff] }
 0x703   :  { %v2022_v49 = vmul.f32 %v3388_v11, %v2021_v62  ;;  %v2051_v51 = vsub.f32 1.0, %v2050_v17  ;;  %v2081_v13 = vmul.f32 %v2047_v53, %v5509_v7  ;;  %v5727_v53 = vld [vmem:[#allocation2 + $0x118] sm:$0xff] }
 0x704   :  { %v2067_v26 = vmul.f32 %v3390_v35, %v2066_v1 }
 0x705   :  { %v2023_v3 = vadd.f32 %v3388_v11, %v2022_v49  ;;  %v2052_v58 = vmul.f32 %v3392_v5, %v2051_v51  ;;  %v5645_v49 = vld [vmem:[#allocation2 + $0x1f0] sm:$0xff]  ;;  %v5697_v51 = vld [vmem:[#allocation2 + $0x178] sm:$0xff] }
 0x706   :  { %v2068_v54 = vadd.f32 %v3390_v35, %v2067_v26 }
 0x707   :  { %v2027_v6 = vsel %vm2026_vm9, %v3388_v11, %v2023_v3  ;;  %v2053_v20 = vadd.f32 %v3392_v5, %v2052_v58  ;;  %v2060_v11 = vand.u32 2147483648, %v5627_v23  ;;  %v5664_v3 = vld [vmem:[#allocation2 + $0x1e0] sm:$0xff] }
 0x708   :  { %v2072_v42 = vsel %vm2071_vm7, %v3390_v35, %v2068_v54  ;;  %v2032_v4 = vsel %vm2029_vm11, %v2031_v16, %v2027_v6  ;;  %v2058_v35 = vand.u32 2147483647, %v5627_v23  ;;  %v5654_v23 = vld [vmem:[#allocation2 + $0x190] sm:$0xff]  ;;  %v5714_v6 = vld [vmem:[#allocation2 + $0x140] sm:$0xff] }
 0x709   :  { %v2077_v0 = vsel %vm2074_vm8, %v2076_v59, %v2072_v42  ;;  %v2057_v7 = vsel %vm2056_vm14, %v3392_v5, %v2053_v20  ;;  %v2061_v26 = vor.u32 1.1754944e-38, %v2060_v11  ;;  %v5657_v5 = vld [vmem:[#allocation2 + $0x1f8] sm:$0xff]  ;;  %v5670_v54 = vld [vmem:[#allocation2 + $0x150] sm:$0xff]  ;;  %v5674_v59 = vld [vmem:[#allocation2 + $0x1c0] sm:$0xff] }
 0x70a   :  { %v2079_v8 = vmul.f32 2.0, %v2077_v0  ;;  %vm2059_vm15 = vcmp.eq.f32.partialorder %v2058_v35, 8.507059e+37  ;;  %v5694_v42 = vld [vmem:[#allocation2 + $0x180] sm:$0xff]  ;;  %v5707_v0 = vld [vmem:[#allocation2 + $0x158] sm:$0xff] }
 0x70b   :  { %v2062_v17 = vsel %vm2059_vm15, %v2061_v26, %v2057_v7  ;;  %v5724_v16 = vld [vmem:[#allocation2 + $0x120] sm:$0xff]  ;;  %v5757_v20 = vld [vmem:[#allocation2 + $0xb8] sm:$0xff]  ;;  %v5774_v7 = vld [vmem:[#allocation2 + $0x1e8] sm:$0xff] }
 0x70c   :  { %v3167_v52 = vadd.f32 -1.0, %v2079_v8  ;;  %v5717_v8 = vld [vmem:[#allocation2 + $0x138] sm:$0xff]  ;;  %v5744_v58 = vld [vmem:[#allocation2 + $0xe0] sm:$0xff]  ;;  %7045 = vst [vmem:[#allocation41_spill] sm:$0xff] %v5757_v20 }
 0x70d   :  { %v5764_v11 = vld [vmem:[#allocation2 + $0xa0] sm:$0xff]  ;;  %v5767_v35 = vld [vmem:[#allocation2 + $0x98] sm:$0xff]  ;;  %7050 = vst [vmem:[#allocation47_spill] sm:$0xff] %v5774_v7 }
 0x70e   :  { %v2082_v62 = vmul.f32 %v3167_v52, %v2032_v4  ;;  %v5734_v52 = vld [vmem:[#allocation2 + $0x100] sm:$0xff]  ;;  %v5737_v4 = vld [vmem:[#allocation2 + $0xf8] sm:$0xff]  ;;  %7047 = vst [vmem:[#allocation46_spill] sm:$0xff] %v5764_v11 }
 0x70f   :  { %7048 = vst [vmem:[#allocation38_spill] sm:$0xff] %v5767_v35  ;;  %v5777_v26 = vld [vmem:[#allocation2 + $0x78] sm:$0xff] }
 0x710   :  { %v5638_v1 = vadd.f32 %v2082_v62, %v2081_v13  ;;  %v5747_v13 = vld [vmem:[#allocation2 + $0xd8] sm:$0xff]  ;;  %v5754_v62 = vld [vmem:[#allocation2 + $0xc0] sm:$0xff]  ;;  %7051 = vst [vmem:[#allocation42_spill] sm:$0xff] %v5777_v26 }
 0x711   :  { %7044 = vst [vmem:[#allocation12_spill] sm:$0xff] %v5754_v62 }
 0x712   :  { %3393 = vtanh.f32 %v5638_v1  ;;  %2108 = vmatmul.f32.vlgmr.msrb.gmra.mxu3 %v5638_v1 }
 0x713   :  { %2453 = vmatpush.msrb.mxu3 %v5645_v49 }
 0x715   :  { %2454 = vmatpush.msrb.mxu3 %v5648_v32 }
 0x717   :  { %2455 = vmatpush.msrb.mxu3 %v5651_v40 }
 0x718   :  { %v3394_v38 = vpop.eup %3393 }
 0x719   :  { %v2085_v27 = vmul.f32 %v3394_v38, %v2062_v17  ;;  %2456 = vmatpush.msrb.mxu3 %v5654_v23  ;;  %v5784_v38 = vld [vmem:[#allocation2 + $0x1c8] sm:$0xff]  ;;  %v5787_v17 = vld [vmem:[#allocation2 + $0x58] sm:$0xff] }
 0x71a   :  { %7053 = vst [vmem:[#allocation14_spill] sm:$0xff] %v5784_v38 }
 0x71b   :  { %2182 = vmatmul.f32.vlgmr.msra.gmra.mxu0 %v2085_v27  ;;  %2202 = vmatmul.f32.vlgmr.msra.gmra.mxu1 %v2085_v27  ;;  %7054 = vst [vmem:[#allocation48_spill] sm:$0xff] %v5787_v17 }
 0x71c   :  { %2222 = vmatmul.f32.vlgmr.msra.gmra.mxu2 %v2085_v27  ;;  %2242 = vmatmul.f32.vlgmr.msra.gmra.mxu3 %v2085_v27  ;;  %v5794_v27 = vld [vmem:[#allocation2 + $0x1a8] sm:$0xff] }
 0x71d   :  { %2473 = vmatpush.msra.mxu0 %v5657_v5  ;;  %2457 = vmatpush.msrb.mxu3 %v5660_v31  ;;  %7056 = vst [vmem:[#allocation35_spill] sm:$0xff] %v5794_v27 }
 0x71e   :  { %2586 = vmatpush.msra.mxu1 %v5331_v43  ;;  %2660 = vmatpush.msra.mxu2 %v5664_v3  ;;  %v5680_v43 = vld [vmem:[#allocation2 + $0x130] sm:$0xff] }
 0x71f   :  { %2474 = vmatpush.msra.mxu0 %v5667_v63  ;;  %2458 = vmatpush.msrb.mxu3 %v5670_v54 }
 0x720   :  { %2587 = vmatpush.msra.mxu1 %v5340_v12  ;;  %2661 = vmatpush.msra.mxu2 %v5674_v59  ;;  %v5690_v12 = vld [vmem:[#allocation2 + $0x110] sm:$0xff] }
 0x721   :  { %2475 = vmatpush.msra.mxu0 %v5677_v14  ;;  %2459 = vmatpush.msrb.mxu3 %v5680_v43 }
 0x722   :  { %2588 = vmatpush.msra.mxu1 %v5349_v55  ;;  %2662 = vmatpush.msra.mxu2 %v5684_v46  ;;  %v5700_v55 = vld [vmem:[#allocation2 + $0xf0] sm:$0xff] }
 0x723   :  { %2476 = vmatpush.msra.mxu0 %v5687_v39  ;;  %2460 = vmatpush.msrb.mxu3 %v5690_v12 }
 0x724   :  { %2589 = vmatpush.msra.mxu1 %v5358_v2  ;;  %2663 = vmatpush.msra.mxu2 %v5694_v42  ;;  %v5710_v2 = vld [vmem:[#allocation2 + $0xd0] sm:$0xff] }
 0x725   :  { %2477 = vmatpush.msra.mxu0 %v5697_v51  ;;  %2461 = vmatpush.msrb.mxu3 %v5700_v55 }
 0x726   :  { %2590 = vmatpush.msra.mxu1 %v5367_v45  ;;  %2664 = vmatpush.msra.mxu2 %v5704_v37  ;;  %v5720_v45 = vld [vmem:[#allocation2 + $0xb0] sm:$0xff] }
 0x727   :  { %2478 = vmatpush.msra.mxu0 %v5707_v0  ;;  %2462 = vmatpush.msrb.mxu3 %v5710_v2 }
 0x728   :  { %2591 = vmatpush.msra.mxu1 %v5376_v18  ;;  %2665 = vmatpush.msra.mxu2 %v5714_v6  ;;  %v5730_v18 = vld [vmem:[#allocation2 + $0x90] sm:$0xff] }
 0x729   :  { %2479 = vmatpush.msra.mxu0 %v5717_v8  ;;  %2463 = vmatpush.msrb.mxu3 %v5720_v45 }
 0x72a   :  { %2592 = vmatpush.msra.mxu1 %v5385_v34  ;;  %2666 = vmatpush.msra.mxu2 %v5724_v16  ;;  %v5740_v34 = vld [vmem:[#allocation2 + $0x70] sm:$0xff] }
 0x72b   :  { %2480 = vmatpush.msra.mxu0 %v5727_v53  ;;  %2464 = vmatpush.msrb.mxu3 %v5730_v18 }
 0x72c   :  { %2593 = vmatpush.msra.mxu1 %v6987_v47  ;;  %2667 = vmatpush.msra.mxu2 %v5734_v52  ;;  %v5750_v47 = vld [vmem:[#allocation2 + $0x50] sm:$0xff] }
 0x72d   :  { %2481 = vmatpush.msra.mxu0 %v5737_v4  ;;  %2465 = vmatpush.msrb.mxu3 %v5740_v34 }
 0x72e   :  { %2594 = vmatpush.msra.mxu1 %v6991_v24  ;;  %2668 = vmatpush.msra.mxu2 %v5744_v58  ;;  %v5760_v24 = vld [vmem:[#allocation2 + $0x30] sm:$0xff] }
 0x72f   :  { %2482 = vmatpush.msra.mxu0 %v5747_v13  ;;  %2466 = vmatpush.msrb.mxu3 %v5750_v47  ;;  %7046 = vst [vmem:[#allocation22_spill] sm:$0xff] %v5760_v24 }
 0x730   :  { %2595 = vmatpush.msra.mxu1 %v6995_v30  ;;  %2669 = vmatpush.msra.mxu2 %v5754_v62  ;;  %v5770_v30 = vld [vmem:[#allocation2 + $0x10] sm:$0xff] }
 0x731   :  { %2483 = vmatpush.msra.mxu0 %v5757_v20  ;;  %2467 = vmatpush.msrb.mxu3 %v5760_v24  ;;  %7049 = vst [vmem:[#allocation13_spill] sm:$0xff] %v5770_v30 }
 0x732   :  { %2596 = vmatpush.msra.mxu1 %v6999_v19  ;;  %2670 = vmatpush.msra.mxu2 %v5764_v11  ;;  %v5780_v19 = vld [vmem:[#allocation2 + $0x80] sm:$0xff] }
 0x733   :  { %2484 = vmatpush.msra.mxu0 %v5767_v35  ;;  %2468 = vmatpush.msrb.mxu3 %v5770_v30  ;;  %7052 = vst [vmem:[#allocation17_spill] sm:$0xff] %v5780_v19 }
 0x734   :  { %2597 = vmatpush.msra.mxu1 %v7003_v15  ;;  %2671 = vmatpush.msra.mxu2 %v5780_v19  ;;  %v5790_v15 = vld [vmem:[#allocation2 + $0x60] sm:$0xff]  ;;  %v5797_v19 = vld [vmem:[#allocation2 + $0x38] sm:$0xff] }
 0x735   :  { %2680 = vmatpush.msra.mxu3 %v5774_v7  ;;  %2485 = vmatpush.msra.mxu0 %v5777_v26  ;;  %7055 = vst [vmem:[#allocation20_spill] sm:$0xff] %v5790_v15  ;;  %v7077_v7 = vld [vmem:[#allocation55_spill] sm:$0xff] }
 0x736   :  { %2598 = vmatpush.msra.mxu1 %v7007_v50  ;;  %2672 = vmatpush.msra.mxu2 %v5790_v15  ;;  %7057 = vst [vmem:[#allocation16_spill] sm:$0xff] %v5797_v19  ;;  %v5800_v50 = vld [vmem:[#allocation2 + $0x40] sm:$0xff]  ;;  %v5807_v15 = vld [vmem:[#allocation2 + $0x18] sm:$0xff] }
 0x737   :  { %2681 = vmatpush.msra.mxu3 %v5784_v38  ;;  %2486 = vmatpush.msra.mxu0 %v5787_v17  ;;  %7058 = vst [vmem:[#allocation28_spill] sm:$0xff] %v5800_v50  ;;  %v5804_v17 = vld [vmem:[#allocation2 + $0x188] sm:$0xff] }
 0x738   :  { %2599 = vmatpush.msra.mxu1 %v7011_v36  ;;  %2673 = vmatpush.msra.mxu2 %v5800_v50  ;;  %7059 = vst [vmem:[#allocation39_spill] sm:$0xff] %v5804_v17  ;;  %v5810_v36 = vld [vmem:[#allocation2 + $0x20] sm:$0xff] }
 0x739   :  { %2682 = vmatpush.msra.mxu3 %v5794_v27  ;;  %2487 = vmatpush.msra.mxu0 %v5797_v19  ;;  %7060 = vst [vmem:[#allocation62_spill] sm:$0xff] %v5807_v15  ;;  %v5814_v19 = vld [vmem:[#allocation2 + $0x168] sm:$0xff]  ;;  %v5817_v50 = vld [vmem:[#allocation2] sm:$0xff] }
 0x73a   :  { %2600 = vmatpush.msra.mxu1 %v7015_v56  ;;  %7061 = vst [vmem:[#allocation18_spill] sm:$0xff] %v5810_v36  ;;  %2674 = vmatpush.msra.mxu2 %v5810_v36  ;;  %v5820_v56 = vld [vmem:[#allocation2 + $0x148] sm:$0xff] }
 0x73b   :  { %2683 = vmatpush.msra.mxu3 %v5804_v17  ;;  %2488 = vmatpush.msra.mxu0 %v5807_v15  ;;  %7062 = vst [vmem:[#allocation25_spill] sm:$0xff] %v5814_v19  ;;  %v5823_v17 = vld [vmem:[#allocation2 + $0x128] sm:$0xff] }
 0x73c   :  { %2601 = vmatpush.msra.mxu1 %v7019_v29  ;;  %7063 = vst [vmem:[#allocation23_spill] sm:$0xff] %v5817_v50  ;;  %2675 = vmatpush.msra.mxu2 %v5817_v50  ;;  %v5826_v15 = vld [vmem:[#allocation2 + $0x108] sm:$0xff] }
 0x73d   :  { %2684 = vmatpush.msra.mxu3 %v5814_v19  ;;  %7064 = vst [vmem:[#allocation49_spill] sm:$0xff] %v5820_v56  ;;  %v5829_v29 = vld [vmem:[#allocation2 + $0xe8] sm:$0xff] }
 0x73e   :  { %7065 = vst [vmem:[#allocation21_spill] sm:$0xff] %v5823_v17  ;;  %v5832_v19 = vld [vmem:[#allocation2 + $0xc8] sm:$0xff] }
 0x73f   :  { %2685 = vmatpush.msra.mxu3 %v5820_v56  ;;  %7066 = vst [vmem:[#allocation63_spill] sm:$0xff] %v5826_v15  ;;  %v5835_v50 = vld [vmem:[#allocation2 + $0xa8] sm:$0xff] }
 0x740   :  { %7067 = vst [vmem:[#allocation64_spill] sm:$0xff] %v5829_v29  ;;  %v5838_v56 = vld [vmem:[#allocation2 + $0x88] sm:$0xff] }
 0x741   :  { %2686 = vmatpush.msra.mxu3 %v5823_v17  ;;  %7068 = vst [vmem:[#allocation65_spill] sm:$0xff] %v5832_v19  ;;  %v5841_v17 = vld [vmem:[#allocation2 + $0x68] sm:$0xff] }
 0x742   :  { %7069 = vst [vmem:[#allocation24_spill] sm:$0xff] %v5835_v50 }
 0x743   :  { %2687 = vmatpush.msra.mxu3 %v5826_v15  ;;  %7070 = vst [vmem:[#allocation43_spill] sm:$0xff] %v5838_v56  ;;  %v5844_v15 = vld [vmem:[#allocation2 + $0x48] sm:$0xff] }
 0x744   :  { %7071 = vst [vmem:[#allocation32_spill] sm:$0xff] %v5841_v17 }
 0x745   :  { %2688 = vmatpush.msra.mxu3 %v5829_v29  ;;  %7072 = vst [vmem:[#allocation9_spill] sm:$0xff] %v5844_v15  ;;  %v5847_v29 = vld [vmem:[#allocation2 + $0x28] sm:$0xff] }
 0x746   :  { %7073 = vst [vmem:[#allocation19_spill] sm:$0xff] %v5847_v29 }
 0x747   :  { %2689 = vmatpush.msra.mxu3 %v5832_v19  ;;  %v5850_v19 = vld [vmem:[#allocation2 + $0x8] sm:$0xff] }
 0x748   :  { %7074 = vst [vmem:[#allocation8_spill] sm:$0xff] %v5850_v19 }
 0x749   :  { %2690 = vmatpush.msra.mxu3 %v5835_v50 }
 0x74b   :  { %2691 = vmatpush.msra.mxu3 %v5838_v56  ;;  %v7075_v56 = vld [vmem:[#allocation30_spill] sm:$0xff] }
 0x74d   :  { %2692 = vmatpush.msra.mxu3 %v5841_v17  ;;  %v1130_v17 = vmul.f32 %v5614_v60, %v7075_v56 }
 0x74f   :  { %2693 = vmatpush.msra.mxu3 %v5844_v15 }
 0x751   :  { %2694 = vmatpush.msra.mxu3 %v5847_v29 }
 0x753   :  { %2695 = vmatpush.msra.mxu3 %v5850_v19 }
 0x754   :  { %v1133_v50 = vpop.permute.xlu1 %1132 }
 0x755   :  { %v1135_v36 = vmul.f32 %v1133_v50, %v5614_v60 }
 0x757   :  { %1137 = vrot.lane.b32.xlu2 %v1135_v36, %s3833_s24 }
 0x7b1   :  { %v1138_v27 = vpop.permute.xlu2 %1137 }
 0x7b2   :  { %v5857_v38 = vadd.f32 %v1138_v27, %v1130_v17 }
 0x7b4   :  { %7076 = vst [vmem:[#allocation50_spill] sm:$0xff] %v5857_v38  ;;  %3395 = vtanh.f32 %v5857_v38 }
 0x7ba   :  { %v3396_v15 = vpop.eup %3395 }
 0x7bb   :  { %1143 = vrot.lane.b32.xlu1 %v3396_v15, %s3833_s24 }
 0x82d   :  { %v1144_v29 = vpop.permute.xlu1 %1143 }
 0x82e   :  { %v1146_v26 = vmul.f32 %v1144_v29, %v5614_v60 }
 0x830   :  { %1335 = vperm.xlu2 %3214, %v1146_v26  }
 0x88a   :  { %v1336_v19 = vpop.permute.xlu2 %1335 }
 0x88b   :  { %v1338_v50 = vmul.f32 %v5603_v10, %v1336_v19 }
 0x88d   :  { %v1357_v36 = vadd.f32 %v7077_v7, %v1338_v50 }
 0x88f   :  { %v1359_v30 = vadd.f32 %v5610_v61, %v1357_v36 }
 0x891   :  { %v3147_v56 = vmul.f32 -1.442695, %v1359_v30 }
 0x893   :  { %3397 = vpow2.f32 %v3147_v56 }
 0x899   :  { %v3398_v17 = vpop.eup %3397 }
 0x89a   :  { %v1363_v27 = vadd.f32 1.0, %v3398_v17 }
 0x89c   :  { %3399 = vrcp.f32 %v1363_v27  ;;  %v1375_v15 = vand.u32 2147483648, %v1363_v27  ;;  %v1373_v60 = vand.u32 2147483647, %v1363_v27  ;;  %vm1369_vm1 = vweird.f32 %v1363_v27 }
 0x89e   :  { %v1376_v19 = vor.u32 1.1754944e-38, %v1375_v15  ;;  %vm1374_vm3 = vcmp.eq.f32.partialorder %v1373_v60, 8.507059e+37 }
 0x8a2   :  { %v3400_v35 = vpop.eup %3399 }
 0x8a3   :  { %v1365_v11 = vmul.f32 %v3400_v35, %v1363_v27  ;;  %vm1370_vm0 = vweird.f32 %v3400_v35 }
 0x8a4   :  { %vm1371_vm2 = vmor %vm1369_vm1, %vm1370_vm0 }
 0x8a5   :  { %v1366_v24 = vsub.f32 1.0, %v1365_v11 }
 0x8a7   :  { %v1367_v20 = vmul.f32 %v3400_v35, %v1366_v24 }
 0x8a9   :  { %v1368_v26 = vadd.f32 %v3400_v35, %v1367_v20 }
 0x8ab   :  { %v1372_v29 = vsel %vm1371_vm2, %v3400_v35, %v1368_v26  ;;  %v7079_v26 = vld [vmem:[#allocation31_spill] sm:$0xff] }
 0x8ac   :  { %v1377_v7 = vsel %vm1374_vm3, %v1376_v19, %v1372_v29 }
 0x8ad   :  { %v1379_v50 = vmul.f32 2.0, %v1377_v7  ;;  %v1381_v11 = vmul.f32 %v1377_v7, %v5857_v38 }
 0x8af   :  { %v3148_v30 = vadd.f32 -1.0, %v1379_v50 }
 0x8b1   :  { %1383 = vrot.lane.b32.xlu1 %v3148_v30, %s3831_s23 }
 0x923   :  { %v1384_v56 = vpop.permute.xlu1 %1383 }
 0x924   :  { %v1386_v36 = vmul.f32 %v1384_v56, %v1377_v7 }
 0x926   :  { %1388 = vrot.lane.b32.xlu2 %v1386_v36, %s3833_s24 }
 0x980   :  { %v1389_v24 = vpop.permute.xlu2 %1388 }
 0x981   :  { %v5868_v17 = vadd.f32 %v1389_v24, %v1381_v11 }
 0x983   :  { %7078 = vst [vmem:[#allocation36_spill] sm:$0xff] %v5868_v17  ;;  %3401 = vtanh.f32 %v5868_v17 }
 0x989   :  { %v3402_v20 = vpop.eup %3401 }
 0x98a   :  { %1394 = vrot.lane.b32.xlu1 %v3402_v20, %s3833_s24 }
 0x9fc   :  { %v1395_v35 = vpop.permute.xlu1 %1394 }
 0x9fd   :  { %v1397_v27 = vmul.f32 %v1395_v35, %v1377_v7 }
 0x9ff   :  { %1586 = vperm.xlu2 %3214, %v1397_v27  }
 0xa59   :  { %v1587_v15 = vpop.permute.xlu2 %1586 }
 0xa5a   :  { %v1589_v60 = vmul.f32 %v5603_v10, %v1587_v15 }
 0xa5c   :  { %v1608_v19 = vadd.f32 %v7079_v26, %v1589_v60 }
 0xa5e   :  { %v1610_v29 = vadd.f32 %v5610_v61, %v1608_v19 }
 0xa60   :  { %v3154_v50 = vmul.f32 -1.442695, %v1610_v29 }
 0xa62   :  { %3403 = vpow2.f32 %v3154_v50 }
 0xa68   :  { %v3404_v30 = vpop.eup %3403 }
 0xa69   :  { %v1614_v56 = vadd.f32 1.0, %v3404_v30 }
 0xa6b   :  { %3405 = vrcp.f32 %v1614_v56  ;;  %v1626_v38 = vand.u32 2147483648, %v1614_v56  ;;  %v1624_v7 = vand.u32 2147483647, %v1614_v56  ;;  %vm1620_vm5 = vweird.f32 %v1614_v56 }
 0xa6d   :  { %v1627_v27 = vor.u32 1.1754944e-38, %v1626_v38  ;;  %vm1625_vm7 = vcmp.eq.f32.partialorder %v1624_v7, 8.507059e+37 }
 0xa71   :  { %v3406_v36 = vpop.eup %3405 }
 0xa72   :  { %v1616_v11 = vmul.f32 %v3406_v36, %v1614_v56  ;;  %vm1621_vm4 = vweird.f32 %v3406_v36 }
 0xa73   :  { %vm1622_vm6 = vmor %vm1620_vm5, %vm1621_vm4 }
 0xa74   :  { %v1617_v24 = vsub.f32 1.0, %v1616_v11 }
 0xa76   :  { %v1618_v20 = vmul.f32 %v3406_v36, %v1617_v24 }
 0xa78   :  { %v1619_v35 = vadd.f32 %v3406_v36, %v1618_v20 }
 0xa7a   :  { %v1623_v15 = vsel %vm1622_vm6, %v3406_v36, %v1619_v35 }
 0xa7b   :  { %v1628_v60 = vsel %vm1625_vm7, %v1627_v27, %v1623_v15 }
 0xa7c   :  { %v1630_v26 = vmul.f32 2.0, %v1628_v60  ;;  %v1632_v30 = vmul.f32 %v1628_v60, %v5868_v17 }
 0xa7e   :  { %v3155_v19 = vadd.f32 -1.0, %v1630_v26 }
 0xa80   :  { %1634 = vrot.lane.b32.xlu1 %v3155_v19, %s3831_s23 }
 0xaf2   :  { %v1635_v29 = vpop.permute.xlu1 %1634 }
 0xaf3   :  { %v1637_v50 = vmul.f32 %v1635_v29, %v1628_v60 }
 0xaf5   :  { %1639 = vrot.lane.b32.xlu2 %v1637_v50, %s3833_s24 }
 0xb4f   :  { %v1640_v11 = vpop.permute.xlu2 %1639 }
 0xb50   :  { %v5878_v24 = vadd.f32 %v1640_v11, %v1632_v30 }
 0xb52   :  { %7080 = vst [vmem:[#allocation27_spill] sm:$0xff] %v5878_v24  ;;  %3407 = vtanh.f32 %v5878_v24 }
 0xb58   :  { %v3408_v56 = vpop.eup %3407 }
 0xb59   :  { %1645 = vrot.lane.b32.xlu1 %v3408_v56, %s3833_s24 }
 0xbcb   :  { %v1646_v38 = vpop.permute.xlu1 %1645 }
 0xbcc   :  { %v1648_v36 = vmul.f32 %v1646_v38, %v1628_v60 }
 0xbce   :  { %1837 = vperm.xlu2 %3214, %v1648_v36  }
 0xc28   :  { %v1838_v20 = vpop.permute.xlu2 %1837 }
 0xc29   :  { %v1840_v7 = vmul.f32 %v5603_v10, %v1838_v20 }
 0xc2b   :  { %v1859_v35 = vadd.f32 %v5618_v22, %v1840_v7 }
 0xc2d   :  { %v1861_v27 = vadd.f32 %v5610_v61, %v1859_v35 }
 0xc2f   :  { %v3161_v15 = vmul.f32 -1.442695, %v1861_v27 }
 0xc31   :  { %3409 = vpow2.f32 %v3161_v15 }
 0xc37   :  { %v3410_v26 = vpop.eup %3409 }
 0xc38   :  { %v1865_v19 = vadd.f32 1.0, %v3410_v26 }
 0xc3a   :  { %3411 = vrcp.f32 %v1865_v19  ;;  %v1877_v11 = vand.u32 2147483648, %v1865_v19  ;;  %v1875_v60 = vand.u32 2147483647, %v1865_v19  ;;  %vm1871_vm9 = vweird.f32 %v1865_v19 }
 0xc3c   :  { %v1878_v36 = vor.u32 1.1754944e-38, %v1877_v11  ;;  %vm1876_vm11 = vcmp.eq.f32.partialorder %v1875_v60, 8.507059e+37 }
 0xc40   :  { %v3412_v29 = vpop.eup %3411 }
 0xc41   :  { %v1867_v50 = vmul.f32 %v3412_v29, %v1865_v19  ;;  %vm1872_vm8 = vweird.f32 %v3412_v29 }
 0xc42   :  { %vm1873_vm10 = vmor %vm1871_vm9, %vm1872_vm8 }
 0xc43   :  { %v1868_v30 = vsub.f32 1.0, %v1867_v50 }
 0xc45   :  { %v1869_v56 = vmul.f32 %v3412_v29, %v1868_v30 }
 0xc47   :  { %v1870_v38 = vadd.f32 %v3412_v29, %v1869_v56  ;;  %v7082_v56 = vmov 1  }
 0xc49   :  { %v1874_v20 = vsel %vm1873_vm10, %v3412_v29, %v1870_v38 }
 0xc4a   :  { %v1879_v22 = vsel %vm1876_vm11, %v1878_v36, %v1874_v20  ;;  %v2109_v36 = vpop.f32.mrf.mxu3 }
 0xc4b   :  { %v1881_v7 = vmul.f32 2.0, %v1879_v22  ;;  %v1883_v26 = vmul.f32 %v1879_v22, %v5878_v24 }
 0xc4d   :  { %v3162_v35 = vadd.f32 -1.0, %v1881_v7 }
 0xc4f   :  { %1885 = vrot.lane.b32.xlu1 %v3162_v35, %s3831_s23 }
 0xcc1   :  { %v1886_v27 = vpop.permute.xlu1 %1885 }
 0xcc2   :  { %v1888_v15 = vmul.f32 %v1886_v27, %v1879_v22 }
 0xcc4   :  { %1890 = vrot.lane.b32.xlu2 %v1888_v15, %s3833_s24 }
 0xd1e   :  { %v1891_v50 = vpop.permute.xlu2 %1890 }
 0xd1f   :  { %v5888_v30 = vadd.f32 %v1891_v50, %v1883_v26 }
 0xd21   :  { %7081 = vst [vmem:[#allocation26_spill] sm:$0xff] %v5888_v30  ;;  %3413 = vtanh.f32 %v5888_v30 }
 0xd27   :  { %v3414_v19 = vpop.eup %3413 }
 0xd28   :  { %1896 = vrot.lane.b32.xlu1 %v3414_v19, %s3833_s24 }
 0xd9a   :  { %v1897_v29 = vpop.permute.xlu1 %1896 }
 0xd9b   :  { %v1899_v11 = vmul.f32 %v1897_v29, %v1879_v22 }
 0xd9d   :  { %2088 = vperm.xlu2 %3214, %v1899_v11  }
 0xda5   :  { %3221 = vset.pattern.permute.xlu2 %v7082_v56 }
 0xdf7   :  { %v2089_v60 = vpop.permute.xlu2 %2088 }
 0xdf8   :  { %v2091_v38 = vmul.f32 %v5603_v10, %v2089_v60 }
 0xdfa   :  { %v2110_v20 = vadd.f32 %v2109_v36, %v2091_v38 }
 0xdfc   :  { %v2112_v7 = vadd.f32 %v5610_v61, %v2110_v20 }
 0xdfe   :  { %v3168_v35 = vmul.f32 -1.442695, %v2112_v7 }
 0xe00   :  { %3415 = vpow2.f32 %v3168_v35 }
 0xe06   :  { %v3416_v27 = vpop.eup %3415 }
 0xe07   :  { %v2116_v15 = vadd.f32 1.0, %v3416_v27 }
 0xe09   :  { %3417 = vrcp.f32 %v2116_v15  ;;  %v2128_v24 = vand.u32 2147483648, %v2116_v15  ;;  %v2126_v29 = vand.u32 2147483647, %v2116_v15  ;;  %vm2122_vm13 = vweird.f32 %v2116_v15 }
 0xe0b   :  { %v2129_v10 = vor.u32 1.1754944e-38, %v2128_v24  ;;  %vm2127_vm15 = vcmp.eq.f32.partialorder %v2126_v29, 8.507059e+37 }
 0xe0f   :  { %v3418_v26 = vpop.eup %3417 }
 0xe10   :  { %v2118_v50 = vmul.f32 %v3418_v26, %v2116_v15  ;;  %vm2123_vm12 = vweird.f32 %v3418_v26 }
 0xe11   :  { %vm2124_vm14 = vmor %vm2122_vm13, %vm2123_vm12 }
 0xe12   :  { %v2119_v19 = vsub.f32 1.0, %v2118_v50 }
 0xe14   :  { %v2120_v22 = vmul.f32 %v3418_v26, %v2119_v19 }
 0xe16   :  { %v2121_v11 = vadd.f32 %v3418_v26, %v2120_v22 }
 0xe18   :  { %v2125_v60 = vsel %vm2124_vm14, %v3418_v26, %v2121_v11  ;;  %v2183_v11 = vpop.f32.mrf.mxu0 }
 0xe19   :  { %v5895_v38 = vsel %vm2127_vm15, %v2129_v10, %v2125_v60  ;;  %v2203_v10 = vpop.f32.mrf.mxu1 }
 0xe1a   :  { %v2132_v61 = vmul.f32 2.0, %v5895_v38  ;;  %v2134_v35 = vmul.f32 %v5895_v38, %v5888_v30 }
 0xe1c   :  { %v3169_v36 = vadd.f32 -1.0, %v2132_v61 }
 0xe1e   :  { %2136 = vrot.lane.b32.xlu0 %v3169_v36, %s3831_s23 }
 0xe90   :  { %v2137_v20 = vpop.permute.xlu0 %2136 }
 0xe91   :  { %v2139_v7 = vmul.f32 %v2137_v20, %v5895_v38  ;;  %v2223_v20 = vpop.f32.mrf.mxu2 }
 0xe93   :  { %2141 = vrot.lane.b32.xlu1 %v2139_v7, %s3833_s24  ;;  %v2243_v7 = vpop.f32.mrf.mxu3 }
 0xf05   :  { %v2142_v27 = vpop.permute.xlu1 %2141 }
 0xf06   :  { %v5903_v15 = vadd.f32 %v2142_v27, %v2134_v35 }
 0xf08   :  { %7083 = vst [vmem:[#allocation51_spill] sm:$0xff] %v5903_v15  ;;  %3419 = vtanh.f32 %v5903_v15  ;;  %2154 = vperm.xlu2 %3221, %v5903_v15  }
 0xf0e   :  { %v3420_v24 = vpop.eup %3419 }
 0xf0f   :  { %2147 = vrot.lane.b32.xlu0 %v3420_v24, %s3833_s24 }
 0xf10   :  { %3225 = vset.pattern.permute.xlu2 %v6986_v33 }
 0xf62   :  { %v5909_v26 = vpop.permute.xlu2 %2154 }
 0xf63   :  { %7084 = vst [vmem:[#allocation66_spill] sm:$0xff] %v5909_v26  ;;  %v2158_v50 = vmul.f32 %v5909_v26, %v7038_v25  ;;  %v2159_v19 = vmul.f32 %v5909_v26, %v7034_v57  ;;  %v2160_v22 = vmul.f32 %v5909_v26, %v7035_v48  ;;  %v2161_v29 = vmul.f32 %v5909_v26, %v7039_v28 }
 0xf65   :  { %v2162_v60 = vadd.f32 %v2158_v50, %v7040_v44  ;;  %v2163_v33 = vadd.f32 %v2159_v19, %v7036_v21  ;;  %v2164_v61 = vadd.f32 %v2160_v22, %v7037_v9  ;;  %v2165_v36 = vadd.f32 %v2161_v29, %v7041_v41 }
 0xf67   :  { %v2246_v35 = vadd.f32 %v2183_v11, %v2162_v60  ;;  %v2247_v27 = vadd.f32 %v2203_v10, %v2163_v33  ;;  %v2248_v24 = vadd.f32 %v2223_v20, %v2164_v61  ;;  %v2249_v17 = vadd.f32 %v2243_v7, %v2165_v36 }
 0xf69   :  { %v3170_v30 = vmul.f32 -1.442695, %v2246_v35  ;;  %v3171_v48 = vmul.f32 -1.442695, %v2247_v27  ;;  %v3172_v57 = vmul.f32 -1.442695, %v2248_v24 }
 0xf6a   :  { %v3173_v26 = vmul.f32 -1.442695, %v2249_v17 }
 0xf6b   :  { %3421 = vpow2.f32 %v3170_v30 }
 0xf6c   :  { %3423 = vpow2.f32 %v3171_v48 }
 0xf6d   :  { %3425 = vpow2.f32 %v3172_v57 }
 0xf6e   :  { %3427 = vpow2.f32 %v3173_v26 }
 0xf71   :  { %v3422_v50 = vpop.eup %3421 }
 0xf72   :  { %v3424_v19 = vpop.eup %3423  ;;  %v2262_v21 = vadd.f32 1.0, %v3422_v50 }
 0xf73   :  { %v3426_v22 = vpop.eup %3425  ;;  %v2263_v9 = vadd.f32 1.0, %v3424_v19 }
 0xf74   :  { %v3428_v29 = vpop.eup %3427  ;;  %3429 = vrcp.f32 %v2262_v21  ;;  %v5923_v11 = vadd.f32 1.0, %v3426_v22  ;;  %vm2271_vm6 = vweird.f32 %v2262_v21 }
 0xf75   :  { %v2265_v41 = vadd.f32 1.0, %v3428_v29  ;;  %3431 = vrcp.f32 %v2263_v9  ;;  %vm2286_vm2 = vweird.f32 %v2263_v9  ;;  %v2290_v29 = vand.u32 2147483647, %v2263_v9 }
 0xf76   :  { %v2292_v44 = vand.u32 2147483648, %v2263_v9  ;;  %vm2301_vm13 = vweird.f32 %v5923_v11 }
 0xf77   :  { %3433 = vrcp.f32 %v2265_v41  ;;  %v2320_v27 = vand.u32 2147483647, %v2265_v41  ;;  %v2322_v24 = vand.u32 2147483648, %v2265_v41  ;;  %vm2316_vm5 = vweird.f32 %v2265_v41 }
 0xf78   :  { %3435 = vrcp.f32 %v5923_v11  ;;  %vm2291_vm10 = vcmp.eq.f32.partialorder %v2290_v29, 8.507059e+37  ;;  %v7108_v29 = vld [vmem:[#allocation21_spill] sm:$0xff] }
 0xf79   :  { %vm2321_vm8 = vcmp.eq.f32.partialorder %v2320_v27, 8.507059e+37  ;;  %v7106_v27 = vld [vmem:[#allocation23_spill] sm:$0xff] }
 0xf7a   :  { %v3430_v10 = vpop.eup %3429 }
 0xf7b   :  { %v3432_v17 = vpop.eup %3431  ;;  %v2267_v30 = vmul.f32 %v3430_v10, %v2262_v21  ;;  %vm2272_vm3 = vweird.f32 %v3430_v10 }
 0xf7c   :  { %v2282_v48 = vmul.f32 %v3432_v17, %v2263_v9  ;;  %vm2287_vm0 = vweird.f32 %v3432_v17  ;;  %vm2273_vm9 = vmor %vm2271_vm6, %vm2272_vm3 }
 0xf7d   :  { %v3434_v57 = vpop.eup %3433  ;;  %v2268_v26 = vsub.f32 1.0, %v2267_v30  ;;  %vm5931_vm4 = vmor %vm2286_vm2, %vm2287_vm0 }
 0xf7e   :  { %v2283_v60 = vsub.f32 1.0, %v2282_v48  ;;  %v2312_v33 = vmul.f32 %v3434_v57, %v2265_v41  ;;  %v5926_v61 = vpop.eup %3435  ;;  %vm2317_vm1 = vweird.f32 %v3434_v57 }
 0xf7f   :  { %v2269_v36 = vmul.f32 %v3430_v10, %v2268_v26  ;;  %v2297_v30 = vmul.f32 %v5926_v61, %v5923_v11  ;;  %vm2318_vm7 = vmor %vm2316_vm5, %vm2317_vm1  ;;  %vm2302_vm12 = vweird.f32 %v5926_v61 }
 0xf80   :  { %v2284_v20 = vmul.f32 %v3432_v17, %v2283_v60  ;;  %v2313_v7 = vsub.f32 1.0, %v2312_v33  ;;  %v2323_v33 = vor.u32 1.1754944e-38, %v2322_v24  ;;  %vm2303_vm14 = vmor %vm2301_vm13, %vm2302_vm12 }
 0xf81   :  { %v2148_v35 = vpop.permute.xlu0 %2147  ;;  %v2270_v48 = vadd.f32 %v3430_v10, %v2269_v36 }
 0xf82   :  { %v2150_v50 = vmul.f32 %v2148_v35, %v5895_v38  ;;  %v2285_v19 = vadd.f32 %v3432_v17, %v2284_v20  ;;  %v2314_v22 = vmul.f32 %v3434_v57, %v2313_v7  ;;  %v2277_v38 = vand.u32 2147483648, %v2262_v21 }
 0xf83   :  { %v2275_v20 = vand.u32 2147483647, %v2262_v21  ;;  %v2293_v35 = vor.u32 1.1754944e-38, %v2292_v44  ;;  %v2274_v28 = vsel %vm2273_vm9, %v3430_v10, %v2270_v48  ;;  %v7110_v48 = vld [vmem:[#allocation64_spill] sm:$0xff] }
 0xf84   :  { %2335 = vperm.xlu1 %3215, %v2150_v50   ;;  %v2315_v60 = vadd.f32 %v3434_v57, %v2314_v22  ;;  %v2289_v9 = vsel %vm5931_vm4, %v3432_v17, %v2285_v19  ;;  %v2298_v50 = vsub.f32 1.0, %v2297_v30  ;;  %v2278_v15 = vor.u32 1.1754944e-38, %v2277_v38  ;;  %v7107_v19 = vld [vmem:[#allocation49_spill] sm:$0xff]  ;;  %v7109_v30 = vld [vmem:[#allocation63_spill] sm:$0xff]  ;;  %v7112_v38 = vld [vmem:[#allocation24_spill] sm:$0xff] }
 0xf85   :  { %v2294_v22 = vsel %vm2291_vm10, %v2293_v35, %v2289_v9  ;;  %vm2276_vm11 = vcmp.eq.f32.partialorder %v2275_v20, 8.507059e+37  ;;  %v7114_v20 = vld [vmem:[#allocation32_spill] sm:$0xff]  ;;  %v7115_v9 = vld [vmem:[#allocation9_spill] sm:$0xff] }
 0xf86   :  { %v2319_v7 = vsel %vm2318_vm7, %v3434_v57, %v2315_v60  ;;  %v2279_v62 = vsel %vm2276_vm11, %v2278_v15, %v2274_v28  ;;  %v2299_v24 = vmul.f32 %v5926_v61, %v2298_v50  ;;  %v2328_v21 = vmul.f32 %v2294_v22, %v5638_v1  ;;  %v7111_v60 = vld [vmem:[#allocation65_spill] sm:$0xff]  ;;  %v7117_v35 = vld [vmem:[#allocation8_spill] sm:$0xff]  ;;  %v6113_v50 = vld [vmem:[%s6281_s5] ss:$0 sm:$0xff]  ;;  %s3839_s5 = smov [#allocation5]  }
 0xf87   :  { %v2324_v36 = vsel %vm2321_vm8, %v2323_v33, %v2319_v7  ;;  %v2305_v28 = vand.u32 2147483647, %v5923_v11  ;;  %v7113_v33 = vld [vmem:[#allocation43_spill] sm:$0xff] }
 0xf88   :  { %v2326_v25 = vmul.f32 2.0, %v2324_v36  ;;  %v2300_v44 = vadd.f32 %v5926_v61, %v2299_v24  ;;  %v7116_v7 = vld [vmem:[#allocation19_spill] sm:$0xff] }
 0xf89   :  { %vm2306_vm15 = vcmp.eq.f32.partialorder %v2305_v28, 8.507059e+37 }
 0xf8a   :  { %v3174_v41 = vadd.f32 -1.0, %v2326_v25  ;;  %v2307_v25 = vand.u32 2147483648, %v5923_v11  ;;  %v2304_v1 = vsel %vm2303_vm14, %v5926_v61, %v2300_v44  ;;  %v7105_v11 = vld [vmem:[#allocation25_spill] sm:$0xff]  ;;  %v6095_v61 = vld [vmem:[%s6280_s4] sm:$0xff] }
 0xf8c   :  { %v2329_v26 = vmul.f32 %v3174_v41, %v2279_v62  ;;  %3222 = vset.pattern.permute.xlu1 %v7082_v56  ;;  %v2308_v62 = vor.u32 1.1754944e-38, %v2307_v25 }
 0xf8e   :  { %v5940_v17 = vadd.f32 %v2329_v26, %v2328_v21  ;;  %v2309_v10 = vsel %vm2306_vm15, %v2308_v62, %v2304_v1  ;;  %v6119_v21 = vld [vmem:[%s6282_s6] ss:$0 sm:$0xff]  ;;  %s3102_s6 = sshll.u32 %s3839_s5, 4  ;;  %s3103_s6 = int_to_ptr.vmem [resolvable:$true] %s3102_s6 }
 0xf90   :  { %3437 = vtanh.f32 %v5940_v17  ;;  %2355 = vmatmul.f32.vlgmr.msrb.gmra.mxu0 %v5940_v17 }
 0xf91   :  { %2700 = vmatpush.msrb.mxu0 %v5645_v49  ;;  %v5959_v49 = vld [vmem:[%s6280_s4 + $0x78] sm:$0xff] }
 0xf93   :  { %2701 = vmatpush.msrb.mxu0 %v5648_v32  ;;  %v5968_v32 = vld [vmem:[%s6280_s4 + $0x70] sm:$0xff] }
 0xf95   :  { %2702 = vmatpush.msrb.mxu0 %v5651_v40  ;;  %v5977_v40 = vld [vmem:[%s6280_s4 + $0x68] sm:$0xff] }
 0xf96   :  { %v3438_v15 = vpop.eup %3437 }
 0xf97   :  { %v2332_v57 = vmul.f32 %v3438_v15, %v2309_v10  ;;  %2703 = vmatpush.msrb.mxu0 %v5654_v23  ;;  %v5986_v23 = vld [vmem:[%s6280_s4 + $0x60] sm:$0xff] }
 0xf99   :  { %2429 = vmatmul.f32.vlgmr.msrb.gmra.mxu1 %v2332_v57  ;;  %2449 = vmatmul.f32.vlgmr.msrb.gmra.mxu2 %v2332_v57 }
 0xf9a   :  { %2469 = vmatmul.f32.vlgmr.msrb.gmra.mxu3 %v2332_v57  ;;  %2489 = vmatmul.f32.vlgmr.msra.gmra.mxu0 %v2332_v57 }
 0xf9b   :  { %2720 = vmatpush.msrb.mxu1 %v5657_v5  ;;  %2704 = vmatpush.msrb.mxu0 %v5660_v31  ;;  %v5995_v5 = vld [vmem:[%s6280_s4 + $0x58] sm:$0xff]  ;;  %v6004_v31 = vld [vmem:[%s6280_s4 + $0x50] sm:$0xff] }
 0xf9c   :  { %2833 = vmatpush.msrb.mxu2 %v5959_v49  ;;  %2905 = vmatpush.msrb.mxu3 %v5664_v3  ;;  %v6013_v3 = vld [vmem:[%s6280_s4 + $0x48] sm:$0xff] }
 0xf9d   :  { %2721 = vmatpush.msrb.mxu1 %v5667_v63  ;;  %2705 = vmatpush.msrb.mxu0 %v5670_v54  ;;  %v6022_v63 = vld [vmem:[%s6280_s4 + $0x40] sm:$0xff]  ;;  %v6031_v54 = vld [vmem:[%s6280_s4 + $0x38] sm:$0xff] }
 0xf9e   :  { %2834 = vmatpush.msrb.mxu2 %v5968_v32  ;;  %2906 = vmatpush.msrb.mxu3 %v5674_v59  ;;  %v6040_v59 = vld [vmem:[%s6280_s4 + $0x30] sm:$0xff] }
 0xf9f   :  { %2722 = vmatpush.msrb.mxu1 %v5677_v14  ;;  %2706 = vmatpush.msrb.mxu0 %v5680_v43  ;;  %v7087_v14 = vld [vmem:[#allocation12_spill] sm:$0xff]  ;;  %v7088_v43 = vld [vmem:[#allocation41_spill] sm:$0xff] }
 0xfa0   :  { %2835 = vmatpush.msrb.mxu2 %v5977_v40  ;;  %2907 = vmatpush.msrb.mxu3 %v5684_v46  ;;  %v7089_v46 = vld [vmem:[#allocation22_spill] sm:$0xff] }
 0xfa1   :  { %2723 = vmatpush.msrb.mxu1 %v5687_v39  ;;  %2707 = vmatpush.msrb.mxu0 %v5690_v12  ;;  %v6049_v39 = vld [vmem:[%s6280_s4 + $0x28] sm:$0xff]  ;;  %v7090_v12 = vld [vmem:[#allocation46_spill] sm:$0xff] }
 0xfa2   :  { %2836 = vmatpush.msrb.mxu2 %v5986_v23  ;;  %2908 = vmatpush.msrb.mxu3 %v5694_v42  ;;  %v7091_v42 = vld [vmem:[#allocation38_spill] sm:$0xff] }
 0xfa3   :  { %2724 = vmatpush.msrb.mxu1 %v5697_v51  ;;  %2708 = vmatpush.msrb.mxu0 %v5700_v55  ;;  %v7092_v51 = vld [vmem:[#allocation13_spill] sm:$0xff]  ;;  %v7093_v55 = vld [vmem:[#allocation47_spill] sm:$0xff] }
 0xfa4   :  { %2837 = vmatpush.msrb.mxu2 %v5995_v5  ;;  %2909 = vmatpush.msrb.mxu3 %v5704_v37  ;;  %v6059_v37 = vld [vmem:[%s6280_s4 + $0x20] sm:$0xff] }
 0xfa5   :  { %2725 = vmatpush.msrb.mxu1 %v5707_v0  ;;  %2709 = vmatpush.msrb.mxu0 %v5710_v2  ;;  %v7094_v0 = vld [vmem:[#allocation42_spill] sm:$0xff]  ;;  %v7095_v2 = vld [vmem:[#allocation17_spill] sm:$0xff] }
 0xfa6   :  { %2838 = vmatpush.msrb.mxu2 %v6004_v31  ;;  %2910 = vmatpush.msrb.mxu3 %v5714_v6  ;;  %v7096_v6 = vld [vmem:[#allocation14_spill] sm:$0xff] }
 0xfa7   :  { %2726 = vmatpush.msrb.mxu1 %v5717_v8  ;;  %2710 = vmatpush.msrb.mxu0 %v5720_v45  ;;  %v6068_v8 = vld [vmem:[%s6280_s4 + $0x18] sm:$0xff]  ;;  %v7097_v45 = vld [vmem:[#allocation48_spill] sm:$0xff] }
 0xfa8   :  { %2839 = vmatpush.msrb.mxu2 %v6013_v3  ;;  %2911 = vmatpush.msrb.mxu3 %v5724_v16  ;;  %v7098_v16 = vld [vmem:[#allocation20_spill] sm:$0xff] }
 0xfa9   :  { %2727 = vmatpush.msrb.mxu1 %v5727_v53  ;;  %2711 = vmatpush.msrb.mxu0 %v5730_v18  ;;  %v7099_v53 = vld [vmem:[#allocation35_spill] sm:$0xff]  ;;  %v6077_v18 = vld [vmem:[%s6280_s4 + $0x10] sm:$0xff] }
 0xfaa   :  { %2840 = vmatpush.msrb.mxu2 %v6022_v63  ;;  %2912 = vmatpush.msrb.mxu3 %v5734_v52  ;;  %v7100_v52 = vld [vmem:[#allocation16_spill] sm:$0xff] }
 0xfab   :  { %2728 = vmatpush.msrb.mxu1 %v5737_v4  ;;  %2712 = vmatpush.msrb.mxu0 %v5740_v34  ;;  %v7101_v4 = vld [vmem:[#allocation28_spill] sm:$0xff]  ;;  %v7102_v34 = vld [vmem:[#allocation39_spill] sm:$0xff] }
 0xfac   :  { %2841 = vmatpush.msrb.mxu2 %v6031_v54  ;;  %2913 = vmatpush.msrb.mxu3 %v5744_v58  ;;  %v6086_v58 = vld [vmem:[%s6280_s4 + $0x8] sm:$0xff] }
 0xfad   :  { %2729 = vmatpush.msrb.mxu1 %v5747_v13  ;;  %2713 = vmatpush.msrb.mxu0 %v5750_v47  ;;  %v7103_v13 = vld [vmem:[#allocation62_spill] sm:$0xff] }
 0xfae   :  { %2842 = vmatpush.msrb.mxu2 %v6040_v59  ;;  %2914 = vmatpush.msrb.mxu3 %v7087_v14  ;;  %v7104_v47 = vld [vmem:[#allocation18_spill] sm:$0xff] }
 0xfaf   :  { %2730 = vmatpush.msrb.mxu1 %v7088_v43  ;;  %2714 = vmatpush.msrb.mxu0 %v7089_v46 }
 0xfb0   :  { %2843 = vmatpush.msrb.mxu2 %v6049_v39  ;;  %2915 = vmatpush.msrb.mxu3 %v7090_v12 }
 0xfb1   :  { %2731 = vmatpush.msrb.mxu1 %v7091_v42  ;;  %2715 = vmatpush.msrb.mxu0 %v7092_v51 }
 0xfb2   :  { %2844 = vmatpush.msrb.mxu2 %v6059_v37  ;;  %2916 = vmatpush.msrb.mxu3 %v7095_v2 }
 0xfb3   :  { %2925 = vmatpush.msra.mxu0 %v7093_v55  ;;  %2732 = vmatpush.msrb.mxu1 %v7094_v0 }
 0xfb4   :  { %2845 = vmatpush.msrb.mxu2 %v6068_v8  ;;  %2917 = vmatpush.msrb.mxu3 %v7098_v16 }
 0xfb5   :  { %2926 = vmatpush.msra.mxu0 %v7096_v6  ;;  %2733 = vmatpush.msrb.mxu1 %v7097_v45  ;;  %v7118_v6 = vld [vmem:[#allocation51_spill] sm:$0xff] }
 0xfb6   :  { %2846 = vmatpush.msrb.mxu2 %v6077_v18  ;;  %2918 = vmatpush.msrb.mxu3 %v7101_v4 }
 0xfb7   :  { %2927 = vmatpush.msra.mxu0 %v7099_v53  ;;  %2734 = vmatpush.msrb.mxu1 %v7100_v52 }
 0xfb8   :  { %2847 = vmatpush.msrb.mxu2 %v6086_v58  ;;  %2919 = vmatpush.msrb.mxu3 %v7104_v47  ;;  %v7119_v47 = vld [vmem:[#allocation52_spill] sm:$0xff] }
 0xfb9   :  { %2928 = vmatpush.msra.mxu0 %v7102_v34  ;;  %2735 = vmatpush.msrb.mxu1 %v7103_v13 }
 0xfba   :  { %2848 = vmatpush.msrb.mxu2 %v6095_v61  ;;  %2920 = vmatpush.msrb.mxu3 %v7106_v27  ;;  %v7120_v27 = vld [vmem:[#allocation53_spill] sm:$0xff] }
 0xfbb   :  { %2929 = vmatpush.msra.mxu0 %v7105_v11 }
 0xfbd   :  { %2930 = vmatpush.msra.mxu0 %v7107_v19 }
 0xfbf   :  { %2931 = vmatpush.msra.mxu0 %v7108_v29  ;;  %v7121_v29 = vld [vmem:[#allocation58_spill] sm:$0xff] }
 0xfc1   :  { %2932 = vmatpush.msra.mxu0 %v7109_v30 }
 0xfc3   :  { %2933 = vmatpush.msra.mxu0 %v7110_v48  ;;  %v7122_v48 = vld [vmem:[#allocation59_spill] sm:$0xff] }
 0xfc5   :  { %2934 = vmatpush.msra.mxu0 %v7111_v60 }
 0xfc7   :  { %2935 = vmatpush.msra.mxu0 %v7112_v38 }
 0xfc9   :  { %2936 = vmatpush.msra.mxu0 %v7113_v33 }
 0xfcb   :  { %2937 = vmatpush.msra.mxu0 %v7114_v20  ;;  %v7123_v20 = vld [vmem:[#allocation56_spill] sm:$0xff] }
 0xfcd   :  { %2938 = vmatpush.msra.mxu0 %v7115_v9 }
 0xfcf   :  { %2939 = vmatpush.msra.mxu0 %v7116_v7  ;;  %v7124_v7 = vld [vmem:[#allocation57_spill] sm:$0xff] }
 0xfd1   :  { %2940 = vmatpush.msra.mxu0 %v7117_v35 }
 0xff6   :  { %v2336_v36 = vpop.permute.xlu1 %2335 }
 0xff7   :  { %v2338_v22 = vmul.f32 %v6113_v50, %v2336_v36  ;;  %v7125_v36 = vld [vmem:[#allocation60_spill] sm:$0xff] }
0x100d   :  { %v2356_v41 = vpop.f32.mrf.mxu0 }
0x100e   :  { %v2357_v24 = vadd.f32 %v2356_v41, %v2338_v22  ;;  %v7126_v41 = vld [vmem:[#allocation61_spill] sm:$0xff] }
0x1010   :  { %v2359_v26 = vadd.f32 %v6119_v21, %v2357_v24 }
0x1012   :  { %v3175_v44 = vmul.f32 -1.442695, %v2359_v26 }
0x1014   :  { %3439 = vpow2.f32 %v3175_v44 }
0x1016   :  { %v2430_v38 = vpop.f32.mrf.mxu1 }
0x1017   :  { %v2490_v33 = vpop.f32.mrf.mxu0 }
0x101a   :  { %v3440_v25 = vpop.eup %3439 }
0x101b   :  { %v2363_v28 = vadd.f32 1.0, %v3440_v25 }
0x101c   :  { %v2450_v26 = vpop.f32.mrf.mxu2 }
0x101d   :  { %3441 = vrcp.f32 %v2363_v28  ;;  %v2375_v10 = vand.u32 2147483648, %v2363_v28  ;;  %v2373_v14 = vand.u32 2147483647, %v2363_v28  ;;  %vm2369_vm1 = vweird.f32 %v2363_v28  ;;  %v2470_v44 = vpop.f32.mrf.mxu3 }
0x101f   :  { %v2376_v46 = vor.u32 1.1754944e-38, %v2375_v10  ;;  %vm2374_vm3 = vcmp.eq.f32.partialorder %v2373_v14, 8.507059e+37 }
0x1023   :  { %v3442_v1 = vpop.eup %3441 }
0x1024   :  { %v2365_v62 = vmul.f32 %v3442_v1, %v2363_v28  ;;  %vm2370_vm0 = vweird.f32 %v3442_v1 }
0x1025   :  { %vm2371_vm2 = vmor %vm2369_vm1, %vm2370_vm0 }
0x1026   :  { %v2366_v15 = vsub.f32 1.0, %v2365_v62 }
0x1028   :  { %v2367_v57 = vmul.f32 %v3442_v1, %v2366_v15 }
0x102a   :  { %v2368_v43 = vadd.f32 %v3442_v1, %v2367_v57 }
0x102c   :  { %v2372_v12 = vsel %vm2371_vm2, %v3442_v1, %v2368_v43 }
0x102d   :  { %v2377_v42 = vsel %vm2374_vm3, %v2376_v46, %v2372_v12 }
0x102e   :  { %v2379_v51 = vmul.f32 2.0, %v2377_v42  ;;  %v2381_v45 = vmul.f32 %v2377_v42, %v7118_v6 }
0x1030   :  { %v3176_v55 = vadd.f32 -1.0, %v2379_v51 }
0x1032   :  { %2383 = vrot.lane.b32.xlu2 %v3176_v55, %s3831_s23 }
0x108c   :  { %v2384_v0 = vpop.permute.xlu2 %2383 }
0x108d   :  { %v2386_v2 = vmul.f32 %v2384_v0, %v2377_v42 }
0x108f   :  { %2388 = vrot.lane.b32.xlu0 %v2386_v2, %s3833_s24 }
0x1101   :  { %v2389_v16 = vpop.permute.xlu0 %2388 }
0x1102   :  { %v6125_v53 = vadd.f32 %v2389_v16, %v2381_v45 }
0x1104   :  { %3443 = vtanh.f32 %v6125_v53  ;;  %2401 = vperm.xlu1 %3222, %v6125_v53  }
0x110a   :  { %v3444_v52 = vpop.eup %3443 }
0x110b   :  { %2394 = vrot.lane.b32.xlu2 %v3444_v52, %s3833_s24 }
0x1165   :  { %v2395_v4 = vpop.permute.xlu2 %2394 }
0x1166   :  { %v2397_v34 = vmul.f32 %v2395_v4, %v2377_v42 }
0x1168   :  { %2582 = vperm.xlu0 %3223, %v2397_v34  }
0x1176   :  { %v6130_v13 = vpop.permute.xlu1 %2401 }
0x1177   :  { %v2405_v11 = vmul.f32 %v6130_v13, %v7119_v47  ;;  %v2406_v19 = vmul.f32 %v6130_v13, %v7120_v27  ;;  %v2407_v30 = vmul.f32 %v6130_v13, %v7121_v29  ;;  %v2408_v60 = vmul.f32 %v6130_v13, %v7122_v48 }
0x1179   :  { %v2409_v9 = vadd.f32 %v2405_v11, %v7123_v20  ;;  %v2410_v35 = vadd.f32 %v2406_v19, %v7124_v7  ;;  %v2411_v22 = vadd.f32 %v2407_v30, %v7125_v36  ;;  %v2412_v24 = vadd.f32 %v2408_v60, %v7126_v41 }
0x117b   :  { %v2493_v25 = vadd.f32 %v2430_v38, %v2409_v9  ;;  %v2494_v28 = vadd.f32 %v2450_v26, %v2410_v35  ;;  %v2495_v1 = vadd.f32 %v2470_v44, %v2411_v22  ;;  %v2496_v62 = vadd.f32 %v2490_v33, %v2412_v24 }
0x117d   :  { %v3177_v15 = vmul.f32 -1.442695, %v2493_v25  ;;  %v3178_v10 = vmul.f32 -1.442695, %v2494_v28  ;;  %v3179_v57 = vmul.f32 -1.442695, %v2495_v1 }
0x117e   :  { %v3180_v14 = vmul.f32 -1.442695, %v2496_v62  ;;  %v3764_v1 = vld [vmem:[#allocation2 + $0x118] sm:$0xff] }
0x117f   :  { %3445 = vpow2.f32 %v3177_v15 }
0x1180   :  { %3447 = vpow2.f32 %v3178_v10 }
0x1181   :  { %3449 = vpow2.f32 %v3179_v57 }
0x1182   :  { %3451 = vpow2.f32 %v3180_v14 }
0x1185   :  { %v3446_v43 = vpop.eup %3445 }
0x1186   :  { %v3448_v46 = vpop.eup %3447  ;;  %v2509_v12 = vadd.f32 1.0, %v3446_v43 }
0x1187   :  { %v3450_v42 = vpop.eup %3449  ;;  %v2510_v51 = vadd.f32 1.0, %v3448_v46 }
0x1188   :  { %v3452_v55 = vpop.eup %3451  ;;  %3453 = vrcp.f32 %v2509_v12  ;;  %v6144_v2 = vadd.f32 1.0, %v3450_v42  ;;  %vm2518_vm10 = vweird.f32 %v2509_v12  ;;  %v2524_v15 = vand.u32 2147483648, %v2509_v12 }
0x1189   :  { %v2512_v0 = vadd.f32 1.0, %v3452_v55  ;;  %3455 = vrcp.f32 %v2510_v51  ;;  %vm2533_vm6 = vweird.f32 %v2510_v51  ;;  %v2537_v26 = vand.u32 2147483647, %v2510_v51 }
0x118a   :  { %v2539_v44 = vand.u32 2147483648, %v2510_v51  ;;  %v2522_v57 = vand.u32 2147483647, %v2509_v12  ;;  %vm2548_vm1 = vweird.f32 %v6144_v2 }
0x118b   :  { %3457 = vrcp.f32 %v2512_v0  ;;  %v2569_v9 = vand.u32 2147483648, %v2512_v0  ;;  %v2567_v24 = vand.u32 2147483647, %v2512_v0  ;;  %vm2563_vm9 = vweird.f32 %v2512_v0 }
0x118c   :  { %3459 = vrcp.f32 %v6144_v2  ;;  %v2540_v46 = vor.u32 1.1754944e-38, %v2539_v44  ;;  %vm2538_vm14 = vcmp.eq.f32.partialorder %v2537_v26, 8.507059e+37  ;;  %vm2523_vm15 = vcmp.eq.f32.partialorder %v2522_v57, 8.507059e+37 }
0x118d   :  { %v2570_v10 = vor.u32 1.1754944e-38, %v2569_v9  ;;  %vm2568_vm12 = vcmp.eq.f32.partialorder %v2567_v24, 8.507059e+37  ;;  %v3758_v9 = vld [vmem:[#allocation2 + $0x1d8] sm:$0xff] }
0x118e   :  { %v3454_v6 = vpop.eup %3453 }
0x118f   :  { %v3456_v45 = vpop.eup %3455  ;;  %v2514_v16 = vmul.f32 %v3454_v6, %v2509_v12  ;;  %vm2519_vm7 = vweird.f32 %v3454_v6 }
0x1190   :  { %v2529_v52 = vmul.f32 %v3456_v45, %v2510_v51  ;;  %vm2534_vm4 = vweird.f32 %v3456_v45  ;;  %vm2520_vm13 = vmor %vm2518_vm10, %vm2519_vm7 }
0x1191   :  { %v3458_v4 = vpop.eup %3457  ;;  %v2515_v34 = vsub.f32 1.0, %v2514_v16  ;;  %vm6151_vm8 = vmor %vm2533_vm6, %vm2534_vm4 }
0x1192   :  { %v2530_v11 = vsub.f32 1.0, %v2529_v52  ;;  %v2559_v19 = vmul.f32 %v3458_v4, %v2512_v0  ;;  %v6147_v30 = vpop.eup %3459  ;;  %vm2564_vm5 = vweird.f32 %v3458_v4  ;;  %v2525_v52 = vor.u32 1.1754944e-38, %v2524_v15  ;;  %v3766_v15 = vld [vmem:[#allocation2 + $0xd8] sm:$0xff] }
0x1193   :  { %v2516_v60 = vmul.f32 %v3454_v6, %v2515_v34  ;;  %v2544_v25 = vmul.f32 %v6147_v30, %v6144_v2  ;;  %vm2565_vm11 = vmor %vm2563_vm9, %vm2564_vm5  ;;  %vm2549_vm0 = vweird.f32 %v6147_v30 }
0x1194   :  { %v2531_v38 = vmul.f32 %v3456_v45, %v2530_v11  ;;  %v2560_v33 = vsub.f32 1.0, %v2559_v19  ;;  %vm2550_vm2 = vmor %vm2548_vm1, %vm2549_vm0 }
0x1195   :  { %v2517_v28 = vadd.f32 %v3454_v6, %v2516_v60  ;;  %v2545_v51 = vsub.f32 1.0, %v2544_v25  ;;  %v3760_v25 = vld [vmem:[#allocation2 + $0x198] sm:$0xff] }
0x1196   :  { %v2532_v35 = vadd.f32 %v3456_v45, %v2531_v38  ;;  %v2561_v22 = vmul.f32 %v3458_v4, %v2560_v33  ;;  %v2552_v38 = vand.u32 2147483647, %v6144_v2  ;;  %v3757_v33 = vld [vmem:[#allocation2 + $0x1f8] sm:$0xff] }
0x1197   :  { %v2521_v55 = vsel %vm2520_vm13, %v3454_v6, %v2517_v28  ;;  %v2546_v19 = vmul.f32 %v6147_v30, %v2545_v51  ;;  %v2554_v6 = vand.u32 2147483648, %v6144_v2  ;;  %v3761_v2 = vld [vmem:[#allocation2 + $0x178] sm:$0xff] }
0x1198   :  { %v2562_v62 = vadd.f32 %v3458_v4, %v2561_v22  ;;  %v2536_v14 = vsel %vm6151_vm8, %v3456_v45, %v2532_v35  ;;  %v2526_v11 = vsel %vm2523_vm15, %v2525_v52, %v2521_v55  ;;  %vm2553_vm3 = vcmp.eq.f32.partialorder %v2552_v38, 8.507059e+37  ;;  %v3759_v22 = vld [vmem:[#allocation2 + $0x1b8] sm:$0xff] }
0x1199   :  { %v2541_v34 = vsel %vm2538_vm14, %v2540_v46, %v2536_v14  ;;  %v2555_v35 = vor.u32 1.1754944e-38, %v2554_v6  ;;  %v3763_v28 = vld [vmem:[#allocation2 + $0x138] sm:$0xff] }
0x119a   :  { %v2566_v43 = vsel %vm2565_vm11, %v3458_v4, %v2562_v62  ;;  %v2575_v12 = vmul.f32 %v2541_v34, %v5940_v17  ;;  %v2547_v4 = vadd.f32 %v6147_v30, %v2546_v19  ;;  %v3765_v62 = vld [vmem:[#allocation2 + $0xf8] sm:$0xff] }
0x119b   :  { %v2571_v42 = vsel %vm2568_vm12, %v2570_v10, %v2566_v43 }
0x119c   :  { %v2573_v16 = vmul.f32 2.0, %v2571_v42  ;;  %v2551_v17 = vsel %vm2550_vm2, %v6147_v30, %v2547_v4  ;;  %v3762_v30 = vld [vmem:[#allocation2 + $0x158] sm:$0xff] }
0x119d   :  { %v2556_v26 = vsel %vm2553_vm3, %v2555_v35, %v2551_v17 }
0x119e   :  { %v3181_v0 = vadd.f32 -1.0, %v2573_v16 }
0x11a0   :  { %v2576_v60 = vmul.f32 %v3181_v0, %v2526_v11 }
0x11a2   :  { %v6159_v45 = vadd.f32 %v2576_v60, %v2575_v12 }
0x11a4   :  { %3461 = vtanh.f32 %v6159_v45  ;;  %2602 = vmatmul.f32.vlgmr.msra.gmra.mxu1 %v6159_v45 }
0x11a5   :  { %2945 = vmatpush.msra.mxu1 %v3757_v33 }
0x11a7   :  { %2946 = vmatpush.msra.mxu1 %v3758_v9 }
0x11a9   :  { %2947 = vmatpush.msra.mxu1 %v3759_v22 }
0x11aa   :  { %v3462_v24 = vpop.eup %3461 }
0x11ab   :  { %v2579_v44 = vmul.f32 %v3462_v24, %v2556_v26  ;;  %2948 = vmatpush.msra.mxu1 %v3760_v25 }
0x11ad   :  { %2676 = vmatmul.f32.vlgmr.msra.gmra.mxu2 %v2579_v44  ;;  %2696 = vmatmul.f32.vlgmr.msra.gmra.mxu3 %v2579_v44 }
0x11ae   :  { %2716 = vmatmul.f32.vlgmr.msrb.gmra.mxu0 %v2579_v44  ;;  %2736 = vmatmul.f32.vlgmr.msrb.gmra.mxu1 %v2579_v44 }
0x11af   :  { %2949 = vmatpush.msra.mxu1 %v3761_v2  ;;  %3036 = vmatpush.msra.mxu2 %v5959_v49  ;;  %v3767_v49 = vld [vmem:[#allocation2 + $0xb8] sm:$0xff] }
0x11b1   :  { %2950 = vmatpush.msra.mxu1 %v3762_v30  ;;  %3037 = vmatpush.msra.mxu2 %v5968_v32  ;;  %v3768_v32 = vld [vmem:[#allocation2 + $0x98] sm:$0xff] }
0x11b3   :  { %2951 = vmatpush.msra.mxu1 %v3763_v28  ;;  %3038 = vmatpush.msra.mxu2 %v5977_v40  ;;  %v3769_v40 = vld [vmem:[#allocation2 + $0x78] sm:$0xff] }
0x11b5   :  { %2952 = vmatpush.msra.mxu1 %v3764_v1  ;;  %3039 = vmatpush.msra.mxu2 %v5986_v23  ;;  %v3770_v23 = vld [vmem:[#allocation2 + $0x58] sm:$0xff] }
0x11b7   :  { %2953 = vmatpush.msra.mxu1 %v3765_v62  ;;  %3040 = vmatpush.msra.mxu2 %v5995_v5  ;;  %v3771_v5 = vld [vmem:[#allocation2 + $0x38] sm:$0xff] }
0x11b9   :  { %2954 = vmatpush.msra.mxu1 %v3766_v15  ;;  %3041 = vmatpush.msra.mxu2 %v6004_v31  ;;  %v3772_v31 = vld [vmem:[#allocation2 + $0x18] sm:$0xff] }
0x11bb   :  { %2955 = vmatpush.msra.mxu1 %v3767_v49  ;;  %3042 = vmatpush.msra.mxu2 %v6013_v3 }
0x11bd   :  { %2956 = vmatpush.msra.mxu1 %v3768_v32  ;;  %3043 = vmatpush.msra.mxu2 %v6022_v63 }
0x11bf   :  { %2957 = vmatpush.msra.mxu1 %v3769_v40  ;;  %3044 = vmatpush.msra.mxu2 %v6031_v54 }
0x11c1   :  { %2958 = vmatpush.msra.mxu1 %v3770_v23  ;;  %3045 = vmatpush.msra.mxu2 %v6040_v59 }
0x11c3   :  { %2959 = vmatpush.msra.mxu1 %v3771_v5  ;;  %3046 = vmatpush.msra.mxu2 %v6049_v39 }
0x11c5   :  { %2960 = vmatpush.msra.mxu1 %v3772_v31  ;;  %3047 = vmatpush.msra.mxu2 %v6059_v37 }
0x11c7   :  { %3048 = vmatpush.msra.mxu2 %v6068_v8 }
0x11c9   :  { %3049 = vmatpush.msra.mxu2 %v6077_v18 }
0x11cb   :  { %3050 = vmatpush.msra.mxu2 %v6086_v58 }
0x11cd   :  { %3051 = vmatpush.msra.mxu2 %v6095_v61 }
0x11da   :  { %v2583_v3 = vpop.permute.xlu0 %2582 }
0x11db   :  { %v2585_v63 = vmul.f32 %v6113_v50, %v2583_v3 }
0x1221   :  { %v2603_v54 = vpop.f32.mrf.mxu1 }
0x1222   :  { %v2604_v59 = vadd.f32 %v2603_v54, %v2585_v63 }
0x1224   :  { %v2606_v10 = vadd.f32 %v6119_v21, %v2604_v59 }
0x1226   :  { %v3182_v39 = vmul.f32 -1.442695, %v2606_v10 }
0x1228   :  { %3463 = vpow2.f32 %v3182_v39 }
0x122b   :  { %v2717_v35 = vpop.f32.mrf.mxu0  ;;  %v2737_v22 = vpop.f32.mrf.mxu1 }
0x122e   :  { %v3464_v57 = vpop.eup %3463 }
0x122f   :  { %v2610_v14 = vadd.f32 1.0, %v3464_v57 }
0x1230   :  { %v2677_v2 = vpop.f32.mrf.mxu2  ;;  %v2697_v30 = vpop.f32.mrf.mxu3 }
0x1231   :  { %3465 = vrcp.f32 %v2610_v14  ;;  %v2622_v18 = vand.u32 2147483648, %v2610_v14  ;;  %v2620_v58 = vand.u32 2147483647, %v2610_v14  ;;  %vm2616_vm5 = vweird.f32 %v2610_v14 }
0x1233   :  { %v2623_v42 = vor.u32 1.1754944e-38, %v2622_v18  ;;  %vm2621_vm7 = vcmp.eq.f32.partialorder %v2620_v58, 8.507059e+37 }
0x1237   :  { %v3466_v37 = vpop.eup %3465 }
0x1238   :  { %v2612_v8 = vmul.f32 %v3466_v37, %v2610_v14  ;;  %vm2617_vm4 = vweird.f32 %v3466_v37 }
0x1239   :  { %vm2618_vm6 = vmor %vm2616_vm5, %vm2617_vm4 }
0x123a   :  { %v2613_v43 = vsub.f32 1.0, %v2612_v8 }
0x123c   :  { %v2614_v46 = vmul.f32 %v3466_v37, %v2613_v43 }
0x123e   :  { %v2615_v61 = vadd.f32 %v3466_v37, %v2614_v46 }
0x1240   :  { %v2619_v51 = vsel %vm2618_vm6, %v3466_v37, %v2615_v61 }
0x1241   :  { %v2624_v55 = vsel %vm2621_vm7, %v2623_v42, %v2619_v51 }
0x1242   :  { %v2626_v16 = vmul.f32 2.0, %v2624_v55  ;;  %v2628_v11 = vmul.f32 %v2624_v55, %v6125_v53 }
0x1244   :  { %v3183_v52 = vadd.f32 -1.0, %v2626_v16 }
0x1246   :  { %2630 = vrot.lane.b32.xlu1 %v3183_v52, %s3831_s23 }
0x12b8   :  { %v2631_v34 = vpop.permute.xlu1 %2630 }
0x12b9   :  { %v2633_v0 = vmul.f32 %v2631_v34, %v2624_v55 }
0x12bb   :  { %2635 = vrot.lane.b32.xlu2 %v2633_v0, %s3833_s24 }
0x1315   :  { %v2636_v19 = vpop.permute.xlu2 %2635 }
0x1316   :  { %v6190_v12 = vadd.f32 %v2636_v19, %v2628_v11 }
0x1318   :  { %3467 = vtanh.f32 %v6190_v12  ;;  %2648 = vperm.xlu1 %3222, %v6190_v12  }
0x131e   :  { %v3468_v60 = vpop.eup %3467 }
0x131f   :  { %2641 = vrot.lane.b32.xlu2 %v3468_v60, %s3833_s24 }
0x1379   :  { %v2642_v4 = vpop.permute.xlu2 %2641 }
0x137a   :  { %v2644_v6 = vmul.f32 %v2642_v4, %v2624_v55 }
0x137c   :  { %2829 = vperm.xlu0 %3223, %v2644_v6  }
0x1384   :  { %3224 = vset.pattern.permute.xlu0 %v7082_v56 }
0x138a   :  { %v6196_v38 = vpop.permute.xlu1 %2648 }
0x138b   :  { %v2652_v53 = vmul.f32 %v6196_v38, %v7119_v47  ;;  %v2653_v33 = vmul.f32 %v6196_v38, %v7120_v27  ;;  %v2654_v17 = vmul.f32 %v6196_v38, %v7121_v29  ;;  %v2655_v9 = vmul.f32 %v6196_v38, %v7122_v48 }
0x138d   :  { %v2656_v24 = vadd.f32 %v2652_v53, %v7123_v20  ;;  %v2657_v26 = vadd.f32 %v2653_v33, %v7124_v7  ;;  %v2658_v44 = vadd.f32 %v2654_v17, %v7125_v36  ;;  %v2659_v25 = vadd.f32 %v2655_v9, %v7126_v41 }
0x138f   :  { %v2740_v28 = vadd.f32 %v2677_v2, %v2656_v24  ;;  %v2741_v1 = vadd.f32 %v2697_v30, %v2657_v26  ;;  %v2742_v62 = vadd.f32 %v2717_v35, %v2658_v44  ;;  %v2743_v15 = vadd.f32 %v2737_v22, %v2659_v25 }
0x1391   :  { %v3184_v29 = vmul.f32 -1.442695, %v2740_v28  ;;  %v3185_v49 = vmul.f32 -1.442695, %v2741_v1  ;;  %v3186_v32 = vmul.f32 -1.442695, %v2742_v62 }
0x1392   :  { %v3187_v40 = vmul.f32 -1.442695, %v2743_v15 }
0x1393   :  { %3469 = vpow2.f32 %v3184_v29 }
0x1394   :  { %3471 = vpow2.f32 %v3185_v49 }
0x1395   :  { %3473 = vpow2.f32 %v3186_v32 }
0x1396   :  { %3475 = vpow2.f32 %v3187_v40 }
0x1399   :  { %v3470_v23 = vpop.eup %3469 }
0x139a   :  { %v3472_v5 = vpop.eup %3471  ;;  %v2756_v31 = vadd.f32 1.0, %v3470_v23 }
0x139b   :  { %v3474_v36 = vpop.eup %3473  ;;  %v2757_v3 = vadd.f32 1.0, %v3472_v5 }
0x139c   :  { %v3476_v63 = vpop.eup %3475  ;;  %3477 = vrcp.f32 %v2756_v31  ;;  %v6210_v59 = vadd.f32 1.0, %v3474_v36  ;;  %vm2765_vm14 = vweird.f32 %v2756_v31  ;;  %v2771_v6 = vand.u32 2147483648, %v2756_v31 }
0x139d   :  { %v2759_v54 = vadd.f32 1.0, %v3476_v63  ;;  %3479 = vrcp.f32 %v2757_v3  ;;  %vm2780_vm10 = vweird.f32 %v2757_v3  ;;  %v2784_v34 = vand.u32 2147483647, %v2757_v3 }
0x139e   :  { %v2786_v0 = vand.u32 2147483648, %v2757_v3  ;;  %v2769_v33 = vand.u32 2147483647, %v2756_v31  ;;  %v2772_v25 = vor.u32 1.1754944e-38, %v2771_v6  ;;  %v2801_v32 = vand.u32 2147483648, %v6210_v59  ;;  %v7131_v6 = vld [vmem:[#allocation34_spill] sm:$0xff] }
0x139f   :  { %3481 = vrcp.f32 %v2759_v54  ;;  %v2816_v51 = vand.u32 2147483648, %v2759_v54  ;;  %v2814_v52 = vand.u32 2147483647, %v2759_v54  ;;  %vm2810_vm13 = vweird.f32 %v2759_v54 }
0x13a0   :  { %3483 = vrcp.f32 %v6210_v59  ;;  %v2787_v35 = vor.u32 1.1754944e-38, %v2786_v0  ;;  %vm2785_vm2 = vcmp.eq.f32.partialorder %v2784_v34, 8.507059e+37  ;;  %vm2770_vm3 = vcmp.eq.f32.partialorder %v2769_v33, 8.507059e+37  ;;  %v7133_v33 = vld [vmem:[#allocation26_spill] sm:$0xff] }
0x13a1   :  { %v2817_v53 = vor.u32 1.1754944e-38, %v2816_v51  ;;  %vm2815_vm0 = vcmp.eq.f32.partialorder %v2814_v52, 8.507059e+37  ;;  %vm2795_vm5 = vweird.f32 %v6210_v59  ;;  %v2799_v40 = vand.u32 2147483647, %v6210_v59 }
0x13a2   :  { %v3478_v10 = vpop.eup %3477  ;;  %v2802_v5 = vor.u32 1.1754944e-38, %v2801_v32 }
0x13a3   :  { %v3480_v39 = vpop.eup %3479  ;;  %v2761_v57 = vmul.f32 %v3478_v10, %v2756_v31  ;;  %vm2766_vm11 = vweird.f32 %v3478_v10  ;;  %vm2800_vm7 = vcmp.eq.f32.partialorder %v2799_v40, 8.507059e+37 }
0x13a4   :  { %v2776_v14 = vmul.f32 %v3480_v39, %v2757_v3  ;;  %vm2781_vm8 = vweird.f32 %v3480_v39  ;;  %vm2767_vm1 = vmor %vm2765_vm14, %vm2766_vm11 }
0x13a5   :  { %v3482_v37 = vpop.eup %3481  ;;  %v2762_v8 = vsub.f32 1.0, %v2761_v57  ;;  %vm6214_vm12 = vmor %vm2780_vm10, %vm2781_vm8 }
0x13a6   :  { %v2777_v43 = vsub.f32 1.0, %v2776_v14  ;;  %v2806_v18 = vmul.f32 %v3482_v37, %v2759_v54  ;;  %v3484_v46 = vpop.eup %3483  ;;  %vm2811_vm9 = vweird.f32 %v3482_v37 }
0x13a7   :  { %v2763_v58 = vmul.f32 %v3478_v10, %v2762_v8  ;;  %v2791_v11 = vmul.f32 %v3484_v46, %v6210_v59  ;;  %vm2812_vm15 = vmor %vm2810_vm13, %vm2811_vm9  ;;  %vm2796_vm4 = vweird.f32 %v3484_v46 }
0x13a8   :  { %v2778_v61 = vmul.f32 %v3480_v39, %v2777_v43  ;;  %v2807_v42 = vsub.f32 1.0, %v2806_v18  ;;  %vm2797_vm6 = vmor %vm2795_vm5, %vm2796_vm4 }
0x13a9   :  { %v2764_v19 = vadd.f32 %v3478_v10, %v2763_v58  ;;  %v2792_v24 = vsub.f32 1.0, %v2791_v11 }
0x13aa   :  { %v2779_v55 = vadd.f32 %v3480_v39, %v2778_v61  ;;  %v2808_v16 = vmul.f32 %v3482_v37, %v2807_v42 }
0x13ab   :  { %v2768_v26 = vsel %vm2767_vm1, %v3478_v10, %v2764_v19  ;;  %v2793_v1 = vmul.f32 %v3484_v46, %v2792_v24 }
0x13ac   :  { %v2809_v4 = vadd.f32 %v3482_v37, %v2808_v16  ;;  %v2783_v17 = vsel %vm6214_vm12, %v3480_v39, %v2779_v55  ;;  %v2773_v28 = vsel %vm2770_vm3, %v2772_v25, %v2768_v26 }
0x13ad   :  { %v2788_v2 = vsel %vm2785_vm2, %v2787_v35, %v2783_v17  ;;  %v2794_v49 = vadd.f32 %v3484_v46, %v2793_v1 }
0x13ae   :  { %v2813_v9 = vsel %vm2812_vm15, %v3482_v37, %v2809_v4  ;;  %v2822_v62 = vmul.f32 %v2788_v2, %v6159_v45 }
0x13af   :  { %v2818_v22 = vsel %vm2815_vm0, %v2817_v53, %v2813_v9  ;;  %v2798_v23 = vsel %vm2797_vm6, %v3484_v46, %v2794_v49  ;;  %v7132_v53 = vld [vmem:[#allocation50_spill] sm:$0xff] }
0x13b0   :  { %v2820_v44 = vmul.f32 2.0, %v2818_v22  ;;  %v2803_v31 = vsel %vm2800_vm7, %v2802_v5, %v2798_v23 }
0x13b2   :  { %v3188_v30 = vadd.f32 -1.0, %v2820_v44 }
0x13b4   :  { %v2823_v15 = vmul.f32 %v3188_v30, %v2773_v28 }
0x13b6   :  { %v6221_v29 = vadd.f32 %v2823_v15, %v2822_v62 }
0x13b8   :  { %3485 = vtanh.f32 %v6221_v29  ;;  %2849 = vmatmul.f32.vlgmr.msrb.gmra.mxu2 %v6221_v29 }
0x13be   :  { %v3486_v45 = vpop.eup %3485 }
0x13bf   :  { %v2826_v36 = vmul.f32 %v3486_v45, %v2803_v31 }
0x13c1   :  { %2921 = vmatmul.f32.vlgmr.msrb.gmra.mxu3 %v2826_v36  ;;  %2941 = vmatmul.f32.vlgmr.msra.gmra.mxu0 %v2826_v36 }
0x13c2   :  { %2961 = vmatmul.f32.vlgmr.msra.gmra.mxu1 %v2826_v36 }
0x13ee   :  { %v2830_v3 = vpop.permute.xlu0 %2829 }
0x13ef   :  { %v2832_v63 = vmul.f32 %v6113_v50, %v2830_v3 }
0x143b   :  { %v2850_v54 = vpop.f32.mrf.mxu2 }
0x143c   :  { %v2851_v10 = vadd.f32 %v2850_v54, %v2832_v63 }
0x143e   :  { %v2853_v39 = vadd.f32 %v6119_v21, %v2851_v10  ;;  %v2942_v22 = vpop.f32.mrf.mxu0 }
0x143f   :  { %v2962_v25 = vpop.f32.mrf.mxu1 }
0x1440   :  { %v3189_v57 = vmul.f32 -1.442695, %v2853_v39 }
0x1442   :  { %3487 = vpow2.f32 %v3189_v57 }
0x1444   :  { %v2922_v2 = vpop.f32.mrf.mxu3 }
0x1448   :  { %v3488_v59 = vpop.eup %3487 }
0x1449   :  { %v2857_v14 = vadd.f32 1.0, %v3488_v59 }
0x144b   :  { %3489 = vrcp.f32 %v2857_v14  ;;  %v2869_v18 = vand.u32 2147483648, %v2857_v14  ;;  %v2867_v58 = vand.u32 2147483647, %v2857_v14  ;;  %vm2863_vm9 = vweird.f32 %v2857_v14 }
0x144d   :  { %v2870_v42 = vor.u32 1.1754944e-38, %v2869_v18  ;;  %vm2868_vm11 = vcmp.eq.f32.partialorder %v2867_v58, 8.507059e+37 }
0x1451   :  { %v3490_v37 = vpop.eup %3489 }
0x1452   :  { %v2859_v8 = vmul.f32 %v3490_v37, %v2857_v14  ;;  %vm2864_vm8 = vweird.f32 %v3490_v37 }
0x1453   :  { %vm2865_vm10 = vmor %vm2863_vm9, %vm2864_vm8 }
0x1454   :  { %v2860_v43 = vsub.f32 1.0, %v2859_v8 }
0x1456   :  { %v2861_v46 = vmul.f32 %v3490_v37, %v2860_v43 }
0x1458   :  { %v2862_v61 = vadd.f32 %v3490_v37, %v2861_v46 }
0x145a   :  { %v2866_v51 = vsel %vm2865_vm10, %v3490_v37, %v2862_v61 }
0x145b   :  { %v2871_v55 = vsel %vm2868_vm11, %v2870_v42, %v2866_v51 }
0x145c   :  { %v2873_v16 = vmul.f32 2.0, %v2871_v55  ;;  %v2875_v11 = vmul.f32 %v2871_v55, %v6190_v12 }
0x145e   :  { %v3190_v52 = vadd.f32 -1.0, %v2873_v16 }
0x1460   :  { %2877 = vrot.lane.b32.xlu1 %v3190_v52, %s3831_s23 }
0x14d2   :  { %v2878_v34 = vpop.permute.xlu1 %2877 }
0x14d3   :  { %v2880_v0 = vmul.f32 %v2878_v34, %v2871_v55 }
0x14d5   :  { %2882 = vrot.lane.b32.xlu2 %v2880_v0, %s3833_s24 }
0x152f   :  { %v2883_v19 = vpop.permute.xlu2 %2882 }
0x1530   :  { %v6233_v60 = vadd.f32 %v2883_v19, %v2875_v11 }
0x1532   :  { %3491 = vtanh.f32 %v6233_v60  ;;  %2895 = vperm.xlu0 %3224, %v6233_v60  }
0x1538   :  { %v3492_v4 = vpop.eup %3491 }
0x1539   :  { %2888 = vrot.lane.b32.xlu1 %v3492_v4, %s3833_s24 }
0x153a   :  { %397 = vperm.xlu0 %3224, %v7131_v6  }
0x1542   :  { %1150 = vperm.xlu0 %3224, %v7132_v53  }
0x154a   :  { %1903 = vperm.xlu0 %3224, %v7133_v33  }
0x15a4   :  { %v6241_v17 = vpop.permute.xlu0 %2895 }
0x15a5   :  { %v2899_v12 = vmul.f32 %v6241_v17, %v7119_v47  ;;  %v2900_v9 = vmul.f32 %v6241_v17, %v7120_v27  ;;  %v2901_v35 = vmul.f32 %v6241_v17, %v7122_v48 }
0x15a7   :  { %v2902_v24 = vadd.f32 %v2899_v12, %v7123_v20  ;;  %v2903_v26 = vadd.f32 %v2900_v9, %v7124_v7  ;;  %v2904_v44 = vadd.f32 %v2901_v35, %v7126_v41 }
0x15a9   :  { %v2965_v30 = vadd.f32 %v2922_v2, %v2902_v24  ;;  %v2966_v28 = vadd.f32 %v2942_v22, %v2903_v26  ;;  %v2967_v1 = vadd.f32 %v2962_v25, %v2904_v44 }
0x15ab   :  { %v3191_v62 = vmul.f32 -1.442695, %v2965_v30  ;;  %v3192_v47 = vmul.f32 -1.442695, %v2966_v28  ;;  %v3193_v15 = vmul.f32 -1.442695, %v2967_v1  ;;  %v2889_v49 = vpop.permute.xlu1 %2888 }
0x15ac   :  { %v2891_v27 = vmul.f32 %v2889_v49, %v2871_v55 }
0x15ad   :  { %3493 = vpow2.f32 %v3191_v62 }
0x15ae   :  { %3495 = vpow2.f32 %v3192_v47  ;;  %3032 = vperm.xlu2 %3225, %v2891_v27  }
0x15af   :  { %3497 = vpow2.f32 %v3193_v15 }
0x15b3   :  { %v3494_v48 = vpop.eup %3493 }
0x15b4   :  { %v3496_v20 = vpop.eup %3495  ;;  %v2977_v32 = vadd.f32 1.0, %v3494_v48 }
0x15b5   :  { %v3498_v7 = vpop.eup %3497  ;;  %v2978_v40 = vadd.f32 1.0, %v3496_v20 }
0x15b6   :  { %v2979_v41 = vadd.f32 1.0, %v3498_v7  ;;  %3499 = vrcp.f32 %v2977_v32  ;;  %3226 = vset.pattern.permute.xlu2 %v7082_v56  ;;  %vm2985_vm2 = vweird.f32 %v2977_v32  ;;  %v2991_v61 = vand.u32 2147483648, %v2977_v32  ;;  %v7137_v7 = vld [vmem:[#allocation36_spill] sm:$0xff] }
0x15b7   :  { %3501 = vrcp.f32 %v2978_v40  ;;  %vm3000_vm14 = vweird.f32 %v2978_v40  ;;  %v3004_v56 = vand.u32 2147483647, %v2978_v40  ;;  %v3006_v43 = vand.u32 2147483648, %v2978_v40 }
0x15b8   :  { %3503 = vrcp.f32 %v2979_v41  ;;  %v3021_v59 = vand.u32 2147483648, %v2979_v41  ;;  %v3019_v37 = vand.u32 2147483647, %v2979_v41  ;;  %vm3015_vm1 = vweird.f32 %v2979_v41 }
0x15b9   :  { %v2989_v51 = vand.u32 2147483647, %v2977_v32  ;;  %v3007_v52 = vor.u32 1.1754944e-38, %v3006_v43  ;;  %vm3005_vm6 = vcmp.eq.f32.partialorder %v3004_v56, 8.507059e+37  ;;  %v2992_v19 = vor.u32 1.1754944e-38, %v2991_v61  ;;  %v7140_v61 = vld [vmem:[#allocation66_spill] sm:$0xff] }
0x15ba   :  { %v3022_v42 = vor.u32 1.1754944e-38, %v3021_v59  ;;  %vm3020_vm4 = vcmp.eq.f32.partialorder %v3019_v37, 8.507059e+37 }
0x15bb   :  { %vm2990_vm7 = vcmp.eq.f32.partialorder %v2989_v51, 8.507059e+37 }
0x15bc   :  { %v3500_v23 = vpop.eup %3499 }
0x15bd   :  { %v3502_v5 = vpop.eup %3501  ;;  %v2981_v45 = vmul.f32 %v3500_v23, %v2977_v32  ;;  %vm2986_vm15 = vweird.f32 %v3500_v23  ;;  %v7136_v32 = vld [vmem:[#allocation45_spill] sm:$0xff] }
0x15be   :  { %v3504_v31 = vpop.eup %3503  ;;  %v2996_v36 = vmul.f32 %v3502_v5, %v2978_v40  ;;  %vm3001_vm12 = vweird.f32 %v3502_v5  ;;  %vm2987_vm5 = vmor %vm2985_vm2, %vm2986_vm15 }
0x15bf   :  { %v2982_v3 = vsub.f32 1.0, %v2981_v45  ;;  %v3011_v63 = vmul.f32 %v3504_v31, %v2979_v41  ;;  %vm3016_vm13 = vweird.f32 %v3504_v31  ;;  %vm6253_vm0 = vmor %vm3000_vm14, %vm3001_vm12 }
0x15c0   :  { %v2997_v54 = vsub.f32 1.0, %v2996_v36  ;;  %vm3017_vm3 = vmor %vm3015_vm1, %vm3016_vm13 }
0x15c1   :  { %v2983_v10 = vmul.f32 %v3500_v23, %v2982_v3  ;;  %v3012_v39 = vsub.f32 1.0, %v3011_v63  ;;  %v152_v3 = vlaneseq  ;;  %v398_v63 = vpop.permute.xlu0 %397 }
0x15c2   :  { %v2998_v57 = vmul.f32 %v3502_v5, %v2997_v54 }
0x15c3   :  { %v3013_v14 = vmul.f32 %v3504_v31, %v3012_v39  ;;  %v2984_v18 = vadd.f32 %v3500_v23, %v2983_v10  ;;  %v153_v54 = vand.u32 127, %v152_v3 }
0x15c4   :  { %v2999_v8 = vadd.f32 %v3502_v5, %v2998_v57 }
0x15c5   :  { %v3014_v58 = vadd.f32 %v3504_v31, %v3013_v14  ;;  %v2988_v0 = vsel %vm2987_vm5, %v3500_v23, %v2984_v18  ;;  %v7138_v23 = vld [vmem:[#allocation30_spill] sm:$0xff]  ;;  %vm394_vm12 = vcmp.eq.s32.totalorder %v153_v54, 0  ;;  %vm645_vm13 = vcmp.eq.s32.totalorder %v153_v54, 1 }
0x15c6   :  { %v3003_v55 = vsel %vm6253_vm0, %v3502_v5, %v2999_v8  ;;  %v2993_v53 = vsel %vm2990_vm7, %v2992_v19, %v2988_v0  ;;  %v7139_v5 = vld [vmem:[#allocation27_spill] sm:$0xff]  ;;  %vm896_vm14 = vcmp.eq.s32.totalorder %v153_v54, 2  ;;  %v400_v57 = vsel %vm394_vm12, %v398_v63, 0.0 }
0x15c7   :  { %v3018_v16 = vsel %vm3017_vm3, %v3504_v31, %v3014_v58  ;;  %v3008_v4 = vsel %vm3005_vm6, %v3007_v52, %v3003_v55  ;;  %vm1147_vm15 = vcmp.eq.s32.totalorder %v153_v54, 3  ;;  %vm1398_vm0 = vcmp.eq.s32.totalorder %v153_v54, 4 }
0x15c8   :  { %v3023_v34 = vsel %vm3020_vm4, %v3022_v42, %v3018_v16  ;;  %v3027_v33 = vmul.f32 %v3008_v4, %v6221_v29  ;;  %vm1649_vm1 = vcmp.eq.s32.totalorder %v153_v54, 5  ;;  %vm1900_vm2 = vcmp.eq.s32.totalorder %v153_v54, 6 }
0x15c9   :  { %v3025_v11 = vmul.f32 2.0, %v3023_v34  ;;  %v1151_v59 = vpop.permute.xlu0 %1150  ;;  %vm2151_vm3 = vcmp.eq.s32.totalorder %v153_v54, 7  ;;  %vm2398_vm4 = vcmp.eq.s32.totalorder %v153_v54, 8  ;;  %vm2645_vm5 = vcmp.eq.s32.totalorder %v153_v54, 9 }
0x15ca   :  { %vm2892_vm6 = vcmp.eq.s32.totalorder %v153_v54, 10  ;;  %vm3089_vm7 = vcmp.eq.s32.totalorder %v153_v54, 11 }
0x15cb   :  { %v3194_v6 = vadd.f32 -1.0, %v3025_v11 }
0x15cd   :  { %v3028_v12 = vmul.f32 %v3194_v6, %v2993_v53 }
0x15cf   :  { %v3029_v9 = vadd.f32 %v3028_v12, %v3027_v33 }
0x15d1   :  { %3052 = vmatmul.f32.vlgmr.msra.gmra.mxu2 %v3029_v9  ;;  %v1904_v46 = vpop.permute.xlu0 %1903 }
0x1608   :  { %v3033_v35 = vpop.permute.xlu2 %3032 }
0x1609   :  { %v3035_v22 = vmul.f32 %v6113_v50, %v3033_v35 }
0x1654   :  { %v3053_v24 = vpop.f32.mrf.mxu2 }
0x1655   :  { %v3054_v26 = vadd.f32 %v3053_v24, %v3035_v22 }
0x1657   :  { %v3056_v44 = vadd.f32 %v6119_v21, %v3054_v26 }
0x1659   :  { %v3195_v25 = vmul.f32 -1.442695, %v3056_v44 }
0x165b   :  { %3505 = vpow2.f32 %v3195_v25 }
0x1661   :  { %v3506_v2 = vpop.eup %3505 }
0x1662   :  { %v3060_v30 = vadd.f32 1.0, %v3506_v2 }
0x1664   :  { %3507 = vrcp.f32 %v3060_v30  ;;  %v3072_v47 = vand.u32 2147483648, %v3060_v30  ;;  %v3070_v15 = vand.u32 2147483647, %v3060_v30  ;;  %vm3066_vm9 = vweird.f32 %v3060_v30 }
0x1666   :  { %v3073_v50 = vor.u32 1.1754944e-38, %v3072_v47  ;;  %vm3071_vm11 = vcmp.eq.f32.partialorder %v3070_v15, 8.507059e+37 }
0x166a   :  { %v3508_v28 = vpop.eup %3507 }
0x166b   :  { %v3062_v1 = vmul.f32 %v3508_v28, %v3060_v30  ;;  %vm3067_vm8 = vweird.f32 %v3508_v28 }
0x166c   :  { %vm3068_vm10 = vmor %vm3066_vm9, %vm3067_vm8 }
0x166d   :  { %v3063_v62 = vsub.f32 1.0, %v3062_v1 }
0x166f   :  { %v3064_v29 = vmul.f32 %v3508_v28, %v3063_v62 }
0x1671   :  { %v3065_v49 = vadd.f32 %v3508_v28, %v3064_v29 }
0x1673   :  { %v3069_v27 = vsel %vm3068_vm10, %v3508_v28, %v3065_v49 }
0x1674   :  { %v3074_v48 = vsel %vm3071_vm11, %v3073_v50, %v3069_v27 }
0x1675   :  { %v3076_v21 = vmul.f32 2.0, %v3074_v48  ;;  %v3078_v45 = vmul.f32 %v3074_v48, %v6233_v60 }
0x1677   :  { %v3196_v20 = vadd.f32 -1.0, %v3076_v21 }
0x1679   :  { %3080 = vrot.lane.b32.xlu1 %v3196_v20, %s3831_s23 }
0x1681   :  { %648 = vperm.xlu1 %3222, %v7136_v32  }
0x1689   :  { %1401 = vperm.xlu1 %3222, %v7137_v7  }
0x16eb   :  { %v3081_v40 = vpop.permute.xlu1 %3080 }
0x16ec   :  { %v3083_v41 = vmul.f32 %v3081_v40, %v3074_v48 }
0x16ee   :  { %3085 = vrot.lane.b32.xlu2 %v3083_v41, %s3833_s24 }
0x16f3   :  { %v649_v39 = vpop.permute.xlu1 %648 }
0x16f4   :  { %v651_v14 = vsel %vm645_vm13, %v649_v39, %v400_v57 }
0x16f6   :  { %899 = vperm.xlu2 %3226, %v7138_v23  }
0x16fb   :  { %v1402_v56 = vpop.permute.xlu1 %1401 }
0x16fe   :  { %1652 = vperm.xlu2 %3226, %v7139_v5  }
0x1748   :  { %v3086_v31 = vpop.permute.xlu2 %3085 }
0x1749   :  { %v3088_v36 = vadd.f32 %v3086_v31, %v3078_v45 }
0x174b   :  { %3092 = vperm.xlu1 %3222, %v3088_v36  }
0x1750   :  { %v900_v10 = vpop.permute.xlu2 %899 }
0x1751   :  { %v902_v37 = vsel %vm896_vm14, %v900_v10, %v651_v14 }
0x1752   :  { %v1153_v8 = vsel %vm1147_vm15, %v1151_v59, %v902_v37 }
0x1753   :  { %v1404_v43 = vsel %vm1398_vm0, %v1402_v56, %v1153_v8 }
0x1758   :  { %v1653_v60 = vpop.permute.xlu2 %1652 }
0x1759   :  { %v1655_v18 = vsel %vm1649_vm1, %v1653_v60, %v1404_v43 }
0x175a   :  { %v1906_v58 = vsel %vm1900_vm2, %v1904_v46, %v1655_v18 }
0x175b   :  { %v2157_v42 = vsel %vm2151_vm3, %v7140_v61, %v1906_v58 }
0x175c   :  { %v2404_v51 = vsel %vm2398_vm4, %v6130_v13, %v2157_v42 }
0x175d   :  { %v2651_v55 = vsel %vm2645_vm5, %v6196_v38, %v2404_v51 }
0x175e   :  { %v2898_v16 = vsel %vm2892_vm6, %v6241_v17, %v2651_v55 }
0x17bd   :  { %v3093_v52 = vpop.permute.xlu1 %3092 }
0x17be   :  { %v3095_v34 = vsel %vm3089_vm7, %v3093_v52, %v2898_v16 }
0x17bf   :  { %3096 = vst [vmem:[#allocation5] sm:$0xff] %v3095_v34 }
0x17c0   :  { %3107 = dma.vmem_to_hbm [thread:$0]  %s3103_s6, 128, %s3105_s13, [#allocation4]  }
0x17c1   :  { %3823 = dma.done.wait [#allocation4], 128  }
0x17c2   :  { %3824 = vsyncadd [#allocation4], 4294967168 }
0x17c3   :  { %3112 = vsyncpa [#allocation3], 1 }
0x17c4   :  { %3113 = vsyncpa [#allocation4], 1 }

</bundles_post_ra>
